<compile_context>
chip_gen: v5e
topology: v5e:2x2
jax: 0.10.0
libtpu: 0.0.40
codegen_flags: <defaults>
</compile_context>

<pallas_src>
import numpy as np
import jax
import jax.numpy as jnp
from jax.experimental import pallas as pl
from jax.experimental.pallas import tpu as pltpu

# ---------------- small, deterministic config ----------------
B = 2            # batch
CX = 3           # state channels (final_layer has out_channels=3, fed back each step)
CP = 1           # parameter-field channels
CIN = CX + CP    # model_args['in_channels'] = dit in/out channels
H = W = 16
T = 4            # ft has T time points -> T-1 autoregressive steps


def _make_rollout_kernel(n_steps, cx, cin, h, w):
    hw = h * w

    def kernel(ft_ref, wt_ref, wd_ref, wf_ref, mask_ref, x0_ref, pars_ref, o_ref):
        """Full rollout for one batch row.

        refs:
          ft_ref   (B, T)              SMEM  time conditioning
          wt_ref   (CIN, 1)            VMEM  time-embedding weight column
          wd_ref   (CIN, 9, CIN, 1)    VMEM  dit conv weights as per-tap columns
          wf_ref   (CX, 9, CIN, 1)     VMEM  final conv weights as per-tap columns
          mask_ref (9, CIN, HW)        VMEM  per-tap conv boundary masks
          x0_ref   (CX, HW)            VMEM  this row's initial state
          pars_ref (CP, HW)            VMEM  this row's parameter field
          o_ref    (n_steps, CX, HW)   VMEM  this row's stacked step outputs
        """
        b = pl.program_id(0)

        # hoisted once per batch row
        wt_col = wt_ref[...]                                   # (CIN, 1)
        pars_slab = pars_ref[...]                              # (CP, HW)
        state = jnp.concatenate([x0_ref[...], pars_slab], axis=0)   # (CIN, HW)

        def conv3x3(src, w_ref, n_out):
            # 3x3 'same' conv: channels on sublanes, HW on lanes.  Each tap is
            # one lane-rotate (XLU slot) + boundary mask; each output channel
            # then does a full-width multiply by a per-sublane weight column
            # and a cross-sublane accumulate.
            accs = [jnp.zeros((1, hw), jnp.float32) for _ in range(n_out)]
            for tap in range(9):
                dy, dx = tap // 3 - 1, tap % 3 - 1
                off = dy * w + dx
                if off == 0:
                    sh = src
                else:
                    sh = pltpu.roll(src, (-off) % hw, axis=1) * mask_ref[tap]
                for co in range(n_out):
                    wcol = w_ref[co, tap]                      # (CIN, 1)
                    accs[co] = accs[co] + jnp.sum(wcol * sh, axis=0, keepdims=True)
            return jnp.concatenate(accs, axis=0)               # (n_out, HW)

        for step in range(n_steps):
            # TODO(synk): UNet_Tranformer is not defined in the source module; a
            # single time-conditioned residual conv block stands in for self.dit.
            hid = conv3x3(state, wd_ref, cin)                  # (CIN, HW)
            temb = ft_ref[b, step] * wt_col                    # (CIN, 1) per-channel
            y = state + jnp.maximum(hid + temb, 0.0)           # (CIN, HW)

            # final_layer: Conv2d(CIN -> 3, kernel=3, pad=1, bias=False)
            x_new = conv3x3(y, wf_ref, cx)                     # (CX, HW)
            o_ref[step] = x_new                                # lane-dense store
            if step + 1 < n_steps:
                state = jnp.concatenate([x_new, pars_slab], axis=0)

    return kernel


@jax.jit
def forward(x0, pars, ft, wd, wf, wt):
    # ForwardModel.forward: autoregressive rollout, stacked along trailing time axis.
    b, cx, h, w = x0.shape
    cp = pars.shape[1]
    cin = cx + cp
    n_steps = ft.shape[-1] - 1
    hw = h * w

    x0r = x0.reshape(b, cx, hw).astype(jnp.float32)
    parsr = pars.reshape(b, cp, hw).astype(jnp.float32)
    ftf = ft.astype(jnp.float32)
    wt_col = wt.reshape(cin, 1).astype(jnp.float32)
    # OIHW -> (O, tap=kh*3+kw, I, 1) weight columns (channels on sublanes).
    wd_cols = jnp.transpose(wd, (0, 2, 3, 1)).reshape(cin, 9, cin, 1).astype(jnp.float32)
    wf_cols = jnp.transpose(wf, (0, 2, 3, 1)).reshape(cx, 9, cin, 1).astype(jnp.float32)

    # Per-tap boundary masks for the rolled flat (row-major) state; built once at
    # trace time, pre-broadcast over channels so the kernel does no broadcasts.
    rr = np.arange(h)[:, None]
    cc = np.arange(w)[None, :]
    m = np.zeros((9, cin, hw), np.float32)
    for tap in range(9):
        dy, dx = tap // 3 - 1, tap % 3 - 1
        valid = ((rr + dy >= 0) & (rr + dy < h) & (cc + dx >= 0) & (cc + dx < w))
        m[tap] = np.broadcast_to(valid.reshape(-1).astype(np.float32), (cin, hw))
    masks = jnp.asarray(m)

    kernel = _make_rollout_kernel(n_steps, cx, cin, h, w)

    roll_out = pl.pallas_call(
        kernel,
        out_shape=jax.ShapeDtypeStruct((b, n_steps, cx, hw), jnp.float32),
        grid_spec=pltpu.PrefetchScalarGridSpec(
            num_scalar_prefetch=0,
            grid=(b,),
            in_specs=[
                pl.BlockSpec(memory_space=pltpu.MemorySpace.SMEM),        # ft (B, T)
                pl.BlockSpec((cin, 1), lambda bi: (0, 0)),                # wt column
                pl.BlockSpec((cin, 9, cin, 1), lambda bi: (0, 0, 0, 0)),  # wd columns
                pl.BlockSpec((cx, 9, cin, 1), lambda bi: (0, 0, 0, 0)),   # wf columns
                pl.BlockSpec((9, cin, hw), lambda bi: (0, 0, 0)),         # masks
                pl.BlockSpec((None, cx, hw), lambda bi: (bi, 0, 0)),      # x0 row
                pl.BlockSpec((None, cp, hw), lambda bi: (bi, 0, 0)),      # pars row
            ],
            out_specs=pl.BlockSpec((None, n_steps, cx, hw),
                                   lambda bi: (bi, 0, 0, 0)),
        ),
        compiler_params=pltpu.CompilerParams(
            dimension_semantics=("parallel",)),
    )(ftf, wt_col, wd_cols, wf_cols, masks, x0r, parsr)

    # (B, n_steps, CX, HW) -> (B, CX, H, W, n_steps); prepend x0 along time axis.
    roll_out = roll_out.reshape(b, n_steps, cx, h, w)
    roll_out = jnp.transpose(roll_out, (0, 2, 3, 4, 1))
    return jnp.concatenate([x0.astype(jnp.float32)[..., None], roll_out], axis=-1)


# ---------------- pure-JAX reference (correctness check) ----------------
def _conv_ref(x, w):
    return jax.lax.conv_general_dilated(
        x, w, window_strides=(1, 1), padding=((1, 1), (1, 1)),
        dimension_numbers=('NCHW', 'OIHW', 'NCHW'))


def forward_ref(x0, pars, ft, wd, wf, wt):
    xs = [x0]
    cur = x0
    for i in range(ft.shape[-1] - 1):
        xc = jnp.concatenate([cur, pars], axis=1)
        temb = ft[:, i][:, None, None, None] * wt[None, :, None, None]
        y = xc + jnp.maximum(_conv_ref(xc, wd) + temb, 0.0)
        cur = _conv_ref(y, wf)
        xs.append(cur)
    return jnp.stack(xs, axis=-1)


if __name__ == "__main__":
    key = jax.random.PRNGKey(0)
    k1, k2, k3, k4, k5, k6 = jax.random.split(key, 6)

    x0 = jax.random.normal(k1, (B, CX, H, W), jnp.float32)
    pars = jax.random.normal(k2, (B, CP, H, W), jnp.float32)
    ft = jax.random.normal(k3, (B, T), jnp.float32)

    fan_in = CIN * 3 * 3
    wd = jax.random.normal(k4, (CIN, CIN, 3, 3), jnp.float32) / jnp.sqrt(fan_in)
    wf = jax.random.normal(k5, (CX, CIN, 3, 3), jnp.float32) / jnp.sqrt(fan_in)
    wt = 0.1 * jax.random.normal(k6, (CIN,), jnp.float32)

    out = forward(x0, pars, ft, wd, wf, wt)
    jax.block_until_ready(out)

    ref = forward_ref(x0, pars, ft, wd, wf, wt)
    err = float(jnp.max(jnp.abs(out - ref)))
    assert out.shape == (B, CX, H, W, T), out.shape
    assert err < 1e-3, f"mismatch vs reference: {err}"

    print("KERNEL_OK")
</pallas_src>

<mosaic_0001>
module attributes {stable_mosaic.version = 11 : i64} {
  func.func @kernel(%arg0: i32, %arg1: memref<2x4xf32, #tpu.memory_space<smem>>, %arg2: memref<4x1xf32, #tpu.memory_space<vmem>>, %arg3: memref<4x9x4x1xf32, #tpu.memory_space<vmem>>, %arg4: memref<3x9x4x1xf32, #tpu.memory_space<vmem>>, %arg5: memref<9x4x256xf32, #tpu.memory_space<vmem>>, %arg6: memref<1x3x256xf32, #tpu.memory_space<vmem>>, %arg7: memref<1x1x256xf32, #tpu.memory_space<vmem>>, %arg8: memref<1x3x3x256xf32, #tpu.memory_space<vmem>>) attributes {dimension_semantics = [#tpu.dimension_semantics<parallel>], iteration_bounds = array<i64: 2>, scalar_prefetch = 0 : i64, scratch_operands = 0 : i64, tpu.core_type = #tpu.core_type<tc>, window_params = [{transform_indices = @transform_0, window_bounds = array<i64: 2, 4>}, {pipeline_mode = #tpu.pipeline_mode<synchronous>, transform_indices = @transform_1, window_bounds = array<i64: 4, 1>}, {pipeline_mode = #tpu.pipeline_mode<synchronous>, transform_indices = @transform_2, window_bounds = array<i64: 4, 9, 4, 1>}, {pipeline_mode = #tpu.pipeline_mode<synchronous>, transform_indices = @transform_3, window_bounds = array<i64: 3, 9, 4, 1>}, {pipeline_mode = #tpu.pipeline_mode<synchronous>, transform_indices = @transform_4, window_bounds = array<i64: 9, 4, 256>}, {transform_indices = @transform_5, window_bounds = array<i64: 1, 3, 256>}, {transform_indices = @transform_6, window_bounds = array<i64: 1, 1, 256>}, {transform_indices = @transform_7, window_bounds = array<i64: 1, 3, 3, 256>}]} {
    %c0 = arith.constant 0 : index
    %c0_0 = arith.constant 0 : index
    %0 = vector.load %arg2[%c0, %c0_0] : memref<4x1xf32, #tpu.memory_space<vmem>>, vector<4x1xf32>
    %c0_1 = arith.constant 0 : index
    %c0_2 = arith.constant 0 : index
    %c0_3 = arith.constant 0 : index
    %1 = vector.load %arg7[%c0_1, %c0_2, %c0_3] : memref<1x1x256xf32, #tpu.memory_space<vmem>>, vector<1x1x256xf32>
    %2 = vector.shape_cast %1 : vector<1x1x256xf32> to vector<1x256xf32>
    %c0_4 = arith.constant 0 : index
    %c0_5 = arith.constant 0 : index
    %c0_6 = arith.constant 0 : index
    %3 = vector.load %arg6[%c0_4, %c0_5, %c0_6] : memref<1x3x256xf32, #tpu.memory_space<vmem>>, vector<1x3x256xf32>
    %4 = vector.shape_cast %3 : vector<1x3x256xf32> to vector<3x256xf32>
    %5 = tpu.concatenate %4, %2 in 0 : vector<3x256xf32>, vector<1x256xf32> -> vector<4x256xf32>
    %cst = arith.constant 0.000000e+00 : f32
    %6 = vector.broadcast %cst : f32 to vector<1x256xf32>
    %cst_7 = arith.constant 0.000000e+00 : f32
    %7 = vector.broadcast %cst_7 : f32 to vector<1x256xf32>
    %cst_8 = arith.constant 0.000000e+00 : f32
    %8 = vector.broadcast %cst_8 : f32 to vector<1x256xf32>
    %cst_9 = arith.constant 0.000000e+00 : f32
    %9 = vector.broadcast %cst_9 : f32 to vector<1x256xf32>
    %c17_i32 = arith.constant 17 : i32
    %10 = tpu.dynamic_rotate %5 by %c17_i32 dim 1 : vector<4x256xf32>, i32 -> vector<4x256xf32>
    %c0_10 = arith.constant 0 : index
    %c0_11 = arith.constant 0 : index
    %c0_12 = arith.constant 0 : index
    %11 = vector.load %arg5[%c0_10, %c0_11, %c0_12] : memref<9x4x256xf32, #tpu.memory_space<vmem>>, vector<1x4x256xf32>
    %12 = vector.shape_cast %11 : vector<1x4x256xf32> to vector<4x256xf32>
    %13 = arith.mulf %10, %12 : vector<4x256xf32>
    %c0_13 = arith.constant 0 : index
    %c0_14 = arith.constant 0 : index
    %c0_15 = arith.constant 0 : index
    %c0_16 = arith.constant 0 : index
    %14 = vector.load %arg3[%c0_13, %c0_14, %c0_15, %c0_16] : memref<4x9x4x1xf32, #tpu.memory_space<vmem>>, vector<1x1x4x1xf32>
    %15 = vector.shape_cast %14 : vector<1x1x4x1xf32> to vector<4x1xf32>
    %16 = vector.broadcast %15 : vector<4x1xf32> to vector<4x256xf32>
    %17 = arith.mulf %16, %13 : vector<4x256xf32>
    %cst_17 = arith.constant dense<0.000000e+00> : vector<256xf32>
    %18 = vector.multi_reduction <add>, %17, %cst_17 [0] : vector<4x256xf32> to vector<256xf32>
    %19 = vector.shape_cast %18 : vector<256xf32> to vector<1x256xf32>
    %20 = arith.addf %6, %19 : vector<1x256xf32>
    %c1 = arith.constant 1 : index
    %c0_18 = arith.constant 0 : index
    %c0_19 = arith.constant 0 : index
    %c0_20 = arith.constant 0 : index
    %21 = vector.load %arg3[%c1, %c0_18, %c0_19, %c0_20] : memref<4x9x4x1xf32, #tpu.memory_space<vmem>>, vector<1x1x4x1xf32>
    %22 = vector.shape_cast %21 : vector<1x1x4x1xf32> to vector<4x1xf32>
    %23 = vector.broadcast %22 : vector<4x1xf32> to vector<4x256xf32>
    %24 = arith.mulf %23, %13 : vector<4x256xf32>
    %cst_21 = arith.constant dense<0.000000e+00> : vector<256xf32>
    %25 = vector.multi_reduction <add>, %24, %cst_21 [0] : vector<4x256xf32> to vector<256xf32>
    %26 = vector.shape_cast %25 : vector<256xf32> to vector<1x256xf32>
    %27 = arith.addf %7, %26 : vector<1x256xf32>
    %c2 = arith.constant 2 : index
    %c0_22 = arith.constant 0 : index
    %c0_23 = arith.constant 0 : index
    %c0_24 = arith.constant 0 : index
    %28 = vector.load %arg3[%c2, %c0_22, %c0_23, %c0_24] : memref<4x9x4x1xf32, #tpu.memory_space<vmem>>, vector<1x1x4x1xf32>
    %29 = vector.shape_cast %28 : vector<1x1x4x1xf32> to vector<4x1xf32>
    %30 = vector.broadcast %29 : vector<4x1xf32> to vector<4x256xf32>
    %31 = arith.mulf %30, %13 : vector<4x256xf32>
    %cst_25 = arith.constant dense<0.000000e+00> : vector<256xf32>
    %32 = vector.multi_reduction <add>, %31, %cst_25 [0] : vector<4x256xf32> to vector<256xf32>
    %33 = vector.shape_cast %32 : vector<256xf32> to vector<1x256xf32>
    %34 = arith.addf %8, %33 : vector<1x256xf32>
    %c3 = arith.constant 3 : index
    %c0_26 = arith.constant 0 : index
    %c0_27 = arith.constant 0 : index
    %c0_28 = arith.constant 0 : index
    %35 = vector.load %arg3[%c3, %c0_26, %c0_27, %c0_28] : memref<4x9x4x1xf32, #tpu.memory_space<vmem>>, vector<1x1x4x1xf32>
    %36 = vector.shape_cast %35 : vector<1x1x4x1xf32> to vector<4x1xf32>
    %37 = vector.broadcast %36 : vector<4x1xf32> to vector<4x256xf32>
    %38 = arith.mulf %37, %13 : vector<4x256xf32>
    %cst_29 = arith.constant dense<0.000000e+00> : vector<256xf32>
    %39 = vector.multi_reduction <add>, %38, %cst_29 [0] : vector<4x256xf32> to vector<256xf32>
    %40 = vector.shape_cast %39 : vector<256xf32> to vector<1x256xf32>
    %41 = arith.addf %9, %40 : vector<1x256xf32>
    %c16_i32 = arith.constant 16 : i32
    %42 = tpu.dynamic_rotate %5 by %c16_i32 dim 1 : vector<4x256xf32>, i32 -> vector<4x256xf32>
    %c1_30 = arith.constant 1 : index
    %c0_31 = arith.constant 0 : index
    %c0_32 = arith.constant 0 : index
    %43 = vector.load %arg5[%c1_30, %c0_31, %c0_32] : memref<9x4x256xf32, #tpu.memory_space<vmem>>, vector<1x4x256xf32>
    %44 = vector.shape_cast %43 : vector<1x4x256xf32> to vector<4x256xf32>
    %45 = arith.mulf %42, %44 : vector<4x256xf32>
    %c0_33 = arith.constant 0 : index
    %c1_34 = arith.constant 1 : index
    %c0_35 = arith.constant 0 : index
    %c0_36 = arith.constant 0 : index
    %46 = vector.load %arg3[%c0_33, %c1_34, %c0_35, %c0_36] : memref<4x9x4x1xf32, #tpu.memory_space<vmem>>, vector<1x1x4x1xf32>
    %47 = vector.shape_cast %46 : vector<1x1x4x1xf32> to vector<4x1xf32>
    %48 = vector.broadcast %47 : vector<4x1xf32> to vector<4x256xf32>
    %49 = arith.mulf %48, %45 : vector<4x256xf32>
    %cst_37 = arith.constant dense<0.000000e+00> : vector<256xf32>
    %50 = vector.multi_reduction <add>, %49, %cst_37 [0] : vector<4x256xf32> to vector<256xf32>
    %51 = vector.shape_cast %50 : vector<256xf32> to vector<1x256xf32>
    %52 = arith.addf %20, %51 : vector<1x256xf32>
    %c1_38 = arith.constant 1 : index
    %c1_39 = arith.constant 1 : index
    %c0_40 = arith.constant 0 : index
    %c0_41 = arith.constant 0 : index
    %53 = vector.load %arg3[%c1_38, %c1_39, %c0_40, %c0_41] : memref<4x9x4x1xf32, #tpu.memory_space<vmem>>, vector<1x1x4x1xf32>
    %54 = vector.shape_cast %53 : vector<1x1x4x1xf32> to vector<4x1xf32>
    %55 = vector.broadcast %54 : vector<4x1xf32> to vector<4x256xf32>
    %56 = arith.mulf %55, %45 : vector<4x256xf32>
    %cst_42 = arith.constant dense<0.000000e+00> : vector<256xf32>
    %57 = vector.multi_reduction <add>, %56, %cst_42 [0] : vector<4x256xf32> to vector<256xf32>
    %58 = vector.shape_cast %57 : vector<256xf32> to vector<1x256xf32>
    %59 = arith.addf %27, %58 : vector<1x256xf32>
    %c2_43 = arith.constant 2 : index
    %c1_44 = arith.constant 1 : index
    %c0_45 = arith.constant 0 : index
    %c0_46 = arith.constant 0 : index
    %60 = vector.load %arg3[%c2_43, %c1_44, %c0_45, %c0_46] : memref<4x9x4x1xf32, #tpu.memory_space<vmem>>, vector<1x1x4x1xf32>
    %61 = vector.shape_cast %60 : vector<1x1x4x1xf32> to vector<4x1xf32>
    %62 = vector.broadcast %61 : vector<4x1xf32> to vector<4x256xf32>
    %63 = arith.mulf %62, %45 : vector<4x256xf32>
    %cst_47 = arith.constant dense<0.000000e+00> : vector<256xf32>
    %64 = vector.multi_reduction <add>, %63, %cst_47 [0] : vector<4x256xf32> to vector<256xf32>
    %65 = vector.shape_cast %64 : vector<256xf32> to vector<1x256xf32>
    %66 = arith.addf %34, %65 : vector<1x256xf32>
    %c3_48 = arith.constant 3 : index
    %c1_49 = arith.constant 1 : index
    %c0_50 = arith.constant 0 : index
    %c0_51 = arith.constant 0 : index
    %67 = vector.load %arg3[%c3_48, %c1_49, %c0_50, %c0_51] : memref<4x9x4x1xf32, #tpu.memory_space<vmem>>, vector<1x1x4x1xf32>
    %68 = vector.shape_cast %67 : vector<1x1x4x1xf32> to vector<4x1xf32>
    %69 = vector.broadcast %68 : vector<4x1xf32> to vector<4x256xf32>
    %70 = arith.mulf %69, %45 : vector<4x256xf32>
    %cst_52 = arith.constant dense<0.000000e+00> : vector<256xf32>
    %71 = vector.multi_reduction <add>, %70, %cst_52 [0] : vector<4x256xf32> to vector<256xf32>
    %72 = vector.shape_cast %71 : vector<256xf32> to vector<1x256xf32>
    %73 = arith.addf %41, %72 : vector<1x256xf32>
    %c15_i32 = arith.constant 15 : i32
    %74 = tpu.dynamic_rotate %5 by %c15_i32 dim 1 : vector<4x256xf32>, i32 -> vector<4x256xf32>
    %c2_53 = arith.constant 2 : index
    %c0_54 = arith.constant 0 : index
    %c0_55 = arith.constant 0 : index
    %75 = vector.load %arg5[%c2_53, %c0_54, %c0_55] : memref<9x4x256xf32, #tpu.memory_space<vmem>>, vector<1x4x256xf32>
    %76 = vector.shape_cast %75 : vector<1x4x256xf32> to vector<4x256xf32>
    %77 = arith.mulf %74, %76 : vector<4x256xf32>
    %c0_56 = arith.constant 0 : index
    %c2_57 = arith.constant 2 : index
    %c0_58 = arith.constant 0 : index
    %c0_59 = arith.constant 0 : index
    %78 = vector.load %arg3[%c0_56, %c2_57, %c0_58, %c0_59] : memref<4x9x4x1xf32, #tpu.memory_space<vmem>>, vector<1x1x4x1xf32>
    %79 = vector.shape_cast %78 : vector<1x1x4x1xf32> to vector<4x1xf32>
    %80 = vector.broadcast %79 : vector<4x1xf32> to vector<4x256xf32>
    %81 = arith.mulf %80, %77 : vector<4x256xf32>
    %cst_60 = arith.constant dense<0.000000e+00> : vector<256xf32>
    %82 = vector.multi_reduction <add>, %81, %cst_60 [0] : vector<4x256xf32> to vector<256xf32>
    %83 = vector.shape_cast %82 : vector<256xf32> to vector<1x256xf32>
    %84 = arith.addf %52, %83 : vector<1x256xf32>
    %c1_61 = arith.constant 1 : index
    %c2_62 = arith.constant 2 : index
    %c0_63 = arith.constant 0 : index
    %c0_64 = arith.constant 0 : index
    %85 = vector.load %arg3[%c1_61, %c2_62, %c0_63, %c0_64] : memref<4x9x4x1xf32, #tpu.memory_space<vmem>>, vector<1x1x4x1xf32>
    %86 = vector.shape_cast %85 : vector<1x1x4x1xf32> to vector<4x1xf32>
    %87 = vector.broadcast %86 : vector<4x1xf32> to vector<4x256xf32>
    %88 = arith.mulf %87, %77 : vector<4x256xf32>
    %cst_65 = arith.constant dense<0.000000e+00> : vector<256xf32>
    %89 = vector.multi_reduction <add>, %88, %cst_65 [0] : vector<4x256xf32> to vector<256xf32>
    %90 = vector.shape_cast %89 : vector<256xf32> to vector<1x256xf32>
    %91 = arith.addf %59, %90 : vector<1x256xf32>
    %c2_66 = arith.constant 2 : index
    %c2_67 = arith.constant 2 : index
    %c0_68 = arith.constant 0 : index
    %c0_69 = arith.constant 0 : index
    %92 = vector.load %arg3[%c2_66, %c2_67, %c0_68, %c0_69] : memref<4x9x4x1xf32, #tpu.memory_space<vmem>>, vector<1x1x4x1xf32>
    %93 = vector.shape_cast %92 : vector<1x1x4x1xf32> to vector<4x1xf32>
    %94 = vector.broadcast %93 : vector<4x1xf32> to vector<4x256xf32>
    %95 = arith.mulf %94, %77 : vector<4x256xf32>
    %cst_70 = arith.constant dense<0.000000e+00> : vector<256xf32>
    %96 = vector.multi_reduction <add>, %95, %cst_70 [0] : vector<4x256xf32> to vector<256xf32>
    %97 = vector.shape_cast %96 : vector<256xf32> to vector<1x256xf32>
    %98 = arith.addf %66, %97 : vector<1x256xf32>
    %c3_71 = arith.constant 3 : index
    %c2_72 = arith.constant 2 : index
    %c0_73 = arith.constant 0 : index
    %c0_74 = arith.constant 0 : index
    %99 = vector.load %arg3[%c3_71, %c2_72, %c0_73, %c0_74] : memref<4x9x4x1xf32, #tpu.memory_space<vmem>>, vector<1x1x4x1xf32>
    %100 = vector.shape_cast %99 : vector<1x1x4x1xf32> to vector<4x1xf32>
    %101 = vector.broadcast %100 : vector<4x1xf32> to vector<4x256xf32>
    %102 = arith.mulf %101, %77 : vector<4x256xf32>
    %cst_75 = arith.constant dense<0.000000e+00> : vector<256xf32>
    %103 = vector.multi_reduction <add>, %102, %cst_75 [0] : vector<4x256xf32> to vector<256xf32>
    %104 = vector.shape_cast %103 : vector<256xf32> to vector<1x256xf32>
    %105 = arith.addf %73, %104 : vector<1x256xf32>
    %c1_i32 = arith.constant 1 : i32
    %106 = tpu.dynamic_rotate %5 by %c1_i32 dim 1 : vector<4x256xf32>, i32 -> vector<4x256xf32>
    %c3_76 = arith.constant 3 : index
    %c0_77 = arith.constant 0 : index
    %c0_78 = arith.constant 0 : index
    %107 = vector.load %arg5[%c3_76, %c0_77, %c0_78] : memref<9x4x256xf32, #tpu.memory_space<vmem>>, vector<1x4x256xf32>
    %108 = vector.shape_cast %107 : vector<1x4x256xf32> to vector<4x256xf32>
    %109 = arith.mulf %106, %108 : vector<4x256xf32>
    %c0_79 = arith.constant 0 : index
    %c3_80 = arith.constant 3 : index
    %c0_81 = arith.constant 0 : index
    %c0_82 = arith.constant 0 : index
    %110 = vector.load %arg3[%c0_79, %c3_80, %c0_81, %c0_82] : memref<4x9x4x1xf32, #tpu.memory_space<vmem>>, vector<1x1x4x1xf32>
    %111 = vector.shape_cast %110 : vector<1x1x4x1xf32> to vector<4x1xf32>
    %112 = vector.broadcast %111 : vector<4x1xf32> to vector<4x256xf32>
    %113 = arith.mulf %112, %109 : vector<4x256xf32>
    %cst_83 = arith.constant dense<0.000000e+00> : vector<256xf32>
    %114 = vector.multi_reduction <add>, %113, %cst_83 [0] : vector<4x256xf32> to vector<256xf32>
    %115 = vector.shape_cast %114 : vector<256xf32> to vector<1x256xf32>
    %116 = arith.addf %84, %115 : vector<1x256xf32>
    %c1_84 = arith.constant 1 : index
    %c3_85 = arith.constant 3 : index
    %c0_86 = arith.constant 0 : index
    %c0_87 = arith.constant 0 : index
    %117 = vector.load %arg3[%c1_84, %c3_85, %c0_86, %c0_87] : memref<4x9x4x1xf32, #tpu.memory_space<vmem>>, vector<1x1x4x1xf32>
    %118 = vector.shape_cast %117 : vector<1x1x4x1xf32> to vector<4x1xf32>
    %119 = vector.broadcast %118 : vector<4x1xf32> to vector<4x256xf32>
    %120 = arith.mulf %119, %109 : vector<4x256xf32>
    %cst_88 = arith.constant dense<0.000000e+00> : vector<256xf32>
    %121 = vector.multi_reduction <add>, %120, %cst_88 [0] : vector<4x256xf32> to vector<256xf32>
    %122 = vector.shape_cast %121 : vector<256xf32> to vector<1x256xf32>
    %123 = arith.addf %91, %122 : vector<1x256xf32>
    %c2_89 = arith.constant 2 : index
    %c3_90 = arith.constant 3 : index
    %c0_91 = arith.constant 0 : index
    %c0_92 = arith.constant 0 : index
    %124 = vector.load %arg3[%c2_89, %c3_90, %c0_91, %c0_92] : memref<4x9x4x1xf32, #tpu.memory_space<vmem>>, vector<1x1x4x1xf32>
    %125 = vector.shape_cast %124 : vector<1x1x4x1xf32> to vector<4x1xf32>
    %126 = vector.broadcast %125 : vector<4x1xf32> to vector<4x256xf32>
    %127 = arith.mulf %126, %109 : vector<4x256xf32>
    %cst_93 = arith.constant dense<0.000000e+00> : vector<256xf32>
    %128 = vector.multi_reduction <add>, %127, %cst_93 [0] : vector<4x256xf32> to vector<256xf32>
    %129 = vector.shape_cast %128 : vector<256xf32> to vector<1x256xf32>
    %130 = arith.addf %98, %129 : vector<1x256xf32>
    %c3_94 = arith.constant 3 : index
    %c3_95 = arith.constant 3 : index
    %c0_96 = arith.constant 0 : index
    %c0_97 = arith.constant 0 : index
    %131 = vector.load %arg3[%c3_94, %c3_95, %c0_96, %c0_97] : memref<4x9x4x1xf32, #tpu.memory_space<vmem>>, vector<1x1x4x1xf32>
    %132 = vector.shape_cast %131 : vector<1x1x4x1xf32> to vector<4x1xf32>
    %133 = vector.broadcast %132 : vector<4x1xf32> to vector<4x256xf32>
    %134 = arith.mulf %133, %109 : vector<4x256xf32>
    %cst_98 = arith.constant dense<0.000000e+00> : vector<256xf32>
    %135 = vector.multi_reduction <add>, %134, %cst_98 [0] : vector<4x256xf32> to vector<256xf32>
    %136 = vector.shape_cast %135 : vector<256xf32> to vector<1x256xf32>
    %137 = arith.addf %105, %136 : vector<1x256xf32>
    %c0_99 = arith.constant 0 : index
    %c4 = arith.constant 4 : index
    %c0_100 = arith.constant 0 : index
    %c0_101 = arith.constant 0 : index
    %138 = vector.load %arg3[%c0_99, %c4, %c0_100, %c0_101] : memref<4x9x4x1xf32, #tpu.memory_space<vmem>>, vector<1x1x4x1xf32>
    %139 = vector.shape_cast %138 : vector<1x1x4x1xf32> to vector<4x1xf32>
    %140 = vector.broadcast %139 : vector<4x1xf32> to vector<4x256xf32>
    %141 = arith.mulf %140, %5 : vector<4x256xf32>
    %cst_102 = arith.constant dense<0.000000e+00> : vector<256xf32>
    %142 = vector.multi_reduction <add>, %141, %cst_102 [0] : vector<4x256xf32> to vector<256xf32>
    %143 = vector.shape_cast %142 : vector<256xf32> to vector<1x256xf32>
    %144 = arith.addf %116, %143 : vector<1x256xf32>
    %c1_103 = arith.constant 1 : index
    %c4_104 = arith.constant 4 : index
    %c0_105 = arith.constant 0 : index
    %c0_106 = arith.constant 0 : index
    %145 = vector.load %arg3[%c1_103, %c4_104, %c0_105, %c0_106] : memref<4x9x4x1xf32, #tpu.memory_space<vmem>>, vector<1x1x4x1xf32>
    %146 = vector.shape_cast %145 : vector<1x1x4x1xf32> to vector<4x1xf32>
    %147 = vector.broadcast %146 : vector<4x1xf32> to vector<4x256xf32>
    %148 = arith.mulf %147, %5 : vector<4x256xf32>
    %cst_107 = arith.constant dense<0.000000e+00> : vector<256xf32>
    %149 = vector.multi_reduction <add>, %148, %cst_107 [0] : vector<4x256xf32> to vector<256xf32>
    %150 = vector.shape_cast %149 : vector<256xf32> to vector<1x256xf32>
    %151 = arith.addf %123, %150 : vector<1x256xf32>
    %c2_108 = arith.constant 2 : index
    %c4_109 = arith.constant 4 : index
    %c0_110 = arith.constant 0 : index
    %c0_111 = arith.constant 0 : index
    %152 = vector.load %arg3[%c2_108, %c4_109, %c0_110, %c0_111] : memref<4x9x4x1xf32, #tpu.memory_space<vmem>>, vector<1x1x4x1xf32>
    %153 = vector.shape_cast %152 : vector<1x1x4x1xf32> to vector<4x1xf32>
    %154 = vector.broadcast %153 : vector<4x1xf32> to vector<4x256xf32>
    %155 = arith.mulf %154, %5 : vector<4x256xf32>
    %cst_112 = arith.constant dense<0.000000e+00> : vector<256xf32>
    %156 = vector.multi_reduction <add>, %155, %cst_112 [0] : vector<4x256xf32> to vector<256xf32>
    %157 = vector.shape_cast %156 : vector<256xf32> to vector<1x256xf32>
    %158 = arith.addf %130, %157 : vector<1x256xf32>
    %c3_113 = arith.constant 3 : index
    %c4_114 = arith.constant 4 : index
    %c0_115 = arith.constant 0 : index
    %c0_116 = arith.constant 0 : index
    %159 = vector.load %arg3[%c3_113, %c4_114, %c0_115, %c0_116] : memref<4x9x4x1xf32, #tpu.memory_space<vmem>>, vector<1x1x4x1xf32>
    %160 = vector.shape_cast %159 : vector<1x1x4x1xf32> to vector<4x1xf32>
    %161 = vector.broadcast %160 : vector<4x1xf32> to vector<4x256xf32>
    %162 = arith.mulf %161, %5 : vector<4x256xf32>
    %cst_117 = arith.constant dense<0.000000e+00> : vector<256xf32>
    %163 = vector.multi_reduction <add>, %162, %cst_117 [0] : vector<4x256xf32> to vector<256xf32>
    %164 = vector.shape_cast %163 : vector<256xf32> to vector<1x256xf32>
    %165 = arith.addf %137, %164 : vector<1x256xf32>
    %c255_i32 = arith.constant 255 : i32
    %166 = tpu.dynamic_rotate %5 by %c255_i32 dim 1 : vector<4x256xf32>, i32 -> vector<4x256xf32>
    %c5 = arith.constant 5 : index
    %c0_118 = arith.constant 0 : index
    %c0_119 = arith.constant 0 : index
    %167 = vector.load %arg5[%c5, %c0_118, %c0_119] : memref<9x4x256xf32, #tpu.memory_space<vmem>>, vector<1x4x256xf32>
    %168 = vector.shape_cast %167 : vector<1x4x256xf32> to vector<4x256xf32>
    %169 = arith.mulf %166, %168 : vector<4x256xf32>
    %c0_120 = arith.constant 0 : index
    %c5_121 = arith.constant 5 : index
    %c0_122 = arith.constant 0 : index
    %c0_123 = arith.constant 0 : index
    %170 = vector.load %arg3[%c0_120, %c5_121, %c0_122, %c0_123] : memref<4x9x4x1xf32, #tpu.memory_space<vmem>>, vector<1x1x4x1xf32>
    %171 = vector.shape_cast %170 : vector<1x1x4x1xf32> to vector<4x1xf32>
    %172 = vector.broadcast %171 : vector<4x1xf32> to vector<4x256xf32>
    %173 = arith.mulf %172, %169 : vector<4x256xf32>
    %cst_124 = arith.constant dense<0.000000e+00> : vector<256xf32>
    %174 = vector.multi_reduction <add>, %173, %cst_124 [0] : vector<4x256xf32> to vector<256xf32>
    %175 = vector.shape_cast %174 : vector<256xf32> to vector<1x256xf32>
    %176 = arith.addf %144, %175 : vector<1x256xf32>
    %c1_125 = arith.constant 1 : index
    %c5_126 = arith.constant 5 : index
    %c0_127 = arith.constant 0 : index
    %c0_128 = arith.constant 0 : index
    %177 = vector.load %arg3[%c1_125, %c5_126, %c0_127, %c0_128] : memref<4x9x4x1xf32, #tpu.memory_space<vmem>>, vector<1x1x4x1xf32>
    %178 = vector.shape_cast %177 : vector<1x1x4x1xf32> to vector<4x1xf32>
    %179 = vector.broadcast %178 : vector<4x1xf32> to vector<4x256xf32>
    %180 = arith.mulf %179, %169 : vector<4x256xf32>
    %cst_129 = arith.constant dense<0.000000e+00> : vector<256xf32>
    %181 = vector.multi_reduction <add>, %180, %cst_129 [0] : vector<4x256xf32> to vector<256xf32>
    %182 = vector.shape_cast %181 : vector<256xf32> to vector<1x256xf32>
    %183 = arith.addf %151, %182 : vector<1x256xf32>
    %c2_130 = arith.constant 2 : index
    %c5_131 = arith.constant 5 : index
    %c0_132 = arith.constant 0 : index
    %c0_133 = arith.constant 0 : index
    %184 = vector.load %arg3[%c2_130, %c5_131, %c0_132, %c0_133] : memref<4x9x4x1xf32, #tpu.memory_space<vmem>>, vector<1x1x4x1xf32>
    %185 = vector.shape_cast %184 : vector<1x1x4x1xf32> to vector<4x1xf32>
    %186 = vector.broadcast %185 : vector<4x1xf32> to vector<4x256xf32>
    %187 = arith.mulf %186, %169 : vector<4x256xf32>
    %cst_134 = arith.constant dense<0.000000e+00> : vector<256xf32>
    %188 = vector.multi_reduction <add>, %187, %cst_134 [0] : vector<4x256xf32> to vector<256xf32>
    %189 = vector.shape_cast %188 : vector<256xf32> to vector<1x256xf32>
    %190 = arith.addf %158, %189 : vector<1x256xf32>
    %c3_135 = arith.constant 3 : index
    %c5_136 = arith.constant 5 : index
    %c0_137 = arith.constant 0 : index
    %c0_138 = arith.constant 0 : index
    %191 = vector.load %arg3[%c3_135, %c5_136, %c0_137, %c0_138] : memref<4x9x4x1xf32, #tpu.memory_space<vmem>>, vector<1x1x4x1xf32>
    %192 = vector.shape_cast %191 : vector<1x1x4x1xf32> to vector<4x1xf32>
    %193 = vector.broadcast %192 : vector<4x1xf32> to vector<4x256xf32>
    %194 = arith.mulf %193, %169 : vector<4x256xf32>
    %cst_139 = arith.constant dense<0.000000e+00> : vector<256xf32>
    %195 = vector.multi_reduction <add>, %194, %cst_139 [0] : vector<4x256xf32> to vector<256xf32>
    %196 = vector.shape_cast %195 : vector<256xf32> to vector<1x256xf32>
    %197 = arith.addf %165, %196 : vector<1x256xf32>
    %c241_i32 = arith.constant 241 : i32
    %198 = tpu.dynamic_rotate %5 by %c241_i32 dim 1 : vector<4x256xf32>, i32 -> vector<4x256xf32>
    %c6 = arith.constant 6 : index
    %c0_140 = arith.constant 0 : index
    %c0_141 = arith.constant 0 : index
    %199 = vector.load %arg5[%c6, %c0_140, %c0_141] : memref<9x4x256xf32, #tpu.memory_space<vmem>>, vector<1x4x256xf32>
    %200 = vector.shape_cast %199 : vector<1x4x256xf32> to vector<4x256xf32>
    %201 = arith.mulf %198, %200 : vector<4x256xf32>
    %c0_142 = arith.constant 0 : index
    %c6_143 = arith.constant 6 : index
    %c0_144 = arith.constant 0 : index
    %c0_145 = arith.constant 0 : index
    %202 = vector.load %arg3[%c0_142, %c6_143, %c0_144, %c0_145] : memref<4x9x4x1xf32, #tpu.memory_space<vmem>>, vector<1x1x4x1xf32>
    %203 = vector.shape_cast %202 : vector<1x1x4x1xf32> to vector<4x1xf32>
    %204 = vector.broadcast %203 : vector<4x1xf32> to vector<4x256xf32>
    %205 = arith.mulf %204, %201 : vector<4x256xf32>
    %cst_146 = arith.constant dense<0.000000e+00> : vector<256xf32>
    %206 = vector.multi_reduction <add>, %205, %cst_146 [0] : vector<4x256xf32> to vector<256xf32>
    %207 = vector.shape_cast %206 : vector<256xf32> to vector<1x256xf32>
    %208 = arith.addf %176, %207 : vector<1x256xf32>
    %c1_147 = arith.constant 1 : index
    %c6_148 = arith.constant 6 : index
    %c0_149 = arith.constant 0 : index
    %c0_150 = arith.constant 0 : index
    %209 = vector.load %arg3[%c1_147, %c6_148, %c0_149, %c0_150] : memref<4x9x4x1xf32, #tpu.memory_space<vmem>>, vector<1x1x4x1xf32>
    %210 = vector.shape_cast %209 : vector<1x1x4x1xf32> to vector<4x1xf32>
    %211 = vector.broadcast %210 : vector<4x1xf32> to vector<4x256xf32>
    %212 = arith.mulf %211, %201 : vector<4x256xf32>
    %cst_151 = arith.constant dense<0.000000e+00> : vector<256xf32>
    %213 = vector.multi_reduction <add>, %212, %cst_151 [0] : vector<4x256xf32> to vector<256xf32>
    %214 = vector.shape_cast %213 : vector<256xf32> to vector<1x256xf32>
    %215 = arith.addf %183, %214 : vector<1x256xf32>
    %c2_152 = arith.constant 2 : index
    %c6_153 = arith.constant 6 : index
    %c0_154 = arith.constant 0 : index
    %c0_155 = arith.constant 0 : index
    %216 = vector.load %arg3[%c2_152, %c6_153, %c0_154, %c0_155] : memref<4x9x4x1xf32, #tpu.memory_space<vmem>>, vector<1x1x4x1xf32>
    %217 = vector.shape_cast %216 : vector<1x1x4x1xf32> to vector<4x1xf32>
    %218 = vector.broadcast %217 : vector<4x1xf32> to vector<4x256xf32>
    %219 = arith.mulf %218, %201 : vector<4x256xf32>
    %cst_156 = arith.constant dense<0.000000e+00> : vector<256xf32>
    %220 = vector.multi_reduction <add>, %219, %cst_156 [0] : vector<4x256xf32> to vector<256xf32>
    %221 = vector.shape_cast %220 : vector<256xf32> to vector<1x256xf32>
    %222 = arith.addf %190, %221 : vector<1x256xf32>
    %c3_157 = arith.constant 3 : index
    %c6_158 = arith.constant 6 : index
    %c0_159 = arith.constant 0 : index
    %c0_160 = arith.constant 0 : index
    %223 = vector.load %arg3[%c3_157, %c6_158, %c0_159, %c0_160] : memref<4x9x4x1xf32, #tpu.memory_space<vmem>>, vector<1x1x4x1xf32>
    %224 = vector.shape_cast %223 : vector<1x1x4x1xf32> to vector<4x1xf32>
    %225 = vector.broadcast %224 : vector<4x1xf32> to vector<4x256xf32>
    %226 = arith.mulf %225, %201 : vector<4x256xf32>
    %cst_161 = arith.constant dense<0.000000e+00> : vector<256xf32>
    %227 = vector.multi_reduction <add>, %226, %cst_161 [0] : vector<4x256xf32> to vector<256xf32>
    %228 = vector.shape_cast %227 : vector<256xf32> to vector<1x256xf32>
    %229 = arith.addf %197, %228 : vector<1x256xf32>
    %c240_i32 = arith.constant 240 : i32
    %230 = tpu.dynamic_rotate %5 by %c240_i32 dim 1 : vector<4x256xf32>, i32 -> vector<4x256xf32>
    %c7 = arith.constant 7 : index
    %c0_162 = arith.constant 0 : index
    %c0_163 = arith.constant 0 : index
    %231 = vector.load %arg5[%c7, %c0_162, %c0_163] : memref<9x4x256xf32, #tpu.memory_space<vmem>>, vector<1x4x256xf32>
    %232 = vector.shape_cast %231 : vector<1x4x256xf32> to vector<4x256xf32>
    %233 = arith.mulf %230, %232 : vector<4x256xf32>
    %c0_164 = arith.constant 0 : index
    %c7_165 = arith.constant 7 : index
    %c0_166 = arith.constant 0 : index
    %c0_167 = arith.constant 0 : index
    %234 = vector.load %arg3[%c0_164, %c7_165, %c0_166, %c0_167] : memref<4x9x4x1xf32, #tpu.memory_space<vmem>>, vector<1x1x4x1xf32>
    %235 = vector.shape_cast %234 : vector<1x1x4x1xf32> to vector<4x1xf32>
    %236 = vector.broadcast %235 : vector<4x1xf32> to vector<4x256xf32>
    %237 = arith.mulf %236, %233 : vector<4x256xf32>
    %cst_168 = arith.constant dense<0.000000e+00> : vector<256xf32>
    %238 = vector.multi_reduction <add>, %237, %cst_168 [0] : vector<4x256xf32> to vector<256xf32>
    %239 = vector.shape_cast %238 : vector<256xf32> to vector<1x256xf32>
    %240 = arith.addf %208, %239 : vector<1x256xf32>
    %c1_169 = arith.constant 1 : index
    %c7_170 = arith.constant 7 : index
    %c0_171 = arith.constant 0 : index
    %c0_172 = arith.constant 0 : index
    %241 = vector.load %arg3[%c1_169, %c7_170, %c0_171, %c0_172] : memref<4x9x4x1xf32, #tpu.memory_space<vmem>>, vector<1x1x4x1xf32>
    %242 = vector.shape_cast %241 : vector<1x1x4x1xf32> to vector<4x1xf32>
    %243 = vector.broadcast %242 : vector<4x1xf32> to vector<4x256xf32>
    %244 = arith.mulf %243, %233 : vector<4x256xf32>
    %cst_173 = arith.constant dense<0.000000e+00> : vector<256xf32>
    %245 = vector.multi_reduction <add>, %244, %cst_173 [0] : vector<4x256xf32> to vector<256xf32>
    %246 = vector.shape_cast %245 : vector<256xf32> to vector<1x256xf32>
    %247 = arith.addf %215, %246 : vector<1x256xf32>
    %c2_174 = arith.constant 2 : index
    %c7_175 = arith.constant 7 : index
    %c0_176 = arith.constant 0 : index
    %c0_177 = arith.constant 0 : index
    %248 = vector.load %arg3[%c2_174, %c7_175, %c0_176, %c0_177] : memref<4x9x4x1xf32, #tpu.memory_space<vmem>>, vector<1x1x4x1xf32>
    %249 = vector.shape_cast %248 : vector<1x1x4x1xf32> to vector<4x1xf32>
    %250 = vector.broadcast %249 : vector<4x1xf32> to vector<4x256xf32>
    %251 = arith.mulf %250, %233 : vector<4x256xf32>
    %cst_178 = arith.constant dense<0.000000e+00> : vector<256xf32>
    %252 = vector.multi_reduction <add>, %251, %cst_178 [0] : vector<4x256xf32> to vector<256xf32>
    %253 = vector.shape_cast %252 : vector<256xf32> to vector<1x256xf32>
    %254 = arith.addf %222, %253 : vector<1x256xf32>
    %c3_179 = arith.constant 3 : index
    %c7_180 = arith.constant 7 : index
    %c0_181 = arith.constant 0 : index
    %c0_182 = arith.constant 0 : index
    %255 = vector.load %arg3[%c3_179, %c7_180, %c0_181, %c0_182] : memref<4x9x4x1xf32, #tpu.memory_space<vmem>>, vector<1x1x4x1xf32>
    %256 = vector.shape_cast %255 : vector<1x1x4x1xf32> to vector<4x1xf32>
    %257 = vector.broadcast %256 : vector<4x1xf32> to vector<4x256xf32>
    %258 = arith.mulf %257, %233 : vector<4x256xf32>
    %cst_183 = arith.constant dense<0.000000e+00> : vector<256xf32>
    %259 = vector.multi_reduction <add>, %258, %cst_183 [0] : vector<4x256xf32> to vector<256xf32>
    %260 = vector.shape_cast %259 : vector<256xf32> to vector<1x256xf32>
    %261 = arith.addf %229, %260 : vector<1x256xf32>
    %c239_i32 = arith.constant 239 : i32
    %262 = tpu.dynamic_rotate %5 by %c239_i32 dim 1 : vector<4x256xf32>, i32 -> vector<4x256xf32>
    %c8 = arith.constant 8 : index
    %c0_184 = arith.constant 0 : index
    %c0_185 = arith.constant 0 : index
    %263 = vector.load %arg5[%c8, %c0_184, %c0_185] : memref<9x4x256xf32, #tpu.memory_space<vmem>>, vector<1x4x256xf32>
    %264 = vector.shape_cast %263 : vector<1x4x256xf32> to vector<4x256xf32>
    %265 = arith.mulf %262, %264 : vector<4x256xf32>
    %c0_186 = arith.constant 0 : index
    %c8_187 = arith.constant 8 : index
    %c0_188 = arith.constant 0 : index
    %c0_189 = arith.constant 0 : index
    %266 = vector.load %arg3[%c0_186, %c8_187, %c0_188, %c0_189] : memref<4x9x4x1xf32, #tpu.memory_space<vmem>>, vector<1x1x4x1xf32>
    %267 = vector.shape_cast %266 : vector<1x1x4x1xf32> to vector<4x1xf32>
    %268 = vector.broadcast %267 : vector<4x1xf32> to vector<4x256xf32>
    %269 = arith.mulf %268, %265 : vector<4x256xf32>
    %cst_190 = arith.constant dense<0.000000e+00> : vector<256xf32>
    %270 = vector.multi_reduction <add>, %269, %cst_190 [0] : vector<4x256xf32> to vector<256xf32>
    %271 = vector.shape_cast %270 : vector<256xf32> to vector<1x256xf32>
    %272 = arith.addf %240, %271 : vector<1x256xf32>
    %c1_191 = arith.constant 1 : index
    %c8_192 = arith.constant 8 : index
    %c0_193 = arith.constant 0 : index
    %c0_194 = arith.constant 0 : index
    %273 = vector.load %arg3[%c1_191, %c8_192, %c0_193, %c0_194] : memref<4x9x4x1xf32, #tpu.memory_space<vmem>>, vector<1x1x4x1xf32>
    %274 = vector.shape_cast %273 : vector<1x1x4x1xf32> to vector<4x1xf32>
    %275 = vector.broadcast %274 : vector<4x1xf32> to vector<4x256xf32>
    %276 = arith.mulf %275, %265 : vector<4x256xf32>
    %cst_195 = arith.constant dense<0.000000e+00> : vector<256xf32>
    %277 = vector.multi_reduction <add>, %276, %cst_195 [0] : vector<4x256xf32> to vector<256xf32>
    %278 = vector.shape_cast %277 : vector<256xf32> to vector<1x256xf32>
    %279 = arith.addf %247, %278 : vector<1x256xf32>
    %c2_196 = arith.constant 2 : index
    %c8_197 = arith.constant 8 : index
    %c0_198 = arith.constant 0 : index
    %c0_199 = arith.constant 0 : index
    %280 = vector.load %arg3[%c2_196, %c8_197, %c0_198, %c0_199] : memref<4x9x4x1xf32, #tpu.memory_space<vmem>>, vector<1x1x4x1xf32>
    %281 = vector.shape_cast %280 : vector<1x1x4x1xf32> to vector<4x1xf32>
    %282 = vector.broadcast %281 : vector<4x1xf32> to vector<4x256xf32>
    %283 = arith.mulf %282, %265 : vector<4x256xf32>
    %cst_200 = arith.constant dense<0.000000e+00> : vector<256xf32>
    %284 = vector.multi_reduction <add>, %283, %cst_200 [0] : vector<4x256xf32> to vector<256xf32>
    %285 = vector.shape_cast %284 : vector<256xf32> to vector<1x256xf32>
    %286 = arith.addf %254, %285 : vector<1x256xf32>
    %c3_201 = arith.constant 3 : index
    %c8_202 = arith.constant 8 : index
    %c0_203 = arith.constant 0 : index
    %c0_204 = arith.constant 0 : index
    %287 = vector.load %arg3[%c3_201, %c8_202, %c0_203, %c0_204] : memref<4x9x4x1xf32, #tpu.memory_space<vmem>>, vector<1x1x4x1xf32>
    %288 = vector.shape_cast %287 : vector<1x1x4x1xf32> to vector<4x1xf32>
    %289 = vector.broadcast %288 : vector<4x1xf32> to vector<4x256xf32>
    %290 = arith.mulf %289, %265 : vector<4x256xf32>
    %cst_205 = arith.constant dense<0.000000e+00> : vector<256xf32>
    %291 = vector.multi_reduction <add>, %290, %cst_205 [0] : vector<4x256xf32> to vector<256xf32>
    %292 = vector.shape_cast %291 : vector<256xf32> to vector<1x256xf32>
    %293 = arith.addf %261, %292 : vector<1x256xf32>
    %294 = tpu.concatenate %272, %279, %286, %293 in 0 : vector<1x256xf32>, vector<1x256xf32>, vector<1x256xf32>, vector<1x256xf32> -> vector<4x256xf32>
    %295 = arith.index_cast %arg0 : i32 to index
    %c0_206 = arith.constant 0 : index
    %296 = memref.load %arg1[%295, %c0_206] : memref<2x4xf32, #tpu.memory_space<smem>>
    %297 = vector.broadcast %296 : f32 to vector<4x1xf32>
    %298 = arith.mulf %297, %0 : vector<4x1xf32>
    %299 = vector.broadcast %298 : vector<4x1xf32> to vector<4x256xf32>
    %300 = arith.addf %294, %299 : vector<4x256xf32>
    %cst_207 = arith.constant 0.000000e+00 : f32
    %301 = vector.broadcast %cst_207 : f32 to vector<4x256xf32>
    %302 = arith.maximumf %300, %301 : vector<4x256xf32>
    %303 = arith.addf %5, %302 : vector<4x256xf32>
    %cst_208 = arith.constant 0.000000e+00 : f32
    %304 = vector.broadcast %cst_208 : f32 to vector<1x256xf32>
    %cst_209 = arith.constant 0.000000e+00 : f32
    %305 = vector.broadcast %cst_209 : f32 to vector<1x256xf32>
    %cst_210 = arith.constant 0.000000e+00 : f32
    %306 = vector.broadcast %cst_210 : f32 to vector<1x256xf32>
    %c17_i32_211 = arith.constant 17 : i32
    %307 = tpu.dynamic_rotate %303 by %c17_i32_211 dim 1 : vector<4x256xf32>, i32 -> vector<4x256xf32>
    %c0_212 = arith.constant 0 : index
    %c0_213 = arith.constant 0 : index
    %c0_214 = arith.constant 0 : index
    %308 = vector.load %arg5[%c0_212, %c0_213, %c0_214] : memref<9x4x256xf32, #tpu.memory_space<vmem>>, vector<1x4x256xf32>
    %309 = vector.shape_cast %308 : vector<1x4x256xf32> to vector<4x256xf32>
    %310 = arith.mulf %307, %309 : vector<4x256xf32>
    %c0_215 = arith.constant 0 : index
    %c0_216 = arith.constant 0 : index
    %c0_217 = arith.constant 0 : index
    %c0_218 = arith.constant 0 : index
    %311 = vector.load %arg4[%c0_215, %c0_216, %c0_217, %c0_218] : memref<3x9x4x1xf32, #tpu.memory_space<vmem>>, vector<1x1x4x1xf32>
    %312 = vector.shape_cast %311 : vector<1x1x4x1xf32> to vector<4x1xf32>
    %313 = vector.broadcast %312 : vector<4x1xf32> to vector<4x256xf32>
    %314 = arith.mulf %313, %310 : vector<4x256xf32>
    %cst_219 = arith.constant dense<0.000000e+00> : vector<256xf32>
    %315 = vector.multi_reduction <add>, %314, %cst_219 [0] : vector<4x256xf32> to vector<256xf32>
    %316 = vector.shape_cast %315 : vector<256xf32> to vector<1x256xf32>
    %317 = arith.addf %304, %316 : vector<1x256xf32>
    %c1_220 = arith.constant 1 : index
    %c0_221 = arith.constant 0 : index
    %c0_222 = arith.constant 0 : index
    %c0_223 = arith.constant 0 : index
    %318 = vector.load %arg4[%c1_220, %c0_221, %c0_222, %c0_223] : memref<3x9x4x1xf32, #tpu.memory_space<vmem>>, vector<1x1x4x1xf32>
    %319 = vector.shape_cast %318 : vector<1x1x4x1xf32> to vector<4x1xf32>
    %320 = vector.broadcast %319 : vector<4x1xf32> to vector<4x256xf32>
    %321 = arith.mulf %320, %310 : vector<4x256xf32>
    %cst_224 = arith.constant dense<0.000000e+00> : vector<256xf32>
    %322 = vector.multi_reduction <add>, %321, %cst_224 [0] : vector<4x256xf32> to vector<256xf32>
    %323 = vector.shape_cast %322 : vector<256xf32> to vector<1x256xf32>
    %324 = arith.addf %305, %323 : vector<1x256xf32>
    %c2_225 = arith.constant 2 : index
    %c0_226 = arith.constant 0 : index
    %c0_227 = arith.constant 0 : index
    %c0_228 = arith.constant 0 : index
    %325 = vector.load %arg4[%c2_225, %c0_226, %c0_227, %c0_228] : memref<3x9x4x1xf32, #tpu.memory_space<vmem>>, vector<1x1x4x1xf32>
    %326 = vector.shape_cast %325 : vector<1x1x4x1xf32> to vector<4x1xf32>
    %327 = vector.broadcast %326 : vector<4x1xf32> to vector<4x256xf32>
    %328 = arith.mulf %327, %310 : vector<4x256xf32>
    %cst_229 = arith.constant dense<0.000000e+00> : vector<256xf32>
    %329 = vector.multi_reduction <add>, %328, %cst_229 [0] : vector<4x256xf32> to vector<256xf32>
    %330 = vector.shape_cast %329 : vector<256xf32> to vector<1x256xf32>
    %331 = arith.addf %306, %330 : vector<1x256xf32>
    %c16_i32_230 = arith.constant 16 : i32
    %332 = tpu.dynamic_rotate %303 by %c16_i32_230 dim 1 : vector<4x256xf32>, i32 -> vector<4x256xf32>
    %c1_231 = arith.constant 1 : index
    %c0_232 = arith.constant 0 : index
    %c0_233 = arith.constant 0 : index
    %333 = vector.load %arg5[%c1_231, %c0_232, %c0_233] : memref<9x4x256xf32, #tpu.memory_space<vmem>>, vector<1x4x256xf32>
    %334 = vector.shape_cast %333 : vector<1x4x256xf32> to vector<4x256xf32>
    %335 = arith.mulf %332, %334 : vector<4x256xf32>
    %c0_234 = arith.constant 0 : index
    %c1_235 = arith.constant 1 : index
    %c0_236 = arith.constant 0 : index
    %c0_237 = arith.constant 0 : index
    %336 = vector.load %arg4[%c0_234, %c1_235, %c0_236, %c0_237] : memref<3x9x4x1xf32, #tpu.memory_space<vmem>>, vector<1x1x4x1xf32>
    %337 = vector.shape_cast %336 : vector<1x1x4x1xf32> to vector<4x1xf32>
    %338 = vector.broadcast %337 : vector<4x1xf32> to vector<4x256xf32>
    %339 = arith.mulf %338, %335 : vector<4x256xf32>
    %cst_238 = arith.constant dense<0.000000e+00> : vector<256xf32>
    %340 = vector.multi_reduction <add>, %339, %cst_238 [0] : vector<4x256xf32> to vector<256xf32>
    %341 = vector.shape_cast %340 : vector<256xf32> to vector<1x256xf32>
    %342 = arith.addf %317, %341 : vector<1x256xf32>
    %c1_239 = arith.constant 1 : index
    %c1_240 = arith.constant 1 : index
    %c0_241 = arith.constant 0 : index
    %c0_242 = arith.constant 0 : index
    %343 = vector.load %arg4[%c1_239, %c1_240, %c0_241, %c0_242] : memref<3x9x4x1xf32, #tpu.memory_space<vmem>>, vector<1x1x4x1xf32>
    %344 = vector.shape_cast %343 : vector<1x1x4x1xf32> to vector<4x1xf32>
    %345 = vector.broadcast %344 : vector<4x1xf32> to vector<4x256xf32>
    %346 = arith.mulf %345, %335 : vector<4x256xf32>
    %cst_243 = arith.constant dense<0.000000e+00> : vector<256xf32>
    %347 = vector.multi_reduction <add>, %346, %cst_243 [0] : vector<4x256xf32> to vector<256xf32>
    %348 = vector.shape_cast %347 : vector<256xf32> to vector<1x256xf32>
    %349 = arith.addf %324, %348 : vector<1x256xf32>
    %c2_244 = arith.constant 2 : index
    %c1_245 = arith.constant 1 : index
    %c0_246 = arith.constant 0 : index
    %c0_247 = arith.constant 0 : index
    %350 = vector.load %arg4[%c2_244, %c1_245, %c0_246, %c0_247] : memref<3x9x4x1xf32, #tpu.memory_space<vmem>>, vector<1x1x4x1xf32>
    %351 = vector.shape_cast %350 : vector<1x1x4x1xf32> to vector<4x1xf32>
    %352 = vector.broadcast %351 : vector<4x1xf32> to vector<4x256xf32>
    %353 = arith.mulf %352, %335 : vector<4x256xf32>
    %cst_248 = arith.constant dense<0.000000e+00> : vector<256xf32>
    %354 = vector.multi_reduction <add>, %353, %cst_248 [0] : vector<4x256xf32> to vector<256xf32>
    %355 = vector.shape_cast %354 : vector<256xf32> to vector<1x256xf32>
    %356 = arith.addf %331, %355 : vector<1x256xf32>
    %c15_i32_249 = arith.constant 15 : i32
    %357 = tpu.dynamic_rotate %303 by %c15_i32_249 dim 1 : vector<4x256xf32>, i32 -> vector<4x256xf32>
    %c2_250 = arith.constant 2 : index
    %c0_251 = arith.constant 0 : index
    %c0_252 = arith.constant 0 : index
    %358 = vector.load %arg5[%c2_250, %c0_251, %c0_252] : memref<9x4x256xf32, #tpu.memory_space<vmem>>, vector<1x4x256xf32>
    %359 = vector.shape_cast %358 : vector<1x4x256xf32> to vector<4x256xf32>
    %360 = arith.mulf %357, %359 : vector<4x256xf32>
    %c0_253 = arith.constant 0 : index
    %c2_254 = arith.constant 2 : index
    %c0_255 = arith.constant 0 : index
    %c0_256 = arith.constant 0 : index
    %361 = vector.load %arg4[%c0_253, %c2_254, %c0_255, %c0_256] : memref<3x9x4x1xf32, #tpu.memory_space<vmem>>, vector<1x1x4x1xf32>
    %362 = vector.shape_cast %361 : vector<1x1x4x1xf32> to vector<4x1xf32>
    %363 = vector.broadcast %362 : vector<4x1xf32> to vector<4x256xf32>
    %364 = arith.mulf %363, %360 : vector<4x256xf32>
    %cst_257 = arith.constant dense<0.000000e+00> : vector<256xf32>
    %365 = vector.multi_reduction <add>, %364, %cst_257 [0] : vector<4x256xf32> to vector<256xf32>
    %366 = vector.shape_cast %365 : vector<256xf32> to vector<1x256xf32>
    %367 = arith.addf %342, %366 : vector<1x256xf32>
    %c1_258 = arith.constant 1 : index
    %c2_259 = arith.constant 2 : index
    %c0_260 = arith.constant 0 : index
    %c0_261 = arith.constant 0 : index
    %368 = vector.load %arg4[%c1_258, %c2_259, %c0_260, %c0_261] : memref<3x9x4x1xf32, #tpu.memory_space<vmem>>, vector<1x1x4x1xf32>
    %369 = vector.shape_cast %368 : vector<1x1x4x1xf32> to vector<4x1xf32>
    %370 = vector.broadcast %369 : vector<4x1xf32> to vector<4x256xf32>
    %371 = arith.mulf %370, %360 : vector<4x256xf32>
    %cst_262 = arith.constant dense<0.000000e+00> : vector<256xf32>
    %372 = vector.multi_reduction <add>, %371, %cst_262 [0] : vector<4x256xf32> to vector<256xf32>
    %373 = vector.shape_cast %372 : vector<256xf32> to vector<1x256xf32>
    %374 = arith.addf %349, %373 : vector<1x256xf32>
    %c2_263 = arith.constant 2 : index
    %c2_264 = arith.constant 2 : index
    %c0_265 = arith.constant 0 : index
    %c0_266 = arith.constant 0 : index
    %375 = vector.load %arg4[%c2_263, %c2_264, %c0_265, %c0_266] : memref<3x9x4x1xf32, #tpu.memory_space<vmem>>, vector<1x1x4x1xf32>
    %376 = vector.shape_cast %375 : vector<1x1x4x1xf32> to vector<4x1xf32>
    %377 = vector.broadcast %376 : vector<4x1xf32> to vector<4x256xf32>
    %378 = arith.mulf %377, %360 : vector<4x256xf32>
    %cst_267 = arith.constant dense<0.000000e+00> : vector<256xf32>
    %379 = vector.multi_reduction <add>, %378, %cst_267 [0] : vector<4x256xf32> to vector<256xf32>
    %380 = vector.shape_cast %379 : vector<256xf32> to vector<1x256xf32>
    %381 = arith.addf %356, %380 : vector<1x256xf32>
    %c1_i32_268 = arith.constant 1 : i32
    %382 = tpu.dynamic_rotate %303 by %c1_i32_268 dim 1 : vector<4x256xf32>, i32 -> vector<4x256xf32>
    %c3_269 = arith.constant 3 : index
    %c0_270 = arith.constant 0 : index
    %c0_271 = arith.constant 0 : index
    %383 = vector.load %arg5[%c3_269, %c0_270, %c0_271] : memref<9x4x256xf32, #tpu.memory_space<vmem>>, vector<1x4x256xf32>
    %384 = vector.shape_cast %383 : vector<1x4x256xf32> to vector<4x256xf32>
    %385 = arith.mulf %382, %384 : vector<4x256xf32>
    %c0_272 = arith.constant 0 : index
    %c3_273 = arith.constant 3 : index
    %c0_274 = arith.constant 0 : index
    %c0_275 = arith.constant 0 : index
    %386 = vector.load %arg4[%c0_272, %c3_273, %c0_274, %c0_275] : memref<3x9x4x1xf32, #tpu.memory_space<vmem>>, vector<1x1x4x1xf32>
    %387 = vector.shape_cast %386 : vector<1x1x4x1xf32> to vector<4x1xf32>
    %388 = vector.broadcast %387 : vector<4x1xf32> to vector<4x256xf32>
    %389 = arith.mulf %388, %385 : vector<4x256xf32>
    %cst_276 = arith.constant dense<0.000000e+00> : vector<256xf32>
    %390 = vector.multi_reduction <add>, %389, %cst_276 [0] : vector<4x256xf32> to vector<256xf32>
    %391 = vector.shape_cast %390 : vector<256xf32> to vector<1x256xf32>
    %392 = arith.addf %367, %391 : vector<1x256xf32>
    %c1_277 = arith.constant 1 : index
    %c3_278 = arith.constant 3 : index
    %c0_279 = arith.constant 0 : index
    %c0_280 = arith.constant 0 : index
    %393 = vector.load %arg4[%c1_277, %c3_278, %c0_279, %c0_280] : memref<3x9x4x1xf32, #tpu.memory_space<vmem>>, vector<1x1x4x1xf32>
    %394 = vector.shape_cast %393 : vector<1x1x4x1xf32> to vector<4x1xf32>
    %395 = vector.broadcast %394 : vector<4x1xf32> to vector<4x256xf32>
    %396 = arith.mulf %395, %385 : vector<4x256xf32>
    %cst_281 = arith.constant dense<0.000000e+00> : vector<256xf32>
    %397 = vector.multi_reduction <add>, %396, %cst_281 [0] : vector<4x256xf32> to vector<256xf32>
    %398 = vector.shape_cast %397 : vector<256xf32> to vector<1x256xf32>
    %399 = arith.addf %374, %398 : vector<1x256xf32>
    %c2_282 = arith.constant 2 : index
    %c3_283 = arith.constant 3 : index
    %c0_284 = arith.constant 0 : index
    %c0_285 = arith.constant 0 : index
    %400 = vector.load %arg4[%c2_282, %c3_283, %c0_284, %c0_285] : memref<3x9x4x1xf32, #tpu.memory_space<vmem>>, vector<1x1x4x1xf32>
    %401 = vector.shape_cast %400 : vector<1x1x4x1xf32> to vector<4x1xf32>
    %402 = vector.broadcast %401 : vector<4x1xf32> to vector<4x256xf32>
    %403 = arith.mulf %402, %385 : vector<4x256xf32>
    %cst_286 = arith.constant dense<0.000000e+00> : vector<256xf32>
    %404 = vector.multi_reduction <add>, %403, %cst_286 [0] : vector<4x256xf32> to vector<256xf32>
    %405 = vector.shape_cast %404 : vector<256xf32> to vector<1x256xf32>
    %406 = arith.addf %381, %405 : vector<1x256xf32>
    %c0_287 = arith.constant 0 : index
    %c4_288 = arith.constant 4 : index
    %c0_289 = arith.constant 0 : index
    %c0_290 = arith.constant 0 : index
    %407 = vector.load %arg4[%c0_287, %c4_288, %c0_289, %c0_290] : memref<3x9x4x1xf32, #tpu.memory_space<vmem>>, vector<1x1x4x1xf32>
    %408 = vector.shape_cast %407 : vector<1x1x4x1xf32> to vector<4x1xf32>
    %409 = vector.broadcast %408 : vector<4x1xf32> to vector<4x256xf32>
    %410 = arith.mulf %409, %303 : vector<4x256xf32>
    %cst_291 = arith.constant dense<0.000000e+00> : vector<256xf32>
    %411 = vector.multi_reduction <add>, %410, %cst_291 [0] : vector<4x256xf32> to vector<256xf32>
    %412 = vector.shape_cast %411 : vector<256xf32> to vector<1x256xf32>
    %413 = arith.addf %392, %412 : vector<1x256xf32>
    %c1_292 = arith.constant 1 : index
    %c4_293 = arith.constant 4 : index
    %c0_294 = arith.constant 0 : index
    %c0_295 = arith.constant 0 : index
    %414 = vector.load %arg4[%c1_292, %c4_293, %c0_294, %c0_295] : memref<3x9x4x1xf32, #tpu.memory_space<vmem>>, vector<1x1x4x1xf32>
    %415 = vector.shape_cast %414 : vector<1x1x4x1xf32> to vector<4x1xf32>
    %416 = vector.broadcast %415 : vector<4x1xf32> to vector<4x256xf32>
    %417 = arith.mulf %416, %303 : vector<4x256xf32>
    %cst_296 = arith.constant dense<0.000000e+00> : vector<256xf32>
    %418 = vector.multi_reduction <add>, %417, %cst_296 [0] : vector<4x256xf32> to vector<256xf32>
    %419 = vector.shape_cast %418 : vector<256xf32> to vector<1x256xf32>
    %420 = arith.addf %399, %419 : vector<1x256xf32>
    %c2_297 = arith.constant 2 : index
    %c4_298 = arith.constant 4 : index
    %c0_299 = arith.constant 0 : index
    %c0_300 = arith.constant 0 : index
    %421 = vector.load %arg4[%c2_297, %c4_298, %c0_299, %c0_300] : memref<3x9x4x1xf32, #tpu.memory_space<vmem>>, vector<1x1x4x1xf32>
    %422 = vector.shape_cast %421 : vector<1x1x4x1xf32> to vector<4x1xf32>
    %423 = vector.broadcast %422 : vector<4x1xf32> to vector<4x256xf32>
    %424 = arith.mulf %423, %303 : vector<4x256xf32>
    %cst_301 = arith.constant dense<0.000000e+00> : vector<256xf32>
    %425 = vector.multi_reduction <add>, %424, %cst_301 [0] : vector<4x256xf32> to vector<256xf32>
    %426 = vector.shape_cast %425 : vector<256xf32> to vector<1x256xf32>
    %427 = arith.addf %406, %426 : vector<1x256xf32>
    %c255_i32_302 = arith.constant 255 : i32
    %428 = tpu.dynamic_rotate %303 by %c255_i32_302 dim 1 : vector<4x256xf32>, i32 -> vector<4x256xf32>
    %c5_303 = arith.constant 5 : index
    %c0_304 = arith.constant 0 : index
    %c0_305 = arith.constant 0 : index
    %429 = vector.load %arg5[%c5_303, %c0_304, %c0_305] : memref<9x4x256xf32, #tpu.memory_space<vmem>>, vector<1x4x256xf32>
    %430 = vector.shape_cast %429 : vector<1x4x256xf32> to vector<4x256xf32>
    %431 = arith.mulf %428, %430 : vector<4x256xf32>
    %c0_306 = arith.constant 0 : index
    %c5_307 = arith.constant 5 : index
    %c0_308 = arith.constant 0 : index
    %c0_309 = arith.constant 0 : index
    %432 = vector.load %arg4[%c0_306, %c5_307, %c0_308, %c0_309] : memref<3x9x4x1xf32, #tpu.memory_space<vmem>>, vector<1x1x4x1xf32>
    %433 = vector.shape_cast %432 : vector<1x1x4x1xf32> to vector<4x1xf32>
    %434 = vector.broadcast %433 : vector<4x1xf32> to vector<4x256xf32>
    %435 = arith.mulf %434, %431 : vector<4x256xf32>
    %cst_310 = arith.constant dense<0.000000e+00> : vector<256xf32>
    %436 = vector.multi_reduction <add>, %435, %cst_310 [0] : vector<4x256xf32> to vector<256xf32>
    %437 = vector.shape_cast %436 : vector<256xf32> to vector<1x256xf32>
    %438 = arith.addf %413, %437 : vector<1x256xf32>
    %c1_311 = arith.constant 1 : index
    %c5_312 = arith.constant 5 : index
    %c0_313 = arith.constant 0 : index
    %c0_314 = arith.constant 0 : index
    %439 = vector.load %arg4[%c1_311, %c5_312, %c0_313, %c0_314] : memref<3x9x4x1xf32, #tpu.memory_space<vmem>>, vector<1x1x4x1xf32>
    %440 = vector.shape_cast %439 : vector<1x1x4x1xf32> to vector<4x1xf32>
    %441 = vector.broadcast %440 : vector<4x1xf32> to vector<4x256xf32>
    %442 = arith.mulf %441, %431 : vector<4x256xf32>
    %cst_315 = arith.constant dense<0.000000e+00> : vector<256xf32>
    %443 = vector.multi_reduction <add>, %442, %cst_315 [0] : vector<4x256xf32> to vector<256xf32>
    %444 = vector.shape_cast %443 : vector<256xf32> to vector<1x256xf32>
    %445 = arith.addf %420, %444 : vector<1x256xf32>
    %c2_316 = arith.constant 2 : index
    %c5_317 = arith.constant 5 : index
    %c0_318 = arith.constant 0 : index
    %c0_319 = arith.constant 0 : index
    %446 = vector.load %arg4[%c2_316, %c5_317, %c0_318, %c0_319] : memref<3x9x4x1xf32, #tpu.memory_space<vmem>>, vector<1x1x4x1xf32>
    %447 = vector.shape_cast %446 : vector<1x1x4x1xf32> to vector<4x1xf32>
    %448 = vector.broadcast %447 : vector<4x1xf32> to vector<4x256xf32>
    %449 = arith.mulf %448, %431 : vector<4x256xf32>
    %cst_320 = arith.constant dense<0.000000e+00> : vector<256xf32>
    %450 = vector.multi_reduction <add>, %449, %cst_320 [0] : vector<4x256xf32> to vector<256xf32>
    %451 = vector.shape_cast %450 : vector<256xf32> to vector<1x256xf32>
    %452 = arith.addf %427, %451 : vector<1x256xf32>
    %c241_i32_321 = arith.constant 241 : i32
    %453 = tpu.dynamic_rotate %303 by %c241_i32_321 dim 1 : vector<4x256xf32>, i32 -> vector<4x256xf32>
    %c6_322 = arith.constant 6 : index
    %c0_323 = arith.constant 0 : index
    %c0_324 = arith.constant 0 : index
    %454 = vector.load %arg5[%c6_322, %c0_323, %c0_324] : memref<9x4x256xf32, #tpu.memory_space<vmem>>, vector<1x4x256xf32>
    %455 = vector.shape_cast %454 : vector<1x4x256xf32> to vector<4x256xf32>
    %456 = arith.mulf %453, %455 : vector<4x256xf32>
    %c0_325 = arith.constant 0 : index
    %c6_326 = arith.constant 6 : index
    %c0_327 = arith.constant 0 : index
    %c0_328 = arith.constant 0 : index
    %457 = vector.load %arg4[%c0_325, %c6_326, %c0_327, %c0_328] : memref<3x9x4x1xf32, #tpu.memory_space<vmem>>, vector<1x1x4x1xf32>
    %458 = vector.shape_cast %457 : vector<1x1x4x1xf32> to vector<4x1xf32>
    %459 = vector.broadcast %458 : vector<4x1xf32> to vector<4x256xf32>
    %460 = arith.mulf %459, %456 : vector<4x256xf32>
    %cst_329 = arith.constant dense<0.000000e+00> : vector<256xf32>
    %461 = vector.multi_reduction <add>, %460, %cst_329 [0] : vector<4x256xf32> to vector<256xf32>
    %462 = vector.shape_cast %461 : vector<256xf32> to vector<1x256xf32>
    %463 = arith.addf %438, %462 : vector<1x256xf32>
    %c1_330 = arith.constant 1 : index
    %c6_331 = arith.constant 6 : index
    %c0_332 = arith.constant 0 : index
    %c0_333 = arith.constant 0 : index
    %464 = vector.load %arg4[%c1_330, %c6_331, %c0_332, %c0_333] : memref<3x9x4x1xf32, #tpu.memory_space<vmem>>, vector<1x1x4x1xf32>
    %465 = vector.shape_cast %464 : vector<1x1x4x1xf32> to vector<4x1xf32>
    %466 = vector.broadcast %465 : vector<4x1xf32> to vector<4x256xf32>
    %467 = arith.mulf %466, %456 : vector<4x256xf32>
    %cst_334 = arith.constant dense<0.000000e+00> : vector<256xf32>
    %468 = vector.multi_reduction <add>, %467, %cst_334 [0] : vector<4x256xf32> to vector<256xf32>
    %469 = vector.shape_cast %468 : vector<256xf32> to vector<1x256xf32>
    %470 = arith.addf %445, %469 : vector<1x256xf32>
    %c2_335 = arith.constant 2 : index
    %c6_336 = arith.constant 6 : index
    %c0_337 = arith.constant 0 : index
    %c0_338 = arith.constant 0 : index
    %471 = vector.load %arg4[%c2_335, %c6_336, %c0_337, %c0_338] : memref<3x9x4x1xf32, #tpu.memory_space<vmem>>, vector<1x1x4x1xf32>
    %472 = vector.shape_cast %471 : vector<1x1x4x1xf32> to vector<4x1xf32>
    %473 = vector.broadcast %472 : vector<4x1xf32> to vector<4x256xf32>
    %474 = arith.mulf %473, %456 : vector<4x256xf32>
    %cst_339 = arith.constant dense<0.000000e+00> : vector<256xf32>
    %475 = vector.multi_reduction <add>, %474, %cst_339 [0] : vector<4x256xf32> to vector<256xf32>
    %476 = vector.shape_cast %475 : vector<256xf32> to vector<1x256xf32>
    %477 = arith.addf %452, %476 : vector<1x256xf32>
    %c240_i32_340 = arith.constant 240 : i32
    %478 = tpu.dynamic_rotate %303 by %c240_i32_340 dim 1 : vector<4x256xf32>, i32 -> vector<4x256xf32>
    %c7_341 = arith.constant 7 : index
    %c0_342 = arith.constant 0 : index
    %c0_343 = arith.constant 0 : index
    %479 = vector.load %arg5[%c7_341, %c0_342, %c0_343] : memref<9x4x256xf32, #tpu.memory_space<vmem>>, vector<1x4x256xf32>
    %480 = vector.shape_cast %479 : vector<1x4x256xf32> to vector<4x256xf32>
    %481 = arith.mulf %478, %480 : vector<4x256xf32>
    %c0_344 = arith.constant 0 : index
    %c7_345 = arith.constant 7 : index
    %c0_346 = arith.constant 0 : index
    %c0_347 = arith.constant 0 : index
    %482 = vector.load %arg4[%c0_344, %c7_345, %c0_346, %c0_347] : memref<3x9x4x1xf32, #tpu.memory_space<vmem>>, vector<1x1x4x1xf32>
    %483 = vector.shape_cast %482 : vector<1x1x4x1xf32> to vector<4x1xf32>
    %484 = vector.broadcast %483 : vector<4x1xf32> to vector<4x256xf32>
    %485 = arith.mulf %484, %481 : vector<4x256xf32>
    %cst_348 = arith.constant dense<0.000000e+00> : vector<256xf32>
    %486 = vector.multi_reduction <add>, %485, %cst_348 [0] : vector<4x256xf32> to vector<256xf32>
    %487 = vector.shape_cast %486 : vector<256xf32> to vector<1x256xf32>
    %488 = arith.addf %463, %487 : vector<1x256xf32>
    %c1_349 = arith.constant 1 : index
    %c7_350 = arith.constant 7 : index
    %c0_351 = arith.constant 0 : index
    %c0_352 = arith.constant 0 : index
    %489 = vector.load %arg4[%c1_349, %c7_350, %c0_351, %c0_352] : memref<3x9x4x1xf32, #tpu.memory_space<vmem>>, vector<1x1x4x1xf32>
    %490 = vector.shape_cast %489 : vector<1x1x4x1xf32> to vector<4x1xf32>
    %491 = vector.broadcast %490 : vector<4x1xf32> to vector<4x256xf32>
    %492 = arith.mulf %491, %481 : vector<4x256xf32>
    %cst_353 = arith.constant dense<0.000000e+00> : vector<256xf32>
    %493 = vector.multi_reduction <add>, %492, %cst_353 [0] : vector<4x256xf32> to vector<256xf32>
    %494 = vector.shape_cast %493 : vector<256xf32> to vector<1x256xf32>
    %495 = arith.addf %470, %494 : vector<1x256xf32>
    %c2_354 = arith.constant 2 : index
    %c7_355 = arith.constant 7 : index
    %c0_356 = arith.constant 0 : index
    %c0_357 = arith.constant 0 : index
    %496 = vector.load %arg4[%c2_354, %c7_355, %c0_356, %c0_357] : memref<3x9x4x1xf32, #tpu.memory_space<vmem>>, vector<1x1x4x1xf32>
    %497 = vector.shape_cast %496 : vector<1x1x4x1xf32> to vector<4x1xf32>
    %498 = vector.broadcast %497 : vector<4x1xf32> to vector<4x256xf32>
    %499 = arith.mulf %498, %481 : vector<4x256xf32>
    %cst_358 = arith.constant dense<0.000000e+00> : vector<256xf32>
    %500 = vector.multi_reduction <add>, %499, %cst_358 [0] : vector<4x256xf32> to vector<256xf32>
    %501 = vector.shape_cast %500 : vector<256xf32> to vector<1x256xf32>
    %502 = arith.addf %477, %501 : vector<1x256xf32>
    %c239_i32_359 = arith.constant 239 : i32
    %503 = tpu.dynamic_rotate %303 by %c239_i32_359 dim 1 : vector<4x256xf32>, i32 -> vector<4x256xf32>
    %c8_360 = arith.constant 8 : index
    %c0_361 = arith.constant 0 : index
    %c0_362 = arith.constant 0 : index
    %504 = vector.load %arg5[%c8_360, %c0_361, %c0_362] : memref<9x4x256xf32, #tpu.memory_space<vmem>>, vector<1x4x256xf32>
    %505 = vector.shape_cast %504 : vector<1x4x256xf32> to vector<4x256xf32>
    %506 = arith.mulf %503, %505 : vector<4x256xf32>
    %c0_363 = arith.constant 0 : index
    %c8_364 = arith.constant 8 : index
    %c0_365 = arith.constant 0 : index
    %c0_366 = arith.constant 0 : index
    %507 = vector.load %arg4[%c0_363, %c8_364, %c0_365, %c0_366] : memref<3x9x4x1xf32, #tpu.memory_space<vmem>>, vector<1x1x4x1xf32>
    %508 = vector.shape_cast %507 : vector<1x1x4x1xf32> to vector<4x1xf32>
    %509 = vector.broadcast %508 : vector<4x1xf32> to vector<4x256xf32>
    %510 = arith.mulf %509, %506 : vector<4x256xf32>
    %cst_367 = arith.constant dense<0.000000e+00> : vector<256xf32>
    %511 = vector.multi_reduction <add>, %510, %cst_367 [0] : vector<4x256xf32> to vector<256xf32>
    %512 = vector.shape_cast %511 : vector<256xf32> to vector<1x256xf32>
    %513 = arith.addf %488, %512 : vector<1x256xf32>
    %c1_368 = arith.constant 1 : index
    %c8_369 = arith.constant 8 : index
    %c0_370 = arith.constant 0 : index
    %c0_371 = arith.constant 0 : index
    %514 = vector.load %arg4[%c1_368, %c8_369, %c0_370, %c0_371] : memref<3x9x4x1xf32, #tpu.memory_space<vmem>>, vector<1x1x4x1xf32>
    %515 = vector.shape_cast %514 : vector<1x1x4x1xf32> to vector<4x1xf32>
    %516 = vector.broadcast %515 : vector<4x1xf32> to vector<4x256xf32>
    %517 = arith.mulf %516, %506 : vector<4x256xf32>
    %cst_372 = arith.constant dense<0.000000e+00> : vector<256xf32>
    %518 = vector.multi_reduction <add>, %517, %cst_372 [0] : vector<4x256xf32> to vector<256xf32>
    %519 = vector.shape_cast %518 : vector<256xf32> to vector<1x256xf32>
    %520 = arith.addf %495, %519 : vector<1x256xf32>
    %c2_373 = arith.constant 2 : index
    %c8_374 = arith.constant 8 : index
    %c0_375 = arith.constant 0 : index
    %c0_376 = arith.constant 0 : index
    %521 = vector.load %arg4[%c2_373, %c8_374, %c0_375, %c0_376] : memref<3x9x4x1xf32, #tpu.memory_space<vmem>>, vector<1x1x4x1xf32>
    %522 = vector.shape_cast %521 : vector<1x1x4x1xf32> to vector<4x1xf32>
    %523 = vector.broadcast %522 : vector<4x1xf32> to vector<4x256xf32>
    %524 = arith.mulf %523, %506 : vector<4x256xf32>
    %cst_377 = arith.constant dense<0.000000e+00> : vector<256xf32>
    %525 = vector.multi_reduction <add>, %524, %cst_377 [0] : vector<4x256xf32> to vector<256xf32>
    %526 = vector.shape_cast %525 : vector<256xf32> to vector<1x256xf32>
    %527 = arith.addf %502, %526 : vector<1x256xf32>
    %528 = tpu.concatenate %513, %520, %527 in 0 : vector<1x256xf32>, vector<1x256xf32>, vector<1x256xf32> -> vector<3x256xf32>
    %c0_378 = arith.constant 0 : index
    %c0_379 = arith.constant 0 : index
    %c0_380 = arith.constant 0 : index
    %c0_381 = arith.constant 0 : index
    %529 = vector.load %arg8[%c0_378, %c0_379, %c0_380, %c0_381] : memref<1x3x3x256xf32, #tpu.memory_space<vmem>>, vector<1x1x3x256xf32>
    %530 = vector.shape_cast %529 : vector<1x1x3x256xf32> to vector<3x256xf32>
    %531 = vector.shape_cast %528 : vector<3x256xf32> to vector<1x1x3x256xf32>
    tpu.vector_store %arg8[%c0_378, %c0_379, %c0_380, %c0_381], %531 {strides = array<i32>} : memref<1x3x3x256xf32, #tpu.memory_space<vmem>>, vector<1x1x3x256xf32>,
    %532 = tpu.concatenate %528, %2 in 0 : vector<3x256xf32>, vector<1x256xf32> -> vector<4x256xf32>
    %cst_382 = arith.constant 0.000000e+00 : f32
    %533 = vector.broadcast %cst_382 : f32 to vector<1x256xf32>
    %cst_383 = arith.constant 0.000000e+00 : f32
    %534 = vector.broadcast %cst_383 : f32 to vector<1x256xf32>
    %cst_384 = arith.constant 0.000000e+00 : f32
    %535 = vector.broadcast %cst_384 : f32 to vector<1x256xf32>
    %cst_385 = arith.constant 0.000000e+00 : f32
    %536 = vector.broadcast %cst_385 : f32 to vector<1x256xf32>
    %c17_i32_386 = arith.constant 17 : i32
    %537 = tpu.dynamic_rotate %532 by %c17_i32_386 dim 1 : vector<4x256xf32>, i32 -> vector<4x256xf32>
    %c0_387 = arith.constant 0 : index
    %c0_388 = arith.constant 0 : index
    %c0_389 = arith.constant 0 : index
    %538 = vector.load %arg5[%c0_387, %c0_388, %c0_389] : memref<9x4x256xf32, #tpu.memory_space<vmem>>, vector<1x4x256xf32>
    %539 = vector.shape_cast %538 : vector<1x4x256xf32> to vector<4x256xf32>
    %540 = arith.mulf %537, %539 : vector<4x256xf32>
    %c0_390 = arith.constant 0 : index
    %c0_391 = arith.constant 0 : index
    %c0_392 = arith.constant 0 : index
    %c0_393 = arith.constant 0 : index
    %541 = vector.load %arg3[%c0_390, %c0_391, %c0_392, %c0_393] : memref<4x9x4x1xf32, #tpu.memory_space<vmem>>, vector<1x1x4x1xf32>
    %542 = vector.shape_cast %541 : vector<1x1x4x1xf32> to vector<4x1xf32>
    %543 = vector.broadcast %542 : vector<4x1xf32> to vector<4x256xf32>
    %544 = arith.mulf %543, %540 : vector<4x256xf32>
    %cst_394 = arith.constant dense<0.000000e+00> : vector<256xf32>
    %545 = vector.multi_reduction <add>, %544, %cst_394 [0] : vector<4x256xf32> to vector<256xf32>
    %546 = vector.shape_cast %545 : vector<256xf32> to vector<1x256xf32>
    %547 = arith.addf %533, %546 : vector<1x256xf32>
    %c1_395 = arith.constant 1 : index
    %c0_396 = arith.constant 0 : index
    %c0_397 = arith.constant 0 : index
    %c0_398 = arith.constant 0 : index
    %548 = vector.load %arg3[%c1_395, %c0_396, %c0_397, %c0_398] : memref<4x9x4x1xf32, #tpu.memory_space<vmem>>, vector<1x1x4x1xf32>
    %549 = vector.shape_cast %548 : vector<1x1x4x1xf32> to vector<4x1xf32>
    %550 = vector.broadcast %549 : vector<4x1xf32> to vector<4x256xf32>
    %551 = arith.mulf %550, %540 : vector<4x256xf32>
    %cst_399 = arith.constant dense<0.000000e+00> : vector<256xf32>
    %552 = vector.multi_reduction <add>, %551, %cst_399 [0] : vector<4x256xf32> to vector<256xf32>
    %553 = vector.shape_cast %552 : vector<256xf32> to vector<1x256xf32>
    %554 = arith.addf %534, %553 : vector<1x256xf32>
    %c2_400 = arith.constant 2 : index
    %c0_401 = arith.constant 0 : index
    %c0_402 = arith.constant 0 : index
    %c0_403 = arith.constant 0 : index
    %555 = vector.load %arg3[%c2_400, %c0_401, %c0_402, %c0_403] : memref<4x9x4x1xf32, #tpu.memory_space<vmem>>, vector<1x1x4x1xf32>
    %556 = vector.shape_cast %555 : vector<1x1x4x1xf32> to vector<4x1xf32>
    %557 = vector.broadcast %556 : vector<4x1xf32> to vector<4x256xf32>
    %558 = arith.mulf %557, %540 : vector<4x256xf32>
    %cst_404 = arith.constant dense<0.000000e+00> : vector<256xf32>
    %559 = vector.multi_reduction <add>, %558, %cst_404 [0] : vector<4x256xf32> to vector<256xf32>
    %560 = vector.shape_cast %559 : vector<256xf32> to vector<1x256xf32>
    %561 = arith.addf %535, %560 : vector<1x256xf32>
    %c3_405 = arith.constant 3 : index
    %c0_406 = arith.constant 0 : index
    %c0_407 = arith.constant 0 : index
    %c0_408 = arith.constant 0 : index
    %562 = vector.load %arg3[%c3_405, %c0_406, %c0_407, %c0_408] : memref<4x9x4x1xf32, #tpu.memory_space<vmem>>, vector<1x1x4x1xf32>
    %563 = vector.shape_cast %562 : vector<1x1x4x1xf32> to vector<4x1xf32>
    %564 = vector.broadcast %563 : vector<4x1xf32> to vector<4x256xf32>
    %565 = arith.mulf %564, %540 : vector<4x256xf32>
    %cst_409 = arith.constant dense<0.000000e+00> : vector<256xf32>
    %566 = vector.multi_reduction <add>, %565, %cst_409 [0] : vector<4x256xf32> to vector<256xf32>
    %567 = vector.shape_cast %566 : vector<256xf32> to vector<1x256xf32>
    %568 = arith.addf %536, %567 : vector<1x256xf32>
    %c16_i32_410 = arith.constant 16 : i32
    %569 = tpu.dynamic_rotate %532 by %c16_i32_410 dim 1 : vector<4x256xf32>, i32 -> vector<4x256xf32>
    %c1_411 = arith.constant 1 : index
    %c0_412 = arith.constant 0 : index
    %c0_413 = arith.constant 0 : index
    %570 = vector.load %arg5[%c1_411, %c0_412, %c0_413] : memref<9x4x256xf32, #tpu.memory_space<vmem>>, vector<1x4x256xf32>
    %571 = vector.shape_cast %570 : vector<1x4x256xf32> to vector<4x256xf32>
    %572 = arith.mulf %569, %571 : vector<4x256xf32>
    %c0_414 = arith.constant 0 : index
    %c1_415 = arith.constant 1 : index
    %c0_416 = arith.constant 0 : index
    %c0_417 = arith.constant 0 : index
    %573 = vector.load %arg3[%c0_414, %c1_415, %c0_416, %c0_417] : memref<4x9x4x1xf32, #tpu.memory_space<vmem>>, vector<1x1x4x1xf32>
    %574 = vector.shape_cast %573 : vector<1x1x4x1xf32> to vector<4x1xf32>
    %575 = vector.broadcast %574 : vector<4x1xf32> to vector<4x256xf32>
    %576 = arith.mulf %575, %572 : vector<4x256xf32>
    %cst_418 = arith.constant dense<0.000000e+00> : vector<256xf32>
    %577 = vector.multi_reduction <add>, %576, %cst_418 [0] : vector<4x256xf32> to vector<256xf32>
    %578 = vector.shape_cast %577 : vector<256xf32> to vector<1x256xf32>
    %579 = arith.addf %547, %578 : vector<1x256xf32>
    %c1_419 = arith.constant 1 : index
    %c1_420 = arith.constant 1 : index
    %c0_421 = arith.constant 0 : index
    %c0_422 = arith.constant 0 : index
    %580 = vector.load %arg3[%c1_419, %c1_420, %c0_421, %c0_422] : memref<4x9x4x1xf32, #tpu.memory_space<vmem>>, vector<1x1x4x1xf32>
    %581 = vector.shape_cast %580 : vector<1x1x4x1xf32> to vector<4x1xf32>
    %582 = vector.broadcast %581 : vector<4x1xf32> to vector<4x256xf32>
    %583 = arith.mulf %582, %572 : vector<4x256xf32>
    %cst_423 = arith.constant dense<0.000000e+00> : vector<256xf32>
    %584 = vector.multi_reduction <add>, %583, %cst_423 [0] : vector<4x256xf32> to vector<256xf32>
    %585 = vector.shape_cast %584 : vector<256xf32> to vector<1x256xf32>
    %586 = arith.addf %554, %585 : vector<1x256xf32>
    %c2_424 = arith.constant 2 : index
    %c1_425 = arith.constant 1 : index
    %c0_426 = arith.constant 0 : index
    %c0_427 = arith.constant 0 : index
    %587 = vector.load %arg3[%c2_424, %c1_425, %c0_426, %c0_427] : memref<4x9x4x1xf32, #tpu.memory_space<vmem>>, vector<1x1x4x1xf32>
    %588 = vector.shape_cast %587 : vector<1x1x4x1xf32> to vector<4x1xf32>
    %589 = vector.broadcast %588 : vector<4x1xf32> to vector<4x256xf32>
    %590 = arith.mulf %589, %572 : vector<4x256xf32>
    %cst_428 = arith.constant dense<0.000000e+00> : vector<256xf32>
    %591 = vector.multi_reduction <add>, %590, %cst_428 [0] : vector<4x256xf32> to vector<256xf32>
    %592 = vector.shape_cast %591 : vector<256xf32> to vector<1x256xf32>
    %593 = arith.addf %561, %592 : vector<1x256xf32>
    %c3_429 = arith.constant 3 : index
    %c1_430 = arith.constant 1 : index
    %c0_431 = arith.constant 0 : index
    %c0_432 = arith.constant 0 : index
    %594 = vector.load %arg3[%c3_429, %c1_430, %c0_431, %c0_432] : memref<4x9x4x1xf32, #tpu.memory_space<vmem>>, vector<1x1x4x1xf32>
    %595 = vector.shape_cast %594 : vector<1x1x4x1xf32> to vector<4x1xf32>
    %596 = vector.broadcast %595 : vector<4x1xf32> to vector<4x256xf32>
    %597 = arith.mulf %596, %572 : vector<4x256xf32>
    %cst_433 = arith.constant dense<0.000000e+00> : vector<256xf32>
    %598 = vector.multi_reduction <add>, %597, %cst_433 [0] : vector<4x256xf32> to vector<256xf32>
    %599 = vector.shape_cast %598 : vector<256xf32> to vector<1x256xf32>
    %600 = arith.addf %568, %599 : vector<1x256xf32>
    %c15_i32_434 = arith.constant 15 : i32
    %601 = tpu.dynamic_rotate %532 by %c15_i32_434 dim 1 : vector<4x256xf32>, i32 -> vector<4x256xf32>
    %c2_435 = arith.constant 2 : index
    %c0_436 = arith.constant 0 : index
    %c0_437 = arith.constant 0 : index
    %602 = vector.load %arg5[%c2_435, %c0_436, %c0_437] : memref<9x4x256xf32, #tpu.memory_space<vmem>>, vector<1x4x256xf32>
    %603 = vector.shape_cast %602 : vector<1x4x256xf32> to vector<4x256xf32>
    %604 = arith.mulf %601, %603 : vector<4x256xf32>
    %c0_438 = arith.constant 0 : index
    %c2_439 = arith.constant 2 : index
    %c0_440 = arith.constant 0 : index
    %c0_441 = arith.constant 0 : index
    %605 = vector.load %arg3[%c0_438, %c2_439, %c0_440, %c0_441] : memref<4x9x4x1xf32, #tpu.memory_space<vmem>>, vector<1x1x4x1xf32>
    %606 = vector.shape_cast %605 : vector<1x1x4x1xf32> to vector<4x1xf32>
    %607 = vector.broadcast %606 : vector<4x1xf32> to vector<4x256xf32>
    %608 = arith.mulf %607, %604 : vector<4x256xf32>
    %cst_442 = arith.constant dense<0.000000e+00> : vector<256xf32>
    %609 = vector.multi_reduction <add>, %608, %cst_442 [0] : vector<4x256xf32> to vector<256xf32>
    %610 = vector.shape_cast %609 : vector<256xf32> to vector<1x256xf32>
    %611 = arith.addf %579, %610 : vector<1x256xf32>
    %c1_443 = arith.constant 1 : index
    %c2_444 = arith.constant 2 : index
    %c0_445 = arith.constant 0 : index
    %c0_446 = arith.constant 0 : index
    %612 = vector.load %arg3[%c1_443, %c2_444, %c0_445, %c0_446] : memref<4x9x4x1xf32, #tpu.memory_space<vmem>>, vector<1x1x4x1xf32>
    %613 = vector.shape_cast %612 : vector<1x1x4x1xf32> to vector<4x1xf32>
    %614 = vector.broadcast %613 : vector<4x1xf32> to vector<4x256xf32>
    %615 = arith.mulf %614, %604 : vector<4x256xf32>
    %cst_447 = arith.constant dense<0.000000e+00> : vector<256xf32>
    %616 = vector.multi_reduction <add>, %615, %cst_447 [0] : vector<4x256xf32> to vector<256xf32>
    %617 = vector.shape_cast %616 : vector<256xf32> to vector<1x256xf32>
    %618 = arith.addf %586, %617 : vector<1x256xf32>
    %c2_448 = arith.constant 2 : index
    %c2_449 = arith.constant 2 : index
    %c0_450 = arith.constant 0 : index
    %c0_451 = arith.constant 0 : index
    %619 = vector.load %arg3[%c2_448, %c2_449, %c0_450, %c0_451] : memref<4x9x4x1xf32, #tpu.memory_space<vmem>>, vector<1x1x4x1xf32>
    %620 = vector.shape_cast %619 : vector<1x1x4x1xf32> to vector<4x1xf32>
    %621 = vector.broadcast %620 : vector<4x1xf32> to vector<4x256xf32>
    %622 = arith.mulf %621, %604 : vector<4x256xf32>
    %cst_452 = arith.constant dense<0.000000e+00> : vector<256xf32>
    %623 = vector.multi_reduction <add>, %622, %cst_452 [0] : vector<4x256xf32> to vector<256xf32>
    %624 = vector.shape_cast %623 : vector<256xf32> to vector<1x256xf32>
    %625 = arith.addf %593, %624 : vector<1x256xf32>
    %c3_453 = arith.constant 3 : index
    %c2_454 = arith.constant 2 : index
    %c0_455 = arith.constant 0 : index
    %c0_456 = arith.constant 0 : index
    %626 = vector.load %arg3[%c3_453, %c2_454, %c0_455, %c0_456] : memref<4x9x4x1xf32, #tpu.memory_space<vmem>>, vector<1x1x4x1xf32>
    %627 = vector.shape_cast %626 : vector<1x1x4x1xf32> to vector<4x1xf32>
    %628 = vector.broadcast %627 : vector<4x1xf32> to vector<4x256xf32>
    %629 = arith.mulf %628, %604 : vector<4x256xf32>
    %cst_457 = arith.constant dense<0.000000e+00> : vector<256xf32>
    %630 = vector.multi_reduction <add>, %629, %cst_457 [0] : vector<4x256xf32> to vector<256xf32>
    %631 = vector.shape_cast %630 : vector<256xf32> to vector<1x256xf32>
    %632 = arith.addf %600, %631 : vector<1x256xf32>
    %c1_i32_458 = arith.constant 1 : i32
    %633 = tpu.dynamic_rotate %532 by %c1_i32_458 dim 1 : vector<4x256xf32>, i32 -> vector<4x256xf32>
    %c3_459 = arith.constant 3 : index
    %c0_460 = arith.constant 0 : index
    %c0_461 = arith.constant 0 : index
    %634 = vector.load %arg5[%c3_459, %c0_460, %c0_461] : memref<9x4x256xf32, #tpu.memory_space<vmem>>, vector<1x4x256xf32>
    %635 = vector.shape_cast %634 : vector<1x4x256xf32> to vector<4x256xf32>
    %636 = arith.mulf %633, %635 : vector<4x256xf32>
    %c0_462 = arith.constant 0 : index
    %c3_463 = arith.constant 3 : index
    %c0_464 = arith.constant 0 : index
    %c0_465 = arith.constant 0 : index
    %637 = vector.load %arg3[%c0_462, %c3_463, %c0_464, %c0_465] : memref<4x9x4x1xf32, #tpu.memory_space<vmem>>, vector<1x1x4x1xf32>
    %638 = vector.shape_cast %637 : vector<1x1x4x1xf32> to vector<4x1xf32>
    %639 = vector.broadcast %638 : vector<4x1xf32> to vector<4x256xf32>
    %640 = arith.mulf %639, %636 : vector<4x256xf32>
    %cst_466 = arith.constant dense<0.000000e+00> : vector<256xf32>
    %641 = vector.multi_reduction <add>, %640, %cst_466 [0] : vector<4x256xf32> to vector<256xf32>
    %642 = vector.shape_cast %641 : vector<256xf32> to vector<1x256xf32>
    %643 = arith.addf %611, %642 : vector<1x256xf32>
    %c1_467 = arith.constant 1 : index
    %c3_468 = arith.constant 3 : index
    %c0_469 = arith.constant 0 : index
    %c0_470 = arith.constant 0 : index
    %644 = vector.load %arg3[%c1_467, %c3_468, %c0_469, %c0_470] : memref<4x9x4x1xf32, #tpu.memory_space<vmem>>, vector<1x1x4x1xf32>
    %645 = vector.shape_cast %644 : vector<1x1x4x1xf32> to vector<4x1xf32>
    %646 = vector.broadcast %645 : vector<4x1xf32> to vector<4x256xf32>
    %647 = arith.mulf %646, %636 : vector<4x256xf32>
    %cst_471 = arith.constant dense<0.000000e+00> : vector<256xf32>
    %648 = vector.multi_reduction <add>, %647, %cst_471 [0] : vector<4x256xf32> to vector<256xf32>
    %649 = vector.shape_cast %648 : vector<256xf32> to vector<1x256xf32>
    %650 = arith.addf %618, %649 : vector<1x256xf32>
    %c2_472 = arith.constant 2 : index
    %c3_473 = arith.constant 3 : index
    %c0_474 = arith.constant 0 : index
    %c0_475 = arith.constant 0 : index
    %651 = vector.load %arg3[%c2_472, %c3_473, %c0_474, %c0_475] : memref<4x9x4x1xf32, #tpu.memory_space<vmem>>, vector<1x1x4x1xf32>
    %652 = vector.shape_cast %651 : vector<1x1x4x1xf32> to vector<4x1xf32>
    %653 = vector.broadcast %652 : vector<4x1xf32> to vector<4x256xf32>
    %654 = arith.mulf %653, %636 : vector<4x256xf32>
    %cst_476 = arith.constant dense<0.000000e+00> : vector<256xf32>
    %655 = vector.multi_reduction <add>, %654, %cst_476 [0] : vector<4x256xf32> to vector<256xf32>
    %656 = vector.shape_cast %655 : vector<256xf32> to vector<1x256xf32>
    %657 = arith.addf %625, %656 : vector<1x256xf32>
    %c3_477 = arith.constant 3 : index
    %c3_478 = arith.constant 3 : index
    %c0_479 = arith.constant 0 : index
    %c0_480 = arith.constant 0 : index
    %658 = vector.load %arg3[%c3_477, %c3_478, %c0_479, %c0_480] : memref<4x9x4x1xf32, #tpu.memory_space<vmem>>, vector<1x1x4x1xf32>
    %659 = vector.shape_cast %658 : vector<1x1x4x1xf32> to vector<4x1xf32>
    %660 = vector.broadcast %659 : vector<4x1xf32> to vector<4x256xf32>
    %661 = arith.mulf %660, %636 : vector<4x256xf32>
    %cst_481 = arith.constant dense<0.000000e+00> : vector<256xf32>
    %662 = vector.multi_reduction <add>, %661, %cst_481 [0] : vector<4x256xf32> to vector<256xf32>
    %663 = vector.shape_cast %662 : vector<256xf32> to vector<1x256xf32>
    %664 = arith.addf %632, %663 : vector<1x256xf32>
    %c0_482 = arith.constant 0 : index
    %c4_483 = arith.constant 4 : index
    %c0_484 = arith.constant 0 : index
    %c0_485 = arith.constant 0 : index
    %665 = vector.load %arg3[%c0_482, %c4_483, %c0_484, %c0_485] : memref<4x9x4x1xf32, #tpu.memory_space<vmem>>, vector<1x1x4x1xf32>
    %666 = vector.shape_cast %665 : vector<1x1x4x1xf32> to vector<4x1xf32>
    %667 = vector.broadcast %666 : vector<4x1xf32> to vector<4x256xf32>
    %668 = arith.mulf %667, %532 : vector<4x256xf32>
    %cst_486 = arith.constant dense<0.000000e+00> : vector<256xf32>
    %669 = vector.multi_reduction <add>, %668, %cst_486 [0] : vector<4x256xf32> to vector<256xf32>
    %670 = vector.shape_cast %669 : vector<256xf32> to vector<1x256xf32>
    %671 = arith.addf %643, %670 : vector<1x256xf32>
    %c1_487 = arith.constant 1 : index
    %c4_488 = arith.constant 4 : index
    %c0_489 = arith.constant 0 : index
    %c0_490 = arith.constant 0 : index
    %672 = vector.load %arg3[%c1_487, %c4_488, %c0_489, %c0_490] : memref<4x9x4x1xf32, #tpu.memory_space<vmem>>, vector<1x1x4x1xf32>
    %673 = vector.shape_cast %672 : vector<1x1x4x1xf32> to vector<4x1xf32>
    %674 = vector.broadcast %673 : vector<4x1xf32> to vector<4x256xf32>
    %675 = arith.mulf %674, %532 : vector<4x256xf32>
    %cst_491 = arith.constant dense<0.000000e+00> : vector<256xf32>
    %676 = vector.multi_reduction <add>, %675, %cst_491 [0] : vector<4x256xf32> to vector<256xf32>
    %677 = vector.shape_cast %676 : vector<256xf32> to vector<1x256xf32>
    %678 = arith.addf %650, %677 : vector<1x256xf32>
    %c2_492 = arith.constant 2 : index
    %c4_493 = arith.constant 4 : index
    %c0_494 = arith.constant 0 : index
    %c0_495 = arith.constant 0 : index
    %679 = vector.load %arg3[%c2_492, %c4_493, %c0_494, %c0_495] : memref<4x9x4x1xf32, #tpu.memory_space<vmem>>, vector<1x1x4x1xf32>
    %680 = vector.shape_cast %679 : vector<1x1x4x1xf32> to vector<4x1xf32>
    %681 = vector.broadcast %680 : vector<4x1xf32> to vector<4x256xf32>
    %682 = arith.mulf %681, %532 : vector<4x256xf32>
    %cst_496 = arith.constant dense<0.000000e+00> : vector<256xf32>
    %683 = vector.multi_reduction <add>, %682, %cst_496 [0] : vector<4x256xf32> to vector<256xf32>
    %684 = vector.shape_cast %683 : vector<256xf32> to vector<1x256xf32>
    %685 = arith.addf %657, %684 : vector<1x256xf32>
    %c3_497 = arith.constant 3 : index
    %c4_498 = arith.constant 4 : index
    %c0_499 = arith.constant 0 : index
    %c0_500 = arith.constant 0 : index
    %686 = vector.load %arg3[%c3_497, %c4_498, %c0_499, %c0_500] : memref<4x9x4x1xf32, #tpu.memory_space<vmem>>, vector<1x1x4x1xf32>
    %687 = vector.shape_cast %686 : vector<1x1x4x1xf32> to vector<4x1xf32>
    %688 = vector.broadcast %687 : vector<4x1xf32> to vector<4x256xf32>
    %689 = arith.mulf %688, %532 : vector<4x256xf32>
    %cst_501 = arith.constant dense<0.000000e+00> : vector<256xf32>
    %690 = vector.multi_reduction <add>, %689, %cst_501 [0] : vector<4x256xf32> to vector<256xf32>
    %691 = vector.shape_cast %690 : vector<256xf32> to vector<1x256xf32>
    %692 = arith.addf %664, %691 : vector<1x256xf32>
    %c255_i32_502 = arith.constant 255 : i32
    %693 = tpu.dynamic_rotate %532 by %c255_i32_502 dim 1 : vector<4x256xf32>, i32 -> vector<4x256xf32>
    %c5_503 = arith.constant 5 : index
    %c0_504 = arith.constant 0 : index
    %c0_505 = arith.constant 0 : index
    %694 = vector.load %arg5[%c5_503, %c0_504, %c0_505] : memref<9x4x256xf32, #tpu.memory_space<vmem>>, vector<1x4x256xf32>
    %695 = vector.shape_cast %694 : vector<1x4x256xf32> to vector<4x256xf32>
    %696 = arith.mulf %693, %695 : vector<4x256xf32>
    %c0_506 = arith.constant 0 : index
    %c5_507 = arith.constant 5 : index
    %c0_508 = arith.constant 0 : index
    %c0_509 = arith.constant 0 : index
    %697 = vector.load %arg3[%c0_506, %c5_507, %c0_508, %c0_509] : memref<4x9x4x1xf32, #tpu.memory_space<vmem>>, vector<1x1x4x1xf32>
    %698 = vector.shape_cast %697 : vector<1x1x4x1xf32> to vector<4x1xf32>
    %699 = vector.broadcast %698 : vector<4x1xf32> to vector<4x256xf32>
    %700 = arith.mulf %699, %696 : vector<4x256xf32>
    %cst_510 = arith.constant dense<0.000000e+00> : vector<256xf32>
    %701 = vector.multi_reduction <add>, %700, %cst_510 [0] : vector<4x256xf32> to vector<256xf32>
    %702 = vector.shape_cast %701 : vector<256xf32> to vector<1x256xf32>
    %703 = arith.addf %671, %702 : vector<1x256xf32>
    %c1_511 = arith.constant 1 : index
    %c5_512 = arith.constant 5 : index
    %c0_513 = arith.constant 0 : index
    %c0_514 = arith.constant 0 : index
    %704 = vector.load %arg3[%c1_511, %c5_512, %c0_513, %c0_514] : memref<4x9x4x1xf32, #tpu.memory_space<vmem>>, vector<1x1x4x1xf32>
    %705 = vector.shape_cast %704 : vector<1x1x4x1xf32> to vector<4x1xf32>
    %706 = vector.broadcast %705 : vector<4x1xf32> to vector<4x256xf32>
    %707 = arith.mulf %706, %696 : vector<4x256xf32>
    %cst_515 = arith.constant dense<0.000000e+00> : vector<256xf32>
    %708 = vector.multi_reduction <add>, %707, %cst_515 [0] : vector<4x256xf32> to vector<256xf32>
    %709 = vector.shape_cast %708 : vector<256xf32> to vector<1x256xf32>
    %710 = arith.addf %678, %709 : vector<1x256xf32>
    %c2_516 = arith.constant 2 : index
    %c5_517 = arith.constant 5 : index
    %c0_518 = arith.constant 0 : index
    %c0_519 = arith.constant 0 : index
    %711 = vector.load %arg3[%c2_516, %c5_517, %c0_518, %c0_519] : memref<4x9x4x1xf32, #tpu.memory_space<vmem>>, vector<1x1x4x1xf32>
    %712 = vector.shape_cast %711 : vector<1x1x4x1xf32> to vector<4x1xf32>
    %713 = vector.broadcast %712 : vector<4x1xf32> to vector<4x256xf32>
    %714 = arith.mulf %713, %696 : vector<4x256xf32>
    %cst_520 = arith.constant dense<0.000000e+00> : vector<256xf32>
    %715 = vector.multi_reduction <add>, %714, %cst_520 [0] : vector<4x256xf32> to vector<256xf32>
    %716 = vector.shape_cast %715 : vector<256xf32> to vector<1x256xf32>
    %717 = arith.addf %685, %716 : vector<1x256xf32>
    %c3_521 = arith.constant 3 : index
    %c5_522 = arith.constant 5 : index
    %c0_523 = arith.constant 0 : index
    %c0_524 = arith.constant 0 : index
    %718 = vector.load %arg3[%c3_521, %c5_522, %c0_523, %c0_524] : memref<4x9x4x1xf32, #tpu.memory_space<vmem>>, vector<1x1x4x1xf32>
    %719 = vector.shape_cast %718 : vector<1x1x4x1xf32> to vector<4x1xf32>
    %720 = vector.broadcast %719 : vector<4x1xf32> to vector<4x256xf32>
    %721 = arith.mulf %720, %696 : vector<4x256xf32>
    %cst_525 = arith.constant dense<0.000000e+00> : vector<256xf32>
    %722 = vector.multi_reduction <add>, %721, %cst_525 [0] : vector<4x256xf32> to vector<256xf32>
    %723 = vector.shape_cast %722 : vector<256xf32> to vector<1x256xf32>
    %724 = arith.addf %692, %723 : vector<1x256xf32>
    %c241_i32_526 = arith.constant 241 : i32
    %725 = tpu.dynamic_rotate %532 by %c241_i32_526 dim 1 : vector<4x256xf32>, i32 -> vector<4x256xf32>
    %c6_527 = arith.constant 6 : index
    %c0_528 = arith.constant 0 : index
    %c0_529 = arith.constant 0 : index
    %726 = vector.load %arg5[%c6_527, %c0_528, %c0_529] : memref<9x4x256xf32, #tpu.memory_space<vmem>>, vector<1x4x256xf32>
    %727 = vector.shape_cast %726 : vector<1x4x256xf32> to vector<4x256xf32>
    %728 = arith.mulf %725, %727 : vector<4x256xf32>
    %c0_530 = arith.constant 0 : index
    %c6_531 = arith.constant 6 : index
    %c0_532 = arith.constant 0 : index
    %c0_533 = arith.constant 0 : index
    %729 = vector.load %arg3[%c0_530, %c6_531, %c0_532, %c0_533] : memref<4x9x4x1xf32, #tpu.memory_space<vmem>>, vector<1x1x4x1xf32>
    %730 = vector.shape_cast %729 : vector<1x1x4x1xf32> to vector<4x1xf32>
    %731 = vector.broadcast %730 : vector<4x1xf32> to vector<4x256xf32>
    %732 = arith.mulf %731, %728 : vector<4x256xf32>
    %cst_534 = arith.constant dense<0.000000e+00> : vector<256xf32>
    %733 = vector.multi_reduction <add>, %732, %cst_534 [0] : vector<4x256xf32> to vector<256xf32>
    %734 = vector.shape_cast %733 : vector<256xf32> to vector<1x256xf32>
    %735 = arith.addf %703, %734 : vector<1x256xf32>
    %c1_535 = arith.constant 1 : index
    %c6_536 = arith.constant 6 : index
    %c0_537 = arith.constant 0 : index
    %c0_538 = arith.constant 0 : index
    %736 = vector.load %arg3[%c1_535, %c6_536, %c0_537, %c0_538] : memref<4x9x4x1xf32, #tpu.memory_space<vmem>>, vector<1x1x4x1xf32>
    %737 = vector.shape_cast %736 : vector<1x1x4x1xf32> to vector<4x1xf32>
    %738 = vector.broadcast %737 : vector<4x1xf32> to vector<4x256xf32>
    %739 = arith.mulf %738, %728 : vector<4x256xf32>
    %cst_539 = arith.constant dense<0.000000e+00> : vector<256xf32>
    %740 = vector.multi_reduction <add>, %739, %cst_539 [0] : vector<4x256xf32> to vector<256xf32>
    %741 = vector.shape_cast %740 : vector<256xf32> to vector<1x256xf32>
    %742 = arith.addf %710, %741 : vector<1x256xf32>
    %c2_540 = arith.constant 2 : index
    %c6_541 = arith.constant 6 : index
    %c0_542 = arith.constant 0 : index
    %c0_543 = arith.constant 0 : index
    %743 = vector.load %arg3[%c2_540, %c6_541, %c0_542, %c0_543] : memref<4x9x4x1xf32, #tpu.memory_space<vmem>>, vector<1x1x4x1xf32>
    %744 = vector.shape_cast %743 : vector<1x1x4x1xf32> to vector<4x1xf32>
    %745 = vector.broadcast %744 : vector<4x1xf32> to vector<4x256xf32>
    %746 = arith.mulf %745, %728 : vector<4x256xf32>
    %cst_544 = arith.constant dense<0.000000e+00> : vector<256xf32>
    %747 = vector.multi_reduction <add>, %746, %cst_544 [0] : vector<4x256xf32> to vector<256xf32>
    %748 = vector.shape_cast %747 : vector<256xf32> to vector<1x256xf32>
    %749 = arith.addf %717, %748 : vector<1x256xf32>
    %c3_545 = arith.constant 3 : index
    %c6_546 = arith.constant 6 : index
    %c0_547 = arith.constant 0 : index
    %c0_548 = arith.constant 0 : index
    %750 = vector.load %arg3[%c3_545, %c6_546, %c0_547, %c0_548] : memref<4x9x4x1xf32, #tpu.memory_space<vmem>>, vector<1x1x4x1xf32>
    %751 = vector.shape_cast %750 : vector<1x1x4x1xf32> to vector<4x1xf32>
    %752 = vector.broadcast %751 : vector<4x1xf32> to vector<4x256xf32>
    %753 = arith.mulf %752, %728 : vector<4x256xf32>
    %cst_549 = arith.constant dense<0.000000e+00> : vector<256xf32>
    %754 = vector.multi_reduction <add>, %753, %cst_549 [0] : vector<4x256xf32> to vector<256xf32>
    %755 = vector.shape_cast %754 : vector<256xf32> to vector<1x256xf32>
    %756 = arith.addf %724, %755 : vector<1x256xf32>
    %c240_i32_550 = arith.constant 240 : i32
    %757 = tpu.dynamic_rotate %532 by %c240_i32_550 dim 1 : vector<4x256xf32>, i32 -> vector<4x256xf32>
    %c7_551 = arith.constant 7 : index
    %c0_552 = arith.constant 0 : index
    %c0_553 = arith.constant 0 : index
    %758 = vector.load %arg5[%c7_551, %c0_552, %c0_553] : memref<9x4x256xf32, #tpu.memory_space<vmem>>, vector<1x4x256xf32>
    %759 = vector.shape_cast %758 : vector<1x4x256xf32> to vector<4x256xf32>
    %760 = arith.mulf %757, %759 : vector<4x256xf32>
    %c0_554 = arith.constant 0 : index
    %c7_555 = arith.constant 7 : index
    %c0_556 = arith.constant 0 : index
    %c0_557 = arith.constant 0 : index
    %761 = vector.load %arg3[%c0_554, %c7_555, %c0_556, %c0_557] : memref<4x9x4x1xf32, #tpu.memory_space<vmem>>, vector<1x1x4x1xf32>
    %762 = vector.shape_cast %761 : vector<1x1x4x1xf32> to vector<4x1xf32>
    %763 = vector.broadcast %762 : vector<4x1xf32> to vector<4x256xf32>
    %764 = arith.mulf %763, %760 : vector<4x256xf32>
    %cst_558 = arith.constant dense<0.000000e+00> : vector<256xf32>
    %765 = vector.multi_reduction <add>, %764, %cst_558 [0] : vector<4x256xf32> to vector<256xf32>
    %766 = vector.shape_cast %765 : vector<256xf32> to vector<1x256xf32>
    %767 = arith.addf %735, %766 : vector<1x256xf32>
    %c1_559 = arith.constant 1 : index
    %c7_560 = arith.constant 7 : index
    %c0_561 = arith.constant 0 : index
    %c0_562 = arith.constant 0 : index
    %768 = vector.load %arg3[%c1_559, %c7_560, %c0_561, %c0_562] : memref<4x9x4x1xf32, #tpu.memory_space<vmem>>, vector<1x1x4x1xf32>
    %769 = vector.shape_cast %768 : vector<1x1x4x1xf32> to vector<4x1xf32>
    %770 = vector.broadcast %769 : vector<4x1xf32> to vector<4x256xf32>
    %771 = arith.mulf %770, %760 : vector<4x256xf32>
    %cst_563 = arith.constant dense<0.000000e+00> : vector<256xf32>
    %772 = vector.multi_reduction <add>, %771, %cst_563 [0] : vector<4x256xf32> to vector<256xf32>
    %773 = vector.shape_cast %772 : vector<256xf32> to vector<1x256xf32>
    %774 = arith.addf %742, %773 : vector<1x256xf32>
    %c2_564 = arith.constant 2 : index
    %c7_565 = arith.constant 7 : index
    %c0_566 = arith.constant 0 : index
    %c0_567 = arith.constant 0 : index
    %775 = vector.load %arg3[%c2_564, %c7_565, %c0_566, %c0_567] : memref<4x9x4x1xf32, #tpu.memory_space<vmem>>, vector<1x1x4x1xf32>
    %776 = vector.shape_cast %775 : vector<1x1x4x1xf32> to vector<4x1xf32>
    %777 = vector.broadcast %776 : vector<4x1xf32> to vector<4x256xf32>
    %778 = arith.mulf %777, %760 : vector<4x256xf32>
    %cst_568 = arith.constant dense<0.000000e+00> : vector<256xf32>
    %779 = vector.multi_reduction <add>, %778, %cst_568 [0] : vector<4x256xf32> to vector<256xf32>
    %780 = vector.shape_cast %779 : vector<256xf32> to vector<1x256xf32>
    %781 = arith.addf %749, %780 : vector<1x256xf32>
    %c3_569 = arith.constant 3 : index
    %c7_570 = arith.constant 7 : index
    %c0_571 = arith.constant 0 : index
    %c0_572 = arith.constant 0 : index
    %782 = vector.load %arg3[%c3_569, %c7_570, %c0_571, %c0_572] : memref<4x9x4x1xf32, #tpu.memory_space<vmem>>, vector<1x1x4x1xf32>
    %783 = vector.shape_cast %782 : vector<1x1x4x1xf32> to vector<4x1xf32>
    %784 = vector.broadcast %783 : vector<4x1xf32> to vector<4x256xf32>
    %785 = arith.mulf %784, %760 : vector<4x256xf32>
    %cst_573 = arith.constant dense<0.000000e+00> : vector<256xf32>
    %786 = vector.multi_reduction <add>, %785, %cst_573 [0] : vector<4x256xf32> to vector<256xf32>
    %787 = vector.shape_cast %786 : vector<256xf32> to vector<1x256xf32>
    %788 = arith.addf %756, %787 : vector<1x256xf32>
    %c239_i32_574 = arith.constant 239 : i32
    %789 = tpu.dynamic_rotate %532 by %c239_i32_574 dim 1 : vector<4x256xf32>, i32 -> vector<4x256xf32>
    %c8_575 = arith.constant 8 : index
    %c0_576 = arith.constant 0 : index
    %c0_577 = arith.constant 0 : index
    %790 = vector.load %arg5[%c8_575, %c0_576, %c0_577] : memref<9x4x256xf32, #tpu.memory_space<vmem>>, vector<1x4x256xf32>
    %791 = vector.shape_cast %790 : vector<1x4x256xf32> to vector<4x256xf32>
    %792 = arith.mulf %789, %791 : vector<4x256xf32>
    %c0_578 = arith.constant 0 : index
    %c8_579 = arith.constant 8 : index
    %c0_580 = arith.constant 0 : index
    %c0_581 = arith.constant 0 : index
    %793 = vector.load %arg3[%c0_578, %c8_579, %c0_580, %c0_581] : memref<4x9x4x1xf32, #tpu.memory_space<vmem>>, vector<1x1x4x1xf32>
    %794 = vector.shape_cast %793 : vector<1x1x4x1xf32> to vector<4x1xf32>
    %795 = vector.broadcast %794 : vector<4x1xf32> to vector<4x256xf32>
    %796 = arith.mulf %795, %792 : vector<4x256xf32>
    %cst_582 = arith.constant dense<0.000000e+00> : vector<256xf32>
    %797 = vector.multi_reduction <add>, %796, %cst_582 [0] : vector<4x256xf32> to vector<256xf32>
    %798 = vector.shape_cast %797 : vector<256xf32> to vector<1x256xf32>
    %799 = arith.addf %767, %798 : vector<1x256xf32>
    %c1_583 = arith.constant 1 : index
    %c8_584 = arith.constant 8 : index
    %c0_585 = arith.constant 0 : index
    %c0_586 = arith.constant 0 : index
    %800 = vector.load %arg3[%c1_583, %c8_584, %c0_585, %c0_586] : memref<4x9x4x1xf32, #tpu.memory_space<vmem>>, vector<1x1x4x1xf32>
    %801 = vector.shape_cast %800 : vector<1x1x4x1xf32> to vector<4x1xf32>
    %802 = vector.broadcast %801 : vector<4x1xf32> to vector<4x256xf32>
    %803 = arith.mulf %802, %792 : vector<4x256xf32>
    %cst_587 = arith.constant dense<0.000000e+00> : vector<256xf32>
    %804 = vector.multi_reduction <add>, %803, %cst_587 [0] : vector<4x256xf32> to vector<256xf32>
    %805 = vector.shape_cast %804 : vector<256xf32> to vector<1x256xf32>
    %806 = arith.addf %774, %805 : vector<1x256xf32>
    %c2_588 = arith.constant 2 : index
    %c8_589 = arith.constant 8 : index
    %c0_590 = arith.constant 0 : index
    %c0_591 = arith.constant 0 : index
    %807 = vector.load %arg3[%c2_588, %c8_589, %c0_590, %c0_591] : memref<4x9x4x1xf32, #tpu.memory_space<vmem>>, vector<1x1x4x1xf32>
    %808 = vector.shape_cast %807 : vector<1x1x4x1xf32> to vector<4x1xf32>
    %809 = vector.broadcast %808 : vector<4x1xf32> to vector<4x256xf32>
    %810 = arith.mulf %809, %792 : vector<4x256xf32>
    %cst_592 = arith.constant dense<0.000000e+00> : vector<256xf32>
    %811 = vector.multi_reduction <add>, %810, %cst_592 [0] : vector<4x256xf32> to vector<256xf32>
    %812 = vector.shape_cast %811 : vector<256xf32> to vector<1x256xf32>
    %813 = arith.addf %781, %812 : vector<1x256xf32>
    %c3_593 = arith.constant 3 : index
    %c8_594 = arith.constant 8 : index
    %c0_595 = arith.constant 0 : index
    %c0_596 = arith.constant 0 : index
    %814 = vector.load %arg3[%c3_593, %c8_594, %c0_595, %c0_596] : memref<4x9x4x1xf32, #tpu.memory_space<vmem>>, vector<1x1x4x1xf32>
    %815 = vector.shape_cast %814 : vector<1x1x4x1xf32> to vector<4x1xf32>
    %816 = vector.broadcast %815 : vector<4x1xf32> to vector<4x256xf32>
    %817 = arith.mulf %816, %792 : vector<4x256xf32>
    %cst_597 = arith.constant dense<0.000000e+00> : vector<256xf32>
    %818 = vector.multi_reduction <add>, %817, %cst_597 [0] : vector<4x256xf32> to vector<256xf32>
    %819 = vector.shape_cast %818 : vector<256xf32> to vector<1x256xf32>
    %820 = arith.addf %788, %819 : vector<1x256xf32>
    %821 = tpu.concatenate %799, %806, %813, %820 in 0 : vector<1x256xf32>, vector<1x256xf32>, vector<1x256xf32>, vector<1x256xf32> -> vector<4x256xf32>
    %822 = arith.index_cast %arg0 : i32 to index
    %c1_598 = arith.constant 1 : index
    %823 = memref.load %arg1[%822, %c1_598] : memref<2x4xf32, #tpu.memory_space<smem>>
    %824 = vector.broadcast %823 : f32 to vector<4x1xf32>
    %825 = arith.mulf %824, %0 : vector<4x1xf32>
    %826 = vector.broadcast %825 : vector<4x1xf32> to vector<4x256xf32>
    %827 = arith.addf %821, %826 : vector<4x256xf32>
    %cst_599 = arith.constant 0.000000e+00 : f32
    %828 = vector.broadcast %cst_599 : f32 to vector<4x256xf32>
    %829 = arith.maximumf %827, %828 : vector<4x256xf32>
    %830 = arith.addf %532, %829 : vector<4x256xf32>
    %cst_600 = arith.constant 0.000000e+00 : f32
    %831 = vector.broadcast %cst_600 : f32 to vector<1x256xf32>
    %cst_601 = arith.constant 0.000000e+00 : f32
    %832 = vector.broadcast %cst_601 : f32 to vector<1x256xf32>
    %cst_602 = arith.constant 0.000000e+00 : f32
    %833 = vector.broadcast %cst_602 : f32 to vector<1x256xf32>
    %c17_i32_603 = arith.constant 17 : i32
    %834 = tpu.dynamic_rotate %830 by %c17_i32_603 dim 1 : vector<4x256xf32>, i32 -> vector<4x256xf32>
    %c0_604 = arith.constant 0 : index
    %c0_605 = arith.constant 0 : index
    %c0_606 = arith.constant 0 : index
    %835 = vector.load %arg5[%c0_604, %c0_605, %c0_606] : memref<9x4x256xf32, #tpu.memory_space<vmem>>, vector<1x4x256xf32>
    %836 = vector.shape_cast %835 : vector<1x4x256xf32> to vector<4x256xf32>
    %837 = arith.mulf %834, %836 : vector<4x256xf32>
    %c0_607 = arith.constant 0 : index
    %c0_608 = arith.constant 0 : index
    %c0_609 = arith.constant 0 : index
    %c0_610 = arith.constant 0 : index
    %838 = vector.load %arg4[%c0_607, %c0_608, %c0_609, %c0_610] : memref<3x9x4x1xf32, #tpu.memory_space<vmem>>, vector<1x1x4x1xf32>
    %839 = vector.shape_cast %838 : vector<1x1x4x1xf32> to vector<4x1xf32>
    %840 = vector.broadcast %839 : vector<4x1xf32> to vector<4x256xf32>
    %841 = arith.mulf %840, %837 : vector<4x256xf32>
    %cst_611 = arith.constant dense<0.000000e+00> : vector<256xf32>
    %842 = vector.multi_reduction <add>, %841, %cst_611 [0] : vector<4x256xf32> to vector<256xf32>
    %843 = vector.shape_cast %842 : vector<256xf32> to vector<1x256xf32>
    %844 = arith.addf %831, %843 : vector<1x256xf32>
    %c1_612 = arith.constant 1 : index
    %c0_613 = arith.constant 0 : index
    %c0_614 = arith.constant 0 : index
    %c0_615 = arith.constant 0 : index
    %845 = vector.load %arg4[%c1_612, %c0_613, %c0_614, %c0_615] : memref<3x9x4x1xf32, #tpu.memory_space<vmem>>, vector<1x1x4x1xf32>
    %846 = vector.shape_cast %845 : vector<1x1x4x1xf32> to vector<4x1xf32>
    %847 = vector.broadcast %846 : vector<4x1xf32> to vector<4x256xf32>
    %848 = arith.mulf %847, %837 : vector<4x256xf32>
    %cst_616 = arith.constant dense<0.000000e+00> : vector<256xf32>
    %849 = vector.multi_reduction <add>, %848, %cst_616 [0] : vector<4x256xf32> to vector<256xf32>
    %850 = vector.shape_cast %849 : vector<256xf32> to vector<1x256xf32>
    %851 = arith.addf %832, %850 : vector<1x256xf32>
    %c2_617 = arith.constant 2 : index
    %c0_618 = arith.constant 0 : index
    %c0_619 = arith.constant 0 : index
    %c0_620 = arith.constant 0 : index
    %852 = vector.load %arg4[%c2_617, %c0_618, %c0_619, %c0_620] : memref<3x9x4x1xf32, #tpu.memory_space<vmem>>, vector<1x1x4x1xf32>
    %853 = vector.shape_cast %852 : vector<1x1x4x1xf32> to vector<4x1xf32>
    %854 = vector.broadcast %853 : vector<4x1xf32> to vector<4x256xf32>
    %855 = arith.mulf %854, %837 : vector<4x256xf32>
    %cst_621 = arith.constant dense<0.000000e+00> : vector<256xf32>
    %856 = vector.multi_reduction <add>, %855, %cst_621 [0] : vector<4x256xf32> to vector<256xf32>
    %857 = vector.shape_cast %856 : vector<256xf32> to vector<1x256xf32>
    %858 = arith.addf %833, %857 : vector<1x256xf32>
    %c16_i32_622 = arith.constant 16 : i32
    %859 = tpu.dynamic_rotate %830 by %c16_i32_622 dim 1 : vector<4x256xf32>, i32 -> vector<4x256xf32>
    %c1_623 = arith.constant 1 : index
    %c0_624 = arith.constant 0 : index
    %c0_625 = arith.constant 0 : index
    %860 = vector.load %arg5[%c1_623, %c0_624, %c0_625] : memref<9x4x256xf32, #tpu.memory_space<vmem>>, vector<1x4x256xf32>
    %861 = vector.shape_cast %860 : vector<1x4x256xf32> to vector<4x256xf32>
    %862 = arith.mulf %859, %861 : vector<4x256xf32>
    %c0_626 = arith.constant 0 : index
    %c1_627 = arith.constant 1 : index
    %c0_628 = arith.constant 0 : index
    %c0_629 = arith.constant 0 : index
    %863 = vector.load %arg4[%c0_626, %c1_627, %c0_628, %c0_629] : memref<3x9x4x1xf32, #tpu.memory_space<vmem>>, vector<1x1x4x1xf32>
    %864 = vector.shape_cast %863 : vector<1x1x4x1xf32> to vector<4x1xf32>
    %865 = vector.broadcast %864 : vector<4x1xf32> to vector<4x256xf32>
    %866 = arith.mulf %865, %862 : vector<4x256xf32>
    %cst_630 = arith.constant dense<0.000000e+00> : vector<256xf32>
    %867 = vector.multi_reduction <add>, %866, %cst_630 [0] : vector<4x256xf32> to vector<256xf32>
    %868 = vector.shape_cast %867 : vector<256xf32> to vector<1x256xf32>
    %869 = arith.addf %844, %868 : vector<1x256xf32>
    %c1_631 = arith.constant 1 : index
    %c1_632 = arith.constant 1 : index
    %c0_633 = arith.constant 0 : index
    %c0_634 = arith.constant 0 : index
    %870 = vector.load %arg4[%c1_631, %c1_632, %c0_633, %c0_634] : memref<3x9x4x1xf32, #tpu.memory_space<vmem>>, vector<1x1x4x1xf32>
    %871 = vector.shape_cast %870 : vector<1x1x4x1xf32> to vector<4x1xf32>
    %872 = vector.broadcast %871 : vector<4x1xf32> to vector<4x256xf32>
    %873 = arith.mulf %872, %862 : vector<4x256xf32>
    %cst_635 = arith.constant dense<0.000000e+00> : vector<256xf32>
    %874 = vector.multi_reduction <add>, %873, %cst_635 [0] : vector<4x256xf32> to vector<256xf32>
    %875 = vector.shape_cast %874 : vector<256xf32> to vector<1x256xf32>
    %876 = arith.addf %851, %875 : vector<1x256xf32>
    %c2_636 = arith.constant 2 : index
    %c1_637 = arith.constant 1 : index
    %c0_638 = arith.constant 0 : index
    %c0_639 = arith.constant 0 : index
    %877 = vector.load %arg4[%c2_636, %c1_637, %c0_638, %c0_639] : memref<3x9x4x1xf32, #tpu.memory_space<vmem>>, vector<1x1x4x1xf32>
    %878 = vector.shape_cast %877 : vector<1x1x4x1xf32> to vector<4x1xf32>
    %879 = vector.broadcast %878 : vector<4x1xf32> to vector<4x256xf32>
    %880 = arith.mulf %879, %862 : vector<4x256xf32>
    %cst_640 = arith.constant dense<0.000000e+00> : vector<256xf32>
    %881 = vector.multi_reduction <add>, %880, %cst_640 [0] : vector<4x256xf32> to vector<256xf32>
    %882 = vector.shape_cast %881 : vector<256xf32> to vector<1x256xf32>
    %883 = arith.addf %858, %882 : vector<1x256xf32>
    %c15_i32_641 = arith.constant 15 : i32
    %884 = tpu.dynamic_rotate %830 by %c15_i32_641 dim 1 : vector<4x256xf32>, i32 -> vector<4x256xf32>
    %c2_642 = arith.constant 2 : index
    %c0_643 = arith.constant 0 : index
    %c0_644 = arith.constant 0 : index
    %885 = vector.load %arg5[%c2_642, %c0_643, %c0_644] : memref<9x4x256xf32, #tpu.memory_space<vmem>>, vector<1x4x256xf32>
    %886 = vector.shape_cast %885 : vector<1x4x256xf32> to vector<4x256xf32>
    %887 = arith.mulf %884, %886 : vector<4x256xf32>
    %c0_645 = arith.constant 0 : index
    %c2_646 = arith.constant 2 : index
    %c0_647 = arith.constant 0 : index
    %c0_648 = arith.constant 0 : index
    %888 = vector.load %arg4[%c0_645, %c2_646, %c0_647, %c0_648] : memref<3x9x4x1xf32, #tpu.memory_space<vmem>>, vector<1x1x4x1xf32>
    %889 = vector.shape_cast %888 : vector<1x1x4x1xf32> to vector<4x1xf32>
    %890 = vector.broadcast %889 : vector<4x1xf32> to vector<4x256xf32>
    %891 = arith.mulf %890, %887 : vector<4x256xf32>
    %cst_649 = arith.constant dense<0.000000e+00> : vector<256xf32>
    %892 = vector.multi_reduction <add>, %891, %cst_649 [0] : vector<4x256xf32> to vector<256xf32>
    %893 = vector.shape_cast %892 : vector<256xf32> to vector<1x256xf32>
    %894 = arith.addf %869, %893 : vector<1x256xf32>
    %c1_650 = arith.constant 1 : index
    %c2_651 = arith.constant 2 : index
    %c0_652 = arith.constant 0 : index
    %c0_653 = arith.constant 0 : index
    %895 = vector.load %arg4[%c1_650, %c2_651, %c0_652, %c0_653] : memref<3x9x4x1xf32, #tpu.memory_space<vmem>>, vector<1x1x4x1xf32>
    %896 = vector.shape_cast %895 : vector<1x1x4x1xf32> to vector<4x1xf32>
    %897 = vector.broadcast %896 : vector<4x1xf32> to vector<4x256xf32>
    %898 = arith.mulf %897, %887 : vector<4x256xf32>
    %cst_654 = arith.constant dense<0.000000e+00> : vector<256xf32>
    %899 = vector.multi_reduction <add>, %898, %cst_654 [0] : vector<4x256xf32> to vector<256xf32>
    %900 = vector.shape_cast %899 : vector<256xf32> to vector<1x256xf32>
    %901 = arith.addf %876, %900 : vector<1x256xf32>
    %c2_655 = arith.constant 2 : index
    %c2_656 = arith.constant 2 : index
    %c0_657 = arith.constant 0 : index
    %c0_658 = arith.constant 0 : index
    %902 = vector.load %arg4[%c2_655, %c2_656, %c0_657, %c0_658] : memref<3x9x4x1xf32, #tpu.memory_space<vmem>>, vector<1x1x4x1xf32>
    %903 = vector.shape_cast %902 : vector<1x1x4x1xf32> to vector<4x1xf32>
    %904 = vector.broadcast %903 : vector<4x1xf32> to vector<4x256xf32>
    %905 = arith.mulf %904, %887 : vector<4x256xf32>
    %cst_659 = arith.constant dense<0.000000e+00> : vector<256xf32>
    %906 = vector.multi_reduction <add>, %905, %cst_659 [0] : vector<4x256xf32> to vector<256xf32>
    %907 = vector.shape_cast %906 : vector<256xf32> to vector<1x256xf32>
    %908 = arith.addf %883, %907 : vector<1x256xf32>
    %c1_i32_660 = arith.constant 1 : i32
    %909 = tpu.dynamic_rotate %830 by %c1_i32_660 dim 1 : vector<4x256xf32>, i32 -> vector<4x256xf32>
    %c3_661 = arith.constant 3 : index
    %c0_662 = arith.constant 0 : index
    %c0_663 = arith.constant 0 : index
    %910 = vector.load %arg5[%c3_661, %c0_662, %c0_663] : memref<9x4x256xf32, #tpu.memory_space<vmem>>, vector<1x4x256xf32>
    %911 = vector.shape_cast %910 : vector<1x4x256xf32> to vector<4x256xf32>
    %912 = arith.mulf %909, %911 : vector<4x256xf32>
    %c0_664 = arith.constant 0 : index
    %c3_665 = arith.constant 3 : index
    %c0_666 = arith.constant 0 : index
    %c0_667 = arith.constant 0 : index
    %913 = vector.load %arg4[%c0_664, %c3_665, %c0_666, %c0_667] : memref<3x9x4x1xf32, #tpu.memory_space<vmem>>, vector<1x1x4x1xf32>
    %914 = vector.shape_cast %913 : vector<1x1x4x1xf32> to vector<4x1xf32>
    %915 = vector.broadcast %914 : vector<4x1xf32> to vector<4x256xf32>
    %916 = arith.mulf %915, %912 : vector<4x256xf32>
    %cst_668 = arith.constant dense<0.000000e+00> : vector<256xf32>
    %917 = vector.multi_reduction <add>, %916, %cst_668 [0] : vector<4x256xf32> to vector<256xf32>
    %918 = vector.shape_cast %917 : vector<256xf32> to vector<1x256xf32>
    %919 = arith.addf %894, %918 : vector<1x256xf32>
    %c1_669 = arith.constant 1 : index
    %c3_670 = arith.constant 3 : index
    %c0_671 = arith.constant 0 : index
    %c0_672 = arith.constant 0 : index
    %920 = vector.load %arg4[%c1_669, %c3_670, %c0_671, %c0_672] : memref<3x9x4x1xf32, #tpu.memory_space<vmem>>, vector<1x1x4x1xf32>
    %921 = vector.shape_cast %920 : vector<1x1x4x1xf32> to vector<4x1xf32>
    %922 = vector.broadcast %921 : vector<4x1xf32> to vector<4x256xf32>
    %923 = arith.mulf %922, %912 : vector<4x256xf32>
    %cst_673 = arith.constant dense<0.000000e+00> : vector<256xf32>
    %924 = vector.multi_reduction <add>, %923, %cst_673 [0] : vector<4x256xf32> to vector<256xf32>
    %925 = vector.shape_cast %924 : vector<256xf32> to vector<1x256xf32>
    %926 = arith.addf %901, %925 : vector<1x256xf32>
    %c2_674 = arith.constant 2 : index
    %c3_675 = arith.constant 3 : index
    %c0_676 = arith.constant 0 : index
    %c0_677 = arith.constant 0 : index
    %927 = vector.load %arg4[%c2_674, %c3_675, %c0_676, %c0_677] : memref<3x9x4x1xf32, #tpu.memory_space<vmem>>, vector<1x1x4x1xf32>
    %928 = vector.shape_cast %927 : vector<1x1x4x1xf32> to vector<4x1xf32>
    %929 = vector.broadcast %928 : vector<4x1xf32> to vector<4x256xf32>
    %930 = arith.mulf %929, %912 : vector<4x256xf32>
    %cst_678 = arith.constant dense<0.000000e+00> : vector<256xf32>
    %931 = vector.multi_reduction <add>, %930, %cst_678 [0] : vector<4x256xf32> to vector<256xf32>
    %932 = vector.shape_cast %931 : vector<256xf32> to vector<1x256xf32>
    %933 = arith.addf %908, %932 : vector<1x256xf32>
    %c0_679 = arith.constant 0 : index
    %c4_680 = arith.constant 4 : index
    %c0_681 = arith.constant 0 : index
    %c0_682 = arith.constant 0 : index
    %934 = vector.load %arg4[%c0_679, %c4_680, %c0_681, %c0_682] : memref<3x9x4x1xf32, #tpu.memory_space<vmem>>, vector<1x1x4x1xf32>
    %935 = vector.shape_cast %934 : vector<1x1x4x1xf32> to vector<4x1xf32>
    %936 = vector.broadcast %935 : vector<4x1xf32> to vector<4x256xf32>
    %937 = arith.mulf %936, %830 : vector<4x256xf32>
    %cst_683 = arith.constant dense<0.000000e+00> : vector<256xf32>
    %938 = vector.multi_reduction <add>, %937, %cst_683 [0] : vector<4x256xf32> to vector<256xf32>
    %939 = vector.shape_cast %938 : vector<256xf32> to vector<1x256xf32>
    %940 = arith.addf %919, %939 : vector<1x256xf32>
    %c1_684 = arith.constant 1 : index
    %c4_685 = arith.constant 4 : index
    %c0_686 = arith.constant 0 : index
    %c0_687 = arith.constant 0 : index
    %941 = vector.load %arg4[%c1_684, %c4_685, %c0_686, %c0_687] : memref<3x9x4x1xf32, #tpu.memory_space<vmem>>, vector<1x1x4x1xf32>
    %942 = vector.shape_cast %941 : vector<1x1x4x1xf32> to vector<4x1xf32>
    %943 = vector.broadcast %942 : vector<4x1xf32> to vector<4x256xf32>
    %944 = arith.mulf %943, %830 : vector<4x256xf32>
    %cst_688 = arith.constant dense<0.000000e+00> : vector<256xf32>
    %945 = vector.multi_reduction <add>, %944, %cst_688 [0] : vector<4x256xf32> to vector<256xf32>
    %946 = vector.shape_cast %945 : vector<256xf32> to vector<1x256xf32>
    %947 = arith.addf %926, %946 : vector<1x256xf32>
    %c2_689 = arith.constant 2 : index
    %c4_690 = arith.constant 4 : index
    %c0_691 = arith.constant 0 : index
    %c0_692 = arith.constant 0 : index
    %948 = vector.load %arg4[%c2_689, %c4_690, %c0_691, %c0_692] : memref<3x9x4x1xf32, #tpu.memory_space<vmem>>, vector<1x1x4x1xf32>
    %949 = vector.shape_cast %948 : vector<1x1x4x1xf32> to vector<4x1xf32>
    %950 = vector.broadcast %949 : vector<4x1xf32> to vector<4x256xf32>
    %951 = arith.mulf %950, %830 : vector<4x256xf32>
    %cst_693 = arith.constant dense<0.000000e+00> : vector<256xf32>
    %952 = vector.multi_reduction <add>, %951, %cst_693 [0] : vector<4x256xf32> to vector<256xf32>
    %953 = vector.shape_cast %952 : vector<256xf32> to vector<1x256xf32>
    %954 = arith.addf %933, %953 : vector<1x256xf32>
    %c255_i32_694 = arith.constant 255 : i32
    %955 = tpu.dynamic_rotate %830 by %c255_i32_694 dim 1 : vector<4x256xf32>, i32 -> vector<4x256xf32>
    %c5_695 = arith.constant 5 : index
    %c0_696 = arith.constant 0 : index
    %c0_697 = arith.constant 0 : index
    %956 = vector.load %arg5[%c5_695, %c0_696, %c0_697] : memref<9x4x256xf32, #tpu.memory_space<vmem>>, vector<1x4x256xf32>
    %957 = vector.shape_cast %956 : vector<1x4x256xf32> to vector<4x256xf32>
    %958 = arith.mulf %955, %957 : vector<4x256xf32>
    %c0_698 = arith.constant 0 : index
    %c5_699 = arith.constant 5 : index
    %c0_700 = arith.constant 0 : index
    %c0_701 = arith.constant 0 : index
    %959 = vector.load %arg4[%c0_698, %c5_699, %c0_700, %c0_701] : memref<3x9x4x1xf32, #tpu.memory_space<vmem>>, vector<1x1x4x1xf32>
    %960 = vector.shape_cast %959 : vector<1x1x4x1xf32> to vector<4x1xf32>
    %961 = vector.broadcast %960 : vector<4x1xf32> to vector<4x256xf32>
    %962 = arith.mulf %961, %958 : vector<4x256xf32>
    %cst_702 = arith.constant dense<0.000000e+00> : vector<256xf32>
    %963 = vector.multi_reduction <add>, %962, %cst_702 [0] : vector<4x256xf32> to vector<256xf32>
    %964 = vector.shape_cast %963 : vector<256xf32> to vector<1x256xf32>
    %965 = arith.addf %940, %964 : vector<1x256xf32>
    %c1_703 = arith.constant 1 : index
    %c5_704 = arith.constant 5 : index
    %c0_705 = arith.constant 0 : index
    %c0_706 = arith.constant 0 : index
    %966 = vector.load %arg4[%c1_703, %c5_704, %c0_705, %c0_706] : memref<3x9x4x1xf32, #tpu.memory_space<vmem>>, vector<1x1x4x1xf32>
    %967 = vector.shape_cast %966 : vector<1x1x4x1xf32> to vector<4x1xf32>
    %968 = vector.broadcast %967 : vector<4x1xf32> to vector<4x256xf32>
    %969 = arith.mulf %968, %958 : vector<4x256xf32>
    %cst_707 = arith.constant dense<0.000000e+00> : vector<256xf32>
    %970 = vector.multi_reduction <add>, %969, %cst_707 [0] : vector<4x256xf32> to vector<256xf32>
    %971 = vector.shape_cast %970 : vector<256xf32> to vector<1x256xf32>
    %972 = arith.addf %947, %971 : vector<1x256xf32>
    %c2_708 = arith.constant 2 : index
    %c5_709 = arith.constant 5 : index
    %c0_710 = arith.constant 0 : index
    %c0_711 = arith.constant 0 : index
    %973 = vector.load %arg4[%c2_708, %c5_709, %c0_710, %c0_711] : memref<3x9x4x1xf32, #tpu.memory_space<vmem>>, vector<1x1x4x1xf32>
    %974 = vector.shape_cast %973 : vector<1x1x4x1xf32> to vector<4x1xf32>
    %975 = vector.broadcast %974 : vector<4x1xf32> to vector<4x256xf32>
    %976 = arith.mulf %975, %958 : vector<4x256xf32>
    %cst_712 = arith.constant dense<0.000000e+00> : vector<256xf32>
    %977 = vector.multi_reduction <add>, %976, %cst_712 [0] : vector<4x256xf32> to vector<256xf32>
    %978 = vector.shape_cast %977 : vector<256xf32> to vector<1x256xf32>
    %979 = arith.addf %954, %978 : vector<1x256xf32>
    %c241_i32_713 = arith.constant 241 : i32
    %980 = tpu.dynamic_rotate %830 by %c241_i32_713 dim 1 : vector<4x256xf32>, i32 -> vector<4x256xf32>
    %c6_714 = arith.constant 6 : index
    %c0_715 = arith.constant 0 : index
    %c0_716 = arith.constant 0 : index
    %981 = vector.load %arg5[%c6_714, %c0_715, %c0_716] : memref<9x4x256xf32, #tpu.memory_space<vmem>>, vector<1x4x256xf32>
    %982 = vector.shape_cast %981 : vector<1x4x256xf32> to vector<4x256xf32>
    %983 = arith.mulf %980, %982 : vector<4x256xf32>
    %c0_717 = arith.constant 0 : index
    %c6_718 = arith.constant 6 : index
    %c0_719 = arith.constant 0 : index
    %c0_720 = arith.constant 0 : index
    %984 = vector.load %arg4[%c0_717, %c6_718, %c0_719, %c0_720] : memref<3x9x4x1xf32, #tpu.memory_space<vmem>>, vector<1x1x4x1xf32>
    %985 = vector.shape_cast %984 : vector<1x1x4x1xf32> to vector<4x1xf32>
    %986 = vector.broadcast %985 : vector<4x1xf32> to vector<4x256xf32>
    %987 = arith.mulf %986, %983 : vector<4x256xf32>
    %cst_721 = arith.constant dense<0.000000e+00> : vector<256xf32>
    %988 = vector.multi_reduction <add>, %987, %cst_721 [0] : vector<4x256xf32> to vector<256xf32>
    %989 = vector.shape_cast %988 : vector<256xf32> to vector<1x256xf32>
    %990 = arith.addf %965, %989 : vector<1x256xf32>
    %c1_722 = arith.constant 1 : index
    %c6_723 = arith.constant 6 : index
    %c0_724 = arith.constant 0 : index
    %c0_725 = arith.constant 0 : index
    %991 = vector.load %arg4[%c1_722, %c6_723, %c0_724, %c0_725] : memref<3x9x4x1xf32, #tpu.memory_space<vmem>>, vector<1x1x4x1xf32>
    %992 = vector.shape_cast %991 : vector<1x1x4x1xf32> to vector<4x1xf32>
    %993 = vector.broadcast %992 : vector<4x1xf32> to vector<4x256xf32>
    %994 = arith.mulf %993, %983 : vector<4x256xf32>
    %cst_726 = arith.constant dense<0.000000e+00> : vector<256xf32>
    %995 = vector.multi_reduction <add>, %994, %cst_726 [0] : vector<4x256xf32> to vector<256xf32>
    %996 = vector.shape_cast %995 : vector<256xf32> to vector<1x256xf32>
    %997 = arith.addf %972, %996 : vector<1x256xf32>
    %c2_727 = arith.constant 2 : index
    %c6_728 = arith.constant 6 : index
    %c0_729 = arith.constant 0 : index
    %c0_730 = arith.constant 0 : index
    %998 = vector.load %arg4[%c2_727, %c6_728, %c0_729, %c0_730] : memref<3x9x4x1xf32, #tpu.memory_space<vmem>>, vector<1x1x4x1xf32>
    %999 = vector.shape_cast %998 : vector<1x1x4x1xf32> to vector<4x1xf32>
    %1000 = vector.broadcast %999 : vector<4x1xf32> to vector<4x256xf32>
    %1001 = arith.mulf %1000, %983 : vector<4x256xf32>
    %cst_731 = arith.constant dense<0.000000e+00> : vector<256xf32>
    %1002 = vector.multi_reduction <add>, %1001, %cst_731 [0] : vector<4x256xf32> to vector<256xf32>
    %1003 = vector.shape_cast %1002 : vector<256xf32> to vector<1x256xf32>
    %1004 = arith.addf %979, %1003 : vector<1x256xf32>
    %c240_i32_732 = arith.constant 240 : i32
    %1005 = tpu.dynamic_rotate %830 by %c240_i32_732 dim 1 : vector<4x256xf32>, i32 -> vector<4x256xf32>
    %c7_733 = arith.constant 7 : index
    %c0_734 = arith.constant 0 : index
    %c0_735 = arith.constant 0 : index
    %1006 = vector.load %arg5[%c7_733, %c0_734, %c0_735] : memref<9x4x256xf32, #tpu.memory_space<vmem>>, vector<1x4x256xf32>
    %1007 = vector.shape_cast %1006 : vector<1x4x256xf32> to vector<4x256xf32>
    %1008 = arith.mulf %1005, %1007 : vector<4x256xf32>
    %c0_736 = arith.constant 0 : index
    %c7_737 = arith.constant 7 : index
    %c0_738 = arith.constant 0 : index
    %c0_739 = arith.constant 0 : index
    %1009 = vector.load %arg4[%c0_736, %c7_737, %c0_738, %c0_739] : memref<3x9x4x1xf32, #tpu.memory_space<vmem>>, vector<1x1x4x1xf32>
    %1010 = vector.shape_cast %1009 : vector<1x1x4x1xf32> to vector<4x1xf32>
    %1011 = vector.broadcast %1010 : vector<4x1xf32> to vector<4x256xf32>
    %1012 = arith.mulf %1011, %1008 : vector<4x256xf32>
    %cst_740 = arith.constant dense<0.000000e+00> : vector<256xf32>
    %1013 = vector.multi_reduction <add>, %1012, %cst_740 [0] : vector<4x256xf32> to vector<256xf32>
    %1014 = vector.shape_cast %1013 : vector<256xf32> to vector<1x256xf32>
    %1015 = arith.addf %990, %1014 : vector<1x256xf32>
    %c1_741 = arith.constant 1 : index
    %c7_742 = arith.constant 7 : index
    %c0_743 = arith.constant 0 : index
    %c0_744 = arith.constant 0 : index
    %1016 = vector.load %arg4[%c1_741, %c7_742, %c0_743, %c0_744] : memref<3x9x4x1xf32, #tpu.memory_space<vmem>>, vector<1x1x4x1xf32>
    %1017 = vector.shape_cast %1016 : vector<1x1x4x1xf32> to vector<4x1xf32>
    %1018 = vector.broadcast %1017 : vector<4x1xf32> to vector<4x256xf32>
    %1019 = arith.mulf %1018, %1008 : vector<4x256xf32>
    %cst_745 = arith.constant dense<0.000000e+00> : vector<256xf32>
    %1020 = vector.multi_reduction <add>, %1019, %cst_745 [0] : vector<4x256xf32> to vector<256xf32>
    %1021 = vector.shape_cast %1020 : vector<256xf32> to vector<1x256xf32>
    %1022 = arith.addf %997, %1021 : vector<1x256xf32>
    %c2_746 = arith.constant 2 : index
    %c7_747 = arith.constant 7 : index
    %c0_748 = arith.constant 0 : index
    %c0_749 = arith.constant 0 : index
    %1023 = vector.load %arg4[%c2_746, %c7_747, %c0_748, %c0_749] : memref<3x9x4x1xf32, #tpu.memory_space<vmem>>, vector<1x1x4x1xf32>
    %1024 = vector.shape_cast %1023 : vector<1x1x4x1xf32> to vector<4x1xf32>
    %1025 = vector.broadcast %1024 : vector<4x1xf32> to vector<4x256xf32>
    %1026 = arith.mulf %1025, %1008 : vector<4x256xf32>
    %cst_750 = arith.constant dense<0.000000e+00> : vector<256xf32>
    %1027 = vector.multi_reduction <add>, %1026, %cst_750 [0] : vector<4x256xf32> to vector<256xf32>
    %1028 = vector.shape_cast %1027 : vector<256xf32> to vector<1x256xf32>
    %1029 = arith.addf %1004, %1028 : vector<1x256xf32>
    %c239_i32_751 = arith.constant 239 : i32
    %1030 = tpu.dynamic_rotate %830 by %c239_i32_751 dim 1 : vector<4x256xf32>, i32 -> vector<4x256xf32>
    %c8_752 = arith.constant 8 : index
    %c0_753 = arith.constant 0 : index
    %c0_754 = arith.constant 0 : index
    %1031 = vector.load %arg5[%c8_752, %c0_753, %c0_754] : memref<9x4x256xf32, #tpu.memory_space<vmem>>, vector<1x4x256xf32>
    %1032 = vector.shape_cast %1031 : vector<1x4x256xf32> to vector<4x256xf32>
    %1033 = arith.mulf %1030, %1032 : vector<4x256xf32>
    %c0_755 = arith.constant 0 : index
    %c8_756 = arith.constant 8 : index
    %c0_757 = arith.constant 0 : index
    %c0_758 = arith.constant 0 : index
    %1034 = vector.load %arg4[%c0_755, %c8_756, %c0_757, %c0_758] : memref<3x9x4x1xf32, #tpu.memory_space<vmem>>, vector<1x1x4x1xf32>
    %1035 = vector.shape_cast %1034 : vector<1x1x4x1xf32> to vector<4x1xf32>
    %1036 = vector.broadcast %1035 : vector<4x1xf32> to vector<4x256xf32>
    %1037 = arith.mulf %1036, %1033 : vector<4x256xf32>
    %cst_759 = arith.constant dense<0.000000e+00> : vector<256xf32>
    %1038 = vector.multi_reduction <add>, %1037, %cst_759 [0] : vector<4x256xf32> to vector<256xf32>
    %1039 = vector.shape_cast %1038 : vector<256xf32> to vector<1x256xf32>
    %1040 = arith.addf %1015, %1039 : vector<1x256xf32>
    %c1_760 = arith.constant 1 : index
    %c8_761 = arith.constant 8 : index
    %c0_762 = arith.constant 0 : index
    %c0_763 = arith.constant 0 : index
    %1041 = vector.load %arg4[%c1_760, %c8_761, %c0_762, %c0_763] : memref<3x9x4x1xf32, #tpu.memory_space<vmem>>, vector<1x1x4x1xf32>
    %1042 = vector.shape_cast %1041 : vector<1x1x4x1xf32> to vector<4x1xf32>
    %1043 = vector.broadcast %1042 : vector<4x1xf32> to vector<4x256xf32>
    %1044 = arith.mulf %1043, %1033 : vector<4x256xf32>
    %cst_764 = arith.constant dense<0.000000e+00> : vector<256xf32>
    %1045 = vector.multi_reduction <add>, %1044, %cst_764 [0] : vector<4x256xf32> to vector<256xf32>
    %1046 = vector.shape_cast %1045 : vector<256xf32> to vector<1x256xf32>
    %1047 = arith.addf %1022, %1046 : vector<1x256xf32>
    %c2_765 = arith.constant 2 : index
    %c8_766 = arith.constant 8 : index
    %c0_767 = arith.constant 0 : index
    %c0_768 = arith.constant 0 : index
    %1048 = vector.load %arg4[%c2_765, %c8_766, %c0_767, %c0_768] : memref<3x9x4x1xf32, #tpu.memory_space<vmem>>, vector<1x1x4x1xf32>
    %1049 = vector.shape_cast %1048 : vector<1x1x4x1xf32> to vector<4x1xf32>
    %1050 = vector.broadcast %1049 : vector<4x1xf32> to vector<4x256xf32>
    %1051 = arith.mulf %1050, %1033 : vector<4x256xf32>
    %cst_769 = arith.constant dense<0.000000e+00> : vector<256xf32>
    %1052 = vector.multi_reduction <add>, %1051, %cst_769 [0] : vector<4x256xf32> to vector<256xf32>
    %1053 = vector.shape_cast %1052 : vector<256xf32> to vector<1x256xf32>
    %1054 = arith.addf %1029, %1053 : vector<1x256xf32>
    %1055 = tpu.concatenate %1040, %1047, %1054 in 0 : vector<1x256xf32>, vector<1x256xf32>, vector<1x256xf32> -> vector<3x256xf32>
    %c0_770 = arith.constant 0 : index
    %c1_771 = arith.constant 1 : index
    %c0_772 = arith.constant 0 : index
    %c0_773 = arith.constant 0 : index
    %1056 = vector.load %arg8[%c0_770, %c1_771, %c0_772, %c0_773] : memref<1x3x3x256xf32, #tpu.memory_space<vmem>>, vector<1x1x3x256xf32>
    %1057 = vector.shape_cast %1056 : vector<1x1x3x256xf32> to vector<3x256xf32>
    %1058 = vector.shape_cast %1055 : vector<3x256xf32> to vector<1x1x3x256xf32>
    tpu.vector_store %arg8[%c0_770, %c1_771, %c0_772, %c0_773], %1058 {strides = array<i32>} : memref<1x3x3x256xf32, #tpu.memory_space<vmem>>, vector<1x1x3x256xf32>,
    %1059 = tpu.concatenate %1055, %2 in 0 : vector<3x256xf32>, vector<1x256xf32> -> vector<4x256xf32>
    %cst_774 = arith.constant 0.000000e+00 : f32
    %1060 = vector.broadcast %cst_774 : f32 to vector<1x256xf32>
    %cst_775 = arith.constant 0.000000e+00 : f32
    %1061 = vector.broadcast %cst_775 : f32 to vector<1x256xf32>
    %cst_776 = arith.constant 0.000000e+00 : f32
    %1062 = vector.broadcast %cst_776 : f32 to vector<1x256xf32>
    %cst_777 = arith.constant 0.000000e+00 : f32
    %1063 = vector.broadcast %cst_777 : f32 to vector<1x256xf32>
    %c17_i32_778 = arith.constant 17 : i32
    %1064 = tpu.dynamic_rotate %1059 by %c17_i32_778 dim 1 : vector<4x256xf32>, i32 -> vector<4x256xf32>
    %c0_779 = arith.constant 0 : index
    %c0_780 = arith.constant 0 : index
    %c0_781 = arith.constant 0 : index
    %1065 = vector.load %arg5[%c0_779, %c0_780, %c0_781] : memref<9x4x256xf32, #tpu.memory_space<vmem>>, vector<1x4x256xf32>
    %1066 = vector.shape_cast %1065 : vector<1x4x256xf32> to vector<4x256xf32>
    %1067 = arith.mulf %1064, %1066 : vector<4x256xf32>
    %c0_782 = arith.constant 0 : index
    %c0_783 = arith.constant 0 : index
    %c0_784 = arith.constant 0 : index
    %c0_785 = arith.constant 0 : index
    %1068 = vector.load %arg3[%c0_782, %c0_783, %c0_784, %c0_785] : memref<4x9x4x1xf32, #tpu.memory_space<vmem>>, vector<1x1x4x1xf32>
    %1069 = vector.shape_cast %1068 : vector<1x1x4x1xf32> to vector<4x1xf32>
    %1070 = vector.broadcast %1069 : vector<4x1xf32> to vector<4x256xf32>
    %1071 = arith.mulf %1070, %1067 : vector<4x256xf32>
    %cst_786 = arith.constant dense<0.000000e+00> : vector<256xf32>
    %1072 = vector.multi_reduction <add>, %1071, %cst_786 [0] : vector<4x256xf32> to vector<256xf32>
    %1073 = vector.shape_cast %1072 : vector<256xf32> to vector<1x256xf32>
    %1074 = arith.addf %1060, %1073 : vector<1x256xf32>
    %c1_787 = arith.constant 1 : index
    %c0_788 = arith.constant 0 : index
    %c0_789 = arith.constant 0 : index
    %c0_790 = arith.constant 0 : index
    %1075 = vector.load %arg3[%c1_787, %c0_788, %c0_789, %c0_790] : memref<4x9x4x1xf32, #tpu.memory_space<vmem>>, vector<1x1x4x1xf32>
    %1076 = vector.shape_cast %1075 : vector<1x1x4x1xf32> to vector<4x1xf32>
    %1077 = vector.broadcast %1076 : vector<4x1xf32> to vector<4x256xf32>
    %1078 = arith.mulf %1077, %1067 : vector<4x256xf32>
    %cst_791 = arith.constant dense<0.000000e+00> : vector<256xf32>
    %1079 = vector.multi_reduction <add>, %1078, %cst_791 [0] : vector<4x256xf32> to vector<256xf32>
    %1080 = vector.shape_cast %1079 : vector<256xf32> to vector<1x256xf32>
    %1081 = arith.addf %1061, %1080 : vector<1x256xf32>
    %c2_792 = arith.constant 2 : index
    %c0_793 = arith.constant 0 : index
    %c0_794 = arith.constant 0 : index
    %c0_795 = arith.constant 0 : index
    %1082 = vector.load %arg3[%c2_792, %c0_793, %c0_794, %c0_795] : memref<4x9x4x1xf32, #tpu.memory_space<vmem>>, vector<1x1x4x1xf32>
    %1083 = vector.shape_cast %1082 : vector<1x1x4x1xf32> to vector<4x1xf32>
    %1084 = vector.broadcast %1083 : vector<4x1xf32> to vector<4x256xf32>
    %1085 = arith.mulf %1084, %1067 : vector<4x256xf32>
    %cst_796 = arith.constant dense<0.000000e+00> : vector<256xf32>
    %1086 = vector.multi_reduction <add>, %1085, %cst_796 [0] : vector<4x256xf32> to vector<256xf32>
    %1087 = vector.shape_cast %1086 : vector<256xf32> to vector<1x256xf32>
    %1088 = arith.addf %1062, %1087 : vector<1x256xf32>
    %c3_797 = arith.constant 3 : index
    %c0_798 = arith.constant 0 : index
    %c0_799 = arith.constant 0 : index
    %c0_800 = arith.constant 0 : index
    %1089 = vector.load %arg3[%c3_797, %c0_798, %c0_799, %c0_800] : memref<4x9x4x1xf32, #tpu.memory_space<vmem>>, vector<1x1x4x1xf32>
    %1090 = vector.shape_cast %1089 : vector<1x1x4x1xf32> to vector<4x1xf32>
    %1091 = vector.broadcast %1090 : vector<4x1xf32> to vector<4x256xf32>
    %1092 = arith.mulf %1091, %1067 : vector<4x256xf32>
    %cst_801 = arith.constant dense<0.000000e+00> : vector<256xf32>
    %1093 = vector.multi_reduction <add>, %1092, %cst_801 [0] : vector<4x256xf32> to vector<256xf32>
    %1094 = vector.shape_cast %1093 : vector<256xf32> to vector<1x256xf32>
    %1095 = arith.addf %1063, %1094 : vector<1x256xf32>
    %c16_i32_802 = arith.constant 16 : i32
    %1096 = tpu.dynamic_rotate %1059 by %c16_i32_802 dim 1 : vector<4x256xf32>, i32 -> vector<4x256xf32>
    %c1_803 = arith.constant 1 : index
    %c0_804 = arith.constant 0 : index
    %c0_805 = arith.constant 0 : index
    %1097 = vector.load %arg5[%c1_803, %c0_804, %c0_805] : memref<9x4x256xf32, #tpu.memory_space<vmem>>, vector<1x4x256xf32>
    %1098 = vector.shape_cast %1097 : vector<1x4x256xf32> to vector<4x256xf32>
    %1099 = arith.mulf %1096, %1098 : vector<4x256xf32>
    %c0_806 = arith.constant 0 : index
    %c1_807 = arith.constant 1 : index
    %c0_808 = arith.constant 0 : index
    %c0_809 = arith.constant 0 : index
    %1100 = vector.load %arg3[%c0_806, %c1_807, %c0_808, %c0_809] : memref<4x9x4x1xf32, #tpu.memory_space<vmem>>, vector<1x1x4x1xf32>
    %1101 = vector.shape_cast %1100 : vector<1x1x4x1xf32> to vector<4x1xf32>
    %1102 = vector.broadcast %1101 : vector<4x1xf32> to vector<4x256xf32>
    %1103 = arith.mulf %1102, %1099 : vector<4x256xf32>
    %cst_810 = arith.constant dense<0.000000e+00> : vector<256xf32>
    %1104 = vector.multi_reduction <add>, %1103, %cst_810 [0] : vector<4x256xf32> to vector<256xf32>
    %1105 = vector.shape_cast %1104 : vector<256xf32> to vector<1x256xf32>
    %1106 = arith.addf %1074, %1105 : vector<1x256xf32>
    %c1_811 = arith.constant 1 : index
    %c1_812 = arith.constant 1 : index
    %c0_813 = arith.constant 0 : index
    %c0_814 = arith.constant 0 : index
    %1107 = vector.load %arg3[%c1_811, %c1_812, %c0_813, %c0_814] : memref<4x9x4x1xf32, #tpu.memory_space<vmem>>, vector<1x1x4x1xf32>
    %1108 = vector.shape_cast %1107 : vector<1x1x4x1xf32> to vector<4x1xf32>
    %1109 = vector.broadcast %1108 : vector<4x1xf32> to vector<4x256xf32>
    %1110 = arith.mulf %1109, %1099 : vector<4x256xf32>
    %cst_815 = arith.constant dense<0.000000e+00> : vector<256xf32>
    %1111 = vector.multi_reduction <add>, %1110, %cst_815 [0] : vector<4x256xf32> to vector<256xf32>
    %1112 = vector.shape_cast %1111 : vector<256xf32> to vector<1x256xf32>
    %1113 = arith.addf %1081, %1112 : vector<1x256xf32>
    %c2_816 = arith.constant 2 : index
    %c1_817 = arith.constant 1 : index
    %c0_818 = arith.constant 0 : index
    %c0_819 = arith.constant 0 : index
    %1114 = vector.load %arg3[%c2_816, %c1_817, %c0_818, %c0_819] : memref<4x9x4x1xf32, #tpu.memory_space<vmem>>, vector<1x1x4x1xf32>
    %1115 = vector.shape_cast %1114 : vector<1x1x4x1xf32> to vector<4x1xf32>
    %1116 = vector.broadcast %1115 : vector<4x1xf32> to vector<4x256xf32>
    %1117 = arith.mulf %1116, %1099 : vector<4x256xf32>
    %cst_820 = arith.constant dense<0.000000e+00> : vector<256xf32>
    %1118 = vector.multi_reduction <add>, %1117, %cst_820 [0] : vector<4x256xf32> to vector<256xf32>
    %1119 = vector.shape_cast %1118 : vector<256xf32> to vector<1x256xf32>
    %1120 = arith.addf %1088, %1119 : vector<1x256xf32>
    %c3_821 = arith.constant 3 : index
    %c1_822 = arith.constant 1 : index
    %c0_823 = arith.constant 0 : index
    %c0_824 = arith.constant 0 : index
    %1121 = vector.load %arg3[%c3_821, %c1_822, %c0_823, %c0_824] : memref<4x9x4x1xf32, #tpu.memory_space<vmem>>, vector<1x1x4x1xf32>
    %1122 = vector.shape_cast %1121 : vector<1x1x4x1xf32> to vector<4x1xf32>
    %1123 = vector.broadcast %1122 : vector<4x1xf32> to vector<4x256xf32>
    %1124 = arith.mulf %1123, %1099 : vector<4x256xf32>
    %cst_825 = arith.constant dense<0.000000e+00> : vector<256xf32>
    %1125 = vector.multi_reduction <add>, %1124, %cst_825 [0] : vector<4x256xf32> to vector<256xf32>
    %1126 = vector.shape_cast %1125 : vector<256xf32> to vector<1x256xf32>
    %1127 = arith.addf %1095, %1126 : vector<1x256xf32>
    %c15_i32_826 = arith.constant 15 : i32
    %1128 = tpu.dynamic_rotate %1059 by %c15_i32_826 dim 1 : vector<4x256xf32>, i32 -> vector<4x256xf32>
    %c2_827 = arith.constant 2 : index
    %c0_828 = arith.constant 0 : index
    %c0_829 = arith.constant 0 : index
    %1129 = vector.load %arg5[%c2_827, %c0_828, %c0_829] : memref<9x4x256xf32, #tpu.memory_space<vmem>>, vector<1x4x256xf32>
    %1130 = vector.shape_cast %1129 : vector<1x4x256xf32> to vector<4x256xf32>
    %1131 = arith.mulf %1128, %1130 : vector<4x256xf32>
    %c0_830 = arith.constant 0 : index
    %c2_831 = arith.constant 2 : index
    %c0_832 = arith.constant 0 : index
    %c0_833 = arith.constant 0 : index
    %1132 = vector.load %arg3[%c0_830, %c2_831, %c0_832, %c0_833] : memref<4x9x4x1xf32, #tpu.memory_space<vmem>>, vector<1x1x4x1xf32>
    %1133 = vector.shape_cast %1132 : vector<1x1x4x1xf32> to vector<4x1xf32>
    %1134 = vector.broadcast %1133 : vector<4x1xf32> to vector<4x256xf32>
    %1135 = arith.mulf %1134, %1131 : vector<4x256xf32>
    %cst_834 = arith.constant dense<0.000000e+00> : vector<256xf32>
    %1136 = vector.multi_reduction <add>, %1135, %cst_834 [0] : vector<4x256xf32> to vector<256xf32>
    %1137 = vector.shape_cast %1136 : vector<256xf32> to vector<1x256xf32>
    %1138 = arith.addf %1106, %1137 : vector<1x256xf32>
    %c1_835 = arith.constant 1 : index
    %c2_836 = arith.constant 2 : index
    %c0_837 = arith.constant 0 : index
    %c0_838 = arith.constant 0 : index
    %1139 = vector.load %arg3[%c1_835, %c2_836, %c0_837, %c0_838] : memref<4x9x4x1xf32, #tpu.memory_space<vmem>>, vector<1x1x4x1xf32>
    %1140 = vector.shape_cast %1139 : vector<1x1x4x1xf32> to vector<4x1xf32>
    %1141 = vector.broadcast %1140 : vector<4x1xf32> to vector<4x256xf32>
    %1142 = arith.mulf %1141, %1131 : vector<4x256xf32>
    %cst_839 = arith.constant dense<0.000000e+00> : vector<256xf32>
    %1143 = vector.multi_reduction <add>, %1142, %cst_839 [0] : vector<4x256xf32> to vector<256xf32>
    %1144 = vector.shape_cast %1143 : vector<256xf32> to vector<1x256xf32>
    %1145 = arith.addf %1113, %1144 : vector<1x256xf32>
    %c2_840 = arith.constant 2 : index
    %c2_841 = arith.constant 2 : index
    %c0_842 = arith.constant 0 : index
    %c0_843 = arith.constant 0 : index
    %1146 = vector.load %arg3[%c2_840, %c2_841, %c0_842, %c0_843] : memref<4x9x4x1xf32, #tpu.memory_space<vmem>>, vector<1x1x4x1xf32>
    %1147 = vector.shape_cast %1146 : vector<1x1x4x1xf32> to vector<4x1xf32>
    %1148 = vector.broadcast %1147 : vector<4x1xf32> to vector<4x256xf32>
    %1149 = arith.mulf %1148, %1131 : vector<4x256xf32>
    %cst_844 = arith.constant dense<0.000000e+00> : vector<256xf32>
    %1150 = vector.multi_reduction <add>, %1149, %cst_844 [0] : vector<4x256xf32> to vector<256xf32>
    %1151 = vector.shape_cast %1150 : vector<256xf32> to vector<1x256xf32>
    %1152 = arith.addf %1120, %1151 : vector<1x256xf32>
    %c3_845 = arith.constant 3 : index
    %c2_846 = arith.constant 2 : index
    %c0_847 = arith.constant 0 : index
    %c0_848 = arith.constant 0 : index
    %1153 = vector.load %arg3[%c3_845, %c2_846, %c0_847, %c0_848] : memref<4x9x4x1xf32, #tpu.memory_space<vmem>>, vector<1x1x4x1xf32>
    %1154 = vector.shape_cast %1153 : vector<1x1x4x1xf32> to vector<4x1xf32>
    %1155 = vector.broadcast %1154 : vector<4x1xf32> to vector<4x256xf32>
    %1156 = arith.mulf %1155, %1131 : vector<4x256xf32>
    %cst_849 = arith.constant dense<0.000000e+00> : vector<256xf32>
    %1157 = vector.multi_reduction <add>, %1156, %cst_849 [0] : vector<4x256xf32> to vector<256xf32>
    %1158 = vector.shape_cast %1157 : vector<256xf32> to vector<1x256xf32>
    %1159 = arith.addf %1127, %1158 : vector<1x256xf32>
    %c1_i32_850 = arith.constant 1 : i32
    %1160 = tpu.dynamic_rotate %1059 by %c1_i32_850 dim 1 : vector<4x256xf32>, i32 -> vector<4x256xf32>
    %c3_851 = arith.constant 3 : index
    %c0_852 = arith.constant 0 : index
    %c0_853 = arith.constant 0 : index
    %1161 = vector.load %arg5[%c3_851, %c0_852, %c0_853] : memref<9x4x256xf32, #tpu.memory_space<vmem>>, vector<1x4x256xf32>
    %1162 = vector.shape_cast %1161 : vector<1x4x256xf32> to vector<4x256xf32>
    %1163 = arith.mulf %1160, %1162 : vector<4x256xf32>
    %c0_854 = arith.constant 0 : index
    %c3_855 = arith.constant 3 : index
    %c0_856 = arith.constant 0 : index
    %c0_857 = arith.constant 0 : index
    %1164 = vector.load %arg3[%c0_854, %c3_855, %c0_856, %c0_857] : memref<4x9x4x1xf32, #tpu.memory_space<vmem>>, vector<1x1x4x1xf32>
    %1165 = vector.shape_cast %1164 : vector<1x1x4x1xf32> to vector<4x1xf32>
    %1166 = vector.broadcast %1165 : vector<4x1xf32> to vector<4x256xf32>
    %1167 = arith.mulf %1166, %1163 : vector<4x256xf32>
    %cst_858 = arith.constant dense<0.000000e+00> : vector<256xf32>
    %1168 = vector.multi_reduction <add>, %1167, %cst_858 [0] : vector<4x256xf32> to vector<256xf32>
    %1169 = vector.shape_cast %1168 : vector<256xf32> to vector<1x256xf32>
    %1170 = arith.addf %1138, %1169 : vector<1x256xf32>
    %c1_859 = arith.constant 1 : index
    %c3_860 = arith.constant 3 : index
    %c0_861 = arith.constant 0 : index
    %c0_862 = arith.constant 0 : index
    %1171 = vector.load %arg3[%c1_859, %c3_860, %c0_861, %c0_862] : memref<4x9x4x1xf32, #tpu.memory_space<vmem>>, vector<1x1x4x1xf32>
    %1172 = vector.shape_cast %1171 : vector<1x1x4x1xf32> to vector<4x1xf32>
    %1173 = vector.broadcast %1172 : vector<4x1xf32> to vector<4x256xf32>
    %1174 = arith.mulf %1173, %1163 : vector<4x256xf32>
    %cst_863 = arith.constant dense<0.000000e+00> : vector<256xf32>
    %1175 = vector.multi_reduction <add>, %1174, %cst_863 [0] : vector<4x256xf32> to vector<256xf32>
    %1176 = vector.shape_cast %1175 : vector<256xf32> to vector<1x256xf32>
    %1177 = arith.addf %1145, %1176 : vector<1x256xf32>
    %c2_864 = arith.constant 2 : index
    %c3_865 = arith.constant 3 : index
    %c0_866 = arith.constant 0 : index
    %c0_867 = arith.constant 0 : index
    %1178 = vector.load %arg3[%c2_864, %c3_865, %c0_866, %c0_867] : memref<4x9x4x1xf32, #tpu.memory_space<vmem>>, vector<1x1x4x1xf32>
    %1179 = vector.shape_cast %1178 : vector<1x1x4x1xf32> to vector<4x1xf32>
    %1180 = vector.broadcast %1179 : vector<4x1xf32> to vector<4x256xf32>
    %1181 = arith.mulf %1180, %1163 : vector<4x256xf32>
    %cst_868 = arith.constant dense<0.000000e+00> : vector<256xf32>
    %1182 = vector.multi_reduction <add>, %1181, %cst_868 [0] : vector<4x256xf32> to vector<256xf32>
    %1183 = vector.shape_cast %1182 : vector<256xf32> to vector<1x256xf32>
    %1184 = arith.addf %1152, %1183 : vector<1x256xf32>
    %c3_869 = arith.constant 3 : index
    %c3_870 = arith.constant 3 : index
    %c0_871 = arith.constant 0 : index
    %c0_872 = arith.constant 0 : index
    %1185 = vector.load %arg3[%c3_869, %c3_870, %c0_871, %c0_872] : memref<4x9x4x1xf32, #tpu.memory_space<vmem>>, vector<1x1x4x1xf32>
    %1186 = vector.shape_cast %1185 : vector<1x1x4x1xf32> to vector<4x1xf32>
    %1187 = vector.broadcast %1186 : vector<4x1xf32> to vector<4x256xf32>
    %1188 = arith.mulf %1187, %1163 : vector<4x256xf32>
    %cst_873 = arith.constant dense<0.000000e+00> : vector<256xf32>
    %1189 = vector.multi_reduction <add>, %1188, %cst_873 [0] : vector<4x256xf32> to vector<256xf32>
    %1190 = vector.shape_cast %1189 : vector<256xf32> to vector<1x256xf32>
    %1191 = arith.addf %1159, %1190 : vector<1x256xf32>
    %c0_874 = arith.constant 0 : index
    %c4_875 = arith.constant 4 : index
    %c0_876 = arith.constant 0 : index
    %c0_877 = arith.constant 0 : index
    %1192 = vector.load %arg3[%c0_874, %c4_875, %c0_876, %c0_877] : memref<4x9x4x1xf32, #tpu.memory_space<vmem>>, vector<1x1x4x1xf32>
    %1193 = vector.shape_cast %1192 : vector<1x1x4x1xf32> to vector<4x1xf32>
    %1194 = vector.broadcast %1193 : vector<4x1xf32> to vector<4x256xf32>
    %1195 = arith.mulf %1194, %1059 : vector<4x256xf32>
    %cst_878 = arith.constant dense<0.000000e+00> : vector<256xf32>
    %1196 = vector.multi_reduction <add>, %1195, %cst_878 [0] : vector<4x256xf32> to vector<256xf32>
    %1197 = vector.shape_cast %1196 : vector<256xf32> to vector<1x256xf32>
    %1198 = arith.addf %1170, %1197 : vector<1x256xf32>
    %c1_879 = arith.constant 1 : index
    %c4_880 = arith.constant 4 : index
    %c0_881 = arith.constant 0 : index
    %c0_882 = arith.constant 0 : index
    %1199 = vector.load %arg3[%c1_879, %c4_880, %c0_881, %c0_882] : memref<4x9x4x1xf32, #tpu.memory_space<vmem>>, vector<1x1x4x1xf32>
    %1200 = vector.shape_cast %1199 : vector<1x1x4x1xf32> to vector<4x1xf32>
    %1201 = vector.broadcast %1200 : vector<4x1xf32> to vector<4x256xf32>
    %1202 = arith.mulf %1201, %1059 : vector<4x256xf32>
    %cst_883 = arith.constant dense<0.000000e+00> : vector<256xf32>
    %1203 = vector.multi_reduction <add>, %1202, %cst_883 [0] : vector<4x256xf32> to vector<256xf32>
    %1204 = vector.shape_cast %1203 : vector<256xf32> to vector<1x256xf32>
    %1205 = arith.addf %1177, %1204 : vector<1x256xf32>
    %c2_884 = arith.constant 2 : index
    %c4_885 = arith.constant 4 : index
    %c0_886 = arith.constant 0 : index
    %c0_887 = arith.constant 0 : index
    %1206 = vector.load %arg3[%c2_884, %c4_885, %c0_886, %c0_887] : memref<4x9x4x1xf32, #tpu.memory_space<vmem>>, vector<1x1x4x1xf32>
    %1207 = vector.shape_cast %1206 : vector<1x1x4x1xf32> to vector<4x1xf32>
    %1208 = vector.broadcast %1207 : vector<4x1xf32> to vector<4x256xf32>
    %1209 = arith.mulf %1208, %1059 : vector<4x256xf32>
    %cst_888 = arith.constant dense<0.000000e+00> : vector<256xf32>
    %1210 = vector.multi_reduction <add>, %1209, %cst_888 [0] : vector<4x256xf32> to vector<256xf32>
    %1211 = vector.shape_cast %1210 : vector<256xf32> to vector<1x256xf32>
    %1212 = arith.addf %1184, %1211 : vector<1x256xf32>
    %c3_889 = arith.constant 3 : index
    %c4_890 = arith.constant 4 : index
    %c0_891 = arith.constant 0 : index
    %c0_892 = arith.constant 0 : index
    %1213 = vector.load %arg3[%c3_889, %c4_890, %c0_891, %c0_892] : memref<4x9x4x1xf32, #tpu.memory_space<vmem>>, vector<1x1x4x1xf32>
    %1214 = vector.shape_cast %1213 : vector<1x1x4x1xf32> to vector<4x1xf32>
    %1215 = vector.broadcast %1214 : vector<4x1xf32> to vector<4x256xf32>
    %1216 = arith.mulf %1215, %1059 : vector<4x256xf32>
    %cst_893 = arith.constant dense<0.000000e+00> : vector<256xf32>
    %1217 = vector.multi_reduction <add>, %1216, %cst_893 [0] : vector<4x256xf32> to vector<256xf32>
    %1218 = vector.shape_cast %1217 : vector<256xf32> to vector<1x256xf32>
    %1219 = arith.addf %1191, %1218 : vector<1x256xf32>
    %c255_i32_894 = arith.constant 255 : i32
    %1220 = tpu.dynamic_rotate %1059 by %c255_i32_894 dim 1 : vector<4x256xf32>, i32 -> vector<4x256xf32>
    %c5_895 = arith.constant 5 : index
    %c0_896 = arith.constant 0 : index
    %c0_897 = arith.constant 0 : index
    %1221 = vector.load %arg5[%c5_895, %c0_896, %c0_897] : memref<9x4x256xf32, #tpu.memory_space<vmem>>, vector<1x4x256xf32>
    %1222 = vector.shape_cast %1221 : vector<1x4x256xf32> to vector<4x256xf32>
    %1223 = arith.mulf %1220, %1222 : vector<4x256xf32>
    %c0_898 = arith.constant 0 : index
    %c5_899 = arith.constant 5 : index
    %c0_900 = arith.constant 0 : index
    %c0_901 = arith.constant 0 : index
    %1224 = vector.load %arg3[%c0_898, %c5_899, %c0_900, %c0_901] : memref<4x9x4x1xf32, #tpu.memory_space<vmem>>, vector<1x1x4x1xf32>
    %1225 = vector.shape_cast %1224 : vector<1x1x4x1xf32> to vector<4x1xf32>
    %1226 = vector.broadcast %1225 : vector<4x1xf32> to vector<4x256xf32>
    %1227 = arith.mulf %1226, %1223 : vector<4x256xf32>
    %cst_902 = arith.constant dense<0.000000e+00> : vector<256xf32>
    %1228 = vector.multi_reduction <add>, %1227, %cst_902 [0] : vector<4x256xf32> to vector<256xf32>
    %1229 = vector.shape_cast %1228 : vector<256xf32> to vector<1x256xf32>
    %1230 = arith.addf %1198, %1229 : vector<1x256xf32>
    %c1_903 = arith.constant 1 : index
    %c5_904 = arith.constant 5 : index
    %c0_905 = arith.constant 0 : index
    %c0_906 = arith.constant 0 : index
    %1231 = vector.load %arg3[%c1_903, %c5_904, %c0_905, %c0_906] : memref<4x9x4x1xf32, #tpu.memory_space<vmem>>, vector<1x1x4x1xf32>
    %1232 = vector.shape_cast %1231 : vector<1x1x4x1xf32> to vector<4x1xf32>
    %1233 = vector.broadcast %1232 : vector<4x1xf32> to vector<4x256xf32>
    %1234 = arith.mulf %1233, %1223 : vector<4x256xf32>
    %cst_907 = arith.constant dense<0.000000e+00> : vector<256xf32>
    %1235 = vector.multi_reduction <add>, %1234, %cst_907 [0] : vector<4x256xf32> to vector<256xf32>
    %1236 = vector.shape_cast %1235 : vector<256xf32> to vector<1x256xf32>
    %1237 = arith.addf %1205, %1236 : vector<1x256xf32>
    %c2_908 = arith.constant 2 : index
    %c5_909 = arith.constant 5 : index
    %c0_910 = arith.constant 0 : index
    %c0_911 = arith.constant 0 : index
    %1238 = vector.load %arg3[%c2_908, %c5_909, %c0_910, %c0_911] : memref<4x9x4x1xf32, #tpu.memory_space<vmem>>, vector<1x1x4x1xf32>
    %1239 = vector.shape_cast %1238 : vector<1x1x4x1xf32> to vector<4x1xf32>
    %1240 = vector.broadcast %1239 : vector<4x1xf32> to vector<4x256xf32>
    %1241 = arith.mulf %1240, %1223 : vector<4x256xf32>
    %cst_912 = arith.constant dense<0.000000e+00> : vector<256xf32>
    %1242 = vector.multi_reduction <add>, %1241, %cst_912 [0] : vector<4x256xf32> to vector<256xf32>
    %1243 = vector.shape_cast %1242 : vector<256xf32> to vector<1x256xf32>
    %1244 = arith.addf %1212, %1243 : vector<1x256xf32>
    %c3_913 = arith.constant 3 : index
    %c5_914 = arith.constant 5 : index
    %c0_915 = arith.constant 0 : index
    %c0_916 = arith.constant 0 : index
    %1245 = vector.load %arg3[%c3_913, %c5_914, %c0_915, %c0_916] : memref<4x9x4x1xf32, #tpu.memory_space<vmem>>, vector<1x1x4x1xf32>
    %1246 = vector.shape_cast %1245 : vector<1x1x4x1xf32> to vector<4x1xf32>
    %1247 = vector.broadcast %1246 : vector<4x1xf32> to vector<4x256xf32>
    %1248 = arith.mulf %1247, %1223 : vector<4x256xf32>
    %cst_917 = arith.constant dense<0.000000e+00> : vector<256xf32>
    %1249 = vector.multi_reduction <add>, %1248, %cst_917 [0] : vector<4x256xf32> to vector<256xf32>
    %1250 = vector.shape_cast %1249 : vector<256xf32> to vector<1x256xf32>
    %1251 = arith.addf %1219, %1250 : vector<1x256xf32>
    %c241_i32_918 = arith.constant 241 : i32
    %1252 = tpu.dynamic_rotate %1059 by %c241_i32_918 dim 1 : vector<4x256xf32>, i32 -> vector<4x256xf32>
    %c6_919 = arith.constant 6 : index
    %c0_920 = arith.constant 0 : index
    %c0_921 = arith.constant 0 : index
    %1253 = vector.load %arg5[%c6_919, %c0_920, %c0_921] : memref<9x4x256xf32, #tpu.memory_space<vmem>>, vector<1x4x256xf32>
    %1254 = vector.shape_cast %1253 : vector<1x4x256xf32> to vector<4x256xf32>
    %1255 = arith.mulf %1252, %1254 : vector<4x256xf32>
    %c0_922 = arith.constant 0 : index
    %c6_923 = arith.constant 6 : index
    %c0_924 = arith.constant 0 : index
    %c0_925 = arith.constant 0 : index
    %1256 = vector.load %arg3[%c0_922, %c6_923, %c0_924, %c0_925] : memref<4x9x4x1xf32, #tpu.memory_space<vmem>>, vector<1x1x4x1xf32>
    %1257 = vector.shape_cast %1256 : vector<1x1x4x1xf32> to vector<4x1xf32>
    %1258 = vector.broadcast %1257 : vector<4x1xf32> to vector<4x256xf32>
    %1259 = arith.mulf %1258, %1255 : vector<4x256xf32>
    %cst_926 = arith.constant dense<0.000000e+00> : vector<256xf32>
    %1260 = vector.multi_reduction <add>, %1259, %cst_926 [0] : vector<4x256xf32> to vector<256xf32>
    %1261 = vector.shape_cast %1260 : vector<256xf32> to vector<1x256xf32>
    %1262 = arith.addf %1230, %1261 : vector<1x256xf32>
    %c1_927 = arith.constant 1 : index
    %c6_928 = arith.constant 6 : index
    %c0_929 = arith.constant 0 : index
    %c0_930 = arith.constant 0 : index
    %1263 = vector.load %arg3[%c1_927, %c6_928, %c0_929, %c0_930] : memref<4x9x4x1xf32, #tpu.memory_space<vmem>>, vector<1x1x4x1xf32>
    %1264 = vector.shape_cast %1263 : vector<1x1x4x1xf32> to vector<4x1xf32>
    %1265 = vector.broadcast %1264 : vector<4x1xf32> to vector<4x256xf32>
    %1266 = arith.mulf %1265, %1255 : vector<4x256xf32>
    %cst_931 = arith.constant dense<0.000000e+00> : vector<256xf32>
    %1267 = vector.multi_reduction <add>, %1266, %cst_931 [0] : vector<4x256xf32> to vector<256xf32>
    %1268 = vector.shape_cast %1267 : vector<256xf32> to vector<1x256xf32>
    %1269 = arith.addf %1237, %1268 : vector<1x256xf32>
    %c2_932 = arith.constant 2 : index
    %c6_933 = arith.constant 6 : index
    %c0_934 = arith.constant 0 : index
    %c0_935 = arith.constant 0 : index
    %1270 = vector.load %arg3[%c2_932, %c6_933, %c0_934, %c0_935] : memref<4x9x4x1xf32, #tpu.memory_space<vmem>>, vector<1x1x4x1xf32>
    %1271 = vector.shape_cast %1270 : vector<1x1x4x1xf32> to vector<4x1xf32>
    %1272 = vector.broadcast %1271 : vector<4x1xf32> to vector<4x256xf32>
    %1273 = arith.mulf %1272, %1255 : vector<4x256xf32>
    %cst_936 = arith.constant dense<0.000000e+00> : vector<256xf32>
    %1274 = vector.multi_reduction <add>, %1273, %cst_936 [0] : vector<4x256xf32> to vector<256xf32>
    %1275 = vector.shape_cast %1274 : vector<256xf32> to vector<1x256xf32>
    %1276 = arith.addf %1244, %1275 : vector<1x256xf32>
    %c3_937 = arith.constant 3 : index
    %c6_938 = arith.constant 6 : index
    %c0_939 = arith.constant 0 : index
    %c0_940 = arith.constant 0 : index
    %1277 = vector.load %arg3[%c3_937, %c6_938, %c0_939, %c0_940] : memref<4x9x4x1xf32, #tpu.memory_space<vmem>>, vector<1x1x4x1xf32>
    %1278 = vector.shape_cast %1277 : vector<1x1x4x1xf32> to vector<4x1xf32>
    %1279 = vector.broadcast %1278 : vector<4x1xf32> to vector<4x256xf32>
    %1280 = arith.mulf %1279, %1255 : vector<4x256xf32>
    %cst_941 = arith.constant dense<0.000000e+00> : vector<256xf32>
    %1281 = vector.multi_reduction <add>, %1280, %cst_941 [0] : vector<4x256xf32> to vector<256xf32>
    %1282 = vector.shape_cast %1281 : vector<256xf32> to vector<1x256xf32>
    %1283 = arith.addf %1251, %1282 : vector<1x256xf32>
    %c240_i32_942 = arith.constant 240 : i32
    %1284 = tpu.dynamic_rotate %1059 by %c240_i32_942 dim 1 : vector<4x256xf32>, i32 -> vector<4x256xf32>
    %c7_943 = arith.constant 7 : index
    %c0_944 = arith.constant 0 : index
    %c0_945 = arith.constant 0 : index
    %1285 = vector.load %arg5[%c7_943, %c0_944, %c0_945] : memref<9x4x256xf32, #tpu.memory_space<vmem>>, vector<1x4x256xf32>
    %1286 = vector.shape_cast %1285 : vector<1x4x256xf32> to vector<4x256xf32>
    %1287 = arith.mulf %1284, %1286 : vector<4x256xf32>
    %c0_946 = arith.constant 0 : index
    %c7_947 = arith.constant 7 : index
    %c0_948 = arith.constant 0 : index
    %c0_949 = arith.constant 0 : index
    %1288 = vector.load %arg3[%c0_946, %c7_947, %c0_948, %c0_949] : memref<4x9x4x1xf32, #tpu.memory_space<vmem>>, vector<1x1x4x1xf32>
    %1289 = vector.shape_cast %1288 : vector<1x1x4x1xf32> to vector<4x1xf32>
    %1290 = vector.broadcast %1289 : vector<4x1xf32> to vector<4x256xf32>
    %1291 = arith.mulf %1290, %1287 : vector<4x256xf32>
    %cst_950 = arith.constant dense<0.000000e+00> : vector<256xf32>
    %1292 = vector.multi_reduction <add>, %1291, %cst_950 [0] : vector<4x256xf32> to vector<256xf32>
    %1293 = vector.shape_cast %1292 : vector<256xf32> to vector<1x256xf32>
    %1294 = arith.addf %1262, %1293 : vector<1x256xf32>
    %c1_951 = arith.constant 1 : index
    %c7_952 = arith.constant 7 : index
    %c0_953 = arith.constant 0 : index
    %c0_954 = arith.constant 0 : index
    %1295 = vector.load %arg3[%c1_951, %c7_952, %c0_953, %c0_954] : memref<4x9x4x1xf32, #tpu.memory_space<vmem>>, vector<1x1x4x1xf32>
    %1296 = vector.shape_cast %1295 : vector<1x1x4x1xf32> to vector<4x1xf32>
    %1297 = vector.broadcast %1296 : vector<4x1xf32> to vector<4x256xf32>
    %1298 = arith.mulf %1297, %1287 : vector<4x256xf32>
    %cst_955 = arith.constant dense<0.000000e+00> : vector<256xf32>
    %1299 = vector.multi_reduction <add>, %1298, %cst_955 [0] : vector<4x256xf32> to vector<256xf32>
    %1300 = vector.shape_cast %1299 : vector<256xf32> to vector<1x256xf32>
    %1301 = arith.addf %1269, %1300 : vector<1x256xf32>
    %c2_956 = arith.constant 2 : index
    %c7_957 = arith.constant 7 : index
    %c0_958 = arith.constant 0 : index
    %c0_959 = arith.constant 0 : index
    %1302 = vector.load %arg3[%c2_956, %c7_957, %c0_958, %c0_959] : memref<4x9x4x1xf32, #tpu.memory_space<vmem>>, vector<1x1x4x1xf32>
    %1303 = vector.shape_cast %1302 : vector<1x1x4x1xf32> to vector<4x1xf32>
    %1304 = vector.broadcast %1303 : vector<4x1xf32> to vector<4x256xf32>
    %1305 = arith.mulf %1304, %1287 : vector<4x256xf32>
    %cst_960 = arith.constant dense<0.000000e+00> : vector<256xf32>
    %1306 = vector.multi_reduction <add>, %1305, %cst_960 [0] : vector<4x256xf32> to vector<256xf32>
    %1307 = vector.shape_cast %1306 : vector<256xf32> to vector<1x256xf32>
    %1308 = arith.addf %1276, %1307 : vector<1x256xf32>
    %c3_961 = arith.constant 3 : index
    %c7_962 = arith.constant 7 : index
    %c0_963 = arith.constant 0 : index
    %c0_964 = arith.constant 0 : index
    %1309 = vector.load %arg3[%c3_961, %c7_962, %c0_963, %c0_964] : memref<4x9x4x1xf32, #tpu.memory_space<vmem>>, vector<1x1x4x1xf32>
    %1310 = vector.shape_cast %1309 : vector<1x1x4x1xf32> to vector<4x1xf32>
    %1311 = vector.broadcast %1310 : vector<4x1xf32> to vector<4x256xf32>
    %1312 = arith.mulf %1311, %1287 : vector<4x256xf32>
    %cst_965 = arith.constant dense<0.000000e+00> : vector<256xf32>
    %1313 = vector.multi_reduction <add>, %1312, %cst_965 [0] : vector<4x256xf32> to vector<256xf32>
    %1314 = vector.shape_cast %1313 : vector<256xf32> to vector<1x256xf32>
    %1315 = arith.addf %1283, %1314 : vector<1x256xf32>
    %c239_i32_966 = arith.constant 239 : i32
    %1316 = tpu.dynamic_rotate %1059 by %c239_i32_966 dim 1 : vector<4x256xf32>, i32 -> vector<4x256xf32>
    %c8_967 = arith.constant 8 : index
    %c0_968 = arith.constant 0 : index
    %c0_969 = arith.constant 0 : index
    %1317 = vector.load %arg5[%c8_967, %c0_968, %c0_969] : memref<9x4x256xf32, #tpu.memory_space<vmem>>, vector<1x4x256xf32>
    %1318 = vector.shape_cast %1317 : vector<1x4x256xf32> to vector<4x256xf32>
    %1319 = arith.mulf %1316, %1318 : vector<4x256xf32>
    %c0_970 = arith.constant 0 : index
    %c8_971 = arith.constant 8 : index
    %c0_972 = arith.constant 0 : index
    %c0_973 = arith.constant 0 : index
    %1320 = vector.load %arg3[%c0_970, %c8_971, %c0_972, %c0_973] : memref<4x9x4x1xf32, #tpu.memory_space<vmem>>, vector<1x1x4x1xf32>
    %1321 = vector.shape_cast %1320 : vector<1x1x4x1xf32> to vector<4x1xf32>
    %1322 = vector.broadcast %1321 : vector<4x1xf32> to vector<4x256xf32>
    %1323 = arith.mulf %1322, %1319 : vector<4x256xf32>
    %cst_974 = arith.constant dense<0.000000e+00> : vector<256xf32>
    %1324 = vector.multi_reduction <add>, %1323, %cst_974 [0] : vector<4x256xf32> to vector<256xf32>
    %1325 = vector.shape_cast %1324 : vector<256xf32> to vector<1x256xf32>
    %1326 = arith.addf %1294, %1325 : vector<1x256xf32>
    %c1_975 = arith.constant 1 : index
    %c8_976 = arith.constant 8 : index
    %c0_977 = arith.constant 0 : index
    %c0_978 = arith.constant 0 : index
    %1327 = vector.load %arg3[%c1_975, %c8_976, %c0_977, %c0_978] : memref<4x9x4x1xf32, #tpu.memory_space<vmem>>, vector<1x1x4x1xf32>
    %1328 = vector.shape_cast %1327 : vector<1x1x4x1xf32> to vector<4x1xf32>
    %1329 = vector.broadcast %1328 : vector<4x1xf32> to vector<4x256xf32>
    %1330 = arith.mulf %1329, %1319 : vector<4x256xf32>
    %cst_979 = arith.constant dense<0.000000e+00> : vector<256xf32>
    %1331 = vector.multi_reduction <add>, %1330, %cst_979 [0] : vector<4x256xf32> to vector<256xf32>
    %1332 = vector.shape_cast %1331 : vector<256xf32> to vector<1x256xf32>
    %1333 = arith.addf %1301, %1332 : vector<1x256xf32>
    %c2_980 = arith.constant 2 : index
    %c8_981 = arith.constant 8 : index
    %c0_982 = arith.constant 0 : index
    %c0_983 = arith.constant 0 : index
    %1334 = vector.load %arg3[%c2_980, %c8_981, %c0_982, %c0_983] : memref<4x9x4x1xf32, #tpu.memory_space<vmem>>, vector<1x1x4x1xf32>
    %1335 = vector.shape_cast %1334 : vector<1x1x4x1xf32> to vector<4x1xf32>
    %1336 = vector.broadcast %1335 : vector<4x1xf32> to vector<4x256xf32>
    %1337 = arith.mulf %1336, %1319 : vector<4x256xf32>
    %cst_984 = arith.constant dense<0.000000e+00> : vector<256xf32>
    %1338 = vector.multi_reduction <add>, %1337, %cst_984 [0] : vector<4x256xf32> to vector<256xf32>
    %1339 = vector.shape_cast %1338 : vector<256xf32> to vector<1x256xf32>
    %1340 = arith.addf %1308, %1339 : vector<1x256xf32>
    %c3_985 = arith.constant 3 : index
    %c8_986 = arith.constant 8 : index
    %c0_987 = arith.constant 0 : index
    %c0_988 = arith.constant 0 : index
    %1341 = vector.load %arg3[%c3_985, %c8_986, %c0_987, %c0_988] : memref<4x9x4x1xf32, #tpu.memory_space<vmem>>, vector<1x1x4x1xf32>
    %1342 = vector.shape_cast %1341 : vector<1x1x4x1xf32> to vector<4x1xf32>
    %1343 = vector.broadcast %1342 : vector<4x1xf32> to vector<4x256xf32>
    %1344 = arith.mulf %1343, %1319 : vector<4x256xf32>
    %cst_989 = arith.constant dense<0.000000e+00> : vector<256xf32>
    %1345 = vector.multi_reduction <add>, %1344, %cst_989 [0] : vector<4x256xf32> to vector<256xf32>
    %1346 = vector.shape_cast %1345 : vector<256xf32> to vector<1x256xf32>
    %1347 = arith.addf %1315, %1346 : vector<1x256xf32>
    %1348 = tpu.concatenate %1326, %1333, %1340, %1347 in 0 : vector<1x256xf32>, vector<1x256xf32>, vector<1x256xf32>, vector<1x256xf32> -> vector<4x256xf32>
    %1349 = arith.index_cast %arg0 : i32 to index
    %c2_990 = arith.constant 2 : index
    %1350 = memref.load %arg1[%1349, %c2_990] : memref<2x4xf32, #tpu.memory_space<smem>>
    %1351 = vector.broadcast %1350 : f32 to vector<4x1xf32>
    %1352 = arith.mulf %1351, %0 : vector<4x1xf32>
    %1353 = vector.broadcast %1352 : vector<4x1xf32> to vector<4x256xf32>
    %1354 = arith.addf %1348, %1353 : vector<4x256xf32>
    %cst_991 = arith.constant 0.000000e+00 : f32
    %1355 = vector.broadcast %cst_991 : f32 to vector<4x256xf32>
    %1356 = arith.maximumf %1354, %1355 : vector<4x256xf32>
    %1357 = arith.addf %1059, %1356 : vector<4x256xf32>
    %cst_992 = arith.constant 0.000000e+00 : f32
    %1358 = vector.broadcast %cst_992 : f32 to vector<1x256xf32>
    %cst_993 = arith.constant 0.000000e+00 : f32
    %1359 = vector.broadcast %cst_993 : f32 to vector<1x256xf32>
    %cst_994 = arith.constant 0.000000e+00 : f32
    %1360 = vector.broadcast %cst_994 : f32 to vector<1x256xf32>
    %c17_i32_995 = arith.constant 17 : i32
    %1361 = tpu.dynamic_rotate %1357 by %c17_i32_995 dim 1 : vector<4x256xf32>, i32 -> vector<4x256xf32>
    %c0_996 = arith.constant 0 : index
    %c0_997 = arith.constant 0 : index
    %c0_998 = arith.constant 0 : index
    %1362 = vector.load %arg5[%c0_996, %c0_997, %c0_998] : memref<9x4x256xf32, #tpu.memory_space<vmem>>, vector<1x4x256xf32>
    %1363 = vector.shape_cast %1362 : vector<1x4x256xf32> to vector<4x256xf32>
    %1364 = arith.mulf %1361, %1363 : vector<4x256xf32>
    %c0_999 = arith.constant 0 : index
    %c0_1000 = arith.constant 0 : index
    %c0_1001 = arith.constant 0 : index
    %c0_1002 = arith.constant 0 : index
    %1365 = vector.load %arg4[%c0_999, %c0_1000, %c0_1001, %c0_1002] : memref<3x9x4x1xf32, #tpu.memory_space<vmem>>, vector<1x1x4x1xf32>
    %1366 = vector.shape_cast %1365 : vector<1x1x4x1xf32> to vector<4x1xf32>
    %1367 = vector.broadcast %1366 : vector<4x1xf32> to vector<4x256xf32>
    %1368 = arith.mulf %1367, %1364 : vector<4x256xf32>
    %cst_1003 = arith.constant dense<0.000000e+00> : vector<256xf32>
    %1369 = vector.multi_reduction <add>, %1368, %cst_1003 [0] : vector<4x256xf32> to vector<256xf32>
    %1370 = vector.shape_cast %1369 : vector<256xf32> to vector<1x256xf32>
    %1371 = arith.addf %1358, %1370 : vector<1x256xf32>
    %c1_1004 = arith.constant 1 : index
    %c0_1005 = arith.constant 0 : index
    %c0_1006 = arith.constant 0 : index
    %c0_1007 = arith.constant 0 : index
    %1372 = vector.load %arg4[%c1_1004, %c0_1005, %c0_1006, %c0_1007] : memref<3x9x4x1xf32, #tpu.memory_space<vmem>>, vector<1x1x4x1xf32>
    %1373 = vector.shape_cast %1372 : vector<1x1x4x1xf32> to vector<4x1xf32>
    %1374 = vector.broadcast %1373 : vector<4x1xf32> to vector<4x256xf32>
    %1375 = arith.mulf %1374, %1364 : vector<4x256xf32>
    %cst_1008 = arith.constant dense<0.000000e+00> : vector<256xf32>
    %1376 = vector.multi_reduction <add>, %1375, %cst_1008 [0] : vector<4x256xf32> to vector<256xf32>
    %1377 = vector.shape_cast %1376 : vector<256xf32> to vector<1x256xf32>
    %1378 = arith.addf %1359, %1377 : vector<1x256xf32>
    %c2_1009 = arith.constant 2 : index
    %c0_1010 = arith.constant 0 : index
    %c0_1011 = arith.constant 0 : index
    %c0_1012 = arith.constant 0 : index
    %1379 = vector.load %arg4[%c2_1009, %c0_1010, %c0_1011, %c0_1012] : memref<3x9x4x1xf32, #tpu.memory_space<vmem>>, vector<1x1x4x1xf32>
    %1380 = vector.shape_cast %1379 : vector<1x1x4x1xf32> to vector<4x1xf32>
    %1381 = vector.broadcast %1380 : vector<4x1xf32> to vector<4x256xf32>
    %1382 = arith.mulf %1381, %1364 : vector<4x256xf32>
    %cst_1013 = arith.constant dense<0.000000e+00> : vector<256xf32>
    %1383 = vector.multi_reduction <add>, %1382, %cst_1013 [0] : vector<4x256xf32> to vector<256xf32>
    %1384 = vector.shape_cast %1383 : vector<256xf32> to vector<1x256xf32>
    %1385 = arith.addf %1360, %1384 : vector<1x256xf32>
    %c16_i32_1014 = arith.constant 16 : i32
    %1386 = tpu.dynamic_rotate %1357 by %c16_i32_1014 dim 1 : vector<4x256xf32>, i32 -> vector<4x256xf32>
    %c1_1015 = arith.constant 1 : index
    %c0_1016 = arith.constant 0 : index
    %c0_1017 = arith.constant 0 : index
    %1387 = vector.load %arg5[%c1_1015, %c0_1016, %c0_1017] : memref<9x4x256xf32, #tpu.memory_space<vmem>>, vector<1x4x256xf32>
    %1388 = vector.shape_cast %1387 : vector<1x4x256xf32> to vector<4x256xf32>
    %1389 = arith.mulf %1386, %1388 : vector<4x256xf32>
    %c0_1018 = arith.constant 0 : index
    %c1_1019 = arith.constant 1 : index
    %c0_1020 = arith.constant 0 : index
    %c0_1021 = arith.constant 0 : index
    %1390 = vector.load %arg4[%c0_1018, %c1_1019, %c0_1020, %c0_1021] : memref<3x9x4x1xf32, #tpu.memory_space<vmem>>, vector<1x1x4x1xf32>
    %1391 = vector.shape_cast %1390 : vector<1x1x4x1xf32> to vector<4x1xf32>
    %1392 = vector.broadcast %1391 : vector<4x1xf32> to vector<4x256xf32>
    %1393 = arith.mulf %1392, %1389 : vector<4x256xf32>
    %cst_1022 = arith.constant dense<0.000000e+00> : vector<256xf32>
    %1394 = vector.multi_reduction <add>, %1393, %cst_1022 [0] : vector<4x256xf32> to vector<256xf32>
    %1395 = vector.shape_cast %1394 : vector<256xf32> to vector<1x256xf32>
    %1396 = arith.addf %1371, %1395 : vector<1x256xf32>
    %c1_1023 = arith.constant 1 : index
    %c1_1024 = arith.constant 1 : index
    %c0_1025 = arith.constant 0 : index
    %c0_1026 = arith.constant 0 : index
    %1397 = vector.load %arg4[%c1_1023, %c1_1024, %c0_1025, %c0_1026] : memref<3x9x4x1xf32, #tpu.memory_space<vmem>>, vector<1x1x4x1xf32>
    %1398 = vector.shape_cast %1397 : vector<1x1x4x1xf32> to vector<4x1xf32>
    %1399 = vector.broadcast %1398 : vector<4x1xf32> to vector<4x256xf32>
    %1400 = arith.mulf %1399, %1389 : vector<4x256xf32>
    %cst_1027 = arith.constant dense<0.000000e+00> : vector<256xf32>
    %1401 = vector.multi_reduction <add>, %1400, %cst_1027 [0] : vector<4x256xf32> to vector<256xf32>
    %1402 = vector.shape_cast %1401 : vector<256xf32> to vector<1x256xf32>
    %1403 = arith.addf %1378, %1402 : vector<1x256xf32>
    %c2_1028 = arith.constant 2 : index
    %c1_1029 = arith.constant 1 : index
    %c0_1030 = arith.constant 0 : index
    %c0_1031 = arith.constant 0 : index
    %1404 = vector.load %arg4[%c2_1028, %c1_1029, %c0_1030, %c0_1031] : memref<3x9x4x1xf32, #tpu.memory_space<vmem>>, vector<1x1x4x1xf32>
    %1405 = vector.shape_cast %1404 : vector<1x1x4x1xf32> to vector<4x1xf32>
    %1406 = vector.broadcast %1405 : vector<4x1xf32> to vector<4x256xf32>
    %1407 = arith.mulf %1406, %1389 : vector<4x256xf32>
    %cst_1032 = arith.constant dense<0.000000e+00> : vector<256xf32>
    %1408 = vector.multi_reduction <add>, %1407, %cst_1032 [0] : vector<4x256xf32> to vector<256xf32>
    %1409 = vector.shape_cast %1408 : vector<256xf32> to vector<1x256xf32>
    %1410 = arith.addf %1385, %1409 : vector<1x256xf32>
    %c15_i32_1033 = arith.constant 15 : i32
    %1411 = tpu.dynamic_rotate %1357 by %c15_i32_1033 dim 1 : vector<4x256xf32>, i32 -> vector<4x256xf32>
    %c2_1034 = arith.constant 2 : index
    %c0_1035 = arith.constant 0 : index
    %c0_1036 = arith.constant 0 : index
    %1412 = vector.load %arg5[%c2_1034, %c0_1035, %c0_1036] : memref<9x4x256xf32, #tpu.memory_space<vmem>>, vector<1x4x256xf32>
    %1413 = vector.shape_cast %1412 : vector<1x4x256xf32> to vector<4x256xf32>
    %1414 = arith.mulf %1411, %1413 : vector<4x256xf32>
    %c0_1037 = arith.constant 0 : index
    %c2_1038 = arith.constant 2 : index
    %c0_1039 = arith.constant 0 : index
    %c0_1040 = arith.constant 0 : index
    %1415 = vector.load %arg4[%c0_1037, %c2_1038, %c0_1039, %c0_1040] : memref<3x9x4x1xf32, #tpu.memory_space<vmem>>, vector<1x1x4x1xf32>
    %1416 = vector.shape_cast %1415 : vector<1x1x4x1xf32> to vector<4x1xf32>
    %1417 = vector.broadcast %1416 : vector<4x1xf32> to vector<4x256xf32>
    %1418 = arith.mulf %1417, %1414 : vector<4x256xf32>
    %cst_1041 = arith.constant dense<0.000000e+00> : vector<256xf32>
    %1419 = vector.multi_reduction <add>, %1418, %cst_1041 [0] : vector<4x256xf32> to vector<256xf32>
    %1420 = vector.shape_cast %1419 : vector<256xf32> to vector<1x256xf32>
    %1421 = arith.addf %1396, %1420 : vector<1x256xf32>
    %c1_1042 = arith.constant 1 : index
    %c2_1043 = arith.constant 2 : index
    %c0_1044 = arith.constant 0 : index
    %c0_1045 = arith.constant 0 : index
    %1422 = vector.load %arg4[%c1_1042, %c2_1043, %c0_1044, %c0_1045] : memref<3x9x4x1xf32, #tpu.memory_space<vmem>>, vector<1x1x4x1xf32>
    %1423 = vector.shape_cast %1422 : vector<1x1x4x1xf32> to vector<4x1xf32>
    %1424 = vector.broadcast %1423 : vector<4x1xf32> to vector<4x256xf32>
    %1425 = arith.mulf %1424, %1414 : vector<4x256xf32>
    %cst_1046 = arith.constant dense<0.000000e+00> : vector<256xf32>
    %1426 = vector.multi_reduction <add>, %1425, %cst_1046 [0] : vector<4x256xf32> to vector<256xf32>
    %1427 = vector.shape_cast %1426 : vector<256xf32> to vector<1x256xf32>
    %1428 = arith.addf %1403, %1427 : vector<1x256xf32>
    %c2_1047 = arith.constant 2 : index
    %c2_1048 = arith.constant 2 : index
    %c0_1049 = arith.constant 0 : index
    %c0_1050 = arith.constant 0 : index
    %1429 = vector.load %arg4[%c2_1047, %c2_1048, %c0_1049, %c0_1050] : memref<3x9x4x1xf32, #tpu.memory_space<vmem>>, vector<1x1x4x1xf32>
    %1430 = vector.shape_cast %1429 : vector<1x1x4x1xf32> to vector<4x1xf32>
    %1431 = vector.broadcast %1430 : vector<4x1xf32> to vector<4x256xf32>
    %1432 = arith.mulf %1431, %1414 : vector<4x256xf32>
    %cst_1051 = arith.constant dense<0.000000e+00> : vector<256xf32>
    %1433 = vector.multi_reduction <add>, %1432, %cst_1051 [0] : vector<4x256xf32> to vector<256xf32>
    %1434 = vector.shape_cast %1433 : vector<256xf32> to vector<1x256xf32>
    %1435 = arith.addf %1410, %1434 : vector<1x256xf32>
    %c1_i32_1052 = arith.constant 1 : i32
    %1436 = tpu.dynamic_rotate %1357 by %c1_i32_1052 dim 1 : vector<4x256xf32>, i32 -> vector<4x256xf32>
    %c3_1053 = arith.constant 3 : index
    %c0_1054 = arith.constant 0 : index
    %c0_1055 = arith.constant 0 : index
    %1437 = vector.load %arg5[%c3_1053, %c0_1054, %c0_1055] : memref<9x4x256xf32, #tpu.memory_space<vmem>>, vector<1x4x256xf32>
    %1438 = vector.shape_cast %1437 : vector<1x4x256xf32> to vector<4x256xf32>
    %1439 = arith.mulf %1436, %1438 : vector<4x256xf32>
    %c0_1056 = arith.constant 0 : index
    %c3_1057 = arith.constant 3 : index
    %c0_1058 = arith.constant 0 : index
    %c0_1059 = arith.constant 0 : index
    %1440 = vector.load %arg4[%c0_1056, %c3_1057, %c0_1058, %c0_1059] : memref<3x9x4x1xf32, #tpu.memory_space<vmem>>, vector<1x1x4x1xf32>
    %1441 = vector.shape_cast %1440 : vector<1x1x4x1xf32> to vector<4x1xf32>
    %1442 = vector.broadcast %1441 : vector<4x1xf32> to vector<4x256xf32>
    %1443 = arith.mulf %1442, %1439 : vector<4x256xf32>
    %cst_1060 = arith.constant dense<0.000000e+00> : vector<256xf32>
    %1444 = vector.multi_reduction <add>, %1443, %cst_1060 [0] : vector<4x256xf32> to vector<256xf32>
    %1445 = vector.shape_cast %1444 : vector<256xf32> to vector<1x256xf32>
    %1446 = arith.addf %1421, %1445 : vector<1x256xf32>
    %c1_1061 = arith.constant 1 : index
    %c3_1062 = arith.constant 3 : index
    %c0_1063 = arith.constant 0 : index
    %c0_1064 = arith.constant 0 : index
    %1447 = vector.load %arg4[%c1_1061, %c3_1062, %c0_1063, %c0_1064] : memref<3x9x4x1xf32, #tpu.memory_space<vmem>>, vector<1x1x4x1xf32>
    %1448 = vector.shape_cast %1447 : vector<1x1x4x1xf32> to vector<4x1xf32>
    %1449 = vector.broadcast %1448 : vector<4x1xf32> to vector<4x256xf32>
    %1450 = arith.mulf %1449, %1439 : vector<4x256xf32>
    %cst_1065 = arith.constant dense<0.000000e+00> : vector<256xf32>
    %1451 = vector.multi_reduction <add>, %1450, %cst_1065 [0] : vector<4x256xf32> to vector<256xf32>
    %1452 = vector.shape_cast %1451 : vector<256xf32> to vector<1x256xf32>
    %1453 = arith.addf %1428, %1452 : vector<1x256xf32>
    %c2_1066 = arith.constant 2 : index
    %c3_1067 = arith.constant 3 : index
    %c0_1068 = arith.constant 0 : index
    %c0_1069 = arith.constant 0 : index
    %1454 = vector.load %arg4[%c2_1066, %c3_1067, %c0_1068, %c0_1069] : memref<3x9x4x1xf32, #tpu.memory_space<vmem>>, vector<1x1x4x1xf32>
    %1455 = vector.shape_cast %1454 : vector<1x1x4x1xf32> to vector<4x1xf32>
    %1456 = vector.broadcast %1455 : vector<4x1xf32> to vector<4x256xf32>
    %1457 = arith.mulf %1456, %1439 : vector<4x256xf32>
    %cst_1070 = arith.constant dense<0.000000e+00> : vector<256xf32>
    %1458 = vector.multi_reduction <add>, %1457, %cst_1070 [0] : vector<4x256xf32> to vector<256xf32>
    %1459 = vector.shape_cast %1458 : vector<256xf32> to vector<1x256xf32>
    %1460 = arith.addf %1435, %1459 : vector<1x256xf32>
    %c0_1071 = arith.constant 0 : index
    %c4_1072 = arith.constant 4 : index
    %c0_1073 = arith.constant 0 : index
    %c0_1074 = arith.constant 0 : index
    %1461 = vector.load %arg4[%c0_1071, %c4_1072, %c0_1073, %c0_1074] : memref<3x9x4x1xf32, #tpu.memory_space<vmem>>, vector<1x1x4x1xf32>
    %1462 = vector.shape_cast %1461 : vector<1x1x4x1xf32> to vector<4x1xf32>
    %1463 = vector.broadcast %1462 : vector<4x1xf32> to vector<4x256xf32>
    %1464 = arith.mulf %1463, %1357 : vector<4x256xf32>
    %cst_1075 = arith.constant dense<0.000000e+00> : vector<256xf32>
    %1465 = vector.multi_reduction <add>, %1464, %cst_1075 [0] : vector<4x256xf32> to vector<256xf32>
    %1466 = vector.shape_cast %1465 : vector<256xf32> to vector<1x256xf32>
    %1467 = arith.addf %1446, %1466 : vector<1x256xf32>
    %c1_1076 = arith.constant 1 : index
    %c4_1077 = arith.constant 4 : index
    %c0_1078 = arith.constant 0 : index
    %c0_1079 = arith.constant 0 : index
    %1468 = vector.load %arg4[%c1_1076, %c4_1077, %c0_1078, %c0_1079] : memref<3x9x4x1xf32, #tpu.memory_space<vmem>>, vector<1x1x4x1xf32>
    %1469 = vector.shape_cast %1468 : vector<1x1x4x1xf32> to vector<4x1xf32>
    %1470 = vector.broadcast %1469 : vector<4x1xf32> to vector<4x256xf32>
    %1471 = arith.mulf %1470, %1357 : vector<4x256xf32>
    %cst_1080 = arith.constant dense<0.000000e+00> : vector<256xf32>
    %1472 = vector.multi_reduction <add>, %1471, %cst_1080 [0] : vector<4x256xf32> to vector<256xf32>
    %1473 = vector.shape_cast %1472 : vector<256xf32> to vector<1x256xf32>
    %1474 = arith.addf %1453, %1473 : vector<1x256xf32>
    %c2_1081 = arith.constant 2 : index
    %c4_1082 = arith.constant 4 : index
    %c0_1083 = arith.constant 0 : index
    %c0_1084 = arith.constant 0 : index
    %1475 = vector.load %arg4[%c2_1081, %c4_1082, %c0_1083, %c0_1084] : memref<3x9x4x1xf32, #tpu.memory_space<vmem>>, vector<1x1x4x1xf32>
    %1476 = vector.shape_cast %1475 : vector<1x1x4x1xf32> to vector<4x1xf32>
    %1477 = vector.broadcast %1476 : vector<4x1xf32> to vector<4x256xf32>
    %1478 = arith.mulf %1477, %1357 : vector<4x256xf32>
    %cst_1085 = arith.constant dense<0.000000e+00> : vector<256xf32>
    %1479 = vector.multi_reduction <add>, %1478, %cst_1085 [0] : vector<4x256xf32> to vector<256xf32>
    %1480 = vector.shape_cast %1479 : vector<256xf32> to vector<1x256xf32>
    %1481 = arith.addf %1460, %1480 : vector<1x256xf32>
    %c255_i32_1086 = arith.constant 255 : i32
    %1482 = tpu.dynamic_rotate %1357 by %c255_i32_1086 dim 1 : vector<4x256xf32>, i32 -> vector<4x256xf32>
    %c5_1087 = arith.constant 5 : index
    %c0_1088 = arith.constant 0 : index
    %c0_1089 = arith.constant 0 : index
    %1483 = vector.load %arg5[%c5_1087, %c0_1088, %c0_1089] : memref<9x4x256xf32, #tpu.memory_space<vmem>>, vector<1x4x256xf32>
    %1484 = vector.shape_cast %1483 : vector<1x4x256xf32> to vector<4x256xf32>
    %1485 = arith.mulf %1482, %1484 : vector<4x256xf32>
    %c0_1090 = arith.constant 0 : index
    %c5_1091 = arith.constant 5 : index
    %c0_1092 = arith.constant 0 : index
    %c0_1093 = arith.constant 0 : index
    %1486 = vector.load %arg4[%c0_1090, %c5_1091, %c0_1092, %c0_1093] : memref<3x9x4x1xf32, #tpu.memory_space<vmem>>, vector<1x1x4x1xf32>
    %1487 = vector.shape_cast %1486 : vector<1x1x4x1xf32> to vector<4x1xf32>
    %1488 = vector.broadcast %1487 : vector<4x1xf32> to vector<4x256xf32>
    %1489 = arith.mulf %1488, %1485 : vector<4x256xf32>
    %cst_1094 = arith.constant dense<0.000000e+00> : vector<256xf32>
    %1490 = vector.multi_reduction <add>, %1489, %cst_1094 [0] : vector<4x256xf32> to vector<256xf32>
    %1491 = vector.shape_cast %1490 : vector<256xf32> to vector<1x256xf32>
    %1492 = arith.addf %1467, %1491 : vector<1x256xf32>
    %c1_1095 = arith.constant 1 : index
    %c5_1096 = arith.constant 5 : index
    %c0_1097 = arith.constant 0 : index
    %c0_1098 = arith.constant 0 : index
    %1493 = vector.load %arg4[%c1_1095, %c5_1096, %c0_1097, %c0_1098] : memref<3x9x4x1xf32, #tpu.memory_space<vmem>>, vector<1x1x4x1xf32>
    %1494 = vector.shape_cast %1493 : vector<1x1x4x1xf32> to vector<4x1xf32>
    %1495 = vector.broadcast %1494 : vector<4x1xf32> to vector<4x256xf32>
    %1496 = arith.mulf %1495, %1485 : vector<4x256xf32>
    %cst_1099 = arith.constant dense<0.000000e+00> : vector<256xf32>
    %1497 = vector.multi_reduction <add>, %1496, %cst_1099 [0] : vector<4x256xf32> to vector<256xf32>
    %1498 = vector.shape_cast %1497 : vector<256xf32> to vector<1x256xf32>
    %1499 = arith.addf %1474, %1498 : vector<1x256xf32>
    %c2_1100 = arith.constant 2 : index
    %c5_1101 = arith.constant 5 : index
    %c0_1102 = arith.constant 0 : index
    %c0_1103 = arith.constant 0 : index
    %1500 = vector.load %arg4[%c2_1100, %c5_1101, %c0_1102, %c0_1103] : memref<3x9x4x1xf32, #tpu.memory_space<vmem>>, vector<1x1x4x1xf32>
    %1501 = vector.shape_cast %1500 : vector<1x1x4x1xf32> to vector<4x1xf32>
    %1502 = vector.broadcast %1501 : vector<4x1xf32> to vector<4x256xf32>
    %1503 = arith.mulf %1502, %1485 : vector<4x256xf32>
    %cst_1104 = arith.constant dense<0.000000e+00> : vector<256xf32>
    %1504 = vector.multi_reduction <add>, %1503, %cst_1104 [0] : vector<4x256xf32> to vector<256xf32>
    %1505 = vector.shape_cast %1504 : vector<256xf32> to vector<1x256xf32>
    %1506 = arith.addf %1481, %1505 : vector<1x256xf32>
    %c241_i32_1105 = arith.constant 241 : i32
    %1507 = tpu.dynamic_rotate %1357 by %c241_i32_1105 dim 1 : vector<4x256xf32>, i32 -> vector<4x256xf32>
    %c6_1106 = arith.constant 6 : index
    %c0_1107 = arith.constant 0 : index
    %c0_1108 = arith.constant 0 : index
    %1508 = vector.load %arg5[%c6_1106, %c0_1107, %c0_1108] : memref<9x4x256xf32, #tpu.memory_space<vmem>>, vector<1x4x256xf32>
    %1509 = vector.shape_cast %1508 : vector<1x4x256xf32> to vector<4x256xf32>
    %1510 = arith.mulf %1507, %1509 : vector<4x256xf32>
    %c0_1109 = arith.constant 0 : index
    %c6_1110 = arith.constant 6 : index
    %c0_1111 = arith.constant 0 : index
    %c0_1112 = arith.constant 0 : index
    %1511 = vector.load %arg4[%c0_1109, %c6_1110, %c0_1111, %c0_1112] : memref<3x9x4x1xf32, #tpu.memory_space<vmem>>, vector<1x1x4x1xf32>
    %1512 = vector.shape_cast %1511 : vector<1x1x4x1xf32> to vector<4x1xf32>
    %1513 = vector.broadcast %1512 : vector<4x1xf32> to vector<4x256xf32>
    %1514 = arith.mulf %1513, %1510 : vector<4x256xf32>
    %cst_1113 = arith.constant dense<0.000000e+00> : vector<256xf32>
    %1515 = vector.multi_reduction <add>, %1514, %cst_1113 [0] : vector<4x256xf32> to vector<256xf32>
    %1516 = vector.shape_cast %1515 : vector<256xf32> to vector<1x256xf32>
    %1517 = arith.addf %1492, %1516 : vector<1x256xf32>
    %c1_1114 = arith.constant 1 : index
    %c6_1115 = arith.constant 6 : index
    %c0_1116 = arith.constant 0 : index
    %c0_1117 = arith.constant 0 : index
    %1518 = vector.load %arg4[%c1_1114, %c6_1115, %c0_1116, %c0_1117] : memref<3x9x4x1xf32, #tpu.memory_space<vmem>>, vector<1x1x4x1xf32>
    %1519 = vector.shape_cast %1518 : vector<1x1x4x1xf32> to vector<4x1xf32>
    %1520 = vector.broadcast %1519 : vector<4x1xf32> to vector<4x256xf32>
    %1521 = arith.mulf %1520, %1510 : vector<4x256xf32>
    %cst_1118 = arith.constant dense<0.000000e+00> : vector<256xf32>
    %1522 = vector.multi_reduction <add>, %1521, %cst_1118 [0] : vector<4x256xf32> to vector<256xf32>
    %1523 = vector.shape_cast %1522 : vector<256xf32> to vector<1x256xf32>
    %1524 = arith.addf %1499, %1523 : vector<1x256xf32>
    %c2_1119 = arith.constant 2 : index
    %c6_1120 = arith.constant 6 : index
    %c0_1121 = arith.constant 0 : index
    %c0_1122 = arith.constant 0 : index
    %1525 = vector.load %arg4[%c2_1119, %c6_1120, %c0_1121, %c0_1122] : memref<3x9x4x1xf32, #tpu.memory_space<vmem>>, vector<1x1x4x1xf32>
    %1526 = vector.shape_cast %1525 : vector<1x1x4x1xf32> to vector<4x1xf32>
    %1527 = vector.broadcast %1526 : vector<4x1xf32> to vector<4x256xf32>
    %1528 = arith.mulf %1527, %1510 : vector<4x256xf32>
    %cst_1123 = arith.constant dense<0.000000e+00> : vector<256xf32>
    %1529 = vector.multi_reduction <add>, %1528, %cst_1123 [0] : vector<4x256xf32> to vector<256xf32>
    %1530 = vector.shape_cast %1529 : vector<256xf32> to vector<1x256xf32>
    %1531 = arith.addf %1506, %1530 : vector<1x256xf32>
    %c240_i32_1124 = arith.constant 240 : i32
    %1532 = tpu.dynamic_rotate %1357 by %c240_i32_1124 dim 1 : vector<4x256xf32>, i32 -> vector<4x256xf32>
    %c7_1125 = arith.constant 7 : index
    %c0_1126 = arith.constant 0 : index
    %c0_1127 = arith.constant 0 : index
    %1533 = vector.load %arg5[%c7_1125, %c0_1126, %c0_1127] : memref<9x4x256xf32, #tpu.memory_space<vmem>>, vector<1x4x256xf32>
    %1534 = vector.shape_cast %1533 : vector<1x4x256xf32> to vector<4x256xf32>
    %1535 = arith.mulf %1532, %1534 : vector<4x256xf32>
    %c0_1128 = arith.constant 0 : index
    %c7_1129 = arith.constant 7 : index
    %c0_1130 = arith.constant 0 : index
    %c0_1131 = arith.constant 0 : index
    %1536 = vector.load %arg4[%c0_1128, %c7_1129, %c0_1130, %c0_1131] : memref<3x9x4x1xf32, #tpu.memory_space<vmem>>, vector<1x1x4x1xf32>
    %1537 = vector.shape_cast %1536 : vector<1x1x4x1xf32> to vector<4x1xf32>
    %1538 = vector.broadcast %1537 : vector<4x1xf32> to vector<4x256xf32>
    %1539 = arith.mulf %1538, %1535 : vector<4x256xf32>
    %cst_1132 = arith.constant dense<0.000000e+00> : vector<256xf32>
    %1540 = vector.multi_reduction <add>, %1539, %cst_1132 [0] : vector<4x256xf32> to vector<256xf32>
    %1541 = vector.shape_cast %1540 : vector<256xf32> to vector<1x256xf32>
    %1542 = arith.addf %1517, %1541 : vector<1x256xf32>
    %c1_1133 = arith.constant 1 : index
    %c7_1134 = arith.constant 7 : index
    %c0_1135 = arith.constant 0 : index
    %c0_1136 = arith.constant 0 : index
    %1543 = vector.load %arg4[%c1_1133, %c7_1134, %c0_1135, %c0_1136] : memref<3x9x4x1xf32, #tpu.memory_space<vmem>>, vector<1x1x4x1xf32>
    %1544 = vector.shape_cast %1543 : vector<1x1x4x1xf32> to vector<4x1xf32>
    %1545 = vector.broadcast %1544 : vector<4x1xf32> to vector<4x256xf32>
    %1546 = arith.mulf %1545, %1535 : vector<4x256xf32>
    %cst_1137 = arith.constant dense<0.000000e+00> : vector<256xf32>
    %1547 = vector.multi_reduction <add>, %1546, %cst_1137 [0] : vector<4x256xf32> to vector<256xf32>
    %1548 = vector.shape_cast %1547 : vector<256xf32> to vector<1x256xf32>
    %1549 = arith.addf %1524, %1548 : vector<1x256xf32>
    %c2_1138 = arith.constant 2 : index
    %c7_1139 = arith.constant 7 : index
    %c0_1140 = arith.constant 0 : index
    %c0_1141 = arith.constant 0 : index
    %1550 = vector.load %arg4[%c2_1138, %c7_1139, %c0_1140, %c0_1141] : memref<3x9x4x1xf32, #tpu.memory_space<vmem>>, vector<1x1x4x1xf32>
    %1551 = vector.shape_cast %1550 : vector<1x1x4x1xf32> to vector<4x1xf32>
    %1552 = vector.broadcast %1551 : vector<4x1xf32> to vector<4x256xf32>
    %1553 = arith.mulf %1552, %1535 : vector<4x256xf32>
    %cst_1142 = arith.constant dense<0.000000e+00> : vector<256xf32>
    %1554 = vector.multi_reduction <add>, %1553, %cst_1142 [0] : vector<4x256xf32> to vector<256xf32>
    %1555 = vector.shape_cast %1554 : vector<256xf32> to vector<1x256xf32>
    %1556 = arith.addf %1531, %1555 : vector<1x256xf32>
    %c239_i32_1143 = arith.constant 239 : i32
    %1557 = tpu.dynamic_rotate %1357 by %c239_i32_1143 dim 1 : vector<4x256xf32>, i32 -> vector<4x256xf32>
    %c8_1144 = arith.constant 8 : index
    %c0_1145 = arith.constant 0 : index
    %c0_1146 = arith.constant 0 : index
    %1558 = vector.load %arg5[%c8_1144, %c0_1145, %c0_1146] : memref<9x4x256xf32, #tpu.memory_space<vmem>>, vector<1x4x256xf32>
    %1559 = vector.shape_cast %1558 : vector<1x4x256xf32> to vector<4x256xf32>
    %1560 = arith.mulf %1557, %1559 : vector<4x256xf32>
    %c0_1147 = arith.constant 0 : index
    %c8_1148 = arith.constant 8 : index
    %c0_1149 = arith.constant 0 : index
    %c0_1150 = arith.constant 0 : index
    %1561 = vector.load %arg4[%c0_1147, %c8_1148, %c0_1149, %c0_1150] : memref<3x9x4x1xf32, #tpu.memory_space<vmem>>, vector<1x1x4x1xf32>
    %1562 = vector.shape_cast %1561 : vector<1x1x4x1xf32> to vector<4x1xf32>
    %1563 = vector.broadcast %1562 : vector<4x1xf32> to vector<4x256xf32>
    %1564 = arith.mulf %1563, %1560 : vector<4x256xf32>
    %cst_1151 = arith.constant dense<0.000000e+00> : vector<256xf32>
    %1565 = vector.multi_reduction <add>, %1564, %cst_1151 [0] : vector<4x256xf32> to vector<256xf32>
    %1566 = vector.shape_cast %1565 : vector<256xf32> to vector<1x256xf32>
    %1567 = arith.addf %1542, %1566 : vector<1x256xf32>
    %c1_1152 = arith.constant 1 : index
    %c8_1153 = arith.constant 8 : index
    %c0_1154 = arith.constant 0 : index
    %c0_1155 = arith.constant 0 : index
    %1568 = vector.load %arg4[%c1_1152, %c8_1153, %c0_1154, %c0_1155] : memref<3x9x4x1xf32, #tpu.memory_space<vmem>>, vector<1x1x4x1xf32>
    %1569 = vector.shape_cast %1568 : vector<1x1x4x1xf32> to vector<4x1xf32>
    %1570 = vector.broadcast %1569 : vector<4x1xf32> to vector<4x256xf32>
    %1571 = arith.mulf %1570, %1560 : vector<4x256xf32>
    %cst_1156 = arith.constant dense<0.000000e+00> : vector<256xf32>
    %1572 = vector.multi_reduction <add>, %1571, %cst_1156 [0] : vector<4x256xf32> to vector<256xf32>
    %1573 = vector.shape_cast %1572 : vector<256xf32> to vector<1x256xf32>
    %1574 = arith.addf %1549, %1573 : vector<1x256xf32>
    %c2_1157 = arith.constant 2 : index
    %c8_1158 = arith.constant 8 : index
    %c0_1159 = arith.constant 0 : index
    %c0_1160 = arith.constant 0 : index
    %1575 = vector.load %arg4[%c2_1157, %c8_1158, %c0_1159, %c0_1160] : memref<3x9x4x1xf32, #tpu.memory_space<vmem>>, vector<1x1x4x1xf32>
    %1576 = vector.shape_cast %1575 : vector<1x1x4x1xf32> to vector<4x1xf32>
    %1577 = vector.broadcast %1576 : vector<4x1xf32> to vector<4x256xf32>
    %1578 = arith.mulf %1577, %1560 : vector<4x256xf32>
    %cst_1161 = arith.constant dense<0.000000e+00> : vector<256xf32>
    %1579 = vector.multi_reduction <add>, %1578, %cst_1161 [0] : vector<4x256xf32> to vector<256xf32>
    %1580 = vector.shape_cast %1579 : vector<256xf32> to vector<1x256xf32>
    %1581 = arith.addf %1556, %1580 : vector<1x256xf32>
    %1582 = tpu.concatenate %1567, %1574, %1581 in 0 : vector<1x256xf32>, vector<1x256xf32>, vector<1x256xf32> -> vector<3x256xf32>
    %c0_1162 = arith.constant 0 : index
    %c2_1163 = arith.constant 2 : index
    %c0_1164 = arith.constant 0 : index
    %c0_1165 = arith.constant 0 : index
    %1583 = vector.load %arg8[%c0_1162, %c2_1163, %c0_1164, %c0_1165] : memref<1x3x3x256xf32, #tpu.memory_space<vmem>>, vector<1x1x3x256xf32>
    %1584 = vector.shape_cast %1583 : vector<1x1x3x256xf32> to vector<3x256xf32>
    %1585 = vector.shape_cast %1582 : vector<3x256xf32> to vector<1x1x3x256xf32>
    tpu.vector_store %arg8[%c0_1162, %c2_1163, %c0_1164, %c0_1165], %1585 {strides = array<i32>} : memref<1x3x3x256xf32, #tpu.memory_space<vmem>>, vector<1x1x3x256xf32>,
    return
  }
  func.func @transform_0(%arg0: i32) -> (i32, i32) {
    %c0_i32 = arith.constant 0 : i32
    %c0_i32_0 = arith.constant 0 : i32
    %c0_i32_1 = arith.constant 0 : i32
    return %c0_i32, %c0_i32_0 : i32, i32
  }
  func.func @transform_1(%arg0: i32) -> (i32, i32) {
    %c0_i32 = arith.constant 0 : i32
    %c0_i32_0 = arith.constant 0 : i32
    %c0_i32_1 = arith.constant 0 : i32
    return %c0_i32, %c0_i32_0 : i32, i32
  }
  func.func @transform_2(%arg0: i32) -> (i32, i32, i32, i32) {
    %c0_i32 = arith.constant 0 : i32
    %c0_i32_0 = arith.constant 0 : i32
    %c0_i32_1 = arith.constant 0 : i32
    %c0_i32_2 = arith.constant 0 : i32
    %c0_i32_3 = arith.constant 0 : i32
    return %c0_i32, %c0_i32_0, %c0_i32_1, %c0_i32_2 : i32, i32, i32, i32
  }
  func.func @transform_3(%arg0: i32) -> (i32, i32, i32, i32) {
    %c0_i32 = arith.constant 0 : i32
    %c0_i32_0 = arith.constant 0 : i32
    %c0_i32_1 = arith.constant 0 : i32
    %c0_i32_2 = arith.constant 0 : i32
    %c0_i32_3 = arith.constant 0 : i32
    return %c0_i32, %c0_i32_0, %c0_i32_1, %c0_i32_2 : i32, i32, i32, i32
  }
  func.func @transform_4(%arg0: i32) -> (i32, i32, i32) {
    %c0_i32 = arith.constant 0 : i32
    %c0_i32_0 = arith.constant 0 : i32
    %c0_i32_1 = arith.constant 0 : i32
    %c0_i32_2 = arith.constant 0 : i32
    return %c0_i32, %c0_i32_0, %c0_i32_1 : i32, i32, i32
  }
  func.func @transform_5(%arg0: i32) -> (i32, i32, i32) {
    %c0_i32 = arith.constant 0 : i32
    %c0_i32_0 = arith.constant 0 : i32
    %c0_i32_1 = arith.constant 0 : i32
    return %arg0, %c0_i32, %c0_i32_0 : i32, i32, i32
  }
  func.func @transform_6(%arg0: i32) -> (i32, i32, i32) {
    %c0_i32 = arith.constant 0 : i32
    %c0_i32_0 = arith.constant 0 : i32
    %c0_i32_1 = arith.constant 0 : i32
    return %arg0, %c0_i32, %c0_i32_0 : i32, i32, i32
  }
  func.func @transform_7(%arg0: i32) -> (i32, i32, i32, i32) {
    %c0_i32 = arith.constant 0 : i32
    %c0_i32_0 = arith.constant 0 : i32
    %c0_i32_1 = arith.constant 0 : i32
    %c0_i32_2 = arith.constant 0 : i32
    return %arg0, %c0_i32, %c0_i32_0, %c0_i32_1 : i32, i32, i32, i32
  }
}

</mosaic_0001>

<bundles_post_ra>
// kernel: forward.1
= control target key start
LH: loop header
LB: loop body
LE: loop exit
PB: predicated region body
PF: predicated region fallthrough
CT: control target
= control target key end

     0   :  { %12 = vsyncpa [#allocation3], 0  ;;  %s6126_s24 = smov 0   ;;  %s9700_s0 = inlined_call_operand.vmem [shape: f32[2,4], index: 0, kind: input, shape index: {}]   ;;  %s9701_s1 = inlined_call_operand.vmem [shape: f32[4,1], index: 1, kind: input, shape index: {}]   ;;  %s9702_s2 = inlined_call_operand.vmem [shape: f32[4,9,4,1], index: 2, kind: input, shape index: {}]   ;;  %s9703_s3 = inlined_call_operand.vmem [shape: f32[3,9,4,1], index: 3, kind: input, shape index: {}]   ;;  %s9704_s4 = inlined_call_operand.vmem [shape: f32[9,4,256], index: 4, kind: input, shape index: {}]   ;;  %s9705_s5 = inlined_call_operand.vmem [shape: f32[2,3,256], index: 5, kind: input, shape index: {}]   ;;  %s9706_s6 = inlined_call_operand.vmem [shape: f32[2,1,256], index: 6, kind: input, shape index: {}]   ;;  %s9707_s7 = inlined_call_operand.vmem [shape: f32[2,3,3,256], index: 7, kind: output, shape index: {}]  }
   0x1 LB: > { %s6132_s25 = sadd.s32 4294967295, %s6074_s24   ;;  %p5796_p0 = scmp.ge.s32.totalorder %s6074_s24, 1  ;;  %s6074_s24 = sphi %s6126_s24, %s18_s24  }
   0x2   : > { %p206_p1 = scmp.lt.s32.totalorder %s6074_s24, 3  ;;  %s218_s28 = sshll.u32 %s9700_s0, 4  ;;  %s219_s28 = int_to_ptr.vmem [resolvable:$true] %s218_s28 }
   0x3   : > { %p6024_p3 = scmp.eq.s32.totalorder %s6132_s25, 0  ;;  %s6076_s29 = smov [#allocation2]  }
   0x4   : > { %p207_p2 = pnand %p5796_p0, %p206_p1 }
   0x6   : > { %p6020_p4 = pneg %p207_p2  ;;  %258 = sbr.rel (%p207_p2) target bundleno = 1646 (0x66e), region = 48 }
   0x8   : > { %p6021_p5 = pnand %p6024_p3, %p6020_p4 }
   0xa   : > { %6023 = dma.vmem_to_smem (!%p6021_p5), %s219_s28, 32, %s6076_s29, [#allocation3]  }
   0xb   : > { %6069 = dma.done.wait (%p6024_p3), [#allocation3], 32  }
   0xc   : > { %6071 = vsyncadd (%p6024_p3), [#allocation3], 4294967264 }
   0xd   : > { %265 = sfence }
   0xe   : > { %v5806_v0 = vld [vmem:[%s9702_s2 + $0x48] sm:$0xf]  ;;  %v345_v1 = vld [vmem:[%s9702_s2] sm:$0xf]  ;;  %p296_p6 = scmp.lt.s32.totalorder %s6132_s25, 1  ;;  %v6077_v2 = vmov 0  }
   0xf   : > { %6045 = vset.pattern.permute.xlu2 %v6077_v2  ;;  %6044 = vset.pattern.permute.xlu1 %v6077_v2  ;;  %v5807_v4 = vld [vmem:[%s9702_s2 + $0x6c] sm:$0xf]  ;;  %v5805_v5 = vld [vmem:[%s9702_s2 + $0x24] sm:$0xf]  ;;  %vm324_vm0 = vcmask 1042432   ;;  %s6078_s30 = smov 17  }
  0x10   : > { %399 = vperm.xlu2 %6045, %v5806_v0   ;;  %348 = vperm.xlu1 %6044, %v345_v1   ;;  %s6148_s11 = scalar_select %p296_p6, %s6132_s25, 1  ;;  %v6171_v9 = vld [vmem:[%s9704_s4] sm:$0xff]  ;;  %v6192_v15 = vld [vmem:[%s9704_s4 + $0x8] sm:$0xff]  ;;  %v5812_v18 = vld [vmem:[%s9702_s2 + $0x70] sm:$0xf]  ;;  %vm353_vm2 = vcmask 1043456  }
  0x11   : > { %6046 = vset.pattern.permute.xlu0 %v6077_v2  ;;  %v5809_v13 = vld [vmem:[%s9702_s2 + $0x4] sm:$0xf]  ;;  %s6079_s8 = smov 16   ;;  %v5811_v19 = vld [vmem:[%s9702_s2 + $0x4c] sm:$0xf]  ;;  %v6210_v20 = vld [vmem:[%s9704_s4 + $0x10] sm:$0xff] }
  0x12   : > { %s6014_s12 = sshll.u32 %s6148_s11, 3  ;;  %s5803_s13 = sshll.u32 %s6148_s11, 1  ;;  %v6226_v23 = vld [vmem:[%s9704_s4 + $0x18] sm:$0xff]  ;;  %v5810_v24 = vld [vmem:[%s9702_s2 + $0x28] sm:$0xf]  ;;  %v6262_v33 = vld [vmem:[%s9704_s4 + $0x30] sm:$0xff] }
  0x13   : > { %s300_s16 = scalar_lea.vmem %s9705_s5, %s6014_s12  ;;  %s304_s19 = scalar_lea.vmem %s9706_s6, %s5803_s13  ;;  %v5816_v27 = vld [vmem:[%s9702_s2 + $0x50] sm:$0xf]  ;;  %v5815_v28 = vld [vmem:[%s9702_s2 + $0x2c] sm:$0xf]  ;;  %v5814_v30 = vld [vmem:[%s9702_s2 + $0x8] sm:$0xf] }
  0x14   : > { %v312_v3 = vld [vmem:[%s300_s16] sm:$0x77]  ;;  %s6080_s18 = smov 15   ;;  %v6245_v29 = vld [vmem:[%s9704_s4 + $0x28] sm:$0xff]  ;;  %s6081_s13 = smov 1   ;;  %9764 = vst [vmem:[#allocation7_spill] sm:$0xff] %v6262_v33 }
  0x15   : > { %314 = vst [vmem:[#allocation1] ss:$2 sm:$0xff] %v312_v3  ;;  %v311_v6 = vld [vmem:[%s304_s19] sm:$0x3]  ;;  %v5817_v34 = vld [vmem:[%s9702_s2 + $0x74] sm:$0xf] }
  0x16   : > { %v6164_v7 = vperm.slane %v311_v6, 0  ;;  %v6166_v8 = vperm.slane %v311_v6, 1  ;;  %v5821_v37 = vld [vmem:[%s9702_s2 + $0x54] sm:$0xf]  ;;  %v5820_v38 = vld [vmem:[%s9702_s2 + $0x30] sm:$0xf] }
  0x17   : > { %v6281_v39 = vld [vmem:[%s9704_s4 + $0x38] sm:$0xff]  ;;  %v5819_v40 = vld [vmem:[%s9702_s2 + $0xc] sm:$0xf]  ;;  %v5824_v43 = vld [vmem:[%s9702_s2 + $0x34] sm:$0xf]  ;;  %s6082_s21 = smov 127  }
  0x18   : > { %424 = vperm.xlu2 %6045, %v5807_v4   ;;  %374 = vperm.xlu1 %6044, %v5805_v5   ;;  %9762 = vst [vmem:[#allocation5_spill] sm:$0xff] %v6164_v7  ;;  %v5823_v44 = vld [vmem:[%s9702_s2 + $0x10] sm:$0xf]  ;;  %v6300_v45 = vld [vmem:[%s9704_s4 + $0x40] sm:$0xff]  ;;  %v5822_v46 = vld [vmem:[%s9702_s2 + $0x78] sm:$0xf] }
  0x19   : > { %9763 = vst [vmem:[#allocation6_spill] sm:$0xff] %v6166_v8  ;;  %v5826_v49 = vld [vmem:[%s9702_s2 + $0x7c] sm:$0xf]  ;;  %v5825_v50 = vld [vmem:[%s9702_s2 + $0x58] sm:$0xf]  ;;  %s6083_s12 = smov 113  }
  0x1a   : > { %9765 = vst [vmem:[#allocation8_spill] sm:$0xff] %v6281_v39  ;;  %v5829_v53 = vld [vmem:[%s9702_s2 + $0x38] sm:$0xf]  ;;  %v5828_v54 = vld [vmem:[%s9702_s2 + $0x14] sm:$0xf]  ;;  %s6084_s26 = smov 112  }
  0x1b   : > { %9768 = vst [vmem:[#allocation11_spill] sm:$0xff] %v6300_v45  ;;  %v5831_v57 = vld [vmem:[%s9702_s2 + $0x80] sm:$0xf]  ;;  %v5830_v59 = vld [vmem:[%s9702_s2 + $0x5c] sm:$0xf]  ;;  %s6395_s17 = sshll.u32 %s6132_s25, 7 }
  0x1c   : > { %v315_v10 = vld.sshfl [vmem:[#allocation1] sm:$0xff pattern:$0x75316420]  ;;  %v316_v11 = vld.sshfl [vmem:[#allocation1 + $0x8] sm:$0xff pattern:$0x75316420] }
  0x1d   : > { %v6175_v12 = vsel %vm324_vm0, %v315_v10, %v6164_v7  ;;  %338 = vst [vmem:[#allocation1] ss:$2 sm:$0xff] %v6171_v9  ;;  %v6183_v14 = vsel %vm324_vm0, %v316_v11, %v6166_v8  ;;  %v5834_v62 = vld [vmem:[%s9702_s2 + $0x3c] sm:$0xf]  ;;  %v5833_v63 = vld [vmem:[%s9702_s2 + $0x18] sm:$0xf] }
  0x1e   : > { %327 = vrot.lane.b32.xlu0 %v6175_v12, %s6078_s30  ;;  %v5836_v3 = vld [vmem:[%s9702_s2 + $0x84] sm:$0xf]  ;;  %v5835_v5 = vld [vmem:[%s9702_s2 + $0x60] sm:$0xf]  ;;  %v5838_v11 = vld [vmem:[%s9702_s2 + $0x1c] sm:$0xf] }
  0x1f   : > { %v5839_v10 = vld [vmem:[%s9702_s2 + $0x40] sm:$0xf]  ;;  %s6085_s19 = smov 111   ;;  %s1373_s20 = sld [smem:[#allocation2 + %s6395_s17]]  ;;  %vm1364_vm10 = vcmask 1040384   ;;  %vm1367_vm11 = vcmask 1041408  }
  0x20   : > { %466 = vperm.xlu2 %6045, %v5809_v13   ;;  %447 = vrot.lane.b32.xlu1 %v6183_v14, %s6079_s8  ;;  %s6015_s14 = smul.u32 24, %s6148_s11  ;;  %s3167_s11 = sadd.s32 1, %s6395_s17 }
  0x21   : > { %s3168_s22 = sld [smem:[#allocation2 + %s3167_s11]]  ;;  %s4937_s11 = sadd.s32 2, %s6395_s17 }
  0x22   : > { %s7316_s16 = scalar_lea.vmem %s9707_s7, %s6015_s14  ;;  %s4938_s15 = sld [smem:[#allocation2 + %s4937_s11]] }
  0x24   : > { %v6194_v16 = vld.sshfl [vmem:[#allocation1] sm:$0xff pattern:$0x75316420]  ;;  %v6196_v17 = vld.sshfl [vmem:[#allocation1 + $0x8] sm:$0xff pattern:$0x75316420] }
  0x25   : > { %455 = vst [vmem:[#allocation1] ss:$2 sm:$0xff] %v6192_v15 }
  0x26   : > { %329 = vrot.lane.b32.xlu0 %v6183_v14, %s6078_s30 }
  0x28   : > { %541 = vperm.xlu2 %6045, %v5812_v18   ;;  %516 = vperm.xlu1 %6044, %v5811_v19   ;;  %v5841_v18 = vld [vmem:[%s9702_s2 + $0x88] sm:$0xf] }
  0x2c   : > { %v6212_v21 = vld.sshfl [vmem:[#allocation1] sm:$0xff pattern:$0x75316420]  ;;  %v6214_v22 = vld.sshfl [vmem:[#allocation1 + $0x8] sm:$0xff pattern:$0x75316420] }
  0x2d   : > { %572 = vst [vmem:[#allocation1] ss:$2 sm:$0xff] %v6210_v20 }
  0x2e   : > { %445 = vrot.lane.b32.xlu0 %v6175_v12, %s6079_s8 }
  0x30   : > { %564 = vrot.lane.b32.xlu2 %v6183_v14, %s6080_s18  ;;  %562 = vrot.lane.b32.xlu1 %v6175_v12, %s6080_s18 }
  0x34   : > { %v6231_v25 = vld.sshfl [vmem:[#allocation1] sm:$0xff pattern:$0x75316420]  ;;  %v6233_v26 = vld.sshfl [vmem:[#allocation1 + $0x8] sm:$0xff pattern:$0x75316420] }
  0x35   : > { %689 = vst [vmem:[#allocation1] ss:$2 sm:$0xff] %v6226_v23 }
  0x36   : > { %491 = vperm.xlu0 %6046, %v5810_v24   ;;  %v5843_v24 = vld [vmem:[%s9702_s2 + $0x20] sm:$0xf] }
  0x38   : > { %633 = vperm.xlu2 %6045, %v5816_v27   ;;  %608 = vperm.xlu1 %6044, %v5815_v28   ;;  %v331_v27 = vlaneseq }
  0x3c   : > { %v6250_v31 = vld.sshfl [vmem:[#allocation1] sm:$0xff pattern:$0x75316420]  ;;  %v6252_v32 = vld.sshfl [vmem:[#allocation1 + $0x8] sm:$0xff pattern:$0x75316420] }
  0x3d   : > { %906 = vst [vmem:[#allocation1] ss:$2 sm:$0xff] %v6245_v29 }
  0x3e   : > { %583 = vperm.xlu0 %6046, %v5814_v30   ;;  %v310_v30 = vld [vmem:[%s9701_s1] sm:$0xf] }
  0x40   : > { %681 = vrot.lane.b32.xlu2 %v6183_v14, %s6081_s13  ;;  %679 = vrot.lane.b32.xlu1 %v6175_v12, %s6081_s13 }
  0x44   : > { %v6267_v35 = vld.sshfl [vmem:[#allocation1] sm:$0xff pattern:$0x75316420]  ;;  %v6269_v36 = vld.sshfl [vmem:[#allocation1 + $0x8] sm:$0xff pattern:$0x75316420] }
  0x45   : > { %1023 = vst [vmem:[#allocation1] ss:$2 sm:$0xff] %v6262_v33 }
  0x46   : > { %658 = vperm.xlu0 %6046, %v5817_v34   ;;  %v1374_v34 = vstv %s1373_s20 }
  0x48   : > { %750 = vperm.xlu2 %6045, %v5821_v37   ;;  %725 = vperm.xlu1 %6044, %v5820_v38   ;;  %v6414_v37 = vand.u32 127, %v331_v27  ;;  %v1375_v38 = vmul.f32 %v1374_v34, %v310_v30 }
  0x4a   : > { %9781 = vst [vmem:[#allocation24_spill] sm:$0xff] %v6414_v37  ;;  %vm333_vm1 = vcmp.lt.s32.totalorder %v6414_v37, 17  ;;  %vm449_vm3 = vcmp.lt.s32.totalorder %v6414_v37, 16  ;;  %vm566_vm4 = vcmp.lt.s32.totalorder %v6414_v37, 15  ;;  %vm683_vm5 = vcmp.lt.s32.totalorder %v6414_v37, 1 }
  0x4b   : > { %vm900_vm6 = vcmp.lt.s32.totalorder %v6414_v37, 127  ;;  %vm1017_vm7 = vcmp.lt.s32.totalorder %v6414_v37, 113  ;;  %vm1134_vm8 = vcmp.lt.s32.totalorder %v6414_v37, 112  ;;  %vm1251_vm9 = vcmp.lt.s32.totalorder %v6414_v37, 111 }
  0x4c   : > { %v6286_v41 = vld.sshfl [vmem:[#allocation1] sm:$0xff pattern:$0x75316420]  ;;  %v6288_v42 = vld.sshfl [vmem:[#allocation1 + $0x8] sm:$0xff pattern:$0x75316420] }
  0x4d   : > { %9766 = vst [vmem:[#allocation9_spill] sm:$0xff] %v6286_v41 }
  0x4e   : > { %9767 = vst [vmem:[#allocation10_spill] sm:$0xff] %v6288_v42  ;;  %700 = vperm.xlu0 %6046, %v5819_v40  }
  0x4f   : > { %1140 = vst [vmem:[#allocation1] ss:$2 sm:$0xff] %v6281_v39 }
  0x50   : > { %825 = vperm.xlu2 %6045, %v5824_v43   ;;  %800 = vperm.xlu1 %6044, %v5823_v44   ;;  %v5846_v43 = vld [vmem:[%s9702_s2 + $0x8c] sm:$0xf] }
  0x56   : > { %v6305_v47 = vld.sshfl [vmem:[#allocation1] sm:$0xff pattern:$0x75316420]  ;;  %v6307_v48 = vld.sshfl [vmem:[#allocation1 + $0x8] sm:$0xff pattern:$0x75316420]  ;;  %775 = vperm.xlu0 %6046, %v5822_v46  }
  0x57   : > { %9769 = vst [vmem:[#allocation12_spill] sm:$0xff] %v6305_v47 }
  0x58   : > { %9770 = vst [vmem:[#allocation13_spill] sm:$0xff] %v6307_v48  ;;  %896 = vrot.lane.b32.xlu2 %v6175_v12, %s6082_s21  ;;  %875 = vperm.xlu1 %6044, %v5826_v49  }
  0x59   : > { %1257 = vst [vmem:[#allocation1] ss:$2 sm:$0xff] %v6300_v45 }
  0x5e   : > { %850 = vperm.xlu0 %6046, %v5825_v50  }
  0x60   : > { %v6318_v51 = vld.sshfl [vmem:[#allocation1] sm:$0xff pattern:$0x75316420]  ;;  %v6320_v52 = vld.sshfl [vmem:[#allocation1 + $0x8] sm:$0xff pattern:$0x75316420]  ;;  %942 = vperm.xlu2 %6045, %v5829_v53   ;;  %917 = vperm.xlu1 %6044, %v5828_v54  }
  0x61   : > { %9771 = vst [vmem:[#allocation14_spill] sm:$0xff] %v6318_v51 }
  0x62   : > { %9772 = vst [vmem:[#allocation15_spill] sm:$0xff] %v6320_v52 }
  0x63   : > { %1393 = vst [vmem:[#allocation1] ss:$2 sm:$0xff] %v6171_v9 }
  0x66   : > { %898 = vrot.lane.b32.xlu0 %v6183_v14, %s6082_s21 }
  0x68   : > { %1013 = vrot.lane.b32.xlu2 %v6175_v12, %s6083_s12  ;;  %992 = vperm.xlu1 %6044, %v5831_v57   ;;  %v5845_v57 = vld [vmem:[%s9702_s2 + $0x68] sm:$0xf] }
  0x6a   : > { %v6329_v55 = vld.sshfl [vmem:[#allocation1] sm:$0xff pattern:$0x75316420]  ;;  %v6331_v56 = vld.sshfl [vmem:[#allocation1 + $0x8] sm:$0xff pattern:$0x75316420]  ;;  %v6341_v58 = vpop.permute.xlu2 %399 }
  0x6b   : > { %9773 = vst [vmem:[#allocation16_spill] sm:$0xff] %v6329_v55 }
  0x6c   : > { %9774 = vst [vmem:[#allocation17_spill] sm:$0xff] %v6331_v56 }
  0x6d   : > { %1480 = vst [vmem:[#allocation1] ss:$2 sm:$0xff] %v6192_v15 }
  0x6e   : > { %967 = vperm.xlu0 %6046, %v5830_v59  }
  0x70   : > { %1059 = vperm.xlu2 %6045, %v5834_v62   ;;  %1034 = vperm.xlu1 %6044, %v5833_v63  }
  0x72   : > { %v6357_v0 = vpop.permute.xlu2 %424 }
  0x74   : > { %v6346_v60 = vld.sshfl [vmem:[#allocation1] sm:$0xff pattern:$0x75316420]  ;;  %v6348_v61 = vld.sshfl [vmem:[#allocation1 + $0x8] sm:$0xff pattern:$0x75316420] }
  0x75   : > { %9775 = vst [vmem:[#allocation18_spill] sm:$0xff] %v6346_v60 }
  0x76   : > { %9776 = vst [vmem:[#allocation19_spill] sm:$0xff] %v6348_v61  ;;  %1015 = vrot.lane.b32.xlu0 %v6183_v14, %s6083_s12 }
  0x77   : > { %1568 = vst [vmem:[#allocation1] ss:$2 sm:$0xff] %v6210_v20  ;;  %v5840_v20 = vld [vmem:[%s9702_s2 + $0x64] sm:$0xf] }
  0x78   : > { %1130 = vrot.lane.b32.xlu2 %v6175_v12, %s6084_s26  ;;  %1109 = vperm.xlu1 %6044, %v5836_v3  }
  0x7a   : > { %v6371_v4 = vpop.permute.xlu2 %466 }
  0x7e   : > { %v6359_v1 = vld.sshfl [vmem:[#allocation1] sm:$0xff pattern:$0x75316420]  ;;  %v6361_v2 = vld.sshfl [vmem:[#allocation1 + $0x8] sm:$0xff pattern:$0x75316420]  ;;  %1084 = vperm.xlu0 %6046, %v5835_v5  }
  0x7f   : > { %9777 = vst [vmem:[#allocation20_spill] sm:$0xff] %v6359_v1 }
  0x80   : > { %9778 = vst [vmem:[#allocation21_spill] sm:$0xff] %v6361_v2  ;;  %1176 = vperm.xlu2 %6045, %v5839_v10   ;;  %1151 = vperm.xlu1 %6044, %v5838_v11  }
  0x81   : > { %1656 = vst [vmem:[#allocation1] ss:$2 sm:$0xff] %v6226_v23  ;;  %v5844_v23 = vld [vmem:[%s9702_s2 + $0x44] sm:$0xf] }
  0x82   : > { %v349_v13 = vpop.permute.xlu1 %348  ;;  %v6387_v15 = vpop.permute.xlu2 %541 }
  0x86   : > { %1132 = vrot.lane.b32.xlu0 %v6183_v14, %s6084_s26 }
  0x88   : > { %v6376_v6 = vld.sshfl [vmem:[#allocation1] sm:$0xff pattern:$0x75316420]  ;;  %v6378_v9 = vld.sshfl [vmem:[#allocation1 + $0x8] sm:$0xff pattern:$0x75316420]  ;;  %1247 = vrot.lane.b32.xlu2 %v6175_v12, %s6085_s19  ;;  %1226 = vperm.xlu1 %6044, %v5841_v18  }
  0x89   : > { %9779 = vst [vmem:[#allocation22_spill] sm:$0xff] %v6376_v6 }
  0x8a   : > { %9780 = vst [vmem:[#allocation23_spill] sm:$0xff] %v6378_v9  ;;  %v375_v19 = vpop.permute.xlu1 %374  ;;  %v6409_v28 = vpop.permute.xlu2 %564 }
  0x8b   : > { %1819 = vst [vmem:[#allocation1] ss:$2 sm:$0xff] %v6245_v29 }
  0x8e   : > { %1201 = vperm.xlu0 %6046, %v5840_v20  }
  0x90   : > { %1293 = vperm.xlu2 %6045, %v5844_v23   ;;  %1268 = vperm.xlu1 %6044, %v5843_v24   ;;  %v328_v29 = vpop.permute.xlu0 %327 }
  0x92   : > { %v448_v40 = vpop.permute.xlu1 %447  ;;  %v6422_v46 = vpop.permute.xlu2 %633 }
  0x96   : > { %1249 = vrot.lane.b32.xlu0 %v6183_v14, %s6085_s19 }
  0x98   : > { %1378 = vperm.xlu2 %6045, %v1375_v38   ;;  %1343 = vperm.xlu1 %6044, %v5846_v43   ;;  %v330_v44 = vpop.permute.xlu0 %329 }
  0x99   : > { %v334_v49 = vsel %vm333_vm1, %v328_v29, %v330_v44  ;;  %v335_v50 = vsel %vm333_vm1, %v330_v44, %v328_v29 }
  0x9a   : > { %v343_v53 = vmul.f32 %v6194_v16, %v335_v50  ;;  %v344_v54 = vmul.f32 %v6196_v17, %v334_v49  ;;  %v1400_v16 = vld [vmem:[%s9703_s3] sm:$0xf]  ;;  %v5849_v17 = vld [vmem:[%s9703_s3 + $0x48] sm:$0xf]  ;;  %v6451_v50 = vpop.permute.xlu2 %681 }
  0x9c   : > { %v351_v59 = vmul.f32 %v349_v13, %v343_v53  ;;  %v352_v62 = vmul.f32 %v349_v13, %v344_v54  ;;  %v377_v63 = vmul.f32 %v375_v19, %v343_v53  ;;  %v378_v3 = vmul.f32 %v375_v19, %v344_v54  ;;  %v517_v19 = vpop.permute.xlu1 %516 }
  0x9d   : > { %v402_v5 = vmul.f32 %v6341_v58, %v343_v53  ;;  %v403_v10 = vmul.f32 %v6341_v58, %v344_v54  ;;  %v427_v11 = vmul.f32 %v6357_v0, %v343_v53  ;;  %v428_v29 = vmul.f32 %v6357_v0, %v344_v54  ;;  %v5848_v53 = vld [vmem:[%s9703_s3 + $0x24] sm:$0xf] }
  0x9e   : > { %v354_v18 = vsel %vm353_vm2, %v351_v59, 0.0  ;;  %1318 = vperm.xlu0 %6046, %v5845_v57   ;;  %v361_v13 = vsel %vm353_vm2, %v352_v62, 0.0  ;;  %v379_v23 = vsel %vm353_vm2, %v377_v63, 0.0  ;;  %v386_v27 = vsel %vm353_vm2, %v378_v3, 0.0  ;;  %v5851_v3 = vld [vmem:[%s9703_s3 + $0x28] sm:$0xf] }
  0x9f   : > { %v355_v20 = vrot.slane %v354_v18, 4  ;;  %v404_v58 = vsel %vm353_vm2, %v402_v5, 0.0  ;;  %v411_v24 = vsel %vm353_vm2, %v403_v10, 0.0  ;;  %v429_v30 = vsel %vm353_vm2, %v427_v11, 0.0  ;;  %v5850_v11 = vld [vmem:[%s9703_s3 + $0x4] sm:$0xf] }
  0xa0   : > { %1403 = vperm.xlu2 %6045, %v1400_v16   ;;  %1453 = vperm.xlu1 %6044, %v5849_v17   ;;  %v405_v34 = vrot.slane %v404_v58, 4  ;;  %v412_v38 = vrot.slane %v411_v24, 4  ;;  %v446_v43 = vpop.permute.xlu0 %445  ;;  %v362_v44 = vrot.slane %v361_v13, 4  ;;  %v380_v49 = vrot.slane %v379_v23, 4 }
  0xa1   : > { %v6456_v57 = vadd.f32 %v355_v20, %v354_v18  ;;  %v387_v59 = vrot.slane %v386_v27, 4  ;;  %v430_v62 = vrot.slane %v429_v30, 4  ;;  %v436_v0 = vsel %vm353_vm2, %v428_v29, 0.0 }
  0xa2   : > { %v450_v54 = vsel %vm449_vm3, %v446_v43, %v448_v40  ;;  %v451_v63 = vsel %vm449_vm3, %v448_v40, %v446_v43  ;;  %v406_v5 = vadd.f32 %v405_v34, %v404_v58  ;;  %v413_v10 = vadd.f32 %v412_v38, %v411_v24 }
  0xa3   : > { %v363_v16 = vadd.f32 %v362_v44, %v361_v13  ;;  %v6470_v17 = vadd.f32 %v380_v49, %v379_v23  ;;  %v6473_v18 = vmul.f32 %v6212_v21, %v451_v63  ;;  %v6476_v40 = vmul.f32 %v6214_v22, %v450_v54 }
  0xa4   : > { %v357_v20 = vrot.slane %v6456_v57, 2  ;;  %v6479_v58 = vadd.f32 %v387_v59, %v386_v27  ;;  %v431_v24 = vadd.f32 %v430_v62, %v429_v30  ;;  %v437_v29 = vrot.slane %v436_v0, 4  ;;  %v563_v38 = vpop.permute.xlu1 %562 }
  0xa5   : > { %v469_v34 = vmul.f32 %v6371_v4, %v6473_v18  ;;  %v470_v13 = vmul.f32 %v6371_v4, %v6476_v40  ;;  %v519_v23 = vmul.f32 %v517_v19, %v6473_v18  ;;  %v520_v21 = vmul.f32 %v517_v19, %v6476_v40  ;;  %v5852_v19 = vld [vmem:[%s9703_s3 + $0x4c] sm:$0xf] }
  0xa6   : > { %1428 = vperm.xlu0 %6046, %v5848_v53   ;;  %v407_v22 = vrot.slane %v406_v5, 2  ;;  %v414_v43 = vrot.slane %v413_v10, 2  ;;  %v544_v27 = vmul.f32 %v6387_v15, %v6473_v18  ;;  %v545_v30 = vmul.f32 %v6387_v15, %v6476_v40 }
  0xa7   : > { %v471_v44 = vsel %vm353_vm2, %v469_v34, 0.0  ;;  %v478_v49 = vsel %vm353_vm2, %v470_v13, 0.0  ;;  %v521_v4 = vsel %vm353_vm2, %v519_v23, 0.0  ;;  %v528_v53 = vsel %vm353_vm2, %v520_v21, 0.0  ;;  %v6505_v13 = vpop.permute.xlu2 %750 }
  0xa8   : > { %1516 = vperm.xlu2 %6045, %v5851_v3   ;;  %1491 = vperm.xlu1 %6044, %v5850_v11   ;;  %v472_v59 = vrot.slane %v471_v44, 4  ;;  %v479_v62 = vrot.slane %v478_v49, 4  ;;  %v567_v54 = vsel %vm566_vm4, %v563_v38, %v6409_v28  ;;  %v568_v15 = vsel %vm566_vm4, %v6409_v28, %v563_v38 }
  0xa9   : > { %v364_v63 = vrot.slane %v363_v16, 2  ;;  %v438_v3 = vadd.f32 %v437_v29, %v436_v0  ;;  %v522_v11 = vrot.slane %v521_v4, 4  ;;  %v546_v34 = vsel %vm353_vm2, %v544_v27, 0.0 }
  0xaa   : > { %v408_v23 = vadd.f32 %v407_v22, %v406_v5  ;;  %v415_v21 = vadd.f32 %v414_v43, %v413_v10  ;;  %v529_v8 = vrot.slane %v528_v53, 4  ;;  %v553_v7 = vsel %vm353_vm2, %v545_v30, 0.0 }
  0xab   : > { %v473_v45 = vadd.f32 %v472_v59, %v471_v44  ;;  %v480_v39 = vadd.f32 %v479_v62, %v478_v49  ;;  %v6509_v9 = vmul.f32 %v6231_v25, %v568_v15  ;;  %v6512_v28 = vmul.f32 %v6233_v26, %v567_v54  ;;  %v492_v26 = vpop.permute.xlu0 %491 }
  0xac   : > { %v382_v0 = vrot.slane %v6470_v17, 2  ;;  %v389_v29 = vrot.slane %v6479_v58, 2  ;;  %v432_v38 = vrot.slane %v431_v24, 2  ;;  %v547_v27 = vrot.slane %v546_v34, 4 }
  0xad   : > { %v439_v5 = vrot.slane %v438_v3, 2  ;;  %v523_v10 = vadd.f32 %v522_v11, %v521_v4  ;;  %v636_v22 = vmul.f32 %v6422_v46, %v6509_v9  ;;  %v637_v43 = vmul.f32 %v6422_v46, %v6512_v28 }
  0xae   : > { %1541 = vperm.xlu0 %6046, %v5852_v19   ;;  %v409_v30 = vrot.slane %v408_v23, 1  ;;  %v416_v25 = vrot.slane %v415_v21, 1  ;;  %v530_v44 = vadd.f32 %v529_v8, %v528_v53  ;;  %v554_v49 = vrot.slane %v553_v7, 4 }
  0xaf   : > { %v474_v19 = vrot.slane %v473_v45, 2  ;;  %v481_v59 = vrot.slane %v480_v39, 2  ;;  %v638_v62 = vsel %vm353_vm2, %v636_v22, 0.0  ;;  %v645_v54 = vsel %vm353_vm2, %v637_v43, 0.0 }
  0xb0   : > { %v6523_v15 = vadd.f32 %v357_v20, %v6456_v57  ;;  %v6525_v4 = vadd.f32 %v364_v63, %v363_v16  ;;  %v548_v11 = vadd.f32 %v547_v27, %v546_v34  ;;  %v639_v6 = vrot.slane %v638_v62, 4  ;;  %v609_v63 = vpop.permute.xlu1 %608 }
  0xb1   : > { %v6527_v33 = vadd.f32 %v432_v38, %v431_v24  ;;  %v6529_v46 = vadd.f32 %v439_v5, %v438_v3  ;;  %v524_v8 = vrot.slane %v523_v10, 2  ;;  %v646_v53 = vrot.slane %v645_v54, 4  ;;  %v826_v24 = vpop.permute.xlu2 %825 }
  0xb2   : > { %v6531_v61 = vadd.f32 %v409_v30, %v408_v23  ;;  %v531_v60 = vrot.slane %v530_v44, 2  ;;  %v494_v22 = vmul.f32 %v492_v26, %v6473_v18  ;;  %v495_v43 = vmul.f32 %v492_v26, %v6476_v40 }
  0xb3   : > { %v6535_v2 = vadd.f32 %v416_v25, %v415_v21  ;;  %v6537_v57 = vadd.f32 %v474_v19, %v473_v45  ;;  %v6539_v16 = vadd.f32 %v481_v59, %v480_v39  ;;  %v555_v20 = vadd.f32 %v554_v49, %v553_v7 }
  0xb4   : > { %v549_v3 = vrot.slane %v548_v11, 2  ;;  %v640_v34 = vadd.f32 %v639_v6, %v638_v62  ;;  %v496_v38 = vsel %vm353_vm2, %v494_v22, 0.0  ;;  %v503_v23 = vsel %vm353_vm2, %v495_v43, 0.0 }
  0xb5   : > { %v525_v27 = vadd.f32 %v524_v8, %v523_v10  ;;  %v647_v5 = vadd.f32 %v646_v53, %v645_v54  ;;  %v497_v18 = vrot.slane %v496_v38, 4  ;;  %v504_v30 = vrot.slane %v503_v23, 4 }
  0xb6   : > { %v532_v40 = vadd.f32 %v531_v60, %v530_v44  ;;  %v383_v21 = vadd.f32 %v382_v0, %v6470_v17  ;;  %v828_v45 = vmul.f32 %v826_v24, %v6175_v12  ;;  %v829_v39 = vmul.f32 %v826_v24, %v6183_v14  ;;  %v584_v60 = vpop.permute.xlu0 %583 }
  0xb7   : > { %v498_v7 = vadd.f32 %v497_v18, %v496_v38  ;;  %v505_v25 = vadd.f32 %v504_v30, %v503_v23  ;;  %v611_v49 = vmul.f32 %v609_v63, %v6509_v9  ;;  %v612_v6 = vmul.f32 %v609_v63, %v6512_v28 }
  0xb8   : > { %v641_v26 = vrot.slane %v640_v34, 2  ;;  %v390_v19 = vadd.f32 %v389_v29, %v6479_v58  ;;  %v830_v10 = vsel %vm353_vm2, %v828_v45, 0.0  ;;  %v837_v59 = vsel %vm353_vm2, %v829_v39, 0.0  ;;  %v680_v56 = vpop.permute.xlu1 %679 }
  0xb9   : > { %v648_v44 = vrot.slane %v647_v5, 2  ;;  %v499_v17 = vrot.slane %v498_v7, 2  ;;  %v506_v0 = vrot.slane %v505_v25, 2  ;;  %v831_v62 = vrot.slane %v830_v10, 4 }
  0xba   : > { %v556_v54 = vrot.slane %v555_v20, 2  ;;  %v838_v8 = vrot.slane %v837_v59, 4  ;;  %v613_v53 = vsel %vm353_vm2, %v611_v49, 0.0  ;;  %v620_v22 = vsel %vm353_vm2, %v612_v6, 0.0 }
  0xbb   : > { %v526_v43 = vrot.slane %v525_v27, 1  ;;  %v533_v24 = vrot.slane %v532_v40, 1  ;;  %v500_v63 = vadd.f32 %v499_v17, %v498_v7  ;;  %v507_v38 = vadd.f32 %v506_v0, %v505_v25 }
  0xbc   : > { %v384_v58 = vrot.slane %v383_v21, 1  ;;  %v832_v29 = vadd.f32 %v831_v62, %v830_v10  ;;  %v614_v23 = vrot.slane %v613_v53, 4  ;;  %v621_v18 = vrot.slane %v620_v22, 4 }
  0xbd   : > { %v6553_v30 = vadd.f32 %v549_v3, %v548_v11  ;;  %v6555_v45 = vadd.f32 %v641_v26, %v640_v34  ;;  %v6557_v39 = vadd.f32 %v648_v44, %v647_v5  ;;  %v391_v1 = vrot.slane %v390_v19, 1 }
  0xbe   : > { %v6559_v55 = vadd.f32 %v556_v54, %v555_v20  ;;  %v839_v49 = vadd.f32 %v838_v8, %v837_v59  ;;  %v615_v6 = vadd.f32 %v614_v23, %v613_v53  ;;  %v622_v52 = vadd.f32 %v621_v18, %v620_v22  ;;  %v659_v62 = vpop.permute.xlu0 %658 }
  0xbf   : > { %v6561_v51 = vadd.f32 %v526_v43, %v525_v27  ;;  %v6563_v7 = vadd.f32 %v533_v24, %v532_v40  ;;  %v501_v25 = vrot.slane %v500_v63, 1  ;;  %v508_v10 = vrot.slane %v507_v38, 1 }
  0xc0   : > { %v385_v17 = vadd.f32 %v384_v58, %v383_v21  ;;  %v833_v11 = vrot.slane %v832_v29, 2  ;;  %v616_v3 = vrot.slane %v615_v6, 2  ;;  %v623_v34 = vrot.slane %v622_v52, 2 }
  0xc1   : > { %v392_v44 = vadd.f32 %v391_v1, %v390_v19  ;;  %v359_v20 = vrot.slane %v6523_v15, 1  ;;  %v840_v59 = vrot.slane %v839_v49, 2  ;;  %v366_v0 = vrot.slane %v6525_v4, 1 }
  0xc2   : > { %v476_v27 = vrot.slane %v6537_v57, 1  ;;  %v483_v40 = vrot.slane %v6539_v16, 1  ;;  %v502_v54 = vadd.f32 %v501_v25, %v500_v63  ;;  %v509_v21 = vadd.f32 %v508_v10, %v507_v38  ;;  %v726_v10 = vpop.permute.xlu1 %725 }
  0xc3   : > { %v586_v8 = vmul.f32 %v584_v60, %v6509_v9  ;;  %v587_v53 = vmul.f32 %v584_v60, %v6512_v28  ;;  %v834_v22 = vadd.f32 %v833_v11, %v832_v29  ;;  %v617_v43 = vadd.f32 %v616_v3, %v615_v6 }
  0xc4   : > { %v624_v24 = vadd.f32 %v623_v34, %v622_v52  ;;  %v684_v58 = vsel %vm683_vm5, %v680_v56, %v6451_v50  ;;  %v685_v63 = vsel %vm683_vm5, %v6451_v50, %v680_v56  ;;  %v6582_v38 = vadd.f32 %v840_v59, %v839_v49 }
  0xc5   : > { %v588_v1 = vsel %vm353_vm2, %v586_v8, 0.0  ;;  %v595_v19 = vsel %vm353_vm2, %v587_v53, 0.0  ;;  %v360_v60 = vadd.f32 %v359_v20, %v6523_v15  ;;  %v477_v23 = vadd.f32 %v476_v27, %v6537_v57 }
  0xc6   : > { %v589_v29 = vrot.slane %v588_v1, 4  ;;  %v596_v52 = vrot.slane %v595_v19, 4  ;;  %v484_v18 = vadd.f32 %v483_v40, %v6539_v16  ;;  %v6588_v6 = vmul.f32 %v6250_v31, %v685_v63 }
  0xc7   : > { %v6591_v25 = vmul.f32 %v6252_v32, %v684_v58  ;;  %v510_v11 = vadd.f32 %v502_v54, %v385_v17  ;;  %v618_v3 = vrot.slane %v617_v43, 1  ;;  %v625_v56 = vrot.slane %v624_v24, 1 }
  0xc8   : > { %v367_v50 = vadd.f32 %v366_v0, %v6525_v4  ;;  %v511_v49 = vadd.f32 %v509_v21, %v392_v44  ;;  %v835_v15 = vrot.slane %v834_v22, 1  ;;  %v590_v34 = vadd.f32 %v589_v29, %v588_v1  ;;  %v701_v21 = vpop.permute.xlu0 %700 }
  0xc9   : > { %v597_v20 = vadd.f32 %v596_v52, %v595_v19  ;;  %v753_v16 = vmul.f32 %v6505_v13, %v6588_v6  ;;  %v551_v31 = vrot.slane %v6553_v30, 1  ;;  %v661_v32 = vmul.f32 %v659_v62, %v6509_v9 }
  0xca   : > { %v6599_v59 = vadd.f32 %v477_v23, %v360_v60  ;;  %v6601_v17 = vadd.f32 %v484_v18, %v367_v50  ;;  %v754_v4 = vmul.f32 %v6505_v13, %v6591_v25  ;;  %v662_v44 = vmul.f32 %v659_v62, %v6512_v28 }
  0xcb   : > { %v619_v0 = vadd.f32 %v618_v3, %v617_v43  ;;  %v626_v27 = vadd.f32 %v625_v56, %v624_v24  ;;  %v434_v40 = vrot.slane %v6527_v33, 1  ;;  %v441_v54 = vrot.slane %v6529_v46, 1  ;;  %v801_v56 = vpop.permute.xlu1 %800 }
  0xcc   : > { %v591_v8 = vrot.slane %v590_v34, 2  ;;  %v598_v53 = vrot.slane %v597_v20, 2  ;;  %v663_v9 = vsel %vm353_vm2, %v661_v32, 0.0  ;;  %v670_v1 = vsel %vm353_vm2, %v662_v44, 0.0 }
  0xcd   : > { %v6610_v19 = vadd.f32 %v835_v15, %v834_v22  ;;  %v755_v58 = vsel %vm353_vm2, %v753_v16, 0.0  ;;  %v552_v13 = vadd.f32 %v551_v31, %v6553_v30  ;;  %v558_v28 = vrot.slane %v6559_v55, 1 }
  0xce   : > { %v762_v62 = vsel %vm353_vm2, %v754_v4, 0.0  ;;  %v664_v43 = vrot.slane %v663_v9, 4  ;;  %v671_v24 = vrot.slane %v670_v1, 4  ;;  %v728_v63 = vmul.f32 %v726_v10, %v6588_v6 }
  0xcf   : > { %v6617_v60 = vadd.f32 %v619_v0, %v510_v11  ;;  %v6619_v29 = vadd.f32 %v626_v27, %v511_v49  ;;  %v435_v52 = vadd.f32 %v434_v40, %v6527_v33  ;;  %v6623_v22 = vadd.f32 %v441_v54, %v6529_v46 }
  0xd0   : > { %v592_v23 = vadd.f32 %v591_v8, %v590_v34  ;;  %v599_v18 = vadd.f32 %v598_v53, %v597_v20  ;;  %v729_v30 = vmul.f32 %v726_v10, %v6591_v25  ;;  %v730_v3 = vsel %vm353_vm2, %v728_v63, 0.0  ;;  %v776_v53 = vpop.permute.xlu0 %775 }
  0xd1   : > { %v756_v50 = vrot.slane %v755_v58, 4  ;;  %v763_v15 = vrot.slane %v762_v62, 4  ;;  %v6628_v16 = vadd.f32 %v558_v28, %v6559_v55  ;;  %v6630_v11 = vadd.f32 %v552_v13, %v435_v52 }
  0xd2   : > { %v665_v49 = vadd.f32 %v664_v43, %v663_v9  ;;  %v672_v31 = vadd.f32 %v671_v24, %v670_v1  ;;  %v731_v33 = vrot.slane %v730_v3, 4  ;;  %v737_v46 = vsel %vm353_vm2, %v729_v30, 0.0 }
  0xd3   : > { %v738_v32 = vrot.slane %v737_v46, 4  ;;  %v703_v34 = vmul.f32 %v701_v21, %v6588_v6  ;;  %v704_v10 = vmul.f32 %v701_v21, %v6591_v25  ;;  %v803_v20 = vmul.f32 %v801_v56, %v6175_v12  ;;  %v876_v57 = vpop.permute.xlu1 %875 }
  0xd4   : > { %v593_v4 = vrot.slane %v592_v23, 1  ;;  %v600_v44 = vrot.slane %v599_v18, 1  ;;  %v732_v0 = vadd.f32 %v731_v33, %v730_v3  ;;  %v804_v55 = vmul.f32 %v801_v56, %v6183_v14 }
  0xd5   : > { %v739_v27 = vadd.f32 %v738_v32, %v737_v46  ;;  %v705_v40 = vsel %vm353_vm2, %v703_v34, 0.0  ;;  %v712_v54 = vsel %vm353_vm2, %v704_v10, 0.0  ;;  %v805_v8 = vsel %vm353_vm2, %v803_v20, 0.0 }
  0xd6   : > { %v666_v9 = vrot.slane %v665_v49, 2  ;;  %v673_v1 = vrot.slane %v672_v31, 2  ;;  %v733_v13 = vrot.slane %v732_v0, 2  ;;  %v706_v28 = vrot.slane %v705_v40, 4 }
  0xd7   : > { %v740_v21 = vrot.slane %v739_v27, 2  ;;  %v713_v43 = vrot.slane %v712_v54, 4  ;;  %v806_v24 = vrot.slane %v805_v8, 4  ;;  %v812_v63 = vsel %vm353_vm2, %v804_v55, 0.0 }
  0xd8   : > { %v6641_v52 = vadd.f32 %v756_v50, %v755_v58  ;;  %v6643_v30 = vadd.f32 %v763_v15, %v762_v62  ;;  %v734_v3 = vadd.f32 %v733_v13, %v732_v0  ;;  %v707_v56 = vadd.f32 %v706_v28, %v705_v40 }
  0xd9   : > { %v741_v33 = vadd.f32 %v740_v21, %v739_v27  ;;  %v714_v46 = vadd.f32 %v713_v43, %v712_v54  ;;  %v807_v32 = vadd.f32 %v806_v24, %v805_v8  ;;  %v813_v34 = vrot.slane %v812_v63, 4  ;;  %v851_v8 = vpop.permute.xlu0 %850 }
  0xda   : > { %v594_v10 = vadd.f32 %v593_v4, %v592_v23  ;;  %v601_v20 = vadd.f32 %v600_v44, %v599_v18  ;;  %v667_v26 = vadd.f32 %v666_v9, %v665_v49  ;;  %v708_v5 = vrot.slane %v707_v56, 2 }
  0xdb   : > { %v674_v48 = vadd.f32 %v673_v1, %v672_v31  ;;  %v715_v47 = vrot.slane %v714_v46, 2  ;;  %v808_v42 = vrot.slane %v807_v32, 2  ;;  %v814_v41 = vadd.f32 %v813_v34, %v812_v63 }
  0xdc   : > { %v735_v55 = vrot.slane %v734_v3, 1  ;;  %v709_v58 = vadd.f32 %v708_v5, %v707_v56  ;;  %v778_v62 = vmul.f32 %v776_v53, %v6588_v6  ;;  %v779_v50 = vmul.f32 %v776_v53, %v6591_v25 }
  0xdd   : > { %v742_v15 = vrot.slane %v741_v33, 1  ;;  %v716_v0 = vadd.f32 %v715_v47, %v714_v46  ;;  %v809_v27 = vadd.f32 %v808_v42, %v807_v32  ;;  %v815_v40 = vrot.slane %v814_v41, 2 }
  0xde   : > { %v758_v23 = vrot.slane %v6641_v52, 2  ;;  %v710_v18 = vrot.slane %v709_v58, 1  ;;  %v780_v49 = vsel %vm353_vm2, %v778_v62, 0.0  ;;  %v787_v31 = vsel %vm353_vm2, %v779_v50, 0.0 }
  0xdf   : > { %v765_v4 = vrot.slane %v6643_v30, 2  ;;  %v668_v44 = vrot.slane %v667_v26, 1  ;;  %v717_v54 = vrot.slane %v716_v0, 1  ;;  %v816_v5 = vadd.f32 %v815_v40, %v814_v41 }
  0xe0   : > { %v675_v6 = vrot.slane %v674_v48, 1  ;;  %v736_v9 = vadd.f32 %v735_v55, %v734_v3  ;;  %v781_v25 = vrot.slane %v780_v49, 4  ;;  %v788_v53 = vrot.slane %v787_v31, 4  ;;  %v918_v55 = vpop.permute.xlu1 %917 }
  0xe1   : > { %v743_v47 = vadd.f32 %v742_v15, %v741_v33  ;;  %v711_v42 = vadd.f32 %v710_v18, %v709_v58  ;;  %v718_v1 = vadd.f32 %v717_v54, %v716_v0  ;;  %v810_v13 = vrot.slane %v809_v27, 1 }
  0xe2   : > { %v817_v28 = vrot.slane %v816_v5, 1  ;;  %v782_v21 = vadd.f32 %v781_v25, %v780_v49  ;;  %v789_v43 = vadd.f32 %v788_v53, %v787_v31  ;;  %v878_v24 = vmul.f32 %v876_v57, %v6175_v12 }
  0xe3   : > { %v602_v63 = vadd.f32 %v594_v10, %v6599_v59  ;;  %v603_v56 = vadd.f32 %v601_v20, %v6601_v17  ;;  %v669_v46 = vadd.f32 %v668_v44, %v667_v26  ;;  %v879_v41 = vmul.f32 %v876_v57, %v6183_v14  ;;  %v897_v59 = vpop.permute.xlu2 %896 }
  0xe4   : > { %v676_v32 = vadd.f32 %v675_v6, %v674_v48  ;;  %v744_v3 = vadd.f32 %v736_v9, %v6617_v60  ;;  %v783_v34 = vrot.slane %v782_v21, 2  ;;  %v880_v33 = vsel %vm353_vm2, %v878_v24, 0.0 }
  0xe5   : > { %v561_v58 = vadd.f32 %v6628_v16, %v6623_v22  ;;  %v745_v62 = vadd.f32 %v743_v47, %v6619_v29  ;;  %v719_v50 = vadd.f32 %v711_v42, %v602_v63  ;;  %v811_v15 = vadd.f32 %v810_v13, %v809_v27 }
  0xe6   : > { %v720_v10 = vadd.f32 %v718_v1, %v603_v56  ;;  %v818_v17 = vadd.f32 %v817_v28, %v816_v5  ;;  %v790_v26 = vrot.slane %v789_v43, 2  ;;  %v887_v57 = vsel %vm353_vm2, %v879_v41, 0.0 }
  0xe7   : > { %v9782_v48 = vrot.slane %v6582_v38, 1  ;;  %v759_v20 = vadd.f32 %v758_v23, %v6641_v52  ;;  %v6666_v0 = vadd.f32 %v765_v4, %v6643_v30  ;;  %v881_v22 = vrot.slane %v880_v33, 4  ;;  %v899_v30 = vpop.permute.xlu0 %898 }
  0xe8   : > { %v6669_v29 = vadd.f32 %v669_v46, %v6630_v11  ;;  %v6671_v16 = vadd.f32 %v676_v32, %v561_v58  ;;  %v6674_v27 = vadd.f32 %v6610_v19, %v744_v3  ;;  %v784_v40 = vadd.f32 %v783_v34, %v782_v21 }
  0xe9   : > { %v843_v60 = vadd.f32 %v9782_v48, %v6582_v38  ;;  %v6678_v49 = vadd.f32 %v811_v15, %v719_v50  ;;  %v888_v38 = vrot.slane %v887_v57, 4  ;;  %v535_v52 = vadd.f32 %v6561_v51, %v6531_v61 }
  0xea   : > { %v6682_v23 = vadd.f32 %v818_v17, %v720_v10  ;;  %v791_v31 = vadd.f32 %v790_v26, %v789_v43  ;;  %v536_v11 = vadd.f32 %v6563_v7, %v6535_v2  ;;  %v853_v4 = vmul.f32 %v851_v8, %v6175_v12 }
  0xeb   : > { %v6676_v18 = vadd.f32 %v843_v60, %v745_v62  ;;  %v882_v19 = vadd.f32 %v881_v22, %v880_v33  ;;  %v9783_v44 = vrot.slane %v6555_v45, 1  ;;  %v9784_v5 = vrot.slane %v6557_v39, 1  ;;  %v943_v24 = vpop.permute.xlu2 %942 }
  0xec   : > { %v854_v51 = vmul.f32 %v851_v8, %v6183_v14  ;;  %v785_v61 = vrot.slane %v784_v40, 1  ;;  %v760_v9 = vrot.slane %v759_v20, 1  ;;  %v767_v25 = vrot.slane %v6666_v0, 1  ;;  %v993_v8 = vpop.permute.xlu1 %992 }
  0xed   : > { %v644_v54 = vadd.f32 %v9783_v44, %v6555_v45  ;;  %v651_v6 = vadd.f32 %v9784_v5, %v6557_v39  ;;  %v855_v53 = vsel %vm353_vm2, %v853_v4, 0.0  ;;  %v889_v2 = vadd.f32 %v888_v38, %v887_v57 }
  0xee   : > { %v856_v7 = vrot.slane %v855_v53, 4  ;;  %v862_v47 = vsel %vm353_vm2, %v854_v51, 0.0  ;;  %v792_v42 = vrot.slane %v791_v31, 1  ;;  %v901_v1 = vsel %vm900_vm6, %v897_v59, %v899_v30 }
  0xef   : > { %v863_v45 = vrot.slane %v862_v47, 4  ;;  %v902_v39 = vsel %vm900_vm6, %v899_v30, %v897_v59  ;;  %v883_v13 = vrot.slane %v882_v19, 2  ;;  %v911_v21 = vmul.f32 %v6267_v35, %v901_v1 }
  0xf0   : > { %v857_v28 = vadd.f32 %v856_v7, %v855_v53  ;;  %v912_v43 = vmul.f32 %v6269_v36, %v902_v39  ;;  %v652_v63 = vadd.f32 %v644_v54, %v535_v52  ;;  %v653_v56 = vadd.f32 %v651_v6, %v536_v11  ;;  %v968_v36 = vpop.permute.xlu0 %967 }
  0xf1   : > { %v761_v46 = vadd.f32 %v760_v9, %v759_v20  ;;  %v864_v41 = vadd.f32 %v863_v45, %v862_v47  ;;  %v786_v32 = vadd.f32 %v785_v61, %v784_v40  ;;  %v890_v3 = vrot.slane %v889_v2, 2 }
  0xf2   : > { %v920_v34 = vmul.f32 %v918_v55, %v911_v21  ;;  %v921_v33 = vmul.f32 %v918_v55, %v912_v43  ;;  %v793_v58 = vadd.f32 %v792_v42, %v791_v31  ;;  %v858_v62 = vrot.slane %v857_v28, 2 }
  0xf3   : > { %v945_v50 = vmul.f32 %v943_v24, %v911_v21  ;;  %v946_v15 = vmul.f32 %v943_v24, %v912_v43  ;;  %v884_v59 = vadd.f32 %v883_v13, %v882_v19  ;;  %v995_v17 = vmul.f32 %v993_v8, %v911_v21  ;;  %v1014_v47 = vpop.permute.xlu2 %1013 }
  0xf4   : > { %v922_v10 = vsel %vm353_vm2, %v920_v34, 0.0  ;;  %v929_v35 = vsel %vm353_vm2, %v921_v33, 0.0  ;;  %v865_v26 = vrot.slane %v864_v41, 2  ;;  %v891_v20 = vadd.f32 %v890_v3, %v889_v2  ;;  %v1035_v61 = vpop.permute.xlu1 %1034 }
  0xf5   : > { %v923_v57 = vrot.slane %v922_v10, 4  ;;  %v930_v48 = vrot.slane %v929_v35, 4  ;;  %v947_v60 = vsel %vm353_vm2, %v945_v50, 0.0  ;;  %v954_v55 = vsel %vm353_vm2, %v946_v15, 0.0 }
  0xf6   : > { %v948_v22 = vrot.slane %v947_v60, 4  ;;  %v996_v40 = vmul.f32 %v993_v8, %v912_v43  ;;  %v859_v38 = vadd.f32 %v858_v62, %v857_v28  ;;  %v955_v31 = vrot.slane %v954_v55, 4 }
  0xf7   : > { %v924_v52 = vadd.f32 %v923_v57, %v922_v10  ;;  %v931_v30 = vadd.f32 %v930_v48, %v929_v35  ;;  %v885_v11 = vrot.slane %v884_v59, 1  ;;  %v997_v19 = vsel %vm353_vm2, %v995_v17, 0.0 }
  0xf8   : > { %v949_v4 = vadd.f32 %v948_v22, %v947_v60  ;;  %v1004_v44 = vsel %vm353_vm2, %v996_v40, 0.0  ;;  %v768_v54 = vadd.f32 %v767_v25, %v6666_v0  ;;  %v866_v5 = vadd.f32 %v865_v26, %v864_v41  ;;  %v1016_v15 = vpop.permute.xlu0 %1015 }
  0xf9   : > { %v925_v6 = vrot.slane %v924_v52, 2  ;;  %v932_v51 = vrot.slane %v931_v30, 2  ;;  %v892_v9 = vrot.slane %v891_v20, 1  ;;  %v956_v2 = vadd.f32 %v955_v31, %v954_v55 }
  0xfa   : > { %v950_v53 = vrot.slane %v949_v4, 2  ;;  %v998_v7 = vrot.slane %v997_v19, 4  ;;  %v794_v42 = vadd.f32 %v786_v32, %v6669_v29  ;;  %v769_v45 = vadd.f32 %v761_v46, %v652_v63 }
  0xfb   : > { %v860_v1 = vrot.slane %v859_v38, 1  ;;  %v1005_v39 = vrot.slane %v1004_v44, 4  ;;  %v795_v8 = vadd.f32 %v793_v58, %v6671_v16  ;;  %v886_v13 = vadd.f32 %v885_v11, %v884_v59  ;;  %v1060_v31 = vpop.permute.xlu2 %1059 }
  0xfc   : > { %v999_v28 = vadd.f32 %v998_v7, %v997_v19  ;;  %v970_v24 = vmul.f32 %v968_v36, %v911_v21  ;;  %v867_v0 = vrot.slane %v866_v5, 1  ;;  %v926_v25 = vadd.f32 %v925_v6, %v924_v52  ;;  %v1110_v22 = vpop.permute.xlu1 %1109  ;;  %v9785_v52 = vld [vmem:[#allocation9_spill] sm:$0xff] }
  0xfd   : > { %v933_v41 = vadd.f32 %v932_v51, %v931_v30  ;;  %v971_v3 = vmul.f32 %v968_v36, %v912_v43  ;;  %v893_v34 = vadd.f32 %v892_v9, %v891_v20  ;;  %v951_v33 = vadd.f32 %v950_v53, %v949_v4 }
  0xfe   : > { %v957_v62 = vrot.slane %v956_v2, 2  ;;  %v972_v50 = vsel %vm353_vm2, %v970_v24, 0.0  ;;  %v770_v10 = vadd.f32 %v768_v54, %v653_v56  ;;  %v861_v29 = vadd.f32 %v860_v1, %v859_v38 }
  0xff   : > { %v1006_v63 = vadd.f32 %v1005_v39, %v1004_v44  ;;  %v973_v46 = vrot.slane %v972_v50, 4  ;;  %v6714_v32 = vadd.f32 %v886_v13, %v794_v42  ;;  %v1000_v16 = vrot.slane %v999_v28, 2  ;;  %v9786_v44 = vld [vmem:[#allocation10_spill] sm:$0xff] }
 0x100   : > { %v979_v58 = vsel %vm353_vm2, %v971_v3, 0.0  ;;  %v868_v21 = vadd.f32 %v867_v0, %v866_v5  ;;  %v927_v59 = vrot.slane %v926_v25, 1  ;;  %v934_v43 = vrot.slane %v933_v41, 1 }
 0x101   : > { %v974_v35 = vadd.f32 %v973_v46, %v972_v50  ;;  %v6718_v17 = vadd.f32 %v893_v34, %v795_v8  ;;  %v952_v36 = vrot.slane %v951_v33, 1  ;;  %v958_v26 = vadd.f32 %v957_v62, %v956_v2  ;;  %v1085_v8 = vpop.permute.xlu0 %1084 }
 0x102   : > { %v980_v57 = vrot.slane %v979_v58, 4  ;;  %v6720_v56 = vadd.f32 %v861_v29, %v769_v45  ;;  %v1007_v48 = vrot.slane %v1006_v63, 2  ;;  %v1018_v60 = vsel %vm1017_vm7, %v1014_v47, %v1016_v15 }
 0x103   : > { %v1019_v20 = vsel %vm1017_vm7, %v1016_v15, %v1014_v47  ;;  %v1001_v55 = vadd.f32 %v1000_v16, %v999_v28  ;;  %v975_v40 = vrot.slane %v974_v35, 2  ;;  %v1028_v30 = vmul.f32 %v9785_v52, %v1018_v60 }
 0x104   : > { %v981_v38 = vadd.f32 %v980_v57, %v979_v58  ;;  %v6727_v11 = vadd.f32 %v868_v21, %v770_v10  ;;  %v928_v4 = vadd.f32 %v927_v59, %v926_v25  ;;  %v935_v19 = vadd.f32 %v934_v43, %v933_v41  ;;  %v1152_v59 = vpop.permute.xlu1 %1151 }
 0x105   : > { %v1029_v54 = vmul.f32 %v9786_v44, %v1019_v20  ;;  %v953_v5 = vadd.f32 %v952_v36, %v951_v33  ;;  %v959_v6 = vrot.slane %v958_v26, 1  ;;  %v1037_v9 = vmul.f32 %v1035_v61, %v1028_v30 }
 0x106   : > { %v982_v51 = vrot.slane %v981_v38, 2  ;;  %v1008_v53 = vadd.f32 %v1007_v48, %v1006_v63  ;;  %v1062_v7 = vmul.f32 %v1060_v31, %v1028_v30  ;;  %v1002_v42 = vrot.slane %v1001_v55, 1  ;;  %v1131_v48 = vpop.permute.xlu2 %1130 }
 0x107   : > { %v1038_v2 = vmul.f32 %v1035_v61, %v1029_v54  ;;  %v1063_v47 = vmul.f32 %v1060_v31, %v1029_v54  ;;  %v976_v45 = vadd.f32 %v975_v40, %v974_v35  ;;  %v1039_v1 = vsel %vm353_vm2, %v1037_v9, 0.0 }
 0x108   : > { %v1112_v39 = vmul.f32 %v1110_v22, %v1028_v30  ;;  %v1040_v13 = vrot.slane %v1039_v1, 4  ;;  %v1064_v24 = vsel %vm353_vm2, %v1062_v7, 0.0  ;;  %v1113_v0 = vmul.f32 %v1110_v22, %v1029_v54 }
 0x109   : > { %v1046_v28 = vsel %vm353_vm2, %v1038_v2, 0.0  ;;  %v983_v25 = vadd.f32 %v982_v51, %v981_v38  ;;  %v1065_v3 = vrot.slane %v1064_v24, 4  ;;  %v1071_v34 = vsel %vm353_vm2, %v1063_v47, 0.0 }
 0x10a   : > { %v1047_v41 = vrot.slane %v1046_v28, 4  ;;  %v1009_v61 = vrot.slane %v1008_v53, 1  ;;  %v1041_v33 = vadd.f32 %v1040_v13, %v1039_v1  ;;  %v1072_v62 = vrot.slane %v1071_v34, 4  ;;  %v1133_v13 = vpop.permute.xlu0 %1132 }
 0x10b   : > { %v1114_v50 = vsel %vm353_vm2, %v1112_v39, 0.0  ;;  %v977_v15 = vrot.slane %v976_v45, 1  ;;  %v1066_v29 = vadd.f32 %v1065_v3, %v1064_v24  ;;  %v1121_v58 = vsel %vm353_vm2, %v1113_v0, 0.0 }
 0x10c   : > { %v1048_v10 = vadd.f32 %v1047_v41, %v1046_v28  ;;  %v1115_v63 = vrot.slane %v1114_v50, 4  ;;  %v1042_v46 = vrot.slane %v1041_v33, 2  ;;  %v1073_v16 = vadd.f32 %v1072_v62, %v1071_v34  ;;  %v1227_v41 = vpop.permute.xlu1 %1226  ;;  %v9787_v34 = vld [vmem:[#allocation12_spill] sm:$0xff] }
 0x10d   : > { %v1087_v21 = vmul.f32 %v1085_v8, %v1028_v30  ;;  %v984_v43 = vrot.slane %v983_v25, 1  ;;  %v1067_v36 = vrot.slane %v1066_v29, 2  ;;  %v1122_v22 = vrot.slane %v1121_v58, 4 }
 0x10e   : > { %v1049_v35 = vrot.slane %v1048_v10, 2  ;;  %v1116_v57 = vadd.f32 %v1115_v63, %v1114_v50  ;;  %v1043_v60 = vadd.f32 %v1042_v46, %v1041_v33  ;;  %v1074_v20 = vrot.slane %v1073_v16, 2  ;;  %v9788_v50 = vld [vmem:[#allocation13_spill] sm:$0xff] }
 0x10f   : > { %v1088_v40 = vmul.f32 %v1085_v8, %v1029_v54  ;;  %v936_v38 = vadd.f32 %v928_v4, %v6678_v49  ;;  %v960_v52 = vadd.f32 %v959_v6, %v958_v26  ;;  %v1089_v44 = vsel %vm353_vm2, %v1087_v21, 0.0 }
 0x110   : > { %v1050_v31 = vadd.f32 %v1049_v35, %v1048_v10  ;;  %v1003_v51 = vadd.f32 %v1002_v42, %v1001_v55  ;;  %v1068_v9 = vadd.f32 %v1067_v36, %v1066_v29  ;;  %v1117_v2 = vrot.slane %v1116_v57, 2 }
 0x111   : > { %v1123_v30 = vadd.f32 %v1122_v22, %v1121_v58  ;;  %v1010_v7 = vadd.f32 %v1009_v61, %v1008_v53  ;;  %v978_v47 = vadd.f32 %v977_v15, %v976_v45  ;;  %v1090_v1 = vrot.slane %v1089_v44, 4 }
 0x112   : > { %v1096_v39 = vsel %vm353_vm2, %v1088_v40, 0.0  ;;  %v6740_v28 = vadd.f32 %v935_v19, %v6682_v23  ;;  %v985_v54 = vadd.f32 %v984_v43, %v983_v25  ;;  %v1044_v8 = vrot.slane %v1043_v60, 1 }
 0x113   : > { %v1075_v49 = vadd.f32 %v1074_v20, %v1073_v16  ;;  %v6743_v26 = vadd.f32 %v953_v5, %v6674_v27  ;;  %v1051_v4 = vrot.slane %v1050_v31, 1  ;;  %v1097_v55 = vrot.slane %v1096_v39, 4 }
 0x114   : > { %v6747_v6 = vadd.f32 %v960_v52, %v6676_v18  ;;  %v1069_v53 = vrot.slane %v1068_v9, 1  ;;  %v6749_v42 = vadd.f32 %v1117_v2, %v1116_v57  ;;  %v1124_v45 = vrot.slane %v1123_v30, 2 }
 0x115   : > { %v6752_v23 = vadd.f32 %v1003_v51, %v6714_v32  ;;  %v6755_v19 = vadd.f32 %v1010_v7, %v6718_v17  ;;  %v6758_v27 = vadd.f32 %v978_v47, %v6720_v56  ;;  %v1091_v5 = vadd.f32 %v1090_v1, %v1089_v44  ;;  %v1177_v56 = vpop.permute.xlu2 %1176 }
 0x116   : > { %v6761_v24 = vadd.f32 %v985_v54, %v6727_v11  ;;  %v1045_v0 = vadd.f32 %v1044_v8, %v1043_v60  ;;  %v1076_v18 = vrot.slane %v1075_v49, 1  ;;  %v1135_v25 = vsel %vm1134_vm8, %v1131_v48, %v1133_v13  ;;  %v1202_v60 = vpop.permute.xlu0 %1201 }
 0x117   : > { %v6765_v3 = vadd.f32 %v1051_v4, %v1050_v31  ;;  %v1098_v32 = vadd.f32 %v1097_v55, %v1096_v39  ;;  %v1136_v17 = vsel %vm1134_vm8, %v1133_v13, %v1131_v48  ;;  %v1145_v61 = vmul.f32 %v9787_v34, %v1135_v25 }
 0x118   : > { %v1070_v33 = vadd.f32 %v1069_v53, %v1068_v9  ;;  %v1119_v62 = vrot.slane %v6749_v42, 1  ;;  %v1125_v11 = vadd.f32 %v1124_v45, %v1123_v30  ;;  %v1146_v15 = vmul.f32 %v9788_v50, %v1136_v17 }
 0x119   : > { %v1092_v10 = vrot.slane %v1091_v5, 2  ;;  %v1154_v29 = vmul.f32 %v1152_v59, %v1145_v61  ;;  %v1179_v63 = vmul.f32 %v1177_v56, %v1145_v61  ;;  %v1229_v46 = vmul.f32 %v1227_v41, %v1145_v61 }
 0x11a   : > { %v6772_v16 = vadd.f32 %v1045_v0, %v936_v38  ;;  %v1077_v58 = vadd.f32 %v1076_v18, %v1075_v49  ;;  %v1155_v21 = vmul.f32 %v1152_v59, %v1146_v15  ;;  %v1180_v43 = vmul.f32 %v1177_v56, %v1146_v15 }
 0x11b   : > { %v1099_v35 = vrot.slane %v1098_v32, 2  ;;  %v1156_v36 = vsel %vm353_vm2, %v1154_v29, 0.0  ;;  %v1181_v57 = vsel %vm353_vm2, %v1179_v63, 0.0  ;;  %v1230_v48 = vmul.f32 %v1227_v41, %v1146_v15 }
 0x11c   : > { %v1126_v20 = vrot.slane %v1125_v11, 1  ;;  %v1157_v22 = vrot.slane %v1156_v36, 4  ;;  %v1163_v40 = vsel %vm353_vm2, %v1155_v21, 0.0  ;;  %v1182_v52 = vrot.slane %v1181_v57, 4 }
 0x11d   : > { %v1093_v31 = vadd.f32 %v1092_v10, %v1091_v5  ;;  %v1164_v44 = vrot.slane %v1163_v40, 4  ;;  %v1188_v38 = vsel %vm353_vm2, %v1180_v43, 0.0  ;;  %v1231_v51 = vsel %vm353_vm2, %v1229_v46, 0.0  ;;  %v1269_v5 = vpop.permute.xlu1 %1268  ;;  %v1248_v17 = vpop.permute.xlu2 %1247 }
 0x11e   : > { %v1158_v59 = vadd.f32 %v1157_v22, %v1156_v36  ;;  %v1183_v9 = vadd.f32 %v1182_v52, %v1181_v57  ;;  %v1189_v2 = vrot.slane %v1188_v38, 4  ;;  %v1232_v30 = vrot.slane %v1231_v51, 4 }
 0x11f   : > { %v1100_v7 = vadd.f32 %v1099_v35, %v1098_v32  ;;  %v1165_v47 = vadd.f32 %v1164_v44, %v1163_v40  ;;  %v1238_v1 = vsel %vm353_vm2, %v1230_v48, 0.0  ;;  %v1204_v39 = vmul.f32 %v1202_v60, %v1145_v61  ;;  %v1250_v35 = vpop.permute.xlu0 %1249 }
 0x120   : > { %v1159_v13 = vrot.slane %v1158_v59, 2  ;;  %v1184_v54 = vrot.slane %v1183_v9, 2  ;;  %v1190_v8 = vadd.f32 %v1189_v2, %v1188_v38  ;;  %v1233_v49 = vadd.f32 %v1232_v30, %v1231_v51 }
 0x121   : > { %v1166_v4 = vrot.slane %v1165_v47, 2  ;;  %v1239_v55 = vrot.slane %v1238_v1, 4  ;;  %v1205_v53 = vmul.f32 %v1202_v60, %v1146_v15  ;;  %v1206_v45 = vsel %vm353_vm2, %v1204_v39, 0.0 }
 0x122   : > { %v1094_v0 = vrot.slane %v1093_v31, 1  ;;  %v1160_v18 = vadd.f32 %v1159_v13, %v1158_v59  ;;  %v1185_v25 = vadd.f32 %v1184_v54, %v1183_v9  ;;  %v1191_v41 = vrot.slane %v1190_v8, 2 }
 0x123   : > { %v1101_v32 = vrot.slane %v1100_v7, 1  ;;  %v1234_v34 = vrot.slane %v1233_v49, 2  ;;  %v1207_v56 = vrot.slane %v1206_v45, 4  ;;  %v1213_v61 = vsel %vm353_vm2, %v1205_v53, 0.0 }
 0x124   : > { %v1120_v50 = vadd.f32 %v1119_v62, %v6749_v42  ;;  %v1161_v10 = vrot.slane %v1160_v18, 1  ;;  %v1167_v29 = vadd.f32 %v1166_v4, %v1165_v47  ;;  %v1240_v63 = vadd.f32 %v1239_v55, %v1238_v1 }
 0x125   : > { %v1186_v46 = vrot.slane %v1185_v25, 1  ;;  %v1192_v15 = vadd.f32 %v1191_v41, %v1190_v8  ;;  %v1208_v21 = vadd.f32 %v1207_v56, %v1206_v45  ;;  %v1214_v43 = vrot.slane %v1213_v61, 4  ;;  %v1344_v2 = vpop.permute.xlu1 %1343  ;;  %v1294_v1 = vpop.permute.xlu2 %1293 }
 0x126   : > { %v6785_v36 = vadd.f32 %v6765_v3, %v6740_v28  ;;  %v1078_v57 = vadd.f32 %v1070_v33, %v6743_v26  ;;  %v1127_v48 = vadd.f32 %v1126_v20, %v1125_v11  ;;  %v1095_v60 = vadd.f32 %v1094_v0, %v1093_v31  ;;  %v9789_v31 = vld [vmem:[#allocation14_spill] sm:$0xff] }
 0x127   : > { %v1102_v22 = vadd.f32 %v1101_v32, %v1100_v7  ;;  %v1235_v40 = vadd.f32 %v1234_v34, %v1233_v49  ;;  %v1209_v52 = vrot.slane %v1208_v21, 2  ;;  %v6790_v42 = vadd.f32 %v1077_v58, %v6747_v6  ;;  %v9790_v7 = vld [vmem:[#allocation15_spill] sm:$0xff] }
 0x128   : > { %v1162_v62 = vadd.f32 %v1161_v10, %v1160_v18  ;;  %v1168_v44 = vrot.slane %v1167_v29, 1  ;;  %v1241_v38 = vrot.slane %v1240_v63, 2  ;;  %v6793_v51 = vadd.f32 %v1120_v50, %v6752_v23  ;;  %v1319_v18 = vpop.permute.xlu0 %1318 }
 0x129   : > { %v1187_v28 = vadd.f32 %v1186_v46, %v1185_v25  ;;  %v1193_v3 = vrot.slane %v1192_v15, 1  ;;  %v1215_v59 = vadd.f32 %v1214_v43, %v1213_v61  ;;  %v6796_v26 = vadd.f32 %v1127_v48, %v6755_v19 }
 0x12a   : > { %v6799_v33 = vadd.f32 %v1095_v60, %v6758_v27  ;;  %v1252_v11 = vsel %vm1251_vm9, %v1248_v17, %v1250_v35  ;;  %v1253_v6 = vsel %vm1251_vm9, %v1250_v35, %v1248_v17  ;;  %v6806_v58 = vadd.f32 %v1102_v22, %v6761_v24 }
 0x12b   : > { %v1236_v23 = vrot.slane %v1235_v40, 1  ;;  %v6808_v20 = vadd.f32 %v1209_v52, %v1208_v21  ;;  %v1262_v9 = vmul.f32 %v9789_v31, %v1252_v11  ;;  %v6811_v19 = vadd.f32 %v1168_v44, %v1167_v29 }
 0x12c   : > { %v6814_v27 = vadd.f32 %v1162_v62, %v6772_v16  ;;  %v6816_v30 = vadd.f32 %v1241_v38, %v1240_v63  ;;  %v1263_v47 = vmul.f32 %v9790_v7, %v1253_v6  ;;  %v6819_v39 = vadd.f32 %v1193_v3, %v1192_v15 }
 0x12d   : > { %v6821_v24 = vadd.f32 %v1187_v28, %v1078_v57  ;;  %v1216_v13 = vrot.slane %v1215_v59, 2  ;;  %v1271_v54 = vmul.f32 %v1269_v5, %v1262_v9  ;;  %v1296_v49 = vmul.f32 %v1294_v1, %v1262_v9 }
 0x12e   : > { %v1272_v8 = vmul.f32 %v1269_v5, %v1263_v47  ;;  %v1297_v4 = vmul.f32 %v1294_v1, %v1263_v47  ;;  %v1346_v55 = vmul.f32 %v1344_v2, %v1262_v9  ;;  %v1237_v53 = vadd.f32 %v1236_v23, %v1235_v40 }
 0x12f   : > { %v1211_v45 = vrot.slane %v6808_v20, 1  ;;  %v1273_v16 = vsel %vm353_vm2, %v1271_v54, 0.0  ;;  %v1347_v0 = vmul.f32 %v1344_v2, %v1263_v47  ;;  %v1298_v17 = vsel %vm353_vm2, %v1296_v49, 0.0 }
 0x130   : > { %v1274_v25 = vrot.slane %v1273_v16, 4  ;;  %v1280_v41 = vsel %vm353_vm2, %v1272_v8, 0.0  ;;  %v1305_v32 = vsel %vm353_vm2, %v1297_v4, 0.0  ;;  %v1217_v34 = vadd.f32 %v1216_v13, %v1215_v59 }
 0x131   : > { %v1281_v56 = vrot.slane %v1280_v41, 4  ;;  %v1299_v5 = vrot.slane %v1298_v17, 4  ;;  %v1306_v61 = vrot.slane %v1305_v32, 4  ;;  %v1348_v10 = vsel %vm353_vm2, %v1346_v55, 0.0 }
 0x132   : > { %v1275_v50 = vadd.f32 %v1274_v25, %v1273_v16  ;;  %v1355_v29 = vsel %vm353_vm2, %v1347_v0, 0.0  ;;  %v1321_v63 = vmul.f32 %v1319_v18, %v1262_v9  ;;  %v1349_v43 = vrot.slane %v1348_v10, 4 }
 0x133   : > { %v1282_v46 = vadd.f32 %v1281_v56, %v1280_v41  ;;  %v1300_v15 = vadd.f32 %v1299_v5, %v1298_v17  ;;  %v1307_v21 = vadd.f32 %v1306_v61, %v1305_v32  ;;  %v1356_v57 = vrot.slane %v1355_v29, 4 }
 0x134   : > { %v1276_v35 = vrot.slane %v1275_v50, 2  ;;  %v1322_v48 = vmul.f32 %v1319_v18, %v1263_v47  ;;  %v1323_v60 = vsel %vm353_vm2, %v1321_v63, 0.0  ;;  %v1350_v62 = vadd.f32 %v1349_v43, %v1348_v10 }
 0x135   : > { %v1283_v22 = vrot.slane %v1282_v46, 2  ;;  %v1301_v40 = vrot.slane %v1300_v15, 2  ;;  %v1308_v52 = vrot.slane %v1307_v21, 2  ;;  %v1357_v38 = vadd.f32 %v1356_v57, %v1355_v29 }
 0x136   : > { %v1277_v44 = vadd.f32 %v1276_v35, %v1275_v50  ;;  %v1324_v28 = vrot.slane %v1323_v60, 4  ;;  %v1330_v3 = vsel %vm353_vm2, %v1322_v48, 0.0  ;;  %v1351_v23 = vrot.slane %v1350_v62, 2 }
 0x137   : > { %v1284_v59 = vadd.f32 %v1283_v22, %v1282_v46  ;;  %v1302_v11 = vadd.f32 %v1301_v40, %v1300_v15  ;;  %v1309_v6 = vadd.f32 %v1308_v52, %v1307_v21  ;;  %v1358_v9 = vrot.slane %v1357_v38, 2 }
 0x138   : > { %v1278_v31 = vrot.slane %v1277_v44, 1  ;;  %v1325_v2 = vadd.f32 %v1324_v28, %v1323_v60  ;;  %v1331_v7 = vrot.slane %v1330_v3, 4  ;;  %v1352_v54 = vadd.f32 %v1351_v23, %v1350_v62  ;;  %v5859_v23 = vld [vmem:[%s9703_s3 + $0x10] sm:$0xf] }
 0x139   : > { %v1285_v47 = vrot.slane %v1284_v59, 1  ;;  %v1303_v1 = vrot.slane %v1302_v11, 1  ;;  %v1310_v13 = vrot.slane %v1309_v6, 1  ;;  %v1218_v8 = vrot.slane %v1217_v34, 1 }
 0x13a   : > { %v1359_v49 = vadd.f32 %v1358_v9, %v1357_v38  ;;  %v1326_v4 = vrot.slane %v1325_v2, 2  ;;  %v1332_v55 = vadd.f32 %v1331_v7, %v1330_v3  ;;  %v1243_v16 = vrot.slane %v6816_v30, 1  ;;  %v5858_v9 = vld [vmem:[%s9703_s3 + $0x54] sm:$0xf]  ;;  %v5861_v7 = vld [vmem:[%s9703_s3 + $0x58] sm:$0xf] }
 0x13b   : > { %v1279_v0 = vadd.f32 %v1278_v31, %v1277_v44  ;;  %v1304_v18 = vadd.f32 %v1303_v1, %v1302_v11  ;;  %v1353_v25 = vrot.slane %v1352_v54, 1  ;;  %v1171_v41 = vadd.f32 %v6811_v19, %v6785_v36  ;;  %v5854_v11 = vld [vmem:[%s9703_s3 + $0x2c] sm:$0xf]  ;;  %v5857_v31 = vld [vmem:[%s9703_s3 + $0x30] sm:$0xf] }
 0x13c   : > { %v1212_v17 = vadd.f32 %v1211_v45, %v6808_v20  ;;  %v1327_v32 = vadd.f32 %v1326_v4, %v1325_v2  ;;  %v1333_v56 = vrot.slane %v1332_v55, 2  ;;  %v1196_v5 = vadd.f32 %v6819_v39, %v6790_v42  ;;  %v5860_v2 = vld [vmem:[%s9703_s3 + $0x34] sm:$0xf]  ;;  %v5868_v4 = vld [vmem:[%s9703_s3 + $0x1c] sm:$0xf] }
 0x13d   : > { %v1286_v61 = vadd.f32 %v1285_v47, %v1284_v59  ;;  %v1311_v50 = vadd.f32 %v1310_v13, %v1309_v6  ;;  %v1360_v10 = vrot.slane %v1359_v49, 1  ;;  %v1245_v29 = vadd.f32 %v1237_v53, %v6793_v51  ;;  %v5856_v6 = vld [vmem:[%s9703_s3 + $0xc] sm:$0xf]  ;;  %v5863_v47 = vld [vmem:[%s9703_s3 + $0x38] sm:$0xf] }
 0x13e   : > { %v1219_v63 = vadd.f32 %v1218_v8, %v1217_v34  ;;  %v1328_v46 = vrot.slane %v1327_v32, 1  ;;  %v1334_v15 = vadd.f32 %v1333_v56, %v1332_v55  ;;  %v1244_v21 = vadd.f32 %v1243_v16, %v6816_v30  ;;  %v5862_v1 = vld [vmem:[%s9703_s3 + $0x14] sm:$0xf]  ;;  %v5864_v13 = vld [vmem:[%s9703_s3 + $0x5c] sm:$0xf] }
 0x13f   : > { %v1287_v43 = vadd.f32 %v1279_v0, %v6814_v27  ;;  %v1312_v36 = vadd.f32 %v1304_v18, %v6821_v24  ;;  %v1354_v20 = vadd.f32 %v1353_v25, %v1352_v54  ;;  %v1220_v19 = vadd.f32 %v1212_v17, %v6799_v33  ;;  %v1379_v33 = vpop.permute.xlu2 %1378  ;;  %v5867_v54 = vld [vmem:[%s9703_s3 + $0x60] sm:$0xf]  ;;  %v5865_v8 = vld [vmem:[%s9703_s3 + $0x18] sm:$0xf]  ;;  %v5870_v0 = vld [vmem:[%s9703_s3 + $0x64] sm:$0xf] }
 0x140   : > { %v1329_v45 = vadd.f32 %v1328_v46, %v1327_v32  ;;  %v1335_v42 = vrot.slane %v1334_v15, 1  ;;  %v1288_v39 = vadd.f32 %v1286_v61, %v1171_v41  ;;  %v1313_v35 = vadd.f32 %v1311_v50, %v1196_v5  ;;  %v5869_v16 = vld [vmem:[%s9703_s3 + $0x40] sm:$0xf]  ;;  %v5872_v25 = vld [vmem:[%s9703_s3 + $0x44] sm:$0xf]  ;;  %v1429_v61 = vpop.permute.xlu0 %1428  ;;  %v1454_v50 = vpop.permute.xlu1 %1453 }
 0x141   : > { %v1361_v57 = vadd.f32 %v1360_v10, %v1359_v49  ;;  %v1221_v51 = vadd.f32 %v1219_v63, %v6806_v58  ;;  %v1246_v30 = vadd.f32 %v1244_v21, %v6796_v26  ;;  %v1362_v48 = vadd.f32 %v1354_v20, %v1245_v29  ;;  %v5866_v49 = vld [vmem:[%s9703_s3 + $0x3c] sm:$0xf]  ;;  %v5871_v41 = vld [vmem:[%s9703_s3 + $0x20] sm:$0xf]  ;;  %v5875_v32 = vld [vmem:[%s9702_s2 + $0x48] sm:$0xf] }
 0x142   : > { %v1336_v53 = vadd.f32 %v1335_v42, %v1334_v15  ;;  %v1337_v34 = vadd.f32 %v1329_v45, %v1220_v19  ;;  %v1365_v27 = vsel %vm1364_vm10, %v1287_v43, %v1312_v36  ;;  %v1366_v40 = vsel %vm1364_vm10, %v1288_v39, %v1313_v35  ;;  %v5873_v56 = vld [vmem:[%s9703_s3 + $0x68] sm:$0xf]  ;;  %v5874_v5 = vld [vmem:[%s9702_s2 + $0x24] sm:$0xf]  ;;  %v5880_v29 = vld [vmem:[%s9702_s2 + $0x4c] sm:$0xf] }
 0x143   : > { %v1363_v22 = vadd.f32 %v1361_v57, %v1246_v30  ;;  %v2192_v63 = vld [vmem:[%s9702_s2] sm:$0xf]  ;;  %v5879_v46 = vld [vmem:[%s9702_s2 + $0x28] sm:$0xf]  ;;  %v5885_v36 = vld [vmem:[%s9702_s2 + $0x50] sm:$0xf] }
 0x144   : > { %v1338_v24 = vadd.f32 %v1336_v53, %v1221_v51  ;;  %v1368_v60 = vsel %vm1367_vm11, %v1365_v27, %v1337_v34  ;;  %v5876_v20 = vld [vmem:[%s9702_s2 + $0x6c] sm:$0xf]  ;;  %v5890_v57 = vld [vmem:[%s9702_s2 + $0x54] sm:$0xf]  ;;  %v9791_v51 = vld [vmem:[#allocation16_spill] sm:$0xff] }
 0x145   : > { %v1370_v52 = vsel %vm324_vm0, %v1368_v60, %v1362_v48  ;;  %v5884_v19 = vld [vmem:[%s9702_s2 + $0x2c] sm:$0xf]  ;;  %v5878_v48 = vld [vmem:[%s9702_s2 + $0x4] sm:$0xf] }
 0x146   : > { %v1369_v62 = vsel %vm1367_vm11, %v1366_v40, %v1338_v24  ;;  %v1381_v44 = vadd.f32 %v1379_v33, %v1370_v52  ;;  %v9792_v34 = vld [vmem:[#allocation17_spill] sm:$0xff]  ;;  %v5889_v24 = vld [vmem:[%s9702_s2 + $0x30] sm:$0xf] }
 0x147   : > { %v1371_v58 = vsel %vm324_vm0, %v1369_v62, %v1363_v22  ;;  %v1404_v55 = vpop.permute.xlu2 %1403 }
 0x148   : > { %v1382_v38 = vadd.f32 %v1379_v33, %v1371_v58  ;;  %v1383_v28 = vmax.f32 %v1381_v44, 0.0  ;;  %v6971_v15 = vpop.permute.xlu0 %1541  ;;  %v6973_v21 = vpop.permute.xlu1 %1491 }
 0x14a   : > { %v1384_v26 = vmax.f32 %v1382_v38, 0.0  ;;  %v6852_v3 = vadd.f32 %v1383_v28, %v6175_v12  ;;  %v5855_v12 = vld [vmem:[%s9703_s3 + $0x50] sm:$0xf] }
 0x14c   : > { %v6855_v59 = vadd.f32 %v1384_v26, %v6183_v14  ;;  %1474 = vrot.lane.b32.xlu2 %v6852_v3, %s6079_s8  ;;  %1387 = vrot.lane.b32.xlu0 %v6852_v3, %s6078_s30  ;;  %v5853_v14 = vld [vmem:[%s9703_s3 + $0x8] sm:$0xf] }
 0x14e   : > { %1389 = vrot.lane.b32.xlu1 %v6855_v59, %s6078_s30 }
 0x14f   : > { %v6941_v18 = vpop.permute.xlu2 %1516 }
 0x154   : > { %1564 = vrot.lane.b32.xlu2 %v6855_v59, %s6080_s18  ;;  %1476 = vrot.lane.b32.xlu0 %v6855_v59, %s6079_s8 }
 0x156   : > { %1562 = vrot.lane.b32.xlu1 %v6852_v3, %s6080_s18 }
 0x15c   : > { %1629 = vperm.xlu2 %6045, %v5855_v12   ;;  %1579 = vperm.xlu0 %6046, %v5853_v14  }
 0x15e   : > { %1604 = vperm.xlu1 %6044, %v5854_v11  }
 0x164   : > { %1667 = vperm.xlu2 %6045, %v5856_v6   ;;  %1650 = vrot.lane.b32.xlu0 %v6852_v3, %s6081_s13 }
 0x166   : > { %1652 = vrot.lane.b32.xlu1 %v6855_v59, %s6081_s13 }
 0x16c   : > { %1742 = vperm.xlu2 %6045, %v5859_v23   ;;  %1692 = vperm.xlu0 %6046, %v5857_v31  }
 0x16e   : > { %1717 = vperm.xlu1 %6044, %v5858_v9  }
 0x174   : > { %1813 = vrot.lane.b32.xlu2 %v6852_v3, %s6082_s21  ;;  %1767 = vperm.xlu0 %6046, %v5860_v2   ;;  %v5893_v2 = vld [vmem:[%s9702_s2 + $0x34] sm:$0xf] }
 0x176   : > { %1792 = vperm.xlu1 %6044, %v5861_v7  }
 0x17c   : > { %1855 = vperm.xlu2 %6045, %v5863_v47   ;;  %1815 = vrot.lane.b32.xlu0 %v6855_v59, %s6082_s21 }
 0x17e   : > { %1830 = vperm.xlu1 %6044, %v5862_v1  }
 0x184   : > { %1903 = vrot.lane.b32.xlu2 %v6855_v59, %s6083_s12  ;;  %1880 = vperm.xlu0 %6046, %v5864_v13  }
 0x186   : > { %1901 = vrot.lane.b32.xlu1 %v6852_v3, %s6083_s12 }
 0x18c   : > { %1968 = vperm.xlu2 %6045, %v5867_v54   ;;  %1918 = vperm.xlu0 %6046, %v5865_v8   ;;  %v5881_v54 = vld [vmem:[%s9702_s2 + $0x70] sm:$0xf] }
 0x18e   : > { %1943 = vperm.xlu1 %6044, %v5866_v49   ;;  %v5892_v49 = vld [vmem:[%s9702_s2 + $0x10] sm:$0xf] }
 0x194   : > { %2006 = vperm.xlu2 %6045, %v5868_v4   ;;  %1989 = vrot.lane.b32.xlu0 %v6852_v3, %s6084_s26 }
 0x196   : > { %1991 = vrot.lane.b32.xlu1 %v6855_v59, %s6084_s26 }
 0x19c   : > { %2077 = vrot.lane.b32.xlu2 %v6852_v3, %s6085_s19  ;;  %2031 = vperm.xlu0 %6046, %v5869_v16  }
 0x19e   : > { %2056 = vperm.xlu1 %6044, %v5870_v0   ;;  %v9794_v0 = vld [vmem:[#allocation21_spill] sm:$0xff] }
 0x1a4   : > { %2119 = vperm.xlu2 %6045, %v5872_v25   ;;  %2079 = vrot.lane.b32.xlu0 %v6855_v59, %s6085_s19 }
 0x1a6   : > { %2094 = vperm.xlu1 %6044, %v5871_v41   ;;  %v6951_v17 = vpop.permute.xlu2 %1474 }
 0x1ac   : > { %2243 = vperm.xlu2 %6045, %v5875_v32   ;;  %2144 = vperm.xlu0 %6046, %v5873_v56  }
 0x1ae   : > { %2219 = vperm.xlu1 %6044, %v5874_v5   ;;  %v1565_v10 = vpop.permute.xlu2 %1564 }
 0x1b4   : > { %2354 = vperm.xlu2 %6045, %v5880_v29   ;;  %2195 = vperm.xlu0 %6046, %v2192_v63  }
 0x1b6   : > { %2330 = vperm.xlu1 %6044, %v5879_v46   ;;  %v1630_v43 = vpop.permute.xlu2 %1629 }
 0x1bc   : > { %2465 = vperm.xlu2 %6045, %v5885_v36   ;;  %2267 = vperm.xlu0 %6046, %v5876_v20  }
 0x1be   : > { %2441 = vperm.xlu1 %6044, %v5884_v19   ;;  %v1388_v45 = vpop.permute.xlu0 %1387  ;;  %v6996_v27 = vpop.permute.xlu2 %1667 }
 0x1c0   : > { %v1390_v42 = vpop.permute.xlu1 %1389 }
 0x1c1   : > { %v1391_v39 = vsel %vm333_vm1, %v1388_v45, %v1390_v42  ;;  %v1392_v35 = vsel %vm333_vm1, %v1390_v42, %v1388_v45 }
 0x1c2   : > { %v1398_v53 = vmul.f32 %v9791_v51, %v1392_v35  ;;  %v1399_v30 = vmul.f32 %v9792_v34, %v1391_v39 }
 0x1c4   : > { %v1406_v60 = vmul.f32 %v1404_v55, %v1398_v53  ;;  %v1407_v33 = vmul.f32 %v1404_v55, %v1399_v30  ;;  %v1431_v22 = vmul.f32 %v1429_v61, %v1398_v53  ;;  %v1432_v40 = vmul.f32 %v1429_v61, %v1399_v30  ;;  %2576 = vperm.xlu2 %6045, %v5890_v57   ;;  %v9793_v55 = vld [vmem:[#allocation20_spill] sm:$0xff] }
 0x1c5   : > { %v1456_v52 = vmul.f32 %v1454_v50, %v1398_v53  ;;  %v1457_v62 = vmul.f32 %v1454_v50, %v1399_v30  ;;  %2306 = vperm.xlu0 %6046, %v5878_v48  }
 0x1c6   : > { %v1408_v44 = vsel %vm353_vm2, %v1406_v60, 0.0  ;;  %v1415_v58 = vsel %vm353_vm2, %v1407_v33, 0.0  ;;  %v1433_v38 = vsel %vm353_vm2, %v1431_v22, 0.0  ;;  %v1440_v28 = vsel %vm353_vm2, %v1432_v40, 0.0  ;;  %2552 = vperm.xlu1 %6044, %v5889_v24   ;;  %v1477_v23 = vpop.permute.xlu0 %1476  ;;  %v1743_v56 = vpop.permute.xlu2 %1742  ;;  %v9795_v40 = vld [vmem:[#allocation18_spill] sm:$0xff] }
 0x1c7   : > { %v1409_v26 = vrot.slane %v1408_v44, 4  ;;  %v1416_v12 = vrot.slane %v1415_v58, 4  ;;  %v1434_v14 = vrot.slane %v1433_v38, 4  ;;  %v1441_v11 = vrot.slane %v1440_v28, 4 }
 0x1c8   : > { %v1563_v6 = vpop.permute.xlu1 %1562  ;;  %v1458_v31 = vsel %vm353_vm2, %v1456_v52, 0.0  ;;  %v1465_v9 = vsel %vm353_vm2, %v1457_v62, 0.0  ;;  %v1745_v46 = vmul.f32 %v1743_v56, %v6852_v3  ;;  %v1746_v19 = vmul.f32 %v1743_v56, %v6855_v59  ;;  %v9796_v62 = vld [vmem:[#allocation19_spill] sm:$0xff] }
 0x1c9   : > { %v1410_v7 = vadd.f32 %v1409_v26, %v1408_v44  ;;  %v1417_v47 = vadd.f32 %v1416_v12, %v1415_v58  ;;  %v1566_v1 = vsel %vm566_vm4, %v1563_v6, %v1565_v10  ;;  %v1567_v13 = vsel %vm566_vm4, %v1565_v10, %v1563_v6 }
 0x1ca   : > { %v1435_v8 = vadd.f32 %v1434_v14, %v1433_v38  ;;  %v1442_v4 = vadd.f32 %v1441_v11, %v1440_v28  ;;  %v7021_v16 = vmul.f32 %v9793_v55, %v1567_v13  ;;  %v7024_v25 = vmul.f32 %v9794_v0, %v1566_v1 }
 0x1cb   : > { %v1459_v41 = vrot.slane %v1458_v31, 4  ;;  %v1466_v32 = vrot.slane %v1465_v9, 4  ;;  %v1411_v5 = vrot.slane %v1410_v7, 2  ;;  %v1418_v61 = vrot.slane %v1417_v47, 2 }
 0x1cc   : > { %2648 = vperm.xlu2 %6045, %v5893_v2   ;;  %v1632_v50 = vmul.f32 %v1630_v43, %v7021_v16  ;;  %v1633_v10 = vmul.f32 %v1630_v43, %v7024_v25  ;;  %v1436_v29 = vrot.slane %v1435_v8, 2  ;;  %v1443_v63 = vrot.slane %v1442_v4, 2  ;;  %v5883_v43 = vld [vmem:[%s9702_s2 + $0x8] sm:$0xf] }
 0x1cd   : > { %2378 = vperm.xlu0 %6046, %v5881_v54   ;;  %v1460_v36 = vadd.f32 %v1459_v41, %v1458_v31  ;;  %v1412_v45 = vadd.f32 %v1411_v5, %v1410_v7  ;;  %v1419_v42 = vadd.f32 %v1418_v61, %v1417_v47  ;;  %v1467_v39 = vadd.f32 %v1466_v32, %v1465_v9 }
 0x1ce   : > { %2624 = vperm.xlu1 %6044, %v5892_v49   ;;  %v1634_v20 = vsel %vm353_vm2, %v1632_v50, 0.0  ;;  %v1641_v35 = vsel %vm353_vm2, %v1633_v10, 0.0  ;;  %v7032_v57 = vpop.permute.xlu0 %1579  ;;  %v7037_v51 = vadd.f32 %v1436_v29, %v1435_v8  ;;  %v1478_v53 = vsel %vm449_vm3, %v6951_v17, %v1477_v23 }
 0x1cf   : > { %v1479_v34 = vsel %vm449_vm3, %v1477_v23, %v6951_v17  ;;  %v7045_v30 = vadd.f32 %v1443_v63, %v1442_v4  ;;  %v1635_v48 = vrot.slane %v1634_v20, 4  ;;  %v1747_v24 = vsel %vm353_vm2, %v1745_v46, 0.0 }
 0x1d0   : > { %v1605_v60 = vpop.permute.xlu1 %1604  ;;  %v1642_v33 = vrot.slane %v1641_v35, 4  ;;  %v1754_v22 = vsel %vm353_vm2, %v1746_v19, 0.0  ;;  %v1485_v52 = vmul.f32 %v9795_v40, %v1479_v34  ;;  %v1486_v44 = vmul.f32 %v9796_v62, %v1478_v53 }
 0x1d1   : > { %v1413_v58 = vrot.slane %v1412_v45, 1  ;;  %v1420_v38 = vrot.slane %v1419_v42, 1  ;;  %v1461_v28 = vrot.slane %v1460_v36, 2  ;;  %v1468_v26 = vrot.slane %v1467_v39, 2 }
 0x1d2   : > { %v1438_v17 = vrot.slane %v7037_v51, 1  ;;  %v1748_v12 = vrot.slane %v1747_v24, 4  ;;  %v1494_v14 = vmul.f32 %v6973_v21, %v1485_v52  ;;  %v1495_v11 = vmul.f32 %v6973_v21, %v1486_v44  ;;  %v5886_v21 = vld [vmem:[%s9702_s2 + $0x74] sm:$0xf] }
 0x1d3   : > { %v1636_v6 = vadd.f32 %v1635_v48, %v1634_v20  ;;  %v1755_v23 = vrot.slane %v1754_v22, 4  ;;  %v1519_v31 = vmul.f32 %v6941_v18, %v1485_v52  ;;  %v1520_v9 = vmul.f32 %v6941_v18, %v1486_v44 }
 0x1d4   : > { %v1445_v2 = vrot.slane %v7045_v30, 1  ;;  %v1643_v7 = vadd.f32 %v1642_v33, %v1641_v35  ;;  %v1496_v47 = vsel %vm353_vm2, %v1494_v14, 0.0  ;;  %v1503_v1 = vsel %vm353_vm2, %v1495_v11, 0.0 }
 0x1d5   : > { %2417 = vperm.xlu0 %6046, %v5883_v43   ;;  %v1462_v13 = vadd.f32 %v1461_v28, %v1460_v36  ;;  %v1469_v54 = vadd.f32 %v1468_v26, %v1467_v39  ;;  %v1497_v8 = vrot.slane %v1496_v47, 4  ;;  %v1504_v49 = vrot.slane %v1503_v1, 4 }
 0x1d6   : > { %v7062_v4 = vadd.f32 %v1413_v58, %v1412_v45  ;;  %v1749_v55 = vadd.f32 %v1748_v12, %v1747_v24  ;;  %v1521_v18 = vsel %vm353_vm2, %v1519_v31, 0.0  ;;  %v1528_v0 = vsel %vm353_vm2, %v1520_v9, 0.0  ;;  %v7068_v61 = vpop.permute.xlu0 %1650  ;;  %v5888_v58 = vld [vmem:[%s9702_s2 + $0xc] sm:$0xf] }
 0x1d7   : > { %v7066_v41 = vadd.f32 %v1420_v38, %v1419_v42  ;;  %v1637_v32 = vrot.slane %v1636_v6, 2  ;;  %v1756_v56 = vadd.f32 %v1755_v23, %v1754_v22  ;;  %v1498_v5 = vadd.f32 %v1497_v8, %v1496_v47 }
 0x1d8   : > { %v1644_v50 = vrot.slane %v1643_v7, 2  ;;  %v1505_v10 = vadd.f32 %v1504_v49, %v1503_v1  ;;  %v1522_v29 = vrot.slane %v1521_v18, 4  ;;  %v1529_v63 = vrot.slane %v1528_v0, 4  ;;  %v7074_v45 = vpop.permute.xlu1 %1652 }
 0x1d9   : > { %v1544_v46 = vmul.f32 %v6971_v15, %v1485_v52  ;;  %v1545_v36 = vmul.f32 %v6971_v15, %v1486_v44  ;;  %v1607_v20 = vmul.f32 %v1605_v60, %v7021_v16  ;;  %v1608_v19 = vmul.f32 %v1605_v60, %v7024_v25 }
 0x1da   : > { %v1463_v42 = vrot.slane %v1462_v13, 1  ;;  %v1470_v39 = vrot.slane %v1469_v54, 1  ;;  %v1750_v35 = vrot.slane %v1749_v55, 2  ;;  %v1523_v43 = vadd.f32 %v1522_v29, %v1521_v18 }
 0x1db   : > { %v1757_v53 = vrot.slane %v1756_v56, 2  ;;  %v1499_v34 = vrot.slane %v1498_v5, 2  ;;  %v1546_v48 = vsel %vm353_vm2, %v1544_v46, 0.0  ;;  %v1553_v24 = vsel %vm353_vm2, %v1545_v36, 0.0 }
 0x1dc   : > { %v1506_v33 = vrot.slane %v1505_v10, 2  ;;  %v1530_v22 = vadd.f32 %v1529_v63, %v1528_v0  ;;  %v1547_v40 = vrot.slane %v1546_v48, 4  ;;  %v1554_v15 = vrot.slane %v1553_v24, 4  ;;  %v7101_v63 = vld.sshfl [vmem:[#allocation1 + $0x8] sm:$0xff pattern:$0x75316420] }
 0x1dd   : > { %2489 = vperm.xlu0 %6046, %v5886_v21   ;;  %v1638_v52 = vadd.f32 %v1637_v32, %v1636_v6  ;;  %v1645_v62 = vadd.f32 %v1644_v50, %v1643_v7  ;;  %v1609_v60 = vsel %vm353_vm2, %v1607_v20, 0.0  ;;  %v1616_v44 = vsel %vm353_vm2, %v1608_v19, 0.0 }
 0x1de   : > { %v7084_v38 = vadd.f32 %v1438_v17, %v7037_v51  ;;  %v7087_v28 = vadd.f32 %v1445_v2, %v7045_v30  ;;  %v1524_v26 = vrot.slane %v1523_v43, 2  ;;  %v1548_v12 = vadd.f32 %v1547_v40, %v1546_v48  ;;  %v7093_v49 = vpop.permute.xlu0 %1692 }
 0x1df   : > { %v1751_v14 = vadd.f32 %v1750_v35, %v1749_v55  ;;  %v1758_v11 = vadd.f32 %v1757_v53, %v1756_v56  ;;  %v1610_v6 = vrot.slane %v1609_v60, 4  ;;  %v1617_v23 = vrot.slane %v1616_v44, 4 }
 0x1e0   : > { %v1500_v31 = vadd.f32 %v1499_v34, %v1498_v5  ;;  %v1507_v9 = vadd.f32 %v1506_v33, %v1505_v10  ;;  %v1531_v7 = vrot.slane %v1530_v22, 2  ;;  %v1555_v47 = vadd.f32 %v1554_v15, %v1553_v24  ;;  %v7099_v5 = vld.sshfl [vmem:[#allocation1] sm:$0xff pattern:$0x75316420]  ;;  %v9799_v15 = vld [vmem:[#allocation23_spill] sm:$0xff] }
 0x1e1   : > { %v7089_v1 = vadd.f32 %v1463_v42, %v1462_v13  ;;  %v7091_v8 = vadd.f32 %v1470_v39, %v1469_v54  ;;  %v1639_v51 = vrot.slane %v1638_v52, 1  ;;  %v1646_v17 = vrot.slane %v1645_v62, 1  ;;  %v1718_v13 = vpop.permute.xlu1 %1717 }
 0x1e2   : > { %v1525_v30 = vadd.f32 %v1524_v26, %v1523_v43  ;;  %v1549_v2 = vrot.slane %v1548_v12, 2  ;;  %v1611_v21 = vadd.f32 %v1610_v6, %v1609_v60  ;;  %v1618_v55 = vadd.f32 %v1617_v23, %v1616_v44  ;;  %v7131_v6 = vpop.permute.xlu2 %1813 }
 0x1e3   : > { %v1752_v18 = vrot.slane %v1751_v14, 1  ;;  %v1759_v0 = vrot.slane %v1758_v11, 1  ;;  %v1582_v32 = vmul.f32 %v7032_v57, %v7021_v16  ;;  %v1583_v56 = vmul.f32 %v7032_v57, %v7024_v25  ;;  %v5891_v25 = vld [vmem:[%s9702_s2 + $0x78] sm:$0xf] }
 0x1e4   : > { %v1501_v54 = vrot.slane %v1500_v31, 1  ;;  %v1508_v50 = vrot.slane %v1507_v9, 1  ;;  %v1532_v10 = vadd.f32 %v1531_v7, %v1530_v22  ;;  %v1556_v29 = vrot.slane %v1555_v47, 2  ;;  %v9797_v57 = vld [vmem:[#allocation7_spill] sm:$0xff]  ;;  %v9798_v22 = vld [vmem:[#allocation22_spill] sm:$0xff] }
 0x1e5   : > { %2528 = vperm.xlu0 %6046, %v5888_v58   ;;  %v7103_v46 = vadd.f32 %v1639_v51, %v1638_v52  ;;  %v7105_v36 = vadd.f32 %v1646_v17, %v1645_v62  ;;  %v1584_v20 = vsel %vm353_vm2, %v1582_v32, 0.0  ;;  %v1591_v16 = vsel %vm353_vm2, %v1583_v56, 0.0  ;;  %1907 = vst [vmem:[#allocation1] ss:$2 sm:$0xff] %v9797_v57 }
 0x1e6   : > { %v1526_v19 = vrot.slane %v1525_v30, 1  ;;  %v1550_v42 = vadd.f32 %v1549_v2, %v1548_v12  ;;  %v1612_v39 = vrot.slane %v1611_v21, 2  ;;  %v1619_v35 = vrot.slane %v1618_v55, 2 }
 0x1e7   : > { %v1585_v43 = vrot.slane %v1584_v20, 4  ;;  %v1592_v53 = vrot.slane %v1591_v16, 4  ;;  %v1654_v34 = vsel %vm683_vm5, %v7068_v61, %v7074_v45  ;;  %v1655_v48 = vsel %vm683_vm5, %v7074_v45, %v7068_v61 }
 0x1e8   : > { %v1533_v24 = vrot.slane %v1532_v10, 1  ;;  %v1557_v33 = vadd.f32 %v1556_v29, %v1555_v47  ;;  %v1661_v40 = vmul.f32 %v9798_v22, %v1655_v48  ;;  %v1662_v52 = vmul.f32 %v9799_v15, %v1654_v34  ;;  %v9800_v29 = vld [vmem:[#allocation8_spill] sm:$0xff] }
 0x1e9   : > { %v7123_v62 = vadd.f32 %v1752_v18, %v1751_v14  ;;  %v7125_v60 = vadd.f32 %v1759_v0, %v1758_v11  ;;  %v7127_v44 = vadd.f32 %v1501_v54, %v1500_v31  ;;  %v7129_v58 = vadd.f32 %v1508_v50, %v1507_v9  ;;  %v7135_v14 = vpop.permute.xlu0 %1767  ;;  %v5894_v11 = vld [vmem:[%s9702_s2 + $0x58] sm:$0xf]  ;;  %v1793_v0 = vpop.permute.xlu1 %1792 }
 0x1ea   : > { %v1613_v26 = vadd.f32 %v1612_v39, %v1611_v21  ;;  %v1620_v12 = vadd.f32 %v1619_v35, %v1618_v55  ;;  %v1670_v61 = vmul.f32 %v6996_v27, %v1661_v40  ;;  %v1671_v45 = vmul.f32 %v6996_v27, %v1662_v52 }
 0x1eb   : > { %v1527_v23 = vadd.f32 %v1526_v19, %v1525_v30  ;;  %v1551_v7 = vrot.slane %v1550_v42, 1  ;;  %v1586_v47 = vadd.f32 %v1585_v43, %v1584_v20  ;;  %v1593_v51 = vadd.f32 %v1592_v53, %v1591_v16 }
 0x1ec   : > { %v1534_v31 = vadd.f32 %v1533_v24, %v1532_v10  ;;  %v1558_v9 = vrot.slane %v1557_v33, 1  ;;  %v1672_v17 = vsel %vm353_vm2, %v1670_v61, 0.0  ;;  %v1679_v2 = vsel %vm353_vm2, %v1671_v45, 0.0  ;;  %v7142_v21 = vld.sshfl [vmem:[#allocation1] sm:$0xff pattern:$0x75316420] }
 0x1ed   : > { %2600 = vperm.xlu0 %6046, %v5891_v25   ;;  %v1673_v55 = vrot.slane %v1672_v17, 4  ;;  %v1680_v27 = vrot.slane %v1679_v2, 4  ;;  %v1720_v30 = vmul.f32 %v1718_v13, %v1661_v40  ;;  %v1721_v18 = vmul.f32 %v1718_v13, %v1662_v52  ;;  %v7144_v32 = vld.sshfl [vmem:[#allocation1 + $0x8] sm:$0xff pattern:$0x75316420] }
 0x1ee   : > { %v1614_v56 = vrot.slane %v1613_v26, 1  ;;  %v1621_v54 = vrot.slane %v1620_v12, 1  ;;  %v1695_v50 = vmul.f32 %v7093_v49, %v1661_v40  ;;  %v1696_v10 = vmul.f32 %v7093_v49, %v1662_v52  ;;  %1995 = vst [vmem:[#allocation1] ss:$2 sm:$0xff] %v9800_v29 }
 0x1ef   : > { %v1587_v20 = vrot.slane %v1586_v47, 2  ;;  %v1594_v16 = vrot.slane %v1593_v51, 2  ;;  %v1722_v25 = vsel %vm353_vm2, %v1720_v30, 0.0  ;;  %v1729_v57 = vsel %vm353_vm2, %v1721_v18, 0.0 }
 0x1f0   : > { %v1674_v19 = vadd.f32 %v1673_v55, %v1672_v17  ;;  %v1681_v39 = vadd.f32 %v1680_v27, %v1679_v2  ;;  %v1723_v13 = vrot.slane %v1722_v25, 4  ;;  %v1730_v35 = vrot.slane %v1729_v57, 4  ;;  %v7155_v55 = vpop.permute.xlu2 %1855 }
 0x1f1   : > { %v1535_v43 = vadd.f32 %v1527_v23, %v7084_v38  ;;  %v1536_v53 = vadd.f32 %v1534_v31, %v7087_v28  ;;  %v1697_v34 = vsel %vm353_vm2, %v1695_v50, 0.0  ;;  %v1704_v49 = vsel %vm353_vm2, %v1696_v10, 0.0  ;;  %v1831_v18 = vpop.permute.xlu1 %1830 }
 0x1f2   : > { %v1552_v48 = vadd.f32 %v1551_v7, %v1550_v42  ;;  %v1559_v24 = vadd.f32 %v1558_v9, %v1557_v33  ;;  %v1724_v22 = vadd.f32 %v1723_v13, %v1722_v25  ;;  %v1731_v40 = vadd.f32 %v1730_v35, %v1729_v57  ;;  %v1816_v42 = vpop.permute.xlu0 %1815 }
 0x1f3   : > { %v1588_v15 = vadd.f32 %v1587_v20, %v1586_v47  ;;  %v1595_v52 = vadd.f32 %v1594_v16, %v1593_v51  ;;  %v1698_v61 = vrot.slane %v1697_v34, 4  ;;  %v1705_v45 = vrot.slane %v1704_v49, 4 }
 0x1f4   : > { %v1615_v17 = vadd.f32 %v1614_v56, %v1613_v26  ;;  %v1622_v2 = vadd.f32 %v1621_v54, %v1620_v12  ;;  %v1682_v38 = vrot.slane %v1681_v39, 2  ;;  %v1725_v23 = vrot.slane %v1724_v22, 2 }
 0x1f5   : > { %2672 = vperm.xlu0 %6046, %v5894_v11   ;;  %v1675_v11 = vrot.slane %v1674_v19, 2  ;;  %v1732_v28 = vrot.slane %v1731_v40, 2  ;;  %v1795_v31 = vmul.f32 %v1793_v0, %v6852_v3  ;;  %v1796_v27 = vmul.f32 %v1793_v0, %v6855_v59 }
 0x1f6   : > { %v1560_v33 = vadd.f32 %v1552_v48, %v7089_v1  ;;  %v1561_v7 = vadd.f32 %v1559_v24, %v7091_v8  ;;  %v1699_v47 = vadd.f32 %v1698_v61, %v1697_v34  ;;  %v1706_v51 = vadd.f32 %v1705_v45, %v1704_v49 }
 0x1f7   : > { %v1510_v26 = vadd.f32 %v7127_v44, %v7062_v4  ;;  %v1511_v12 = vadd.f32 %v7129_v58, %v7066_v41  ;;  %v1589_v9 = vrot.slane %v1588_v15, 1  ;;  %v1596_v30 = vrot.slane %v1595_v52, 1 }
 0x1f8   : > { %v7165_v56 = vadd.f32 %v1615_v17, %v1535_v43  ;;  %v7167_v54 = vadd.f32 %v1622_v2, %v1536_v53  ;;  %v1676_v0 = vadd.f32 %v1675_v11, %v1674_v19  ;;  %v1683_v50 = vadd.f32 %v1682_v38, %v1681_v39  ;;  %v1904_v34 = vpop.permute.xlu2 %1903 }
 0x1f9   : > { %v1726_v1 = vadd.f32 %v1725_v23, %v1724_v22  ;;  %v1733_v10 = vadd.f32 %v1732_v28, %v1731_v40  ;;  %v1797_v8 = vsel %vm353_vm2, %v1795_v31, 0.0  ;;  %v1804_v29 = vsel %vm353_vm2, %v1796_v27, 0.0  ;;  %v1902_v28 = vpop.permute.xlu1 %1901 }
 0x1fa   : > { %v1648_v4 = vadd.f32 %v7103_v46, %v1560_v33  ;;  %v1649_v44 = vadd.f32 %v7105_v36, %v1561_v7  ;;  %v1700_v41 = vrot.slane %v1699_v47, 2  ;;  %v1707_v58 = vrot.slane %v1706_v51, 2 }
 0x1fb   : > { %v1590_v20 = vadd.f32 %v1589_v9, %v1588_v15  ;;  %v1597_v16 = vadd.f32 %v1596_v30, %v1595_v52  ;;  %v1770_v25 = vmul.f32 %v7135_v14, %v6852_v3  ;;  %v1771_v57 = vmul.f32 %v7135_v14, %v6855_v59  ;;  %v7189_v15 = vpop.permute.xlu0 %1880 }
 0x1fc   : > { %v1677_v19 = vrot.slane %v1676_v0, 1  ;;  %v1684_v39 = vrot.slane %v1683_v50, 1  ;;  %v1798_v13 = vrot.slane %v1797_v8, 4  ;;  %v1805_v35 = vrot.slane %v1804_v29, 4 }
 0x1fd   : > { %v1727_v43 = vrot.slane %v1726_v1, 1  ;;  %v1734_v53 = vrot.slane %v1733_v10, 1  ;;  %v1772_v46 = vsel %vm353_vm2, %v1770_v25, 0.0  ;;  %v1779_v36 = vsel %vm353_vm2, %v1771_v57, 0.0 }
 0x1fe   : > { %v7179_v49 = vadd.f32 %v1700_v41, %v1699_v47  ;;  %v7181_v48 = vadd.f32 %v1707_v58, %v1706_v51  ;;  %v1773_v24 = vrot.slane %v1772_v46, 4  ;;  %v1780_v3 = vrot.slane %v1779_v36, 4 }
 0x1ff   : > { %v1598_v22 = vadd.f32 %v1590_v20, %v1510_v26  ;;  %v1599_v40 = vadd.f32 %v1597_v16, %v1511_v12  ;;  %v1817_v59 = vsel %vm900_vm6, %v7131_v6, %v1816_v42  ;;  %v1818_v14 = vsel %vm900_vm6, %v1816_v42, %v7131_v6 }
 0x200   : > { %v1678_v52 = vadd.f32 %v1677_v19, %v1676_v0  ;;  %v1685_v61 = vadd.f32 %v1684_v39, %v1683_v50  ;;  %v1799_v45 = vadd.f32 %v1798_v13, %v1797_v8  ;;  %v1806_v17 = vadd.f32 %v1805_v35, %v1804_v29  ;;  %v1969_v19 = vpop.permute.xlu2 %1968  ;;  %v7215_v39 = vld.sshfl [vmem:[#allocation1] sm:$0xff pattern:$0x75316420]  ;;  %v7217_v13 = vld.sshfl [vmem:[#allocation1 + $0x8] sm:$0xff pattern:$0x75316420] }
 0x201   : > { %v1728_v2 = vadd.f32 %v1727_v43, %v1726_v1  ;;  %v1735_v11 = vadd.f32 %v1734_v53, %v1733_v10  ;;  %v1824_v38 = vmul.f32 %v7099_v5, %v1817_v59  ;;  %v1825_v23 = vmul.f32 %v7101_v63, %v1818_v14  ;;  %v1944_v59 = vpop.permute.xlu1 %1943 }
 0x202   : > { %v1702_v31 = vrot.slane %v7179_v49, 1  ;;  %v1709_v27 = vrot.slane %v7181_v48, 1  ;;  %v1774_v33 = vadd.f32 %v1773_v24, %v1772_v46  ;;  %v1781_v7 = vadd.f32 %v1780_v3, %v1779_v36 }
 0x203   : > { %v1833_v6 = vmul.f32 %v1831_v18, %v1824_v38  ;;  %v1834_v42 = vmul.f32 %v1831_v18, %v1825_v23  ;;  %v1858_v47 = vmul.f32 %v7155_v55, %v1824_v38  ;;  %v1859_v51 = vmul.f32 %v7155_v55, %v1825_v23  ;;  %v7221_v46 = vpop.permute.xlu0 %1918 }
 0x204   : > { %v1800_v26 = vrot.slane %v1799_v45, 2  ;;  %v1807_v12 = vrot.slane %v1806_v17, 2  ;;  %v1905_v5 = vsel %vm1017_vm7, %v1902_v28, %v1904_v34  ;;  %v1906_v63 = vsel %vm1017_vm7, %v1904_v34, %v1902_v28 }
 0x205   : > { %v1835_v9 = vsel %vm353_vm2, %v1833_v6, 0.0  ;;  %v1842_v30 = vsel %vm353_vm2, %v1834_v42, 0.0  ;;  %v1860_v0 = vsel %vm353_vm2, %v1858_v47, 0.0  ;;  %v1867_v18 = vsel %vm353_vm2, %v1859_v51, 0.0 }
 0x206   : > { %v1775_v50 = vrot.slane %v1774_v33, 2  ;;  %v1782_v1 = vrot.slane %v1781_v7, 2  ;;  %v1836_v10 = vrot.slane %v1835_v9, 4  ;;  %v1843_v55 = vrot.slane %v1842_v30, 4 }
 0x207   : > { %v1861_v8 = vrot.slane %v1860_v0, 4  ;;  %v1868_v29 = vrot.slane %v1867_v18, 4  ;;  %v7206_v41 = vmul.f32 %v7142_v21, %v1905_v5  ;;  %v7209_v58 = vmul.f32 %v7144_v32, %v1906_v63  ;;  %v9801_v32 = vld [vmem:[#allocation11_spill] sm:$0xff] }
 0x208   : > { %v7211_v20 = vadd.f32 %v1678_v52, %v1598_v22  ;;  %v7213_v16 = vadd.f32 %v1685_v61, %v1599_v40  ;;  %v1736_v25 = vadd.f32 %v1728_v2, %v1648_v4  ;;  %v1737_v57 = vadd.f32 %v1735_v11, %v1649_v44  ;;  %2083 = vst [vmem:[#allocation1] ss:$2 sm:$0xff] %v9801_v32 }
 0x209   : > { %v1801_v35 = vadd.f32 %v1800_v26, %v1799_v45  ;;  %v1808_v43 = vadd.f32 %v1807_v12, %v1806_v17  ;;  %v1971_v53 = vmul.f32 %v1969_v19, %v7206_v41  ;;  %v1972_v21 = vmul.f32 %v1969_v19, %v7209_v58 }
 0x20a   : > { %v1776_v36 = vadd.f32 %v1775_v50, %v1774_v33  ;;  %v1783_v34 = vadd.f32 %v1782_v1, %v1781_v7  ;;  %v1837_v24 = vadd.f32 %v1836_v10, %v1835_v9  ;;  %v1844_v4 = vadd.f32 %v1843_v55, %v1842_v30 }
 0x20b   : > { %v1862_v44 = vadd.f32 %v1861_v8, %v1860_v0  ;;  %v1869_v3 = vadd.f32 %v1868_v29, %v1867_v18  ;;  %v1973_v22 = vsel %vm353_vm2, %v1971_v53, 0.0  ;;  %v1980_v40 = vsel %vm353_vm2, %v1972_v21, 0.0  ;;  %v1990_v55 = vpop.permute.xlu0 %1989  ;;  %v1992_v21 = vpop.permute.xlu1 %1991 }
 0x20c   : > { %v1703_v14 = vadd.f32 %v1702_v31, %v7179_v49  ;;  %v1710_v52 = vadd.f32 %v1709_v27, %v7181_v48  ;;  %v1974_v61 = vrot.slane %v1973_v22, 4  ;;  %v1981_v45 = vrot.slane %v1980_v40, 4 }
 0x20d   : > { %v1802_v17 = vrot.slane %v1801_v35, 1  ;;  %v1809_v2 = vrot.slane %v1808_v43, 1  ;;  %v1883_v11 = vmul.f32 %v7189_v15, %v1824_v38  ;;  %v1884_v28 = vmul.f32 %v7189_v15, %v1825_v23 }
 0x20e   : > { %v1777_v33 = vrot.slane %v1776_v36, 1  ;;  %v1784_v7 = vrot.slane %v1783_v34, 1  ;;  %v1838_v6 = vrot.slane %v1837_v24, 2  ;;  %v1845_v42 = vrot.slane %v1844_v4, 2 }
 0x20f   : > { %v1863_v47 = vrot.slane %v1862_v44, 2  ;;  %v1870_v51 = vrot.slane %v1869_v3, 2  ;;  %v1885_v26 = vsel %vm353_vm2, %v1883_v11, 0.0  ;;  %v1892_v49 = vsel %vm353_vm2, %v1884_v28, 0.0 }
 0x210   : > { %v1711_v48 = vadd.f32 %v1703_v14, %v7165_v56  ;;  %v1712_v31 = vadd.f32 %v1710_v52, %v7167_v54  ;;  %v1975_v27 = vadd.f32 %v1974_v61, %v1973_v22  ;;  %v1982_v12 = vadd.f32 %v1981_v45, %v1980_v40 }
 0x211   : > { %v1803_v5 = vadd.f32 %v1802_v17, %v1801_v35  ;;  %v1810_v38 = vadd.f32 %v1809_v2, %v1808_v43  ;;  %v1886_v63 = vrot.slane %v1885_v26, 4  ;;  %v1893_v15 = vrot.slane %v1892_v49, 4 }
 0x212   : > { %v1778_v23 = vadd.f32 %v1777_v33, %v1776_v36  ;;  %v1785_v9 = vadd.f32 %v1784_v7, %v1783_v34  ;;  %v1946_v30 = vmul.f32 %v1944_v59, %v7206_v41  ;;  %v1947_v0 = vmul.f32 %v1944_v59, %v7209_v58 }
 0x213   : > { %v1839_v18 = vadd.f32 %v1838_v6, %v1837_v24  ;;  %v1846_v50 = vadd.f32 %v1845_v42, %v1844_v4  ;;  %v1864_v1 = vadd.f32 %v1863_v47, %v1862_v44  ;;  %v1871_v10 = vadd.f32 %v1870_v51, %v1869_v3 }
 0x214   : > { %v1976_v56 = vrot.slane %v1975_v27, 2  ;;  %v1983_v8 = vrot.slane %v1982_v12, 2  ;;  %v1948_v54 = vsel %vm353_vm2, %v1946_v30, 0.0  ;;  %v1955_v29 = vsel %vm353_vm2, %v1947_v0, 0.0  ;;  %v2057_v0 = vpop.permute.xlu1 %2056 }
 0x215   : > { %v1887_v19 = vadd.f32 %v1886_v63, %v1885_v26  ;;  %v1894_v35 = vadd.f32 %v1893_v15, %v1892_v49  ;;  %v1949_v43 = vrot.slane %v1948_v54, 4  ;;  %v1956_v53 = vrot.slane %v1955_v29, 4 }
 0x216   : > { %v7238_v32 = vadd.f32 %v1803_v5, %v1736_v25  ;;  %v7240_v36 = vadd.f32 %v1810_v38, %v1737_v57  ;;  %v1786_v34 = vadd.f32 %v1778_v23, %v1711_v48  ;;  %v1787_v24 = vadd.f32 %v1785_v9, %v1712_v31  ;;  %v2007_v57 = vpop.permute.xlu2 %2006 }
 0x217   : > { %v1865_v4 = vrot.slane %v1864_v1, 1  ;;  %v1872_v44 = vrot.slane %v1871_v10, 1  ;;  %v1950_v3 = vadd.f32 %v1949_v43, %v1948_v54  ;;  %v1957_v22 = vadd.f32 %v1956_v53, %v1955_v29 }
 0x218   : > { %v1840_v40 = vrot.slane %v1839_v18, 1  ;;  %v1847_v59 = vrot.slane %v1846_v50, 1  ;;  %v1921_v14 = vmul.f32 %v7221_v46, %v7206_v41  ;;  %v1922_v52 = vmul.f32 %v7221_v46, %v7209_v58 }
 0x219   : > { %v1977_v61 = vadd.f32 %v1976_v56, %v1975_v27  ;;  %v1984_v45 = vadd.f32 %v1983_v8, %v1982_v12  ;;  %v1888_v25 = vrot.slane %v1887_v19, 2  ;;  %v1895_v17 = vrot.slane %v1894_v35, 2  ;;  %v2032_v27 = vpop.permute.xlu0 %2031 }
 0x21a   : > { %v1923_v2 = vsel %vm353_vm2, %v1921_v14, 0.0  ;;  %v1930_v11 = vsel %vm353_vm2, %v1922_v52, 0.0  ;;  %v1993_v28 = vsel %vm1134_vm8, %v1990_v55, %v1992_v21  ;;  %v1994_v33 = vsel %vm1134_vm8, %v1992_v21, %v1990_v55 }
 0x21b   : > { %v1866_v7 = vadd.f32 %v1865_v4, %v1864_v1  ;;  %v1873_v41 = vadd.f32 %v1872_v44, %v1871_v10  ;;  %v1951_v6 = vrot.slane %v1950_v3, 2  ;;  %v1958_v42 = vrot.slane %v1957_v22, 2 }
 0x21c   : > { %v1924_v58 = vrot.slane %v1923_v2, 4  ;;  %v1931_v46 = vrot.slane %v1930_v11, 4  ;;  %v2000_v47 = vmul.f32 %v7215_v39, %v1993_v28  ;;  %v2001_v51 = vmul.f32 %v7217_v13, %v1994_v33 }
 0x21d   : > { %v1841_v26 = vadd.f32 %v1840_v40, %v1839_v18  ;;  %v1848_v49 = vadd.f32 %v1847_v59, %v1846_v50  ;;  %v1978_v48 = vrot.slane %v1977_v61, 1  ;;  %v1985_v31 = vrot.slane %v1984_v45, 1 }
 0x21e   : > { %v1889_v12 = vadd.f32 %v1888_v25, %v1887_v19  ;;  %v1896_v5 = vadd.f32 %v1895_v17, %v1894_v35  ;;  %v2009_v38 = vmul.f32 %v2007_v57, %v2000_v47  ;;  %v2010_v63 = vmul.f32 %v2007_v57, %v2001_v51 }
 0x21f   : > { %v1874_v15 = vadd.f32 %v1866_v7, %v1786_v34  ;;  %v1875_v23 = vadd.f32 %v1873_v41, %v1787_v24  ;;  %v1925_v9 = vadd.f32 %v1924_v58, %v1923_v2  ;;  %v1932_v30 = vadd.f32 %v1931_v46, %v1930_v11  ;;  %v2078_v34 = vpop.permute.xlu2 %2077  ;;  %v2084_v2 = vld.sshfl [vmem:[#allocation1] sm:$0xff pattern:$0x75316420]  ;;  %v2085_v58 = vld.sshfl [vmem:[#allocation1 + $0x8] sm:$0xff pattern:$0x75316420] }
 0x220   : > { %v1952_v1 = vadd.f32 %v1951_v6, %v1950_v3  ;;  %v1959_v10 = vadd.f32 %v1958_v42, %v1957_v22  ;;  %v2011_v39 = vsel %vm353_vm2, %v2009_v38, 0.0  ;;  %v2018_v13 = vsel %vm353_vm2, %v2010_v63, 0.0 }
 0x221   : > { %v7256_v18 = vadd.f32 %v1978_v48, %v1977_v61  ;;  %v7258_v50 = vadd.f32 %v1985_v31, %v1984_v45  ;;  %v2012_v55 = vrot.slane %v2011_v39, 4  ;;  %v2019_v56 = vrot.slane %v2018_v13, 4 }
 0x222   : > { %v1890_v8 = vrot.slane %v1889_v12, 1  ;;  %v1897_v54 = vrot.slane %v1896_v5, 1  ;;  %v2059_v29 = vmul.f32 %v2057_v0, %v2000_v47  ;;  %v2060_v19 = vmul.f32 %v2057_v0, %v2001_v51 }
 0x223   : > { %v1926_v35 = vrot.slane %v1925_v9, 2  ;;  %v1933_v43 = vrot.slane %v1932_v30, 2  ;;  %v2034_v53 = vmul.f32 %v2032_v27, %v2000_v47  ;;  %v2035_v21 = vmul.f32 %v2032_v27, %v2001_v51 }
 0x224   : > { %v1953_v24 = vrot.slane %v1952_v1, 1  ;;  %v1960_v4 = vrot.slane %v1959_v10, 1  ;;  %v1761_v44 = vadd.f32 %v7123_v62, %v7211_v20  ;;  %v1762_v3 = vadd.f32 %v7125_v60, %v7213_v16  ;;  %v2080_v60 = vpop.permute.xlu0 %2079 }
 0x225   : > { %v2013_v22 = vadd.f32 %v2012_v55, %v2011_v39  ;;  %v2020_v40 = vadd.f32 %v2019_v56, %v2018_v13  ;;  %v2061_v59 = vsel %vm353_vm2, %v2059_v29, 0.0  ;;  %v2068_v14 = vsel %vm353_vm2, %v2060_v19, 0.0 }
 0x226   : > { %v7266_v52 = vadd.f32 %v1841_v26, %v1761_v44  ;;  %v7268_v61 = vadd.f32 %v1848_v49, %v1762_v3  ;;  %v2036_v45 = vsel %vm353_vm2, %v2034_v53, 0.0  ;;  %v2043_v25 = vsel %vm353_vm2, %v2035_v21, 0.0 }
 0x227   : > { %v1891_v17 = vadd.f32 %v1890_v8, %v1889_v12  ;;  %v1898_v57 = vadd.f32 %v1897_v54, %v1896_v5  ;;  %v1927_v62 = vadd.f32 %v1926_v35, %v1925_v9  ;;  %v1934_v20 = vadd.f32 %v1933_v43, %v1932_v30  ;;  %v2120_v39 = vpop.permute.xlu2 %2119 }
 0x228   : > { %v2062_v16 = vrot.slane %v2061_v59, 4  ;;  %v2069_v11 = vrot.slane %v2068_v14, 4  ;;  %v2037_v28 = vrot.slane %v2036_v45, 4  ;;  %v2044_v33 = vrot.slane %v2043_v25, 4 }
 0x229   : > { %v1954_v7 = vadd.f32 %v1953_v24, %v1952_v1  ;;  %v1961_v41 = vadd.f32 %v1960_v4, %v1959_v10  ;;  %v2014_v6 = vrot.slane %v2013_v22, 2  ;;  %v2021_v42 = vrot.slane %v2020_v40, 2  ;;  %v2095_v10 = vpop.permute.xlu1 %2094 }
 0x22a   : > { %v2038_v46 = vadd.f32 %v2037_v28, %v2036_v45  ;;  %v2045_v47 = vadd.f32 %v2044_v33, %v2043_v25  ;;  %v2081_v51 = vsel %vm1251_vm9, %v2078_v34, %v2080_v60  ;;  %v2082_v26 = vsel %vm1251_vm9, %v2080_v60, %v2078_v34 }
 0x22b   : > { %v7277_v49 = vadd.f32 %v1891_v17, %v7238_v32  ;;  %v7280_v48 = vadd.f32 %v1898_v57, %v7240_v36  ;;  %v1928_v31 = vrot.slane %v1927_v62, 1  ;;  %v1935_v27 = vrot.slane %v1934_v20, 1 }
 0x22c   : > { %v2063_v12 = vadd.f32 %v2062_v16, %v2061_v59  ;;  %v2070_v5 = vadd.f32 %v2069_v11, %v2068_v14  ;;  %v2088_v38 = vmul.f32 %v2084_v2, %v2081_v51  ;;  %v2089_v63 = vmul.f32 %v2085_v58, %v2082_v26  ;;  %v2145_v24 = vpop.permute.xlu0 %2144 }
 0x22d   : > { %v7282_v9 = vadd.f32 %v1954_v7, %v1874_v15  ;;  %v7284_v30 = vadd.f32 %v1961_v41, %v1875_v23  ;;  %v2015_v0 = vadd.f32 %v2014_v6, %v2013_v22  ;;  %v2022_v1 = vadd.f32 %v2021_v42, %v2020_v40 }
 0x22e   : > { %v2039_v13 = vrot.slane %v2038_v46, 2  ;;  %v2046_v32 = vrot.slane %v2045_v47, 2  ;;  %v2097_v55 = vmul.f32 %v2095_v10, %v2088_v38  ;;  %v2098_v56 = vmul.f32 %v2095_v10, %v2089_v63 }
 0x22f   : > { %v1929_v36 = vadd.f32 %v1928_v31, %v1927_v62  ;;  %v1936_v8 = vadd.f32 %v1935_v27, %v1934_v20  ;;  %v2122_v54 = vmul.f32 %v2120_v39, %v2088_v38  ;;  %v2123_v29 = vmul.f32 %v2120_v39, %v2089_v63 }
 0x230   : > { %v2064_v19 = vrot.slane %v2063_v12, 2  ;;  %v2071_v35 = vrot.slane %v2070_v5, 2  ;;  %v2099_v43 = vsel %vm353_vm2, %v2097_v55, 0.0  ;;  %v2106_v15 = vsel %vm353_vm2, %v2098_v56, 0.0 }
 0x231   : > { %v2016_v23 = vrot.slane %v2015_v0, 1  ;;  %v2023_v53 = vrot.slane %v2022_v1, 1  ;;  %v2100_v21 = vrot.slane %v2099_v43, 4  ;;  %v2107_v34 = vrot.slane %v2106_v15, 4 }
 0x232   : > { %v2040_v4 = vadd.f32 %v2039_v13, %v2038_v46  ;;  %v2047_v44 = vadd.f32 %v2046_v32, %v2045_v47  ;;  %v2124_v3 = vsel %vm353_vm2, %v2122_v54, 0.0  ;;  %v2131_v22 = vsel %vm353_vm2, %v2123_v29, 0.0 }
 0x233   : > { %v2101_v40 = vadd.f32 %v2100_v21, %v2099_v43  ;;  %v2108_v59 = vadd.f32 %v2107_v34, %v2106_v15  ;;  %v2125_v14 = vrot.slane %v2124_v3, 4  ;;  %v2132_v45 = vrot.slane %v2131_v22, 4 }
 0x234   : > { %v2065_v25 = vadd.f32 %v2064_v19, %v2063_v12  ;;  %v2072_v17 = vadd.f32 %v2071_v35, %v2070_v5  ;;  %v2147_v57 = vmul.f32 %v2145_v24, %v2088_v38  ;;  %v2148_v62 = vmul.f32 %v2145_v24, %v2089_v63 }
 0x235   : > { %v2102_v20 = vrot.slane %v2101_v40, 2  ;;  %v2109_v2 = vrot.slane %v2108_v59, 2  ;;  %v2126_v60 = vadd.f32 %v2125_v14, %v2124_v3  ;;  %v2133_v16 = vadd.f32 %v2132_v45, %v2131_v22 }
 0x236   : > { %v2041_v11 = vrot.slane %v2040_v4, 1  ;;  %v2048_v28 = vrot.slane %v2047_v44, 1  ;;  %v2149_v33 = vsel %vm353_vm2, %v2147_v57, 0.0  ;;  %v2156_v7 = vsel %vm353_vm2, %v2148_v62, 0.0 }
 0x237   : > { %v2103_v41 = vadd.f32 %v2102_v20, %v2101_v40  ;;  %v2110_v6 = vadd.f32 %v2109_v2, %v2108_v59  ;;  %v2127_v42 = vrot.slane %v2126_v60, 2  ;;  %v2134_v58 = vrot.slane %v2133_v16, 2  ;;  %v9802_v20 = vld [vmem:[#allocation5_spill] sm:$0xff] }
 0x238   : > { %v2017_v46 = vadd.f32 %v2016_v23, %v2015_v0  ;;  %v2024_v47 = vadd.f32 %v2023_v53, %v2022_v1  ;;  %v2150_v51 = vrot.slane %v2149_v33, 4  ;;  %v2157_v26 = vrot.slane %v2156_v7, 4 }
 0x239   : > { %v2104_v31 = vrot.slane %v2103_v41, 1  ;;  %v2111_v27 = vrot.slane %v2110_v6, 1  ;;  %v2128_v12 = vadd.f32 %v2127_v42, %v2126_v60  ;;  %v2135_v5 = vadd.f32 %v2134_v58, %v2133_v16  ;;  %v9803_v60 = vld [vmem:[#allocation6_spill] sm:$0xff]  ;;  %v5909_v42 = vld [vmem:[%s9702_s2 + $0x64] sm:$0xf] }
 0x23a   : > { %v2066_v38 = vrot.slane %v2065_v25, 1  ;;  %v2073_v63 = vrot.slane %v2072_v17, 1  ;;  %v2151_v10 = vadd.f32 %v2150_v51, %v2149_v33  ;;  %v2158_v39 = vadd.f32 %v2157_v26, %v2156_v7  ;;  %v7339_v33 = vpop.permute.xlu0 %2195  ;;  %v5904_v7 = vld [vmem:[%s9702_s2 + $0x60] sm:$0xf]  ;;  %v5898_v58 = vld [vmem:[%s9702_s2 + $0x38] sm:$0xf] }
 0x23b   : > { %v2042_v13 = vadd.f32 %v2041_v11, %v2040_v4  ;;  %v2049_v32 = vadd.f32 %v2048_v28, %v2047_v44  ;;  %v2129_v55 = vrot.slane %v2128_v12, 1  ;;  %v2136_v56 = vrot.slane %v2135_v5, 1  ;;  %v5899_v28 = vld [vmem:[%s9702_s2 + $0x5c] sm:$0xf]  ;;  %v5900_v51 = vld [vmem:[%s9702_s2 + $0x80] sm:$0xf] }
 0x23c   : > { %v1937_v54 = vadd.f32 %v1929_v36, %v7266_v52  ;;  %v1938_v29 = vadd.f32 %v1936_v8, %v7268_v61  ;;  %v2152_v0 = vrot.slane %v2151_v10, 2  ;;  %v2159_v1 = vrot.slane %v2158_v39, 2 }
 0x23d   : > { %v2105_v19 = vadd.f32 %v2104_v31, %v2103_v41  ;;  %v2112_v35 = vadd.f32 %v2111_v27, %v2110_v6  ;;  %v2130_v43 = vadd.f32 %v2129_v55, %v2128_v12  ;;  %v2137_v15 = vadd.f32 %v2136_v56, %v2135_v5  ;;  %v5895_v6 = vld [vmem:[%s9702_s2 + $0x7c] sm:$0xf]  ;;  %v5914_v31 = vld [vmem:[%s9702_s2 + $0x68] sm:$0xf]  ;;  %v7383_v12 = vpop.permute.xlu2 %2243  ;;  %v5902_v5 = vld [vmem:[%s9702_s2 + $0x18] sm:$0xf] }
 0x23e   : > { %v2067_v23 = vadd.f32 %v2066_v38, %v2065_v25  ;;  %v2074_v53 = vadd.f32 %v2073_v63, %v2072_v17  ;;  %v2153_v21 = vadd.f32 %v2152_v0, %v2151_v10  ;;  %v2160_v34 = vadd.f32 %v2159_v1, %v2158_v39  ;;  %v5903_v27 = vld [vmem:[%s9702_s2 + $0x3c] sm:$0xf]  ;;  %v7388_v38 = vpop.permute.xlu1 %2219  ;;  %v5916_v10 = vld [vmem:[%s9703_s3 + $0x24] sm:$0xf]  ;;  %v5920_v55 = vld [vmem:[%s9703_s3 + $0x4c] sm:$0xf] }
 0x23f   : > { %v2025_v24 = vadd.f32 %v2017_v46, %v1937_v54  ;;  %v2026_v4 = vadd.f32 %v2024_v47, %v1938_v29  ;;  %v2050_v44 = vadd.f32 %v2042_v13, %v7282_v9  ;;  %v2051_v3 = vadd.f32 %v2049_v32, %v7284_v30  ;;  %v5897_v46 = vld [vmem:[%s9702_s2 + $0x14] sm:$0xf]  ;;  %v5905_v39 = vld [vmem:[%s9702_s2 + $0x84] sm:$0xf]  ;;  %v5908_v56 = vld [vmem:[%s9702_s2 + $0x40] sm:$0xf] }
 0x240   : > { %v1987_v52 = vadd.f32 %v7256_v18, %v7277_v49  ;;  %v1988_v61 = vadd.f32 %v7258_v50, %v7280_v48  ;;  %v2154_v36 = vrot.slane %v2153_v21, 1  ;;  %v2161_v8 = vrot.slane %v2160_v34, 1  ;;  %v5907_v29 = vld [vmem:[%s9702_s2 + $0x1c] sm:$0xf]  ;;  %v7418_v0 = vld [vmem:[%s9704_s4] sm:$0xff] }
 0x241   : > { %v2113_v22 = vadd.f32 %v2105_v19, %v2025_v24  ;;  %v2114_v40 = vadd.f32 %v2112_v35, %v2026_v4  ;;  %v2138_v59 = vadd.f32 %v2130_v43, %v2050_v44  ;;  %v2139_v14 = vadd.f32 %v2137_v15, %v2051_v3  ;;  %9805 = vst [vmem:[#allocation10_spill] sm:$0xff] %v7418_v0  ;;  %v5921_v19 = vld [vmem:[%s9703_s3 + $0x8] sm:$0xf]  ;;  %v5925_v24 = vld [vmem:[%s9703_s3 + $0x30] sm:$0xf] }
 0x242   : > { %v2075_v45 = vadd.f32 %v2067_v23, %v1987_v52  ;;  %v2076_v25 = vadd.f32 %v2074_v53, %v1988_v61  ;;  %v2155_v17 = vadd.f32 %v2154_v36, %v2153_v21  ;;  %v2162_v57 = vadd.f32 %v2161_v8, %v2160_v34  ;;  %v7348_v41 = vpop.permute.xlu0 %2267  ;;  %2185 = vst [vmem:[#allocation1] ss:$2 sm:$0xff] %v7418_v0  ;;  %v5910_v35 = vld [vmem:[%s9702_s2 + $0x88] sm:$0xf]  ;;  %v5913_v4 = vld [vmem:[%s9702_s2 + $0x44] sm:$0xf] }
 0x243   : > { %v2165_v30 = vsel %vm1364_vm10, %v2113_v22, %v2138_v59  ;;  %v2166_v18 = vsel %vm1364_vm10, %v2114_v40, %v2139_v14  ;;  %v7439_v23 = vld [vmem:[%s9704_s4 + $0x8] sm:$0xff]  ;;  %v5912_v44 = vld [vmem:[%s9702_s2 + $0x20] sm:$0xf]  ;;  %v7460_v3 = vld [vmem:[%s9704_s4 + $0x10] sm:$0xff]  ;;  %v3169_v61 = vstv %s3168_s22 }
 0x244   : > { %v2163_v9 = vadd.f32 %v2155_v17, %v2075_v45  ;;  %v2164_v62 = vadd.f32 %v2162_v57, %v2076_v25  ;;  %9806 = vst [vmem:[#allocation12_spill] sm:$0xff] %v7439_v23  ;;  %v6047_v40 = vld [vmem:[%s9701_s1] sm:$0xf]  ;;  %v5928_v14 = vld [vmem:[%s9703_s3 + $0x34] sm:$0xf]  ;;  %v7483_v17 = vld [vmem:[%s9704_s4 + $0x18] sm:$0xff] }
 0x245   : > { %v7398_v13 = vpop.permute.xlu2 %2354  ;;  %9807 = vst [vmem:[#allocation13_spill] sm:$0xff] %v7460_v3  ;;  %v3170_v59 = vmul.f32 %v6047_v40, %v3169_v61  ;;  %v5915_v25 = vld [vmem:[%s9702_s2 + $0x8c] sm:$0xf] }
 0x246   : > { %v2167_v49 = vsel %vm1367_vm11, %v2165_v30, %v2163_v9  ;;  %v2168_v50 = vsel %vm1367_vm11, %v2166_v18, %v2164_v62  ;;  %v7402_v32 = vpop.permute.xlu1 %2330  ;;  %9808 = vst [vmem:[#allocation14_spill] sm:$0xff] %v7483_v17 }
 0x247   : > { %v2171_v48 = vrot.slane %v2168_v50, 4  ;;  %v7307_v2 = vsel %vm324_vm0, %v2167_v49, %v9802_v20  ;;  %v7311_v16 = vsel %vm324_vm0, %v2168_v50, %v9803_v60  ;;  %v5932_v50 = vld [vmem:[%s9703_s3 + $0x5c] sm:$0xf]  ;;  %v5924_v60 = vld [vmem:[%s9703_s3 + $0xc] sm:$0xf] }
 0x248   : > { %9804 = vst [vmem:[#allocation9_spill] sm:$0xff] %v7311_v16  ;;  %2719 = vrot.lane.b32.xlu0 %v7311_v16, %s6082_s21  ;;  %2179 = vrot.lane.b32.xlu2 %v7311_v16, %s6078_s30 }
 0x249   : > { %v2172_v11 = vsel %vm353_vm2, %v2167_v49, %v2171_v48  ;;  %2177 = vrot.lane.b32.xlu1 %v7307_v2, %s6078_s30  ;;  %v7441_v53 = vld.sshfl [vmem:[#allocation1] sm:$0xff pattern:$0x75316420]  ;;  %v7443_v21 = vld.sshfl [vmem:[#allocation1 + $0x8] sm:$0xff pattern:$0x75316420] }
 0x24a   : > { %2174 = vst [vmem:[%s7316_s16] sm:$0x77] %v2172_v11  ;;  %v7366_v47 = vpop.permute.xlu0 %2306  ;;  %v3195_v48 = vld [vmem:[%s9703_s3] sm:$0xf] }
 0x24b   : > { %2296 = vst [vmem:[#allocation1] ss:$2 sm:$0xff] %v7439_v23 }
 0x24d   : > { %v7421_v1 = vpop.permute.xlu2 %2465 }
 0x24e   : > { %v7430_v43 = vpop.permute.xlu1 %2441 }
 0x250   : > { %2783 = vperm.xlu0 %6046, %v5899_v28   ;;  %2290 = vrot.lane.b32.xlu2 %v7311_v16, %s6079_s8 }
 0x251   : > { %2288 = vrot.lane.b32.xlu1 %v7307_v2, %s6079_s8 }
 0x252   : > { %v7375_v26 = vpop.permute.xlu0 %2378  ;;  %v7464_v36 = vld.sshfl [vmem:[#allocation1] sm:$0xff pattern:$0x75316420]  ;;  %v7466_v8 = vld.sshfl [vmem:[#allocation1 + $0x8] sm:$0xff pattern:$0x75316420] }
 0x253   : > { %2407 = vst [vmem:[#allocation1] ss:$2 sm:$0xff] %v7460_v3 }
 0x255   : > { %v7446_v34 = vpop.permute.xlu2 %2576 }
 0x256   : > { %v7462_v52 = vpop.permute.xlu1 %2552 }
 0x258   : > { %2830 = vrot.lane.b32.xlu0 %v7311_v16, %s6083_s12  ;;  %2401 = vrot.lane.b32.xlu2 %v7311_v16, %s6080_s18 }
 0x259   : > { %2399 = vrot.lane.b32.xlu1 %v7307_v2, %s6080_s18 }
 0x25a   : > { %v7390_v63 = vpop.permute.xlu0 %2417  ;;  %v7485_v57 = vld.sshfl [vmem:[#allocation1] sm:$0xff pattern:$0x75316420]  ;;  %v7487_v9 = vld.sshfl [vmem:[#allocation1 + $0x8] sm:$0xff pattern:$0x75316420] }
 0x25b   : > { %2518 = vst [vmem:[#allocation1] ss:$2 sm:$0xff] %v7483_v17 }
 0x25d   : > { %v2649_v45 = vpop.permute.xlu2 %2648 }
 0x25e   : > { %v2651_v62 = vmul.f32 %v2649_v45, %v7307_v2  ;;  %v2652_v30 = vmul.f32 %v2649_v45, %v7311_v16  ;;  %v2625_v18 = vpop.permute.xlu1 %2624  ;;  %v5918_v45 = vld [vmem:[%s9703_s3 + $0x4] sm:$0xf] }
 0x25f   : > { %v2627_v11 = vmul.f32 %v2625_v18, %v7307_v2  ;;  %v2628_v28 = vmul.f32 %v2625_v18, %v7311_v16 }
 0x260   : > { %2894 = vperm.xlu0 %6046, %v5904_v7   ;;  %2512 = vrot.lane.b32.xlu2 %v7311_v16, %s6081_s13 }
 0x261   : > { %2510 = vrot.lane.b32.xlu1 %v7307_v2, %s6081_s13 }
 0x262   : > { %v7410_v54 = vpop.permute.xlu0 %2489 }
 0x268   : > { %2941 = vrot.lane.b32.xlu0 %v7311_v16, %s6084_s26  ;;  %2717 = vrot.lane.b32.xlu2 %v7307_v2, %s6082_s21 }
 0x269   : > { %2696 = vperm.xlu1 %6044, %v5895_v6   ;;  %v5917_v6 = vld [vmem:[%s9703_s3 + $0x48] sm:$0xf] }
 0x26a   : > { %v7432_v15 = vpop.permute.xlu0 %2528 }
 0x270   : > { %3005 = vperm.xlu0 %6046, %v5909_v42   ;;  %2759 = vperm.xlu2 %6045, %v5898_v58   ;;  %v2653_v42 = vsel %vm353_vm2, %v2651_v62, 0.0  ;;  %v2660_v58 = vsel %vm353_vm2, %v2652_v30, 0.0 }
 0x271   : > { %2735 = vperm.xlu1 %6044, %v5897_v46  }
 0x272   : > { %v7468_v22 = vpop.permute.xlu0 %2600 }
 0x278   : > { %3052 = vrot.lane.b32.xlu0 %v7311_v16, %s6085_s19  ;;  %2828 = vrot.lane.b32.xlu2 %v7307_v2, %s6083_s12 }
 0x279   : > { %2807 = vperm.xlu1 %6044, %v5900_v51  }
 0x27a   : > { %v2673_v49 = vpop.permute.xlu0 %2672 }
 0x27b   : > { %v2675_v46 = vmul.f32 %v2673_v49, %v7307_v2  ;;  %v2676_v51 = vmul.f32 %v2673_v49, %v7311_v16 }
 0x280   : > { %3116 = vperm.xlu0 %6046, %v5914_v31   ;;  %2870 = vperm.xlu2 %6045, %v5903_v27   ;;  %v7510_v31 = vld [vmem:[%s9704_s4 + $0x28] sm:$0xff]  ;;  %v7512_v27 = vld.sshfl [vmem:[#allocation1] sm:$0xff pattern:$0x75316420] }
 0x281   : > { %2846 = vperm.xlu1 %6044, %v5902_v5   ;;  %9809 = vst [vmem:[#allocation15_spill] sm:$0xff] %v7510_v31  ;;  %v7514_v5 = vld.sshfl [vmem:[#allocation1 + $0x8] sm:$0xff pattern:$0x75316420] }
 0x282   : > { %2725 = vst [vmem:[#allocation1] ss:$2 sm:$0xff] %v7510_v31 }
 0x288   : > { %3222 = vperm.xlu0 %6046, %v5916_v10   ;;  %2939 = vrot.lane.b32.xlu2 %v7307_v2, %s6084_s26  ;;  %v2654_v10 = vrot.slane %v2653_v42, 4 }
 0x289   : > { %2918 = vperm.xlu1 %6044, %v5905_v39   ;;  %v2661_v39 = vrot.slane %v2660_v58, 4 }
 0x28a   : > { %v2655_v61 = vadd.f32 %v2654_v10, %v2653_v42  ;;  %v5923_v10 = vld [vmem:[%s9703_s3 + $0x50] sm:$0xf] }
 0x28b   : > { %v2662_v40 = vadd.f32 %v2661_v39, %v2660_v58 }
 0x28c   : > { %v2656_v18 = vrot.slane %v2655_v61, 2 }
 0x28d   : > { %v2663_v49 = vrot.slane %v2662_v40, 2 }
 0x28e   : > { %v7541_v39 = vadd.f32 %v2656_v18, %v2655_v61 }
 0x290   : > { %3331 = vperm.xlu0 %6046, %v5920_v55   ;;  %2981 = vperm.xlu2 %6045, %v5908_v56   ;;  %v2629_v55 = vsel %vm353_vm2, %v2627_v11, 0.0  ;;  %v2636_v56 = vsel %vm353_vm2, %v2628_v28, 0.0 }
 0x291   : > { %2957 = vperm.xlu1 %6044, %v5907_v29   ;;  %v2677_v29 = vsel %vm353_vm2, %v2675_v46, 0.0 }
 0x298   : > { %3368 = vperm.xlu0 %6046, %v5921_v19   ;;  %3050 = vrot.lane.b32.xlu2 %v7307_v2, %s6085_s19  ;;  %v2684_v19 = vsel %vm353_vm2, %v2676_v51, 0.0 }
 0x299   : > { %3029 = vperm.xlu1 %6044, %v5910_v35   ;;  %v2630_v35 = vrot.slane %v2629_v55, 4 }
 0x29b   : > { %v2631_v62 = vadd.f32 %v2630_v35, %v2629_v55  ;;  %v7543_v55 = vadd.f32 %v2663_v49, %v2662_v40 }
 0x29d   : > { %v2632_v42 = vrot.slane %v2631_v62, 2 }
 0x29f   : > { %v2633_v20 = vadd.f32 %v2632_v42, %v2631_v62 }
 0x2a0   : > { %3477 = vperm.xlu0 %6046, %v5925_v24   ;;  %3092 = vperm.xlu2 %6045, %v5913_v4   ;;  %v2637_v24 = vrot.slane %v2636_v56, 4  ;;  %v5933_v4 = vld [vmem:[%s9703_s3 + $0x18] sm:$0xf] }
 0x2a1   : > { %3068 = vperm.xlu1 %6044, %v5912_v44   ;;  %v5919_v44 = vld [vmem:[%s9703_s3 + $0x28] sm:$0xf] }
 0x2a2   : > { %v2180_v7 = vpop.permute.xlu2 %2179  ;;  %v2638_v30 = vadd.f32 %v2637_v24, %v2636_v56 }
 0x2a4   : > { %v2639_v58 = vrot.slane %v2638_v30, 2 }
 0x2a8   : > { %3549 = vperm.xlu0 %6046, %v5928_v14   ;;  %3173 = vperm.xlu2 %6045, %v3170_v59   ;;  %v2678_v59 = vrot.slane %v2677_v29, 4  ;;  %v2685_v14 = vrot.slane %v2684_v19, 4 }
 0x2a9   : > { %3140 = vperm.xlu1 %6044, %v5915_v25  }
 0x2aa   : > { %v7530_v25 = vpop.permute.xlu2 %2290 }
 0x2b0   : > { %3658 = vperm.xlu0 %6046, %v5932_v50   ;;  %3198 = vperm.xlu2 %6045, %v3195_v48   ;;  %v2679_v50 = vadd.f32 %v2678_v59, %v2677_v29  ;;  %v2686_v48 = vadd.f32 %v2685_v14, %v2684_v19 }
 0x2b1   : > { %3246 = vperm.xlu1 %6044, %v5917_v6  }
 0x2b2   : > { %v2680_v56 = vrot.slane %v2679_v50, 2  ;;  %v2687_v29 = vrot.slane %v2686_v48, 2 }
 0x2b8   : > { %3695 = vperm.xlu0 %6046, %v5933_v4   ;;  %3307 = vperm.xlu2 %6045, %v5919_v44  }
 0x2b9   : > { %3283 = vperm.xlu1 %6044, %v5918_v45   ;;  %v7560_v45 = vpop.permute.xlu2 %2401 }
 0x2bb   : > { %v2178_v11 = vpop.permute.xlu1 %2177 }
 0x2bc   : > { %v2181_v28 = vsel %vm333_vm1, %v2178_v11, %v2180_v7  ;;  %v2182_v6 = vsel %vm333_vm1, %v2180_v7, %v2178_v11  ;;  %v5922_v7 = vld [vmem:[%s9703_s3 + $0x2c] sm:$0xf] }
 0x2bd   : > { %v2190_v46 = vmul.f32 %v7441_v53, %v2182_v6  ;;  %v2191_v51 = vmul.f32 %v7443_v21, %v2181_v28 }
 0x2bf   : > { %v2198_v19 = vmul.f32 %v7339_v33, %v2190_v46  ;;  %v2199_v53 = vmul.f32 %v7339_v33, %v2191_v51  ;;  %v2222_v21 = vmul.f32 %v7388_v38, %v2190_v46  ;;  %v2223_v35 = vmul.f32 %v7388_v38, %v2191_v51 }
 0x2c0   : > { %v2246_v24 = vmul.f32 %v7383_v12, %v2190_v46  ;;  %v2247_v4 = vmul.f32 %v7383_v12, %v2191_v51  ;;  %v2270_v44 = vmul.f32 %v7348_v41, %v2190_v46  ;;  %v2271_v61 = vmul.f32 %v7348_v41, %v2191_v51  ;;  %3416 = vperm.xlu2 %6045, %v5923_v10  }
 0x2c1   : > { %v2200_v40 = vsel %vm353_vm2, %v2198_v19, 0.0  ;;  %v2207_v59 = vsel %vm353_vm2, %v2199_v53, 0.0  ;;  %v2224_v14 = vsel %vm353_vm2, %v2222_v21, 0.0  ;;  %v2231_v33 = vsel %vm353_vm2, %v2223_v35, 0.0  ;;  %3392 = vperm.xlu1 %6044, %v5922_v7  }
 0x2c2   : > { %v2201_v38 = vrot.slane %v2200_v40, 4  ;;  %v2208_v18 = vrot.slane %v2207_v59, 4  ;;  %v2225_v49 = vrot.slane %v2224_v14, 4  ;;  %v2232_v12 = vrot.slane %v2231_v33, 4 }
 0x2c3   : > { %v2248_v11 = vsel %vm353_vm2, %v2246_v24, 0.0  ;;  %v2255_v41 = vsel %vm353_vm2, %v2247_v4, 0.0  ;;  %v2272_v28 = vsel %vm353_vm2, %v2270_v44, 0.0  ;;  %v2279_v6 = vsel %vm353_vm2, %v2271_v61, 0.0  ;;  %v5926_v44 = vld [vmem:[%s9703_s3 + $0x54] sm:$0xf] }
 0x2c4   : > { %v2202_v46 = vadd.f32 %v2201_v38, %v2200_v40  ;;  %v2209_v51 = vadd.f32 %v2208_v18, %v2207_v59  ;;  %v2226_v10 = vadd.f32 %v2225_v49, %v2224_v14  ;;  %v2233_v19 = vadd.f32 %v2232_v12, %v2231_v33 }
 0x2c5   : > { %v2249_v53 = vrot.slane %v2248_v11, 4  ;;  %v2256_v7 = vrot.slane %v2255_v41, 4  ;;  %v2273_v21 = vrot.slane %v2272_v28, 4  ;;  %v2280_v35 = vrot.slane %v2279_v6, 4 }
 0x2c6   : > { %v2640_v24 = vadd.f32 %v2639_v58, %v2638_v30  ;;  %v2203_v31 = vrot.slane %v2202_v46, 2  ;;  %v2210_v4 = vrot.slane %v2209_v51, 2  ;;  %v2681_v61 = vadd.f32 %v2680_v56, %v2679_v50  ;;  %v2289_v56 = vpop.permute.xlu1 %2288 }
 0x2c7   : > { %v2688_v40 = vadd.f32 %v2687_v29, %v2686_v48  ;;  %v2227_v59 = vrot.slane %v2226_v10, 2  ;;  %v2234_v14 = vrot.slane %v2233_v19, 2  ;;  %v2658_v33 = vrot.slane %v7541_v39, 1 }
 0x2c8   : > { %v2665_v38 = vrot.slane %v7543_v55, 1  ;;  %v2250_v18 = vadd.f32 %v2249_v53, %v2248_v11  ;;  %v2257_v49 = vadd.f32 %v2256_v7, %v2255_v41  ;;  %3453 = vperm.xlu2 %6045, %v5924_v60   ;;  %v2204_v12 = vadd.f32 %v2203_v31, %v2202_v46  ;;  %v7584_v60 = vpop.permute.xlu2 %2512 }
 0x2c9   : > { %v2211_v62 = vadd.f32 %v2210_v4, %v2209_v51  ;;  %v2274_v30 = vadd.f32 %v2273_v21, %v2272_v28  ;;  %v2281_v42 = vadd.f32 %v2280_v35, %v2279_v6  ;;  %3501 = vperm.xlu1 %6044, %v5926_v44   ;;  %v2634_v58 = vrot.slane %v2633_v20, 1 }
 0x2ca   : > { %v2641_v17 = vrot.slane %v2640_v24, 1  ;;  %v2682_v3 = vrot.slane %v2681_v61, 1  ;;  %v2689_v23 = vrot.slane %v2688_v40, 1  ;;  %v7574_v50 = vadd.f32 %v2227_v59, %v2226_v10 }
 0x2cb   : > { %v7576_v48 = vadd.f32 %v2234_v14, %v2233_v19  ;;  %v7579_v29 = vadd.f32 %v2658_v33, %v7541_v39  ;;  %v7582_v11 = vadd.f32 %v2665_v38, %v7543_v55  ;;  %v2251_v31 = vrot.slane %v2250_v18, 2 }
 0x2cc   : > { %v2258_v41 = vrot.slane %v2257_v49, 2  ;;  %v2205_v28 = vrot.slane %v2204_v12, 1  ;;  %v2212_v6 = vrot.slane %v2211_v62, 1  ;;  %v2275_v46 = vrot.slane %v2274_v30, 2 }
 0x2cd   : > { %v2282_v51 = vrot.slane %v2281_v42, 2  ;;  %v7586_v53 = vadd.f32 %v2634_v58, %v2633_v20  ;;  %v7588_v10 = vadd.f32 %v2641_v17, %v2640_v24  ;;  %v2292_v39 = vsel %vm449_vm3, %v2289_v56, %v7530_v25  ;;  %v2726_v20 = vld.sshfl [vmem:[#allocation1] sm:$0xff pattern:$0x75316420] }
 0x2ce   : > { %v2293_v55 = vsel %vm449_vm3, %v7530_v25, %v2289_v56  ;;  %v7596_v19 = vadd.f32 %v2682_v3, %v2681_v61  ;;  %v7598_v7 = vadd.f32 %v2689_v23, %v2688_v40  ;;  %v2229_v21 = vrot.slane %v7574_v50, 1  ;;  %v2727_v24 = vld.sshfl [vmem:[#allocation1 + $0x8] sm:$0xff pattern:$0x75316420]  ;;  %v7611_v3 = vld [vmem:[%s9704_s4 + $0x30] sm:$0xff] }
 0x2cf   : > { %9810 = vst [vmem:[#allocation16_spill] sm:$0xff] %v7586_v53  ;;  %v2236_v35 = vrot.slane %v7576_v48, 1  ;;  %v7602_v4 = vadd.f32 %v2251_v31, %v2250_v18  ;;  %v7604_v17 = vadd.f32 %v2258_v41, %v2257_v49  ;;  %v2301_v44 = vmul.f32 %v7464_v36, %v2293_v55  ;;  %v2720_v41 = vpop.permute.xlu0 %2719 }
 0x2d0   : > { %9811 = vst [vmem:[#allocation17_spill] sm:$0xff] %v7588_v10  ;;  %v2302_v59 = vmul.f32 %v7466_v8, %v2292_v39  ;;  %v7613_v23 = vadd.f32 %v2205_v28, %v2204_v12  ;;  %v7615_v25 = vadd.f32 %v2212_v6, %v2211_v62  ;;  %v7617_v61 = vadd.f32 %v2275_v46, %v2274_v30  ;;  %v2718_v28 = vpop.permute.xlu2 %2717 }
 0x2d1   : > { %9812 = vst [vmem:[#allocation20_spill] sm:$0xff] %v7611_v3  ;;  %v7619_v40 = vadd.f32 %v2282_v51, %v2281_v42  ;;  %v2309_v14 = vmul.f32 %v7366_v47, %v2301_v44  ;;  %v2333_v8 = vmul.f32 %v7402_v32, %v2301_v44  ;;  %v2357_v38 = vmul.f32 %v7398_v13, %v2301_v44 }
 0x2d2   : > { %9813 = vst [vmem:[#allocation21_spill] sm:$0xff] %v7613_v23  ;;  %v2310_v36 = vmul.f32 %v7366_v47, %v2302_v59  ;;  %v2334_v33 = vmul.f32 %v7402_v32, %v2302_v59  ;;  %v2358_v18 = vmul.f32 %v7398_v13, %v2302_v59  ;;  %v2381_v49 = vmul.f32 %v7375_v26, %v2301_v44  ;;  %v5927_v32 = vld [vmem:[%s9703_s3 + $0x10] sm:$0xf] }
 0x2d3   : > { %9814 = vst [vmem:[#allocation18_spill] sm:$0xff] %v7615_v25  ;;  %v2382_v12 = vmul.f32 %v7375_v26, %v2302_v59  ;;  %v2311_v62 = vsel %vm353_vm2, %v2309_v14, 0.0  ;;  %v2335_v42 = vsel %vm353_vm2, %v2333_v8, 0.0  ;;  %3525 = vperm.xlu2 %6045, %v5927_v32   ;;  %v5929_v26 = vld [vmem:[%s9703_s3 + $0x58] sm:$0xf]  ;;  %v2359_v6 = vsel %vm353_vm2, %v2357_v38, 0.0 }
 0x2d4   : > { %2836 = vst [vmem:[#allocation1] ss:$2 sm:$0xff] %v7611_v3  ;;  %v2318_v30 = vsel %vm353_vm2, %v2310_v36, 0.0  ;;  %v2342_v47 = vsel %vm353_vm2, %v2334_v33, 0.0  ;;  %v2312_v58 = vrot.slane %v2311_v62, 4  ;;  %v2336_v31 = vrot.slane %v2335_v42, 4  ;;  %3573 = vperm.xlu1 %6044, %v5929_v26  }
 0x2d5   : > { %v2319_v56 = vrot.slane %v2318_v30, 4  ;;  %v2343_v13 = vrot.slane %v2342_v47, 4  ;;  %v2366_v46 = vsel %vm353_vm2, %v2358_v18, 0.0  ;;  %v2383_v51 = vsel %vm353_vm2, %v2381_v49, 0.0 }
 0x2d6   : > { %v2390_v39 = vsel %vm353_vm2, %v2382_v12, 0.0  ;;  %v2313_v55 = vadd.f32 %v2312_v58, %v2311_v62  ;;  %v2337_v59 = vadd.f32 %v2336_v31, %v2335_v42  ;;  %v2360_v36 = vrot.slane %v2359_v6, 4 }
 0x2d7   : > { %v2320_v44 = vadd.f32 %v2319_v56, %v2318_v30  ;;  %v2344_v14 = vadd.f32 %v2343_v13, %v2342_v47  ;;  %v2367_v8 = vrot.slane %v2366_v46, 4  ;;  %v2384_v33 = vrot.slane %v2383_v51, 4 }
 0x2d8   : > { %v2391_v32 = vrot.slane %v2390_v39, 4  ;;  %v2721_v3 = vsel %vm900_vm6, %v2718_v28, %v2720_v41  ;;  %v2722_v38 = vsel %vm900_vm6, %v2720_v41, %v2718_v28  ;;  %v2314_v18 = vrot.slane %v2313_v55, 2 }
 0x2d9   : > { %v2321_v10 = vrot.slane %v2320_v44, 2  ;;  %v2338_v49 = vrot.slane %v2337_v59, 2  ;;  %v2345_v53 = vrot.slane %v2344_v14, 2  ;;  %v2361_v12 = vadd.f32 %v2360_v36, %v2359_v6  ;;  %v2400_v36 = vpop.permute.xlu1 %2399 }
 0x2da   : > { %v2368_v26 = vadd.f32 %v2367_v8, %v2366_v46  ;;  %v2253_v62 = vrot.slane %v7602_v4, 1  ;;  %v2260_v30 = vrot.slane %v7604_v17, 1  ;;  %v2277_v42 = vrot.slane %v7617_v61, 1 }
 0x2db   : > { %v2284_v47 = vrot.slane %v7619_v40, 1  ;;  %v7653_v58 = vadd.f32 %v2229_v21, %v7574_v50  ;;  %v7656_v56 = vadd.f32 %v2236_v35, %v7576_v48  ;;  %v2385_v31 = vadd.f32 %v2384_v33, %v2383_v51 }
 0x2dc   : > { %v2392_v13 = vadd.f32 %v2391_v32, %v2390_v39  ;;  %v7658_v41 = vmul.f32 %v2726_v20, %v2721_v3  ;;  %v7660_v28 = vmul.f32 %v2727_v24, %v2722_v38  ;;  %v2315_v6 = vadd.f32 %v2314_v18, %v2313_v55  ;;  %v2760_v24 = vpop.permute.xlu2 %2759 }
 0x2dd   : > { %v2322_v46 = vadd.f32 %v2321_v10, %v2320_v44  ;;  %v2339_v8 = vadd.f32 %v2338_v49, %v2337_v59  ;;  %v2346_v25 = vadd.f32 %v2345_v53, %v2344_v14  ;;  %v2362_v23 = vrot.slane %v2361_v12, 2  ;;  %v2784_v10 = vpop.permute.xlu0 %2783 }
 0x2de   : > { %9815 = vst [vmem:[#allocation19_spill] sm:$0xff] %v7658_v41  ;;  %v2369_v0 = vrot.slane %v2368_v26, 2  ;;  %v7663_v16 = vadd.f32 %v2253_v62, %v7602_v4  ;;  %v7666_v50 = vadd.f32 %v2260_v30, %v7604_v17  ;;  %v7669_v48 = vadd.f32 %v2277_v42, %v7617_v61 }
 0x2df   : > { %9816 = vst [vmem:[#allocation7_spill] sm:$0xff] %v7660_v28  ;;  %v7672_v21 = vadd.f32 %v2284_v47, %v7619_v40  ;;  %v2386_v35 = vrot.slane %v2385_v31, 2  ;;  %v2393_v20 = vrot.slane %v2392_v13, 2  ;;  %v2403_v53 = vsel %vm566_vm4, %v2400_v36, %v7560_v45 }
 0x2e0   : > { %v2404_v4 = vsel %vm566_vm4, %v7560_v45, %v2400_v36  ;;  %v2316_v17 = vrot.slane %v2315_v6, 1  ;;  %v2323_v3 = vrot.slane %v2322_v46, 1  ;;  %v2786_v61 = vmul.f32 %v2784_v10, %v7658_v41 }
 0x2e1   : > { %v2787_v51 = vmul.f32 %v2784_v10, %v7660_v28  ;;  %v2340_v40 = vrot.slane %v2339_v8, 1  ;;  %v2347_v39 = vrot.slane %v2346_v25, 1  ;;  %v2363_v55 = vadd.f32 %v2362_v23, %v2361_v12 }
 0x2e2   : > { %v2370_v44 = vadd.f32 %v2369_v0, %v2368_v26  ;;  %v2788_v59 = vsel %vm353_vm2, %v2786_v61, 0.0  ;;  %v2762_v33 = vmul.f32 %v2760_v24, %v7658_v41  ;;  %v2763_v32 = vmul.f32 %v2760_v24, %v7660_v28 }
 0x2e3   : > { %v2795_v14 = vsel %vm353_vm2, %v2787_v51, 0.0  ;;  %v2387_v38 = vadd.f32 %v2386_v35, %v2385_v31  ;;  %v2394_v45 = vadd.f32 %v2393_v20, %v2392_v13  ;;  %v2789_v18 = vrot.slane %v2788_v59, 4 }
 0x2e4   : > { %v2796_v49 = vrot.slane %v2795_v14, 4  ;;  %v2764_v62 = vsel %vm353_vm2, %v2762_v33, 0.0  ;;  %v2771_v30 = vsel %vm353_vm2, %v2763_v32, 0.0  ;;  %v2412_v42 = vmul.f32 %v7485_v57, %v2404_v4 }
 0x2e5   : > { %v2413_v0 = vmul.f32 %v7487_v9, %v2403_v53  ;;  %v2790_v23 = vadd.f32 %v2789_v18, %v2788_v59  ;;  %v2765_v26 = vrot.slane %v2764_v62, 4  ;;  %v2772_v47 = vrot.slane %v2771_v30, 4 }
 0x2e6   : > { %v2797_v12 = vadd.f32 %v2796_v49, %v2795_v14  ;;  %v2420_v36 = vmul.f32 %v7390_v63, %v2412_v42  ;;  %v2444_v31 = vmul.f32 %v7430_v43, %v2412_v42  ;;  %v2341_v35 = vadd.f32 %v2340_v40, %v2339_v8  ;;  %v5931_v49 = vld [vmem:[%s9703_s3 + $0x38] sm:$0xf] }
 0x2e7   : > { %v2421_v10 = vmul.f32 %v7390_v63, %v2413_v0  ;;  %v2445_v13 = vmul.f32 %v7430_v43, %v2413_v0  ;;  %v2348_v20 = vadd.f32 %v2347_v39, %v2346_v25  ;;  %v2766_v24 = vadd.f32 %v2765_v26, %v2764_v62  ;;  %v5930_v62 = vld [vmem:[%s9703_s3 + $0x14] sm:$0xf]  ;;  %3634 = vperm.xlu2 %6045, %v5931_v49  }
 0x2e8   : > { %v2773_v61 = vadd.f32 %v2772_v47, %v2771_v30  ;;  %v2422_v57 = vsel %vm353_vm2, %v2420_v36, 0.0  ;;  %v2446_v53 = vsel %vm353_vm2, %v2444_v31, 0.0  ;;  %v2364_v51 = vrot.slane %v2363_v55, 1  ;;  %3610 = vperm.xlu1 %6044, %v5930_v62  }
 0x2e9   : > { %v2429_v9 = vsel %vm353_vm2, %v2421_v10, 0.0  ;;  %v2453_v4 = vsel %vm353_vm2, %v2445_v13, 0.0  ;;  %v2371_v59 = vrot.slane %v2370_v44, 1  ;;  %v2791_v14 = vrot.slane %v2790_v23, 2 }
 0x2ea   : > { %v2798_v63 = vrot.slane %v2797_v12, 2  ;;  %v2423_v33 = vrot.slane %v2422_v57, 4  ;;  %v2430_v32 = vrot.slane %v2429_v9, 4  ;;  %v2447_v18 = vrot.slane %v2446_v53, 4 }
 0x2eb   : > { %v2454_v43 = vrot.slane %v2453_v4, 4  ;;  %v7698_v8 = vadd.f32 %v2316_v17, %v2315_v6  ;;  %v7700_v25 = vadd.f32 %v2323_v3, %v2322_v46  ;;  %v2388_v40 = vrot.slane %v2387_v38, 1 }
 0x2ec   : > { %v2395_v39 = vrot.slane %v2394_v45, 1  ;;  %v2767_v30 = vrot.slane %v2766_v24, 2  ;;  %v2774_v26 = vrot.slane %v2773_v61, 2  ;;  %v2448_v47 = vadd.f32 %v2447_v18, %v2446_v53 }
 0x2ed   : > { %9817 = vst [vmem:[#allocation22_spill] sm:$0xff] %v7698_v8  ;;  %v2455_v36 = vadd.f32 %v2454_v43, %v2453_v4  ;;  %v7709_v6 = vadd.f32 %v2341_v35, %v7653_v58  ;;  %v7712_v46 = vadd.f32 %v2348_v20, %v7656_v56  ;;  %v2792_v17 = vadd.f32 %v2791_v14, %v2790_v23 }
 0x2ee   : > { %9818 = vst [vmem:[#allocation23_spill] sm:$0xff] %v7700_v25  ;;  %v2799_v3 = vadd.f32 %v2798_v63, %v2797_v12  ;;  %v2365_v10 = vadd.f32 %v2364_v51, %v2363_v55  ;;  %v2372_v31 = vadd.f32 %v2371_v59, %v2370_v44  ;;  %v2424_v13 = vadd.f32 %v2423_v33, %v2422_v57 }
 0x2ef   : > { %v2431_v25 = vadd.f32 %v2430_v32, %v2429_v9  ;;  %v2449_v8 = vrot.slane %v2448_v47, 2  ;;  %v2456_v28 = vrot.slane %v2455_v36, 2  ;;  %v2468_v41 = vmul.f32 %v7421_v1, %v2412_v42 }
 0x2f0   : > { %v2469_v53 = vmul.f32 %v7421_v1, %v2413_v0  ;;  %v7716_v4 = vadd.f32 %v2388_v40, %v2387_v38  ;;  %v7718_v58 = vadd.f32 %v2395_v39, %v2394_v45  ;;  %v2768_v35 = vadd.f32 %v2767_v30, %v2766_v24  ;;  %v2511_v45 = vpop.permute.xlu1 %2510  ;;  %v7746_v39 = vld.sshfl [vmem:[#allocation1] sm:$0xff pattern:$0x75316420]  ;;  %v7752_v30 = vld.sshfl [vmem:[#allocation1 + $0x8] sm:$0xff pattern:$0x75316420] }
 0x2f1   : > { %v2775_v56 = vadd.f32 %v2774_v26, %v2773_v61  ;;  %v2793_v20 = vrot.slane %v2792_v17, 1  ;;  %v2800_v23 = vrot.slane %v2799_v3, 1  ;;  %v2470_v12 = vsel %vm353_vm2, %v2468_v41, 0.0  ;;  %v2829_v26 = vpop.permute.xlu2 %2828 }
 0x2f2   : > { %v2477_v55 = vsel %vm353_vm2, %v2469_v53, 0.0  ;;  %v2425_v44 = vrot.slane %v2424_v13, 2  ;;  %v2432_v57 = vrot.slane %v2431_v25, 2  ;;  %v2492_v9 = vmul.f32 %v7410_v54, %v2412_v42 }
 0x2f3   : > { %v2493_v51 = vmul.f32 %v7410_v54, %v2413_v0  ;;  %v2450_v59 = vadd.f32 %v2449_v8, %v2448_v47  ;;  %v2457_v1 = vadd.f32 %v2456_v28, %v2455_v36  ;;  %v2471_v38 = vrot.slane %v2470_v12, 4 }
 0x2f4   : > { %v2478_v14 = vrot.slane %v2477_v55, 4  ;;  %v7725_v24 = vadd.f32 %v2365_v10, %v7663_v16  ;;  %v7728_v61 = vadd.f32 %v2372_v31, %v7666_v50  ;;  %v2769_v41 = vrot.slane %v2768_v35, 1 }
 0x2f5   : > { %v2776_v63 = vrot.slane %v2775_v56, 1  ;;  %v7730_v33 = vadd.f32 %v2793_v20, %v2792_v17  ;;  %v7732_v32 = vadd.f32 %v2800_v23, %v2799_v3  ;;  %v2472_v42 = vadd.f32 %v2471_v38, %v2470_v12 }
 0x2f6   : > { %v2479_v18 = vadd.f32 %v2478_v14, %v2477_v55  ;;  %v2494_v54 = vsel %vm353_vm2, %v2492_v9, 0.0  ;;  %v2501_v28 = vsel %vm353_vm2, %v2493_v51, 0.0  ;;  %v2514_v16 = vsel %vm683_vm5, %v2511_v45, %v7584_v60 }
 0x2f7   : > { %v2515_v50 = vsel %vm683_vm5, %v7584_v60, %v2511_v45  ;;  %v7742_v0 = vadd.f32 %v2425_v44, %v2424_v13  ;;  %v7744_v43 = vadd.f32 %v2432_v57, %v2431_v25  ;;  %v2451_v8 = vrot.slane %v2450_v59, 1  ;;  %v7759_v60 = vld [vmem:[%s9704_s4 + $0x38] sm:$0xff] }
 0x2f8   : > { %v2458_v40 = vrot.slane %v2457_v1, 1  ;;  %v7748_v49 = vadd.f32 %v2769_v41, %v2768_v35  ;;  %v7750_v62 = vadd.f32 %v2776_v63, %v2775_v56  ;;  %v2523_v47 = vmul.f32 %v7512_v27, %v2515_v50  ;;  %9819 = vst [vmem:[#allocation8_spill] sm:$0xff] %v7759_v60  ;;  %v7782_v41 = vpop.permute.xlu1 %2696  ;;  %v2831_v63 = vpop.permute.xlu0 %2830 }
 0x2f9   : > { %v2524_v36 = vmul.f32 %v7514_v5, %v2514_v16  ;;  %v2473_v25 = vrot.slane %v2472_v42, 2  ;;  %v2480_v17 = vrot.slane %v2479_v18, 2  ;;  %v2495_v3 = vrot.slane %v2494_v54, 4  ;;  %2947 = vst [vmem:[#allocation1] ss:$2 sm:$0xff] %v7759_v60 }
 0x2fa   : > { %v2502_v10 = vrot.slane %v2501_v28, 4  ;;  %v2531_v31 = vmul.f32 %v7432_v15, %v2523_v47  ;;  %v2555_v53 = vmul.f32 %v7462_v52, %v2523_v47  ;;  %v7768_v56 = vadd.f32 %v2451_v8, %v2450_v59  ;;  %v5934_v59 = vld [vmem:[%s9703_s3 + $0x3c] sm:$0xf] }
 0x2fb   : > { %v2532_v13 = vmul.f32 %v7432_v15, %v2524_v36  ;;  %v2556_v27 = vmul.f32 %v7462_v52, %v2524_v36  ;;  %v7770_v20 = vadd.f32 %v2458_v40, %v2457_v1  ;;  %v5935_v52 = vld [vmem:[%s9703_s3 + $0x60] sm:$0xf]  ;;  %v2474_v44 = vadd.f32 %v2473_v25, %v2472_v42  ;;  %3719 = vperm.xlu1 %6044, %v5934_v59  }
 0x2fc   : > { %v2533_v23 = vsel %vm353_vm2, %v2531_v31, 0.0  ;;  %v2557_v55 = vsel %vm353_vm2, %v2555_v53, 0.0  ;;  %v2481_v57 = vadd.f32 %v2480_v17, %v2479_v18  ;;  %v2496_v9 = vadd.f32 %v2495_v3, %v2494_v54  ;;  %3743 = vperm.xlu2 %6045, %v5935_v52  }
 0x2fd   : > { %v2540_v12 = vsel %vm353_vm2, %v2532_v13, 0.0  ;;  %v2564_v15 = vsel %vm353_vm2, %v2556_v27, 0.0  ;;  %v2503_v51 = vadd.f32 %v2502_v10, %v2501_v28  ;;  %v2534_v1 = vrot.slane %v2533_v23, 4 }
 0x2fe   : > { %v2541_v38 = vrot.slane %v2540_v12, 4  ;;  %v2558_v14 = vrot.slane %v2557_v55, 4  ;;  %v2565_v45 = vrot.slane %v2564_v15, 4  ;;  %v2579_v16 = vmul.f32 %v7446_v34, %v2523_v47 }
 0x2ff   : > { %v2580_v42 = vmul.f32 %v7446_v34, %v2524_v36  ;;  %v2603_v18 = vmul.f32 %v7468_v22, %v2523_v47  ;;  %v2604_v54 = vmul.f32 %v7468_v22, %v2524_v36  ;;  %v2535_v28 = vadd.f32 %v2534_v1, %v2533_v23  ;;  %v2871_v36 = vpop.permute.xlu2 %2870 }
 0x300   : > { %v2542_v50 = vadd.f32 %v2541_v38, %v2540_v12  ;;  %v2559_v8 = vadd.f32 %v2558_v14, %v2557_v55  ;;  %v2566_v40 = vadd.f32 %v2565_v45, %v2564_v15  ;;  %v2832_v25 = vsel %vm1017_vm7, %v2829_v26, %v2831_v63 }
 0x301   : > { %v2833_v17 = vsel %vm1017_vm7, %v2831_v63, %v2829_v26  ;;  %v2581_v3 = vsel %vm353_vm2, %v2579_v16, 0.0  ;;  %v2588_v10 = vsel %vm353_vm2, %v2580_v42, 0.0  ;;  %v2605_v47 = vsel %vm353_vm2, %v2603_v18, 0.0 }
 0x302   : > { %v2560_v31 = vrot.slane %v2559_v8, 2  ;;  %v2567_v34 = vrot.slane %v2566_v40, 2  ;;  %v2612_v22 = vsel %vm353_vm2, %v2604_v54, 0.0  ;;  %v2497_v13 = vrot.slane %v2496_v9, 2 }
 0x303   : > { %v2504_v53 = vrot.slane %v2503_v51, 2  ;;  %v2582_v27 = vrot.slane %v2581_v3, 4  ;;  %v2589_v23 = vrot.slane %v2588_v10, 4  ;;  %v2475_v12 = vrot.slane %v2474_v44, 1 }
 0x304   : > { %v2482_v55 = vrot.slane %v2481_v57, 1  ;;  %v2536_v15 = vrot.slane %v2535_v28, 2  ;;  %v2543_v52 = vrot.slane %v2542_v50, 2  ;;  %v2606_v1 = vrot.slane %v2605_v47, 4 }
 0x305   : > { %v2583_v26 = vadd.f32 %v2582_v27, %v2581_v3  ;;  %v2590_v59 = vadd.f32 %v2589_v23, %v2588_v10  ;;  %v2613_v38 = vrot.slane %v2612_v22, 4  ;;  %v7797_v14 = vmul.f32 %v7746_v39, %v2832_v25  ;;  %v7810_v27 = vpop.permute.xlu1 %2735 }
 0x306   : > { %v7800_v45 = vmul.f32 %v7752_v30, %v2833_v17  ;;  %v2561_v63 = vadd.f32 %v2560_v31, %v2559_v8  ;;  %v2568_v16 = vadd.f32 %v2567_v34, %v2566_v40  ;;  %v7802_v42 = vadd.f32 %v2497_v13, %v2496_v9  ;;  %v2895_v8 = vpop.permute.xlu0 %2894 }
 0x307   : > { %v7804_v18 = vadd.f32 %v2504_v53, %v2503_v51  ;;  %v2584_v54 = vrot.slane %v2583_v26, 2  ;;  %v2591_v35 = vrot.slane %v2590_v59, 2  ;;  %v2476_v5 = vadd.f32 %v2475_v12, %v2474_v44 }
 0x308   : > { %v2483_v60 = vadd.f32 %v2482_v55, %v2481_v57  ;;  %v7806_v3 = vadd.f32 %v2536_v15, %v2535_v28  ;;  %v7808_v10 = vadd.f32 %v2543_v52, %v2542_v50  ;;  %v2607_v30 = vadd.f32 %v2606_v1, %v2605_v47 }
 0x309   : > { %v2585_v39 = vadd.f32 %v2584_v54, %v2583_v26  ;;  %v2592_v25 = vadd.f32 %v2591_v35, %v2590_v59  ;;  %v2614_v17 = vadd.f32 %v2613_v38, %v2612_v22  ;;  %v2562_v40 = vrot.slane %v2561_v63, 1  ;;  %v7820_v22 = vpop.permute.xlu2 %2939 }
 0x30a   : > { %v2569_v9 = vrot.slane %v2568_v16, 1  ;;  %v2897_v51 = vmul.f32 %v2895_v8, %v7797_v14  ;;  %v2898_v31 = vmul.f32 %v2895_v8, %v7800_v45  ;;  %v2873_v57 = vmul.f32 %v2871_v36, %v7797_v14 }
 0x30b   : > { %v2586_v34 = vrot.slane %v2585_v39, 1  ;;  %v2593_v44 = vrot.slane %v2592_v25, 1  ;;  %v2874_v28 = vmul.f32 %v2871_v36, %v7800_v45  ;;  %v2484_v50 = vadd.f32 %v2476_v5, %v7725_v24 }
 0x30c   : > { %v2485_v13 = vadd.f32 %v2483_v60, %v7728_v61  ;;  %v2899_v35 = vsel %vm353_vm2, %v2897_v51, 0.0  ;;  %v2906_v47 = vsel %vm353_vm2, %v2898_v31, 0.0  ;;  %v2563_v15 = vadd.f32 %v2562_v40, %v2561_v63  ;;  %v2948_v31 = vld.sshfl [vmem:[#allocation1] sm:$0xff pattern:$0x75316420] }
 0x30d   : > { %v2587_v53 = vadd.f32 %v2586_v34, %v2585_v39  ;;  %v2594_v23 = vadd.f32 %v2593_v44, %v2592_v25  ;;  %v2900_v12 = vrot.slane %v2899_v35, 4  ;;  %v2907_v55 = vrot.slane %v2906_v47, 4  ;;  %v7828_v34 = vpop.permute.xlu1 %2807 }
 0x30e   : > { %v2570_v52 = vadd.f32 %v2569_v9, %v2568_v16  ;;  %v2875_v26 = vsel %vm353_vm2, %v2873_v57, 0.0  ;;  %v2882_v36 = vsel %vm353_vm2, %v2874_v28, 0.0  ;;  %v2460_v60 = vadd.f32 %v7768_v56, %v7709_v6  ;;  %v2949_v28 = vld.sshfl [vmem:[#allocation1 + $0x8] sm:$0xff pattern:$0x75316420] }
 0x30f   : > { %v2595_v59 = vadd.f32 %v2587_v53, %v2484_v50  ;;  %v2596_v24 = vadd.f32 %v2594_v23, %v2485_v13  ;;  %v2901_v5 = vadd.f32 %v2900_v12, %v2899_v35  ;;  %v2908_v61 = vadd.f32 %v2907_v55, %v2906_v47  ;;  %v7845_v50 = vld [vmem:[%s9704_s4 + $0x40] sm:$0xff]  ;;  %v2942_v23 = vpop.permute.xlu0 %2941 }
 0x310   : > { %v2461_v1 = vadd.f32 %v7770_v20, %v7712_v46  ;;  %v2876_v38 = vrot.slane %v2875_v26, 4  ;;  %v2883_v54 = vrot.slane %v2882_v36, 4  ;;  %v2608_v39 = vrot.slane %v2607_v30, 2  ;;  %9822 = vst [vmem:[#allocation11_spill] sm:$0xff] %v7845_v50 }
 0x311   : > { %v2615_v25 = vrot.slane %v2614_v17, 2  ;;  %v2902_v63 = vrot.slane %v2901_v5, 2  ;;  %v2909_v16 = vrot.slane %v2908_v61, 2  ;;  %v2571_v8 = vadd.f32 %v2563_v15, %v2460_v60  ;;  %3058 = vst [vmem:[#allocation1] ss:$2 sm:$0xff] %v7845_v50 }
 0x312   : > { %v2572_v40 = vadd.f32 %v2570_v52, %v2461_v1  ;;  %v2877_v9 = vadd.f32 %v2876_v38, %v2875_v26  ;;  %v2884_v51 = vadd.f32 %v2883_v54, %v2882_v36  ;;  %v9820_v44 = vrot.slane %v7742_v0, 1  ;;  %v7854_v26 = vpop.permute.xlu2 %2981 }
 0x313   : > { %v9821_v46 = vrot.slane %v7744_v43, 1  ;;  %v2691_v20 = vadd.f32 %v7596_v19, %v2595_v59  ;;  %v2692_v57 = vadd.f32 %v7598_v7, %v2596_v24  ;;  %v2499_v13 = vrot.slane %v7802_v42, 1 }
 0x314   : > { %v7833_v6 = vadd.f32 %v9820_v44, %v7742_v0  ;;  %v2506_v0 = vrot.slane %v7804_v18, 1  ;;  %v2538_v35 = vrot.slane %v7806_v3, 1  ;;  %v2545_v47 = vrot.slane %v7808_v10, 1 }
 0x315   : > { %v7838_v56 = vadd.f32 %v9821_v46, %v7744_v43  ;;  %v2609_v43 = vadd.f32 %v2608_v39, %v2607_v30  ;;  %v2616_v19 = vadd.f32 %v2615_v25, %v2614_v17  ;;  %v2903_v53 = vadd.f32 %v2902_v63, %v2901_v5  ;;  %v9823_v5 = vld [vmem:[#allocation9_spill] sm:$0xff] }
 0x316   : > { %v2910_v7 = vadd.f32 %v2909_v16, %v2908_v61  ;;  %v2667_v12 = vadd.f32 %v7579_v29, %v2571_v8  ;;  %v2668_v55 = vadd.f32 %v7582_v11, %v2572_v40  ;;  %v2878_v15 = vrot.slane %v2877_v9, 2 }
 0x317   : > { %v2885_v52 = vrot.slane %v2884_v51, 2  ;;  %v2802_v36 = vadd.f32 %v7730_v33, %v2691_v20  ;;  %v2803_v59 = vadd.f32 %v7732_v32, %v2692_v57  ;;  %v2397_v24 = vadd.f32 %v7716_v4, %v7669_v48  ;;  %v7870_v4 = vpop.permute.xlu1 %2846  ;;  %v9824_v20 = vld [vmem:[#allocation10_spill] sm:$0xff] }
 0x318   : > { %v2398_v30 = vadd.f32 %v7718_v58, %v7672_v21  ;;  %v2500_v17 = vadd.f32 %v2499_v13, %v7802_v42  ;;  %v2507_v29 = vadd.f32 %v2506_v0, %v7804_v18  ;;  %v2699_v11 = vmul.f32 %v7782_v41, %v7307_v2  ;;  %v7882_v8 = vld.sshfl [vmem:[#allocation1] sm:$0xff pattern:$0x75316420]  ;;  %v7884_v40 = vld.sshfl [vmem:[#allocation1 + $0x8] sm:$0xff pattern:$0x75316420] }
 0x319   : > { %v2700_v61 = vmul.f32 %v7782_v41, %v9823_v5  ;;  %v2904_v60 = vrot.slane %v2903_v53, 1  ;;  %v2911_v33 = vrot.slane %v2910_v7, 1  ;;  %v2610_v1 = vrot.slane %v2609_v43, 1  ;;  %3188 = vst [vmem:[#allocation1] ss:$2 sm:$0xff] %v9824_v20  ;;  %v9825_v0 = vld [vmem:[#allocation19_spill] sm:$0xff] }
 0x31a   : > { %v2617_v32 = vrot.slane %v2616_v19, 1  ;;  %v2879_v38 = vadd.f32 %v2878_v15, %v2877_v9  ;;  %v2886_v54 = vadd.f32 %v2885_v52, %v2884_v51  ;;  %v2701_v48 = vsel %vm353_vm2, %v2699_v11, 0.0 }
 0x31b   : > { %v2708_v21 = vsel %vm353_vm2, %v2700_v61, 0.0  ;;  %v2702_v58 = vrot.slane %v2701_v48, 4  ;;  %v2943_v18 = vsel %vm1134_vm8, %v7820_v22, %v2942_v23  ;;  %v2944_v41 = vsel %vm1134_vm8, %v2942_v23, %v7820_v22  ;;  %v9826_v23 = vld [vmem:[#allocation7_spill] sm:$0xff] }
 0x31c   : > { %v2709_v42 = vrot.slane %v2708_v21, 4  ;;  %v2508_v39 = vadd.f32 %v2500_v17, %v2397_v24  ;;  %v2509_v25 = vadd.f32 %v2507_v29, %v2398_v30  ;;  %v7878_v63 = vmul.f32 %v2948_v31, %v2943_v18  ;;  %v3006_v30 = vpop.permute.xlu0 %3005 }
 0x31d   : > { %v7880_v16 = vmul.f32 %v2949_v28, %v2944_v41  ;;  %v2905_v9 = vadd.f32 %v2904_v60, %v2903_v53  ;;  %v2912_v51 = vadd.f32 %v2911_v33, %v2910_v7  ;;  %v2703_v44 = vadd.f32 %v2702_v58, %v2701_v48 }
 0x31e   : > { %v2710_v46 = vadd.f32 %v2709_v42, %v2708_v21  ;;  %v2611_v57 = vadd.f32 %v2610_v1, %v2609_v43  ;;  %v2618_v13 = vadd.f32 %v2617_v32, %v2616_v19  ;;  %v2738_v22 = vmul.f32 %v7810_v27, %v9825_v0  ;;  %v7895_v19 = vpop.permute.xlu2 %3050 }
 0x31f   : > { %v2739_v31 = vmul.f32 %v7810_v27, %v9826_v23  ;;  %v2880_v28 = vrot.slane %v2879_v38, 1  ;;  %v2887_v15 = vrot.slane %v2886_v54, 1  ;;  %v2704_v52 = vrot.slane %v2703_v44, 2  ;;  %v7903_v48 = vpop.permute.xlu1 %2918 }
 0x320   : > { %v2711_v24 = vrot.slane %v2710_v46, 2  ;;  %v2740_v53 = vsel %vm353_vm2, %v2738_v22, 0.0  ;;  %v3008_v17 = vmul.f32 %v3006_v30, %v7878_v63  ;;  %v3009_v43 = vmul.f32 %v3006_v30, %v7880_v16 }
 0x321   : > { %v2747_v7 = vsel %vm353_vm2, %v2739_v31, 0.0  ;;  %v7897_v29 = vadd.f32 %v2905_v9, %v2802_v36  ;;  %v7899_v11 = vadd.f32 %v2912_v51, %v2803_v59  ;;  %v2778_v27 = vadd.f32 %v7748_v49, %v2667_v12  ;;  %v9827_v51 = vld [vmem:[#allocation21_spill] sm:$0xff]  ;;  %v9828_v49 = vld [vmem:[#allocation22_spill] sm:$0xff] }
 0x322   : > { %v2779_v61 = vadd.f32 %v7750_v62, %v2668_v55  ;;  %v2619_v60 = vadd.f32 %v2611_v57, %v2508_v39  ;;  %v2620_v33 = vadd.f32 %v2618_v13, %v2509_v25  ;;  %v2741_v1 = vrot.slane %v2740_v53, 4  ;;  %v9829_v62 = vld [vmem:[#allocation18_spill] sm:$0xff]  ;;  %v9830_v55 = vld [vmem:[#allocation23_spill] sm:$0xff] }
 0x323   : > { %v2748_v32 = vrot.slane %v2747_v7, 4  ;;  %v2881_v21 = vadd.f32 %v2880_v28, %v2879_v38  ;;  %v2888_v58 = vadd.f32 %v2887_v15, %v2886_v54  ;;  %v3010_v42 = vsel %vm353_vm2, %v3008_v17, 0.0 }
 0x324   : > { %v3017_v18 = vsel %vm353_vm2, %v3009_v43, 0.0  ;;  %v2705_v36 = vadd.f32 %v2704_v52, %v2703_v44  ;;  %v2712_v41 = vadd.f32 %v2711_v24, %v2710_v46  ;;  %v2742_v59 = vadd.f32 %v2741_v1, %v2740_v53 }
 0x325   : > { %v2749_v9 = vadd.f32 %v2748_v32, %v2747_v7  ;;  %v2325_v12 = vadd.f32 %v9828_v49, %v9827_v51  ;;  %v2326_v39 = vadd.f32 %v9830_v55, %v9829_v62  ;;  %v2984_v25 = vmul.f32 %v7854_v26, %v7878_v63 }
 0x326   : > { %v2985_v38 = vmul.f32 %v7854_v26, %v7880_v16  ;;  %v2539_v54 = vadd.f32 %v2538_v35, %v7806_v3  ;;  %v2546_v44 = vadd.f32 %v2545_v47, %v7808_v10  ;;  %v3011_v46 = vrot.slane %v3010_v42, 4  ;;  %v3053_v47 = vpop.permute.xlu0 %3052  ;;  %v3093_v7 = vpop.permute.xlu2 %3092 }
 0x327   : > { %v3018_v20 = vrot.slane %v3017_v18, 4  ;;  %v2436_v57 = vadd.f32 %v7833_v6, %v2325_v12  ;;  %v2437_v13 = vadd.f32 %v7838_v56, %v2326_v39  ;;  %v2986_v22 = vsel %vm353_vm2, %v2984_v25, 0.0  ;;  %v7929_v17 = vpop.permute.xlu1 %2957  ;;  %v9832_v25 = vld [vmem:[#allocation17_spill] sm:$0xff] }
 0x328   : > { %v2993_v31 = vsel %vm353_vm2, %v2985_v38, 0.0  ;;  %v2706_v28 = vrot.slane %v2705_v36, 1  ;;  %v2713_v26 = vrot.slane %v2712_v41, 1  ;;  %v2743_v15 = vrot.slane %v2742_v59, 2 }
 0x329   : > { %v2750_v52 = vrot.slane %v2749_v9, 2  ;;  %v2987_v24 = vrot.slane %v2986_v22, 4  ;;  %v2994_v3 = vrot.slane %v2993_v31, 4  ;;  %v2810_v35 = vmul.f32 %v7828_v34, %v9825_v0 }
 0x32a   : > { %v2811_v10 = vmul.f32 %v7828_v34, %v9826_v23  ;;  %v2547_v6 = vadd.f32 %v2539_v54, %v2436_v57  ;;  %v2548_v30 = vadd.f32 %v2546_v44, %v2437_v13  ;;  %v3012_v56 = vadd.f32 %v3011_v46, %v3010_v42 }
 0x32b   : > { %v3019_v53 = vadd.f32 %v3018_v20, %v3017_v18  ;;  %v2988_v43 = vadd.f32 %v2987_v24, %v2986_v22  ;;  %v2995_v1 = vadd.f32 %v2994_v3, %v2993_v31  ;;  %v2812_v32 = vsel %vm353_vm2, %v2810_v35, 0.0  ;;  %v9831_v18 = vld [vmem:[#allocation16_spill] sm:$0xff] }
 0x32c   : > { %v2819_v51 = vsel %vm353_vm2, %v2811_v10, 0.0  ;;  %v7933_v49 = vadd.f32 %v2881_v21, %v2778_v27  ;;  %v7935_v0 = vadd.f32 %v2888_v58, %v2779_v61  ;;  %v2707_v12 = vadd.f32 %v2706_v28, %v2705_v36 }
 0x32d   : > { %v2714_v34 = vadd.f32 %v2713_v26, %v2712_v41  ;;  %v2744_v23 = vadd.f32 %v2743_v15, %v2742_v59  ;;  %v2751_v62 = vadd.f32 %v2750_v52, %v2749_v9  ;;  %v2813_v55 = vrot.slane %v2812_v32, 4 }
 0x32e   : > { %v2820_v42 = vrot.slane %v2819_v51, 4  ;;  %v7938_v39 = vadd.f32 %v9831_v18, %v2547_v6  ;;  %v7941_v38 = vadd.f32 %v9832_v25, %v2548_v30  ;;  %v3013_v54 = vrot.slane %v3012_v56, 2  ;;  %v3117_v24 = vpop.permute.xlu0 %3116  ;;  %v7969_v10 = vpop.permute.xlu2 %3173 }
 0x32f   : > { %v3020_v44 = vrot.slane %v3019_v53, 2  ;;  %v2989_v46 = vrot.slane %v2988_v43, 2  ;;  %v2996_v20 = vrot.slane %v2995_v1, 2  ;;  %v2814_v27 = vadd.f32 %v2813_v55, %v2812_v32  ;;  %v7963_v28 = vpop.permute.xlu1 %3029 }
 0x330   : > { %v2821_v21 = vadd.f32 %v2820_v42, %v2819_v51  ;;  %v7943_v61 = vadd.f32 %v2707_v12, %v2619_v60  ;;  %v7945_v58 = vadd.f32 %v2714_v34, %v2620_v33  ;;  %v3054_v36 = vsel %vm1251_vm9, %v7895_v19, %v3053_v47 }
 0x331   : > { %v3055_v41 = vsel %vm1251_vm9, %v3053_v47, %v7895_v19  ;;  %v2745_v59 = vrot.slane %v2744_v23, 1  ;;  %v2752_v9 = vrot.slane %v2751_v62, 1  ;;  %v2815_v57 = vrot.slane %v2814_v27, 2 }
 0x332   : > { %v2822_v13 = vrot.slane %v2821_v21, 2  ;;  %v7954_v22 = vmul.f32 %v7882_v8, %v3054_v36  ;;  %v7957_v60 = vmul.f32 %v7884_v40, %v3055_v41  ;;  %v2849_v33 = vmul.f32 %v7870_v4, %v7797_v14 }
 0x333   : > { %v2850_v31 = vmul.f32 %v7870_v4, %v7800_v45  ;;  %v3014_v26 = vadd.f32 %v3013_v54, %v3012_v56  ;;  %v3021_v19 = vadd.f32 %v3020_v44, %v3019_v53  ;;  %v2990_v15 = vadd.f32 %v2989_v46, %v2988_v43 }
 0x334   : > { %v2997_v52 = vadd.f32 %v2996_v20, %v2995_v1  ;;  %v2851_v3 = vsel %vm353_vm2, %v2849_v33, 0.0  ;;  %v3119_v40 = vmul.f32 %v3117_v24, %v7954_v22  ;;  %v3120_v35 = vmul.f32 %v3117_v24, %v7957_v60 }
 0x335   : > { %v2858_v8 = vsel %vm353_vm2, %v2850_v31, 0.0  ;;  %v2746_v47 = vadd.f32 %v2745_v59, %v2744_v23  ;;  %v2753_v6 = vadd.f32 %v2752_v9, %v2751_v62  ;;  %v2816_v4 = vadd.f32 %v2815_v57, %v2814_v27 }
 0x336   : > { %v2823_v30 = vadd.f32 %v2822_v13, %v2821_v21  ;;  %v2852_v32 = vrot.slane %v2851_v3, 4  ;;  %v2859_v56 = vrot.slane %v2858_v8, 4  ;;  %v3121_v53 = vsel %vm353_vm2, %v3119_v40, 0.0 }
 0x337   : > { %v3128_v43 = vsel %vm353_vm2, %v3120_v35, 0.0  ;;  %v2991_v1 = vrot.slane %v2990_v15, 1  ;;  %v2998_v51 = vrot.slane %v2997_v52, 1  ;;  %v3122_v12 = vrot.slane %v3121_v53, 4  ;;  %v7977_v36 = vpop.permute.xlu1 %3068  ;;  %v7983_v35 = vpop.permute.xlu0 %3222 }
 0x338   : > { %v3129_v34 = vrot.slane %v3128_v43, 4  ;;  %v2853_v55 = vadd.f32 %v2852_v32, %v2851_v3  ;;  %v2860_v42 = vadd.f32 %v2859_v56, %v2858_v8  ;;  %v3095_v18 = vmul.f32 %v3093_v7, %v7954_v22 }
 0x339   : > { %v3096_v25 = vmul.f32 %v3093_v7, %v7957_v60  ;;  %v2817_v23 = vrot.slane %v2816_v4, 1  ;;  %v2824_v62 = vrot.slane %v2823_v30, 1  ;;  %v3123_v54 = vadd.f32 %v3122_v12, %v3121_v53  ;;  %v7987_v12 = vpop.permute.xlu2 %3198 }
 0x33a   : > { %v3130_v44 = vadd.f32 %v3129_v34, %v3128_v43  ;;  %v2854_v46 = vrot.slane %v2853_v55, 2  ;;  %v2861_v20 = vrot.slane %v2860_v42, 2  ;;  %v3097_v27 = vsel %vm353_vm2, %v3095_v18, 0.0 }
 0x33b   : > { %v3104_v21 = vsel %vm353_vm2, %v3096_v25, 0.0  ;;  %v3124_v41 = vrot.slane %v3123_v54, 2  ;;  %v3098_v9 = vrot.slane %v3097_v27, 4  ;;  %v3015_v13 = vrot.slane %v3014_v26, 1 }
 0x33c   : > { %v3131_v59 = vrot.slane %v3130_v44, 2  ;;  %v3105_v57 = vrot.slane %v3104_v21, 4  ;;  %v3022_v33 = vrot.slane %v3021_v19, 1  ;;  %v2921_v7 = vmul.f32 %v7903_v48, %v7797_v14 }
 0x33d   : > { %v2922_v31 = vmul.f32 %v7903_v48, %v7800_v45  ;;  %v2992_v24 = vadd.f32 %v2991_v1, %v2990_v15  ;;  %v2999_v3 = vadd.f32 %v2998_v51, %v2997_v52  ;;  %v2855_v8 = vadd.f32 %v2854_v46, %v2853_v55 }
 0x33e   : > { %v2862_v40 = vadd.f32 %v2861_v20, %v2860_v42  ;;  %v3125_v32 = vadd.f32 %v3124_v41, %v3123_v54  ;;  %v3132_v56 = vadd.f32 %v3131_v59, %v3130_v44  ;;  %v2923_v53 = vsel %vm353_vm2, %v2921_v7, 0.0 }
 0x33f   : > { %v2930_v43 = vsel %vm353_vm2, %v2922_v31, 0.0  ;;  %v2818_v34 = vadd.f32 %v2817_v23, %v2816_v4  ;;  %v2825_v18 = vadd.f32 %v2824_v62, %v2823_v30  ;;  %v3099_v14 = vadd.f32 %v3098_v9, %v3097_v27  ;;  %v3141_v62 = vpop.permute.xlu1 %3140 }
 0x340   : > { %v3106_v25 = vadd.f32 %v3105_v57, %v3104_v21  ;;  %v2754_v45 = vadd.f32 %v2746_v47, %v7938_v39  ;;  %v2755_v48 = vadd.f32 %v2753_v6, %v7941_v38  ;;  %v2924_v15 = vrot.slane %v2923_v53, 4 }
 0x341   : > { %v2931_v52 = vrot.slane %v2930_v43, 4  ;;  %v7991_v1 = vadd.f32 %v3015_v13, %v3014_v26  ;;  %v7993_v51 = vadd.f32 %v3022_v33, %v3021_v19  ;;  %v2856_v55 = vrot.slane %v2855_v8, 1  ;;  %v8021_v13 = vpop.permute.xlu0 %3331 }
 0x342   : > { %v2863_v42 = vrot.slane %v2862_v40, 1  ;;  %v7996_v54 = vadd.f32 %v2992_v24, %v7933_v49  ;;  %v7999_v4 = vadd.f32 %v2999_v3, %v7935_v0  ;;  %v3126_v30 = vrot.slane %v3125_v32, 1  ;;  %9833 = vst [vmem:[#allocation9_spill] sm:$0xff] %v8021_v13 }
 0x343   : > { %v3133_v23 = vrot.slane %v3132_v56, 1  ;;  %v8002_v39 = vadd.f32 %v2818_v34, %v7943_v61  ;;  %v8005_v38 = vadd.f32 %v2825_v18, %v7945_v58  ;;  %v3100_v26 = vrot.slane %v3099_v14, 2 }
 0x344   : > { %v3107_v19 = vrot.slane %v3106_v25, 2  ;;  %v2925_v47 = vadd.f32 %v2924_v15, %v2923_v53  ;;  %v2932_v6 = vadd.f32 %v2931_v52, %v2930_v43  ;;  %v2960_v49 = vmul.f32 %v7929_v17, %v7878_v63 }
 0x345   : > { %v2961_v0 = vmul.f32 %v7929_v17, %v7880_v16  ;;  %v2857_v44 = vadd.f32 %v2856_v55, %v2855_v8  ;;  %v2864_v46 = vadd.f32 %v2863_v42, %v2862_v40  ;;  %v3032_v20 = vmul.f32 %v7963_v28, %v7878_v63 }
 0x346   : > { %v3033_v61 = vmul.f32 %v7963_v28, %v7880_v16  ;;  %v8015_v58 = vadd.f32 %v3126_v30, %v3125_v32  ;;  %v8017_v27 = vadd.f32 %v3133_v23, %v3132_v56  ;;  %v2962_v21 = vsel %vm353_vm2, %v2960_v49, 0.0  ;;  %v8025_v28 = vpop.permute.xlu2 %3307 }
 0x347   : > { %v2969_v41 = vsel %vm353_vm2, %v2961_v0, 0.0  ;;  %v3101_v59 = vadd.f32 %v3100_v26, %v3099_v14  ;;  %v3108_v9 = vadd.f32 %v3107_v19, %v3106_v25  ;;  %v2963_v57 = vrot.slane %v2962_v21, 4  ;;  %9834 = vst [vmem:[#allocation10_spill] sm:$0xff] %v8025_v28  ;;  %v8031_v43 = vpop.permute.xlu1 %3246 }
 0x348   : > { %v2970_v17 = vrot.slane %v2969_v41, 4  ;;  %v2926_v33 = vrot.slane %v2925_v47, 2  ;;  %v2933_v7 = vrot.slane %v2932_v6, 2  ;;  %v3034_v63 = vsel %vm353_vm2, %v3032_v20, 0.0 }
 0x349   : > { %v3041_v16 = vsel %vm353_vm2, %v3033_v61, 0.0  ;;  %v2964_v31 = vadd.f32 %v2963_v57, %v2962_v21  ;;  %v3035_v3 = vrot.slane %v3034_v63, 4  ;;  %v2865_v40 = vadd.f32 %v2857_v44, %v2754_v45 }
 0x34a   : > { %v2971_v24 = vadd.f32 %v2970_v17, %v2969_v41  ;;  %v3042_v8 = vrot.slane %v3041_v16, 4  ;;  %v2866_v32 = vadd.f32 %v2864_v46, %v2755_v48  ;;  %v3071_v56 = vmul.f32 %v7977_v36, %v7954_v22 }
 0x34b   : > { %v3072_v53 = vmul.f32 %v7977_v36, %v7957_v60  ;;  %v2965_v34 = vrot.slane %v2964_v31, 2  ;;  %v3036_v14 = vadd.f32 %v3035_v3, %v3034_v63  ;;  %v2927_v15 = vadd.f32 %v2926_v33, %v2925_v47 }
 0x34c   : > { %v2972_v18 = vrot.slane %v2971_v24, 2  ;;  %v3043_v25 = vadd.f32 %v3042_v8, %v3041_v16  ;;  %v2934_v52 = vadd.f32 %v2933_v7, %v2932_v6  ;;  %v3073_v55 = vsel %vm353_vm2, %v3071_v56, 0.0  ;;  %v8039_v7 = vpop.permute.xlu0 %3368 }
 0x34d   : > { %v3080_v42 = vsel %vm353_vm2, %v3072_v53, 0.0  ;;  %v2966_v45 = vadd.f32 %v2965_v34, %v2964_v31  ;;  %v3037_v30 = vrot.slane %v3036_v14, 2  ;;  %v3074_v26 = vrot.slane %v3073_v55, 4 }
 0x34e   : > { %v2973_v48 = vadd.f32 %v2972_v18, %v2971_v24  ;;  %v3044_v23 = vrot.slane %v3043_v25, 2  ;;  %v3081_v19 = vrot.slane %v3080_v42, 4  ;;  %v3143_v36 = vmul.f32 %v3141_v62, %v7954_v22  ;;  %v8041_v16 = vpop.permute.xlu2 %3416 }
 0x34f   : > { %v3144_v49 = vmul.f32 %v3141_v62, %v7957_v60  ;;  %v2967_v0 = vrot.slane %v2966_v45, 1  ;;  %v3038_v46 = vadd.f32 %v3037_v30, %v3036_v14  ;;  %v3075_v47 = vadd.f32 %v3074_v26, %v3073_v55  ;;  %v8043_v31 = vpop.permute.xlu1 %3283 }
 0x350   : > { %v2974_v44 = vrot.slane %v2973_v48, 1  ;;  %v3045_v20 = vadd.f32 %v3044_v23, %v3043_v25  ;;  %v3082_v6 = vadd.f32 %v3081_v19, %v3080_v42  ;;  %v3145_v61 = vsel %vm353_vm2, %v3143_v36, 0.0 }
 0x351   : > { %v3152_v21 = vsel %vm353_vm2, %v3144_v49, 0.0  ;;  %v3102_v41 = vrot.slane %v3101_v59, 1  ;;  %v3109_v57 = vrot.slane %v3108_v9, 1  ;;  %v2928_v17 = vrot.slane %v2927_v15, 1 }
 0x352   : > { %v2935_v33 = vrot.slane %v2934_v52, 1  ;;  %v3076_v63 = vrot.slane %v3075_v47, 2  ;;  %v3083_v22 = vrot.slane %v3082_v6, 2  ;;  %v3146_v60 = vrot.slane %v3145_v61, 4 }
 0x353   : > { %v3153_v62 = vrot.slane %v3152_v21, 4  ;;  %v2968_v24 = vadd.f32 %v2967_v0, %v2966_v45  ;;  %v2975_v3 = vadd.f32 %v2974_v44, %v2973_v48  ;;  %v3039_v8 = vrot.slane %v3038_v46, 1 }
 0x354   : > { %v3046_v56 = vrot.slane %v3045_v20, 1  ;;  %v3077_v53 = vadd.f32 %v3076_v63, %v3075_v47  ;;  %v3084_v34 = vadd.f32 %v3083_v22, %v3082_v6  ;;  %v3147_v18 = vadd.f32 %v3146_v60, %v3145_v61 }
 0x355   : > { %v3154_v14 = vadd.f32 %v3153_v62, %v3152_v21  ;;  %v3103_v25 = vadd.f32 %v3102_v41, %v3101_v59  ;;  %v3110_v55 = vadd.f32 %v3109_v57, %v3108_v9  ;;  %v2929_v42 = vadd.f32 %v2928_v17, %v2927_v15  ;;  %v8057_v41 = vpop.permute.xlu0 %3477 }
 0x356   : > { %v2936_v30 = vadd.f32 %v2935_v33, %v2934_v52  ;;  %v3078_v23 = vrot.slane %v3077_v53, 1  ;;  %v3085_v26 = vrot.slane %v3084_v34, 1  ;;  %v3148_v19 = vrot.slane %v3147_v18, 2  ;;  %v8059_v57 = vpop.permute.xlu2 %3453 }
 0x357   : > { %v3155_v36 = vrot.slane %v3154_v14, 2  ;;  %v2976_v49 = vadd.f32 %v2968_v24, %v2865_v40  ;;  %v2977_v50 = vadd.f32 %v2975_v3, %v2866_v32  ;;  %v3040_v13 = vadd.f32 %v3039_v8, %v3038_v46  ;;  %v8049_v40 = vpop.permute.xlu1 %3392 }
 0x358   : > { %v3047_v28 = vadd.f32 %v3046_v56, %v3045_v20  ;;  %v3079_v45 = vadd.f32 %v3078_v23, %v3077_v53  ;;  %v3086_v48 = vadd.f32 %v3085_v26, %v3084_v34  ;;  %v3149_v0 = vadd.f32 %v3148_v19, %v3147_v18  ;;  %v5943_v23 = vld [vmem:[%s9702_s2 + $0x24] sm:$0xf]  ;;  %v5944_v26 = vld [vmem:[%s9702_s2 + $0x48] sm:$0xf] }
 0x359   : > { %v3156_v44 = vadd.f32 %v3155_v36, %v3154_v14  ;;  %v3111_v47 = vadd.f32 %v3103_v25, %v7996_v54  ;;  %v3112_v6 = vadd.f32 %v3110_v55, %v7999_v4  ;;  %v2937_v59 = vadd.f32 %v2929_v42, %v8002_v39  ;;  %v5936_v14 = vld [vmem:[%s9703_s3 + $0x1c] sm:$0xf]  ;;  %v5938_v25 = vld [vmem:[%s9703_s3 + $0x64] sm:$0xf]  ;;  %v5937_v55 = vld [vmem:[%s9703_s3 + $0x40] sm:$0xf] }
 0x35a   : > { %v2938_v9 = vadd.f32 %v2936_v30, %v8005_v38  ;;  %v3087_v15 = vadd.f32 %v3079_v45, %v2976_v49  ;;  %v3088_v52 = vadd.f32 %v3086_v48, %v2977_v50  ;;  %v3150_v61 = vrot.slane %v3149_v0, 1  ;;  %v5939_v42 = vld [vmem:[%s9703_s3 + $0x20] sm:$0xf]  ;;  %v5940_v30 = vld [vmem:[%s9703_s3 + $0x44] sm:$0xf] }
 0x35b   : > { %v3157_v21 = vrot.slane %v3156_v44, 1  ;;  %v3024_v32 = vadd.f32 %v7991_v1, %v7897_v29  ;;  %v3025_v46 = vadd.f32 %v7993_v51, %v7899_v11  ;;  %v3048_v20 = vadd.f32 %v3040_v13, %v2937_v59  ;;  %v5941_v19 = vld [vmem:[%s9703_s3 + $0x68] sm:$0xf]  ;;  %v5949_v49 = vld [vmem:[%s9702_s2 + $0x4c] sm:$0xf] }
 0x35c   : > { %v3049_v54 = vadd.f32 %v3047_v28, %v2938_v9  ;;  %v3161_v4 = vsel %vm1364_vm10, %v3087_v15, %v3111_v47  ;;  %v3162_v39 = vsel %vm1364_vm10, %v3088_v52, %v3112_v6  ;;  %v3151_v38 = vadd.f32 %v3150_v61, %v3149_v0  ;;  %v5948_v36 = vld [vmem:[%s9702_s2 + $0x28] sm:$0xf]  ;;  %v3962_v45 = vld [vmem:[%s9702_s2] sm:$0xf]  ;;  %v5953_v48 = vld [vmem:[%s9702_s2 + $0x2c] sm:$0xf] }
 0x35d   : > { %v3158_v50 = vadd.f32 %v3157_v21, %v3156_v44  ;;  %v3135_v17 = vadd.f32 %v8015_v58, %v3024_v32  ;;  %v3136_v33 = vadd.f32 %v8017_v27, %v3025_v46  ;;  %v3550_v3 = vpop.permute.xlu0 %3549  ;;  %v5954_v0 = vld [vmem:[%s9702_s2 + $0x50] sm:$0xf]  ;;  %v5945_v44 = vld [vmem:[%s9702_s2 + $0x6c] sm:$0xf]  ;;  %v5959_v6 = vld [vmem:[%s9702_s2 + $0x54] sm:$0xf] }
 0x35e   : > { %v3159_v29 = vadd.f32 %v3151_v38, %v3048_v20  ;;  %v3526_v8 = vpop.permute.xlu2 %3525  ;;  %v5958_v47 = vld [vmem:[%s9702_s2 + $0x30] sm:$0xf]  ;;  %v5947_v59 = vld [vmem:[%s9702_s2 + $0x4] sm:$0xf]  ;;  %v5962_v21 = vld [vmem:[%s9702_s2 + $0x34] sm:$0xf] }
 0x35f   : > { %v3160_v1 = vadd.f32 %v3158_v50, %v3049_v54  ;;  %v3163_v11 = vsel %vm1367_vm11, %v3161_v4, %v3135_v17  ;;  %v3164_v51 = vsel %vm1367_vm11, %v3162_v39, %v3136_v33  ;;  %v8069_v60 = vpop.permute.xlu1 %3501  ;;  %v8152_v9 = vld.sshfl [vmem:[#allocation1] sm:$0xff pattern:$0x75316420]  ;;  %v8154_v15 = vld.sshfl [vmem:[#allocation1 + $0x8] sm:$0xff pattern:$0x75316420] }
 0x360   : > { %v3165_v13 = vsel %vm324_vm0, %v3163_v11, %v3159_v29  ;;  %v9835_v52 = vld [vmem:[#allocation12_spill] sm:$0xff]  ;;  %v5961_v61 = vld [vmem:[%s9702_s2 + $0x10] sm:$0xf]  ;;  %v5964_v46 = vld [vmem:[%s9702_s2 + $0x7c] sm:$0xf] }
 0x361   : > { %v3166_v28 = vsel %vm324_vm0, %v3164_v51, %v3160_v1  ;;  %v3176_v63 = vadd.f32 %v7969_v10, %v3165_v13  ;;  %3273 = vst [vmem:[#allocation1] ss:$2 sm:$0xff] %v9835_v52  ;;  %v5950_v32 = vld [vmem:[%s9702_s2 + $0x70] sm:$0xf]  ;;  %v5967_v54 = vld [vmem:[%s9702_s2 + $0x38] sm:$0xf] }
 0x362   : > { %v3177_v22 = vadd.f32 %v7969_v10, %v3166_v28  ;;  %v5952_v4 = vld [vmem:[%s9702_s2 + $0x8] sm:$0xf]  ;;  %v5966_v11 = vld [vmem:[%s9702_s2 + $0x14] sm:$0xf]  ;;  %v5972_v28 = vld [vmem:[%s9702_s2 + $0x3c] sm:$0xf] }
 0x363   : > { %v3178_v62 = vmax.f32 %v3176_v63, 0.0  ;;  %v9836_v17 = vld [vmem:[#allocation13_spill] sm:$0xff] }
 0x364   : > { %v3179_v58 = vmax.f32 %v3177_v22, 0.0 }
 0x365   : > { %v3180_v27 = vadd.f32 %v3178_v62, %v7307_v2  ;;  %v8184_v33 = vpop.permute.xlu0 %3658  ;;  %v5955_v62 = vld [vmem:[%s9702_s2 + $0x74] sm:$0xf] }
 0x366   : > { %v3181_v24 = vadd.f32 %v3179_v58, %v9823_v5  ;;  %v8169_v20 = vpop.permute.xlu2 %3634 }
 0x367   : > { %v8073_v56 = vmul.f32 %v3550_v3, %v3180_v27  ;;  %v8077_v34 = vmul.f32 %v3526_v8, %v3180_v27  ;;  %3267 = vrot.lane.b32.xlu2 %v3180_v27, %s6079_s8  ;;  %3182 = vrot.lane.b32.xlu0 %v3180_v27, %s6078_s30  ;;  %v3574_v10 = vpop.permute.xlu1 %3573 }
 0x368   : > { %v8075_v53 = vmul.f32 %v3550_v3, %v3181_v24  ;;  %v8079_v18 = vmul.f32 %v3526_v8, %v3181_v24  ;;  %3184 = vrot.lane.b32.xlu1 %v3181_v24, %s6078_s30  ;;  %v8084_v2 = vmul.f32 %v3574_v10, %v3180_v27  ;;  %v8086_v5 = vmul.f32 %v3574_v10, %v3181_v24  ;;  %v8177_v39 = vld.sshfl [vmem:[#allocation1] sm:$0xff pattern:$0x75316420]  ;;  %v8179_v38 = vld.sshfl [vmem:[#allocation1 + $0x8] sm:$0xff pattern:$0x75316420] }
 0x369   : > { %3358 = vst [vmem:[#allocation1] ss:$2 sm:$0xff] %v9836_v17  ;;  %v3554_v29 = vsel %vm353_vm2, %v8073_v56, 0.0  ;;  %v3530_v51 = vsel %vm353_vm2, %v8077_v34, 0.0  ;;  %v9837_v34 = vld [vmem:[#allocation14_spill] sm:$0xff] }
 0x36a   : > { %v3561_v1 = vsel %vm353_vm2, %v8075_v53, 0.0  ;;  %v3537_v13 = vsel %vm353_vm2, %v8079_v18, 0.0  ;;  %v3555_v63 = vrot.slane %v3554_v29, 4  ;;  %v3531_v3 = vrot.slane %v3530_v51, 4 }
 0x36b   : > { %v3562_v22 = vrot.slane %v3561_v1, 4  ;;  %v3538_v8 = vrot.slane %v3537_v13, 4  ;;  %v3578_v56 = vsel %vm353_vm2, %v8084_v2, 0.0  ;;  %v3585_v53 = vsel %vm353_vm2, %v8086_v5, 0.0  ;;  %v5969_v2 = vld [vmem:[%s9702_s2 + $0x80] sm:$0xf] }
 0x36c   : > { %v5977_v5 = vld [vmem:[%s9702_s2 + $0x40] sm:$0xf] }
 0x36d   : > { %v8216_v10 = vpop.permute.xlu0 %3695 }
 0x36e   : > { %v8203_v58 = vpop.permute.xlu2 %3743 }
 0x36f   : > { %3354 = vrot.lane.b32.xlu2 %v3181_v24, %s6080_s18  ;;  %3269 = vrot.lane.b32.xlu0 %v3181_v24, %s6079_s8  ;;  %v8181_v50 = vpop.permute.xlu1 %3610 }
 0x370   : > { %3352 = vrot.lane.b32.xlu1 %v3180_v27, %s6080_s18 }
 0x377   : > { %3594 = vrot.lane.b32.xlu2 %v3180_v27, %s6082_s21  ;;  %3437 = vrot.lane.b32.xlu0 %v3180_v27, %s6081_s13  ;;  %v8214_v18 = vpop.permute.xlu1 %3719 }
 0x378   : > { %3439 = vrot.lane.b32.xlu1 %v3181_v24, %s6081_s13 }
 0x37f   : > { %3681 = vrot.lane.b32.xlu2 %v3181_v24, %s6083_s12  ;;  %3596 = vrot.lane.b32.xlu0 %v3181_v24, %s6082_s21 }
 0x380   : > { %3679 = vrot.lane.b32.xlu1 %v3180_v27, %s6083_s12 }
 0x387   : > { %3780 = vperm.xlu2 %6045, %v5936_v14   ;;  %3764 = vrot.lane.b32.xlu0 %v3180_v27, %s6084_s26  ;;  %v3579_v14 = vrot.slane %v3578_v56, 4 }
 0x388   : > { %3766 = vrot.lane.b32.xlu1 %v3181_v24, %s6084_s26 }
 0x38f   : > { %3849 = vrot.lane.b32.xlu2 %v3180_v27, %s6085_s19  ;;  %3804 = vperm.xlu0 %6046, %v5937_v55   ;;  %v8205_v27 = vld.sshfl [vmem:[#allocation1] sm:$0xff pattern:$0x75316420]  ;;  %v3556_v55 = vadd.f32 %v3555_v63, %v3554_v29  ;;  %v5971_v29 = vld [vmem:[%s9702_s2 + $0x18] sm:$0xf] }
 0x390   : > { %3828 = vperm.xlu1 %6044, %v5938_v25   ;;  %v3586_v25 = vrot.slane %v3585_v53, 4 }
 0x397   : > { %3889 = vperm.xlu2 %6045, %v5940_v30   ;;  %3851 = vrot.lane.b32.xlu0 %v3181_v24, %s6085_s19  ;;  %v8207_v24 = vld.sshfl [vmem:[#allocation1 + $0x8] sm:$0xff pattern:$0x75316420]  ;;  %v3532_v30 = vadd.f32 %v3531_v3, %v3530_v51 }
 0x398   : > { %3865 = vperm.xlu1 %6044, %v5939_v42   ;;  %3443 = vst [vmem:[#allocation1] ss:$2 sm:$0xff] %v9837_v34  ;;  %v3563_v42 = vadd.f32 %v3562_v22, %v3561_v1 }
 0x39f   : > { %4013 = vperm.xlu2 %6045, %v5944_v26   ;;  %3913 = vperm.xlu0 %6046, %v5941_v19   ;;  %v5957_v26 = vld [vmem:[%s9702_s2 + $0xc] sm:$0xf]  ;;  %v3580_v19 = vadd.f32 %v3579_v14, %v3578_v56 }
 0x3a0   : > { %3989 = vperm.xlu1 %6044, %v5943_v23   ;;  %v3539_v23 = vadd.f32 %v3538_v8, %v3537_v13 }
 0x3a7   : > { %4124 = vperm.xlu2 %6045, %v5949_v49   ;;  %3965 = vperm.xlu0 %6046, %v3962_v45   ;;  %v3557_v45 = vrot.slane %v3556_v55, 2 }
 0x3a8   : > { %4100 = vperm.xlu1 %6044, %v5948_v36   ;;  %v3587_v36 = vadd.f32 %v3586_v25, %v3585_v53 }
 0x3a9   : > { %v3558_v1 = vadd.f32 %v3557_v45, %v3556_v55 }
 0x3af   : > { %4235 = vperm.xlu2 %6045, %v5954_v0   ;;  %4037 = vperm.xlu0 %6046, %v5945_v44   ;;  %v3533_v0 = vrot.slane %v3532_v30, 2  ;;  %v3540_v44 = vrot.slane %v3539_v23, 2 }
 0x3b0   : > { %4211 = vperm.xlu1 %6044, %v5953_v48   ;;  %v3564_v48 = vrot.slane %v3563_v42, 2 }
 0x3b1   : > { %v3534_v51 = vadd.f32 %v3533_v0, %v3532_v30  ;;  %v3541_v13 = vadd.f32 %v3540_v44, %v3539_v23 }
 0x3b7   : > { %4346 = vperm.xlu2 %6045, %v5959_v6   ;;  %4076 = vperm.xlu0 %6046, %v5947_v59   ;;  %v8229_v6 = vld.sshfl [vmem:[#allocation1] sm:$0xff pattern:$0x75316420]  ;;  %v8231_v59 = vld.sshfl [vmem:[#allocation1 + $0x8] sm:$0xff pattern:$0x75316420] }
 0x3b8   : > { %4322 = vperm.xlu1 %6044, %v5958_v47  }
 0x3bf   : > { %4418 = vperm.xlu2 %6045, %v5962_v21   ;;  %4148 = vperm.xlu0 %6046, %v5950_v32   ;;  %v3581_v21 = vrot.slane %v3580_v19, 2  ;;  %v3588_v32 = vrot.slane %v3587_v36, 2 }
 0x3c0   : > { %4394 = vperm.xlu1 %6044, %v5961_v61   ;;  %v9838_v61 = vld [vmem:[#allocation15_spill] sm:$0xff] }
 0x3c1   : > { %v8227_v49 = vpop.permute.xlu2 %3267  ;;  %3600 = vst [vmem:[#allocation1] ss:$2 sm:$0xff] %v9838_v61  ;;  %v3589_v3 = vadd.f32 %v3588_v32, %v3587_v36  ;;  %v5974_v61 = vld [vmem:[%s9702_s2 + $0x84] sm:$0xf] }
 0x3c7   : > { %4529 = vperm.xlu2 %6045, %v5967_v54   ;;  %4187 = vperm.xlu0 %6046, %v5952_v4  }
 0x3c8   : > { %4466 = vperm.xlu1 %6044, %v5964_v46  }
 0x3cf   : > { %4640 = vperm.xlu2 %6045, %v5972_v28   ;;  %4259 = vperm.xlu0 %6046, %v5955_v62  }
 0x3d0   : > { %4505 = vperm.xlu1 %6044, %v5966_v11   ;;  %v3565_v11 = vadd.f32 %v3564_v48, %v3563_v42 }
 0x3d2   : > { %v3566_v32 = vrot.slane %v3565_v11, 1 }
 0x3d7   : > { %4751 = vperm.xlu2 %6045, %v5977_v5   ;;  %4298 = vperm.xlu0 %6046, %v5957_v26  }
 0x3d8   : > { %4577 = vperm.xlu1 %6044, %v5969_v2  }
 0x3d9   : > { %v3183_v52 = vpop.permute.xlu0 %3182 }
 0x3da   : > { %v3185_v47 = vpop.permute.xlu1 %3184 }
 0x3db   : > { %v3186_v46 = vsel %vm333_vm1, %v3183_v52, %v3185_v47  ;;  %v3187_v54 = vsel %vm333_vm1, %v3185_v47, %v3183_v52 }
 0x3dc   : > { %v3193_v4 = vmul.f32 %v8152_v9, %v3187_v54  ;;  %v3194_v17 = vmul.f32 %v8154_v15, %v3186_v46  ;;  %v5960_v9 = vld [vmem:[%s9702_s2 + $0x78] sm:$0xf]  ;;  %v3582_v15 = vadd.f32 %v3581_v21, %v3580_v19  ;;  %v3559_v21 = vrot.slane %v3558_v1, 1 }
 0x3de   : > { %v3201_v28 = vmul.f32 %v7987_v12, %v3193_v4  ;;  %v3202_v63 = vmul.f32 %v7987_v12, %v3194_v17  ;;  %v3225_v22 = vmul.f32 %v7983_v35, %v3193_v4  ;;  %v3226_v62 = vmul.f32 %v7983_v35, %v3194_v17  ;;  %v3355_v35 = vpop.permute.xlu2 %3354 }
 0x3df   : > { %v3249_v8 = vmul.f32 %v8031_v43, %v3193_v4  ;;  %v3250_v56 = vmul.f32 %v8031_v43, %v3194_v17  ;;  %4370 = vperm.xlu0 %6046, %v5960_v9  }
 0x3e0   : > { %4616 = vperm.xlu1 %6044, %v5971_v29   ;;  %v3203_v53 = vsel %vm353_vm2, %v3201_v28, 0.0  ;;  %v3210_v34 = vsel %vm353_vm2, %v3202_v63, 0.0  ;;  %v3227_v12 = vsel %vm353_vm2, %v3225_v22, 0.0  ;;  %v3234_v14 = vsel %vm353_vm2, %v3226_v62, 0.0 }
 0x3e1   : > { %v3204_v25 = vrot.slane %v3203_v53, 4  ;;  %v3211_v55 = vrot.slane %v3210_v34, 4  ;;  %v3228_v42 = vrot.slane %v3227_v12, 4  ;;  %v3235_v30 = vrot.slane %v3234_v14, 4 }
 0x3e2   : > { %v3353_v23 = vpop.permute.xlu1 %3352  ;;  %v3251_v2 = vsel %vm353_vm2, %v3249_v8, 0.0  ;;  %v3258_v43 = vsel %vm353_vm2, %v3250_v56, 0.0  ;;  %v3535_v63 = vrot.slane %v3534_v51, 1  ;;  %v3583_v22 = vrot.slane %v3582_v15, 1 }
 0x3e3   : > { %v3356_v5 = vsel %vm566_vm4, %v3353_v23, %v3355_v35  ;;  %v3357_v26 = vsel %vm566_vm4, %v3355_v35, %v3353_v23  ;;  %v3205_v19 = vadd.f32 %v3204_v25, %v3203_v53  ;;  %v3212_v36 = vadd.f32 %v3211_v55, %v3210_v34  ;;  %v8278_v55 = vld.sshfl [vmem:[#allocation1] sm:$0xff pattern:$0x75316420] }
 0x3e4   : > { %v3229_v45 = vadd.f32 %v3228_v42, %v3227_v12  ;;  %v3236_v48 = vadd.f32 %v3235_v30, %v3234_v14  ;;  %v3252_v0 = vrot.slane %v3251_v2, 4  ;;  %v3259_v44 = vrot.slane %v3258_v43, 4 }
 0x3e5   : > { %v3363_v47 = vmul.f32 %v8205_v27, %v3357_v26  ;;  %v3364_v52 = vmul.f32 %v8207_v24, %v3356_v5  ;;  %v3206_v46 = vrot.slane %v3205_v19, 2  ;;  %v3213_v54 = vrot.slane %v3212_v36, 2  ;;  %v5963_v27 = vld [vmem:[%s9702_s2 + $0x58] sm:$0xf] }
 0x3e6   : > { %v3230_v4 = vrot.slane %v3229_v45, 2  ;;  %v3237_v17 = vrot.slane %v3236_v48, 2  ;;  %v3542_v24 = vrot.slane %v3541_v13, 1  ;;  %v3590_v62 = vrot.slane %v3589_v3, 1 }
 0x3e7   : > { %v3371_v29 = vmul.f32 %v8039_v7, %v3363_v47  ;;  %v3372_v28 = vmul.f32 %v8039_v7, %v3364_v52  ;;  %v3253_v9 = vadd.f32 %v3252_v0, %v3251_v2  ;;  %v3260_v8 = vadd.f32 %v3259_v44, %v3258_v43  ;;  %4442 = vperm.xlu0 %6046, %v5963_v27  }
 0x3e8   : > { %4688 = vperm.xlu1 %6044, %v5974_v61   ;;  %v8272_v56 = vadd.f32 %v3559_v21, %v3558_v1  ;;  %v8274_v53 = vadd.f32 %v3566_v32, %v3565_v11  ;;  %v3207_v7 = vadd.f32 %v3206_v46, %v3205_v19  ;;  %v3214_v14 = vadd.f32 %v3213_v54, %v3212_v36  ;;  %v8288_v11 = vld.sshfl [vmem:[#allocation1 + $0x8] sm:$0xff pattern:$0x75316420]  ;;  %v9843_v19 = vld [vmem:[#allocation20_spill] sm:$0xff]  ;;  %v3270_v61 = vpop.permute.xlu0 %3269  ;;  %v5968_v21 = vld [vmem:[%s9702_s2 + $0x5c] sm:$0xf] }
 0x3e9   : > { %v3373_v34 = vsel %vm353_vm2, %v3371_v29, 0.0  ;;  %v3380_v12 = vsel %vm353_vm2, %v3372_v28, 0.0  ;;  %v3231_v35 = vadd.f32 %v3230_v4, %v3229_v45  ;;  %v3238_v25 = vadd.f32 %v3237_v17, %v3236_v48  ;;  %3685 = vst [vmem:[#allocation1] ss:$2 sm:$0xff] %v9843_v19 }
 0x3ea   : > { %9839 = vst [vmem:[#allocation19_spill] sm:$0xff] %v8272_v56  ;;  %v8280_v42 = vadd.f32 %v3535_v63, %v3534_v51  ;;  %v8282_v30 = vadd.f32 %v3542_v24, %v3541_v13  ;;  %v8284_v23 = vadd.f32 %v3583_v22, %v3582_v15  ;;  %v8286_v1 = vadd.f32 %v3590_v62, %v3589_v3  ;;  %v5976_v15 = vld [vmem:[%s9702_s2 + $0x1c] sm:$0xf] }
 0x3eb   : > { %9840 = vst [vmem:[#allocation7_spill] sm:$0xff] %v8274_v53  ;;  %v3254_v2 = vrot.slane %v3253_v9, 2  ;;  %v3261_v43 = vrot.slane %v3260_v8, 2  ;;  %v3374_v5 = vrot.slane %v3373_v34, 4  ;;  %v3381_v26 = vrot.slane %v3380_v12, 4 }
 0x3ec   : > { %9841 = vst [vmem:[#allocation21_spill] sm:$0xff] %v8284_v23  ;;  %v3395_v36 = vmul.f32 %v8049_v40, %v3363_v47  ;;  %v3396_v45 = vmul.f32 %v8049_v40, %v3364_v52  ;;  %v3419_v51 = vmul.f32 %v8041_v16, %v3363_v47  ;;  %v3420_v13 = vmul.f32 %v8041_v16, %v3364_v52 }
 0x3ed   : > { %9842 = vst [vmem:[#allocation22_spill] sm:$0xff] %v8286_v1  ;;  %v3208_v3 = vrot.slane %v3207_v7, 1  ;;  %v3215_v48 = vrot.slane %v3214_v14, 1  ;;  %v3232_v0 = vrot.slane %v3231_v35, 1  ;;  %v3239_v44 = vrot.slane %v3238_v25, 1 }
 0x3ee   : > { %v3397_v32 = vsel %vm353_vm2, %v3395_v36, 0.0  ;;  %v3404_v40 = vsel %vm353_vm2, %v3396_v45, 0.0  ;;  %v3421_v47 = vsel %vm353_vm2, %v3419_v51, 0.0  ;;  %v3428_v16 = vsel %vm353_vm2, %v3420_v13, 0.0  ;;  %v9845_v13 = vld [vmem:[#allocation10_spill] sm:$0xff] }
 0x3ef   : > { %v3255_v52 = vadd.f32 %v3254_v2, %v3253_v9  ;;  %v3262_v46 = vadd.f32 %v3261_v43, %v3260_v8  ;;  %v3398_v54 = vrot.slane %v3397_v32, 4  ;;  %v3405_v4 = vrot.slane %v3404_v40, 4  ;;  %4553 = vperm.xlu0 %6046, %v5968_v21  }
 0x3f0   : > { %4727 = vperm.xlu1 %6044, %v5976_v15   ;;  %v3375_v17 = vadd.f32 %v3374_v5, %v3373_v34  ;;  %v3382_v29 = vadd.f32 %v3381_v26, %v3380_v12  ;;  %v3271_v28 = vsel %vm449_vm3, %v8227_v49, %v3270_v61  ;;  %v3272_v27 = vsel %vm449_vm3, %v3270_v61, %v8227_v49  ;;  %v8317_v2 = vld.sshfl [vmem:[#allocation1] sm:$0xff pattern:$0x75316420]  ;;  %v8319_v43 = vld.sshfl [vmem:[#allocation1 + $0x8] sm:$0xff pattern:$0x75316420] }
 0x3f1   : > { %v8311_v63 = vadd.f32 %v3208_v3, %v3207_v7  ;;  %v8313_v24 = vadd.f32 %v3215_v48, %v3214_v14  ;;  %v3422_v22 = vrot.slane %v3421_v47, 4  ;;  %v3429_v62 = vrot.slane %v3428_v16, 4  ;;  %v9844_v14 = vld [vmem:[#allocation8_spill] sm:$0xff] }
 0x3f2   : > { %v3399_v9 = vadd.f32 %v3398_v54, %v3397_v32  ;;  %v3406_v8 = vadd.f32 %v3405_v4, %v3404_v40  ;;  %v3278_v34 = vmul.f32 %v8177_v39, %v3272_v27  ;;  %v3279_v12 = vmul.f32 %v8179_v38, %v3271_v28  ;;  %3770 = vst [vmem:[#allocation1] ss:$2 sm:$0xff] %v9844_v14 }
 0x3f3   : > { %v8321_v5 = vadd.f32 %v3232_v0, %v3231_v35  ;;  %v8323_v49 = vadd.f32 %v3239_v44, %v3238_v25  ;;  %v3256_v7 = vrot.slane %v3255_v52, 1  ;;  %v3263_v26 = vrot.slane %v3262_v46, 1 }
 0x3f4   : > { %v3376_v19 = vrot.slane %v3375_v17, 2  ;;  %v3383_v36 = vrot.slane %v3382_v29, 2  ;;  %v3286_v45 = vmul.f32 %v8043_v31, %v3278_v34  ;;  %v3287_v39 = vmul.f32 %v8043_v31, %v3279_v12 }
 0x3f5   : > { %v3423_v51 = vadd.f32 %v3422_v22, %v3421_v47  ;;  %v3430_v38 = vadd.f32 %v3429_v62, %v3428_v16  ;;  %v3310_v15 = vmul.f32 %v9845_v13, %v3278_v34  ;;  %v3311_v3 = vmul.f32 %v9845_v13, %v3279_v12  ;;  %v3440_v22 = vpop.permute.xlu1 %3439  ;;  %v3438_v62 = vpop.permute.xlu0 %3437 }
 0x3f6   : > { %v3400_v35 = vrot.slane %v3399_v9, 2  ;;  %v3407_v48 = vrot.slane %v3406_v8, 2  ;;  %v3288_v25 = vsel %vm353_vm2, %v3286_v45, 0.0  ;;  %v3295_v0 = vsel %vm353_vm2, %v3287_v39, 0.0  ;;  %v9846_v39 = vld [vmem:[#allocation9_spill] sm:$0xff] }
 0x3f7   : > { %v8332_v44 = vadd.f32 %v3256_v7, %v3255_v52  ;;  %v8334_v61 = vadd.f32 %v3263_v26, %v3262_v46  ;;  %v3289_v21 = vrot.slane %v3288_v25, 4  ;;  %v3296_v32 = vrot.slane %v3295_v0, 4 }
 0x3f8   : > { %v3377_v40 = vadd.f32 %v3376_v19, %v3375_v17  ;;  %v3384_v31 = vadd.f32 %v3383_v36, %v3382_v29  ;;  %v3312_v47 = vsel %vm353_vm2, %v3310_v15, 0.0  ;;  %v3319_v16 = vsel %vm353_vm2, %v3311_v3, 0.0 }
 0x3f9   : > { %v3424_v54 = vrot.slane %v3423_v51, 2  ;;  %v3431_v4 = vrot.slane %v3430_v38, 2  ;;  %v3290_v28 = vadd.f32 %v3289_v21, %v3288_v25  ;;  %v3297_v27 = vadd.f32 %v3296_v32, %v3295_v0 }
 0x3fa   : > { %v3401_v14 = vadd.f32 %v3400_v35, %v3399_v9  ;;  %v3408_v45 = vadd.f32 %v3407_v48, %v3406_v8  ;;  %v3313_v52 = vrot.slane %v3312_v47, 4  ;;  %v3320_v7 = vrot.slane %v3319_v16, 4 }
 0x3fb   : > { %v3291_v46 = vrot.slane %v3290_v28, 2  ;;  %v3298_v26 = vrot.slane %v3297_v27, 2  ;;  %v3334_v13 = vmul.f32 %v9846_v39, %v3278_v34  ;;  %v3335_v17 = vmul.f32 %v9846_v39, %v3279_v12 }
 0x3fc   : > { %v3314_v29 = vadd.f32 %v3313_v52, %v3312_v47  ;;  %v3321_v19 = vadd.f32 %v3320_v7, %v3319_v16  ;;  %v3441_v36 = vsel %vm683_vm5, %v3438_v62, %v3440_v22  ;;  %v3442_v15 = vsel %vm683_vm5, %v3440_v22, %v3438_v62 }
 0x3fd   : > { %v3292_v3 = vadd.f32 %v3291_v46, %v3290_v28  ;;  %v3299_v25 = vadd.f32 %v3298_v26, %v3297_v27  ;;  %v3336_v9 = vsel %vm353_vm2, %v3334_v13, 0.0  ;;  %v3343_v8 = vsel %vm353_vm2, %v3335_v17, 0.0  ;;  %v8352_v13 = vpop.permute.xlu2 %3594 }
 0x3fe   : > { %v3425_v35 = vadd.f32 %v3424_v54, %v3423_v51  ;;  %v3432_v48 = vadd.f32 %v3431_v4, %v3430_v38  ;;  %v3315_v0 = vrot.slane %v3314_v29, 2  ;;  %v3322_v34 = vrot.slane %v3321_v19, 2 }
 0x3ff   : > { %v3378_v21 = vrot.slane %v3377_v40, 1  ;;  %v3385_v12 = vrot.slane %v3384_v31, 1  ;;  %v3448_v32 = vmul.f32 %v8229_v6, %v3442_v15  ;;  %v3449_v47 = vmul.f32 %v8231_v59, %v3441_v36 }
 0x400   : > { %v3293_v16 = vrot.slane %v3292_v3, 1  ;;  %v3300_v52 = vrot.slane %v3299_v25, 1  ;;  %v3337_v7 = vrot.slane %v3336_v9, 4  ;;  %v3344_v22 = vrot.slane %v3343_v8, 4 }
 0x401   : > { %v3402_v28 = vrot.slane %v3401_v14, 1  ;;  %v3409_v27 = vrot.slane %v3408_v45, 1  ;;  %v3456_v62 = vmul.f32 %v8059_v57, %v3448_v32  ;;  %v3457_v46 = vmul.f32 %v8059_v57, %v3449_v47 }
 0x402   : > { %v3426_v51 = vrot.slane %v3425_v35, 1  ;;  %v3433_v38 = vrot.slane %v3432_v48, 1  ;;  %v3316_v54 = vadd.f32 %v3315_v0, %v3314_v29  ;;  %v3323_v4 = vadd.f32 %v3322_v34, %v3321_v19  ;;  %v5979_v0 = vld [vmem:[%s9702_s2 + $0x88] sm:$0xf] }
 0x403   : > { %v3379_v26 = vadd.f32 %v3378_v21, %v3377_v40  ;;  %v3386_v39 = vadd.f32 %v3385_v12, %v3384_v31  ;;  %v3458_v6 = vsel %vm353_vm2, %v3456_v62, 0.0  ;;  %v3465_v59 = vsel %vm353_vm2, %v3457_v46, 0.0  ;;  %4799 = vperm.xlu1 %6044, %v5979_v0   ;;  %v8378_v46 = vld.sshfl [vmem:[#allocation1 + $0x8] sm:$0xff pattern:$0x75316420] }
 0x404   : > { %v3294_v17 = vadd.f32 %v3293_v16, %v3292_v3  ;;  %v3301_v36 = vadd.f32 %v3300_v52, %v3299_v25  ;;  %v3338_v15 = vadd.f32 %v3337_v7, %v3336_v9  ;;  %v3345_v53 = vadd.f32 %v3344_v22, %v3343_v8  ;;  %v5973_v3 = vld [vmem:[%s9702_s2 + $0x60] sm:$0xf] }
 0x405   : > { %v8354_v56 = vadd.f32 %v3402_v28, %v3401_v14  ;;  %v8356_v1 = vadd.f32 %v3409_v27, %v3408_v45  ;;  %v3459_v57 = vrot.slane %v3458_v6, 4  ;;  %v3466_v23 = vrot.slane %v3465_v59, 4  ;;  %4664 = vperm.xlu0 %6046, %v5973_v3  }
 0x406   : > { %v8358_v29 = vadd.f32 %v3426_v51, %v3425_v35  ;;  %v8360_v40 = vadd.f32 %v3433_v38, %v3432_v48  ;;  %v3317_v31 = vrot.slane %v3316_v54, 1  ;;  %v3324_v19 = vrot.slane %v3323_v4, 1 }
 0x407   : > { %v3460_v14 = vadd.f32 %v3459_v57, %v3458_v6  ;;  %v3467_v25 = vadd.f32 %v3466_v23, %v3465_v59  ;;  %v3480_v45 = vmul.f32 %v8057_v41, %v3448_v32  ;;  %v3481_v9 = vmul.f32 %v8057_v41, %v3449_v47 }
 0x408   : > { %v3302_v8 = vadd.f32 %v3294_v17, %v8311_v63  ;;  %v3303_v35 = vadd.f32 %v3301_v36, %v8313_v24  ;;  %v3339_v48 = vrot.slane %v3338_v15, 2  ;;  %v3346_v34 = vrot.slane %v3345_v53, 2  ;;  %v8376_v24 = vld.sshfl [vmem:[#allocation1] sm:$0xff pattern:$0x75316420]  ;;  %v3680_v17 = vpop.permute.xlu1 %3679  ;;  %v9847_v36 = vld [vmem:[#allocation11_spill] sm:$0xff] }
 0x409   : > { %v3461_v21 = vrot.slane %v3460_v14, 2  ;;  %v3468_v12 = vrot.slane %v3467_v25, 2  ;;  %v3482_v16 = vsel %vm353_vm2, %v3480_v45, 0.0  ;;  %v3489_v52 = vsel %vm353_vm2, %v3481_v9, 0.0  ;;  %3855 = vst [vmem:[#allocation1] ss:$2 sm:$0xff] %v9847_v36 }
 0x40a   : > { %v3318_v7 = vadd.f32 %v3317_v31, %v3316_v54  ;;  %v3325_v23 = vadd.f32 %v3324_v19, %v3323_v4  ;;  %v3483_v22 = vrot.slane %v3482_v16, 4  ;;  %v3490_v28 = vrot.slane %v3489_v52, 4 }
 0x40b   : > { %v3462_v27 = vadd.f32 %v3461_v21, %v3460_v14  ;;  %v3469_v41 = vadd.f32 %v3468_v12, %v3467_v25  ;;  %v3504_v62 = vmul.f32 %v8069_v60, %v3448_v32  ;;  %v3505_v63 = vmul.f32 %v8069_v60, %v3449_v47  ;;  %v3682_v32 = vpop.permute.xlu2 %3681  ;;  %v5978_v25 = vld [vmem:[%s9702_s2 + $0x64] sm:$0xf] }
 0x40c   : > { %v3340_v51 = vadd.f32 %v3339_v48, %v3338_v15  ;;  %v3347_v38 = vadd.f32 %v3346_v34, %v3345_v53  ;;  %v3484_v6 = vadd.f32 %v3483_v22, %v3482_v16  ;;  %v3491_v59 = vadd.f32 %v3490_v28, %v3489_v52 }
 0x40d   : > { %v3463_v54 = vrot.slane %v3462_v27, 1  ;;  %v3470_v4 = vrot.slane %v3469_v41, 1  ;;  %v3506_v57 = vsel %vm353_vm2, %v3504_v62, 0.0  ;;  %v3513_v31 = vsel %vm353_vm2, %v3505_v63, 0.0  ;;  %4775 = vperm.xlu0 %6046, %v5978_v25  }
 0x40e   : > { %v3485_v19 = vrot.slane %v3484_v6, 2  ;;  %v3492_v60 = vrot.slane %v3491_v59, 2  ;;  %v3507_v47 = vrot.slane %v3506_v57, 4  ;;  %v3514_v0 = vrot.slane %v3513_v31, 4 }
 0x40f   : > { %v3387_v3 = vadd.f32 %v3379_v26, %v3302_v8  ;;  %v3388_v14 = vadd.f32 %v3386_v39, %v3303_v35  ;;  %v3683_v53 = vsel %vm1017_vm7, %v3680_v17, %v3682_v32  ;;  %v3684_v15 = vsel %vm1017_vm7, %v3682_v32, %v3680_v17 }
 0x410   : > { %v3341_v45 = vrot.slane %v3340_v51, 1  ;;  %v3348_v9 = vrot.slane %v3347_v38, 1  ;;  %v3508_v48 = vadd.f32 %v3507_v47, %v3506_v57  ;;  %v3515_v34 = vadd.f32 %v3514_v0, %v3513_v31 }
 0x411   : > { %v3464_v21 = vadd.f32 %v3463_v54, %v3462_v27  ;;  %v3471_v12 = vadd.f32 %v3470_v4, %v3469_v41  ;;  %v3690_v26 = vmul.f32 %v8317_v2, %v3683_v53  ;;  %v3691_v39 = vmul.f32 %v8319_v43, %v3684_v15 }
 0x412   : > { %v3486_v8 = vadd.f32 %v3485_v19, %v3484_v6  ;;  %v3493_v35 = vadd.f32 %v3492_v60, %v3491_v59  ;;  %v3509_v16 = vrot.slane %v3508_v48, 2  ;;  %v3516_v52 = vrot.slane %v3515_v34, 2 }
 0x413   : > { %v3698_v22 = vmul.f32 %v8216_v10, %v3690_v26  ;;  %v3699_v28 = vmul.f32 %v8216_v10, %v3691_v39  ;;  %v3722_v62 = vmul.f32 %v8214_v18, %v3690_v26  ;;  %v3723_v63 = vmul.f32 %v8214_v18, %v3691_v39 }
 0x414   : > { %v3326_v17 = vadd.f32 %v3318_v7, %v8321_v5  ;;  %v3327_v27 = vadd.f32 %v3325_v23, %v8323_v49  ;;  %v3510_v41 = vadd.f32 %v3509_v16, %v3508_v48  ;;  %v3517_v2 = vadd.f32 %v3516_v52, %v3515_v34  ;;  %v3597_v48 = vpop.permute.xlu0 %3596 }
 0x415   : > { %v3700_v43 = vsel %vm353_vm2, %v3698_v22, 0.0  ;;  %v3707_v6 = vsel %vm353_vm2, %v3699_v28, 0.0  ;;  %v3724_v59 = vsel %vm353_vm2, %v3722_v62, 0.0  ;;  %v3731_v36 = vsel %vm353_vm2, %v3723_v63, 0.0 }
 0x416   : > { %v3342_v54 = vadd.f32 %v3341_v45, %v3340_v51  ;;  %v3349_v10 = vadd.f32 %v3348_v9, %v3347_v38  ;;  %v3472_v4 = vadd.f32 %v3464_v21, %v3387_v3  ;;  %v3473_v57 = vadd.f32 %v3471_v12, %v3388_v14 }
 0x417   : > { %v3487_v31 = vrot.slane %v3486_v8, 1  ;;  %v3494_v18 = vrot.slane %v3493_v35, 1  ;;  %v3701_v32 = vrot.slane %v3700_v43, 4  ;;  %v3708_v5 = vrot.slane %v3707_v6, 4 }
 0x418   : > { %v3725_v7 = vrot.slane %v3724_v59, 4  ;;  %v3732_v49 = vrot.slane %v3731_v36, 4  ;;  %v3746_v23 = vmul.f32 %v8203_v58, %v3690_v26  ;;  %v3747_v19 = vmul.f32 %v8203_v58, %v3691_v39 }
 0x419   : > { %v3511_v60 = vrot.slane %v3510_v41, 1  ;;  %v3518_v47 = vrot.slane %v3517_v2, 1  ;;  %v3702_v0 = vadd.f32 %v3701_v32, %v3700_v43  ;;  %v3709_v53 = vadd.f32 %v3708_v5, %v3707_v6 }
 0x41a   : > { %v3350_v15 = vadd.f32 %v3342_v54, %v8332_v44  ;;  %v3351_v51 = vadd.f32 %v3349_v10, %v8334_v61  ;;  %v3411_v38 = vadd.f32 %v8354_v56, %v3326_v17  ;;  %v3412_v3 = vadd.f32 %v8356_v1, %v3327_v27 }
 0x41b   : > { %v3488_v14 = vadd.f32 %v3487_v31, %v3486_v8  ;;  %v3495_v25 = vadd.f32 %v3494_v18, %v3493_v35  ;;  %v3748_v45 = vsel %vm353_vm2, %v3746_v23, 0.0  ;;  %v3755_v9 = vsel %vm353_vm2, %v3747_v19, 0.0 }
 0x41c   : > { %v3726_v58 = vadd.f32 %v3725_v7, %v3724_v59  ;;  %v3733_v34 = vadd.f32 %v3732_v49, %v3731_v36  ;;  %v8411_v21 = vadd.f32 %v8280_v42, %v3472_v4  ;;  %v8414_v44 = vadd.f32 %v8282_v30, %v3473_v57  ;;  %v3765_v32 = vpop.permute.xlu0 %3764 }
 0x41d   : > { %v3512_v61 = vadd.f32 %v3511_v60, %v3510_v41  ;;  %v3519_v12 = vadd.f32 %v3518_v47, %v3517_v2  ;;  %v3703_v56 = vrot.slane %v3702_v0, 2  ;;  %v3710_v26 = vrot.slane %v3709_v53, 2 }
 0x41e   : > { %v3749_v1 = vrot.slane %v3748_v45, 4  ;;  %v3756_v39 = vrot.slane %v3755_v9, 4  ;;  %v3598_v8 = vsel %vm900_vm6, %v8352_v13, %v3597_v48  ;;  %v3599_v35 = vsel %vm900_vm6, %v3597_v48, %v8352_v13 }
 0x41f   : > { %v3435_v42 = vadd.f32 %v8358_v29, %v3350_v15  ;;  %v3436_v16 = vadd.f32 %v8360_v40, %v3351_v51  ;;  %v8424_v30 = vadd.f32 %v3488_v14, %v3411_v38  ;;  %v8426_v52 = vadd.f32 %v3495_v25, %v3412_v3 }
 0x420   : > { %v3727_v22 = vrot.slane %v3726_v58, 2  ;;  %v3734_v28 = vrot.slane %v3733_v34, 2  ;;  %v3605_v62 = vmul.f32 %v8278_v55, %v3598_v8  ;;  %v3606_v63 = vmul.f32 %v8288_v11, %v3599_v35 }
 0x421   : > { %v8430_v17 = vadd.f32 %v3512_v61, %v3435_v42  ;;  %v8432_v27 = vadd.f32 %v3519_v12, %v3436_v16  ;;  %v8434_v41 = vadd.f32 %v3703_v56, %v3702_v0  ;;  %v8436_v13 = vadd.f32 %v3710_v26, %v3709_v53  ;;  %v3781_v26 = vpop.permute.xlu2 %3780 }
 0x422   : > { %v3750_v29 = vadd.f32 %v3749_v1, %v3748_v45  ;;  %v3757_v40 = vadd.f32 %v3756_v39, %v3755_v9  ;;  %v3613_v2 = vmul.f32 %v8181_v50, %v3605_v62  ;;  %v3614_v43 = vmul.f32 %v8181_v50, %v3606_v63 }
 0x423   : > { %v3637_v6 = vmul.f32 %v8169_v20, %v3605_v62  ;;  %v3638_v55 = vmul.f32 %v8169_v20, %v3606_v63  ;;  %v3661_v11 = vmul.f32 %v8184_v33, %v3605_v62  ;;  %v3662_v59 = vmul.f32 %v8184_v33, %v3606_v63  ;;  %v3767_v33 = vpop.permute.xlu1 %3766 }
 0x424   : > { %v8444_v36 = vadd.f32 %v3727_v22, %v3726_v58  ;;  %v8446_v54 = vadd.f32 %v3734_v28, %v3733_v34  ;;  %v3615_v10 = vsel %vm353_vm2, %v3613_v2, 0.0  ;;  %v3622_v4 = vsel %vm353_vm2, %v3614_v43, 0.0 }
 0x425   : > { %v3616_v57 = vrot.slane %v3615_v10, 4  ;;  %v3623_v31 = vrot.slane %v3622_v4, 4  ;;  %v3639_v50 = vsel %vm353_vm2, %v3637_v6, 0.0  ;;  %v3646_v18 = vsel %vm353_vm2, %v3638_v55, 0.0 }
 0x426   : > { %v3751_v20 = vrot.slane %v3750_v29, 2  ;;  %v3758_v5 = vrot.slane %v3757_v40, 2  ;;  %v3640_v7 = vrot.slane %v3639_v50, 4  ;;  %v3647_v49 = vrot.slane %v3646_v18, 4 }
 0x427   : > { %v3617_v23 = vadd.f32 %v3616_v57, %v3615_v10  ;;  %v3624_v19 = vadd.f32 %v3623_v31, %v3622_v4  ;;  %v3663_v60 = vsel %vm353_vm2, %v3661_v11, 0.0  ;;  %v3670_v47 = vsel %vm353_vm2, %v3662_v59, 0.0 }
 0x428   : > { %v3641_v0 = vadd.f32 %v3640_v7, %v3639_v50  ;;  %v3648_v53 = vadd.f32 %v3647_v49, %v3646_v18  ;;  %v3664_v15 = vrot.slane %v3663_v60, 4  ;;  %v3671_v51 = vrot.slane %v3670_v47, 4  ;;  %v9849_v49 = vld [vmem:[#allocation22_spill] sm:$0xff] }
 0x429   : > { %v3618_v38 = vrot.slane %v3617_v23, 2  ;;  %v3625_v3 = vrot.slane %v3624_v19, 2  ;;  %v3768_v14 = vsel %vm1134_vm8, %v3765_v32, %v3767_v33  ;;  %v3769_v25 = vsel %vm1134_vm8, %v3767_v33, %v3765_v32 }
 0x42a   : > { %v3705_v45 = vrot.slane %v8434_v41, 1  ;;  %v3712_v9 = vrot.slane %v8436_v13, 1  ;;  %v3665_v48 = vadd.f32 %v3664_v15, %v3663_v60  ;;  %v3672_v58 = vadd.f32 %v3671_v51, %v3670_v47 }
 0x42b   : > { %v3642_v34 = vrot.slane %v3641_v0, 2  ;;  %v3649_v61 = vrot.slane %v3648_v53, 2  ;;  %v3775_v12 = vmul.f32 %v8376_v24, %v3768_v14  ;;  %v3776_v56 = vmul.f32 %v8378_v46, %v3769_v25  ;;  %v3829_v18 = vpop.permute.xlu1 %3828 }
 0x42c   : > { %v3752_v1 = vadd.f32 %v3751_v20, %v3750_v29  ;;  %v3759_v39 = vadd.f32 %v3758_v5, %v3757_v40  ;;  %v3666_v8 = vrot.slane %v3665_v48, 2  ;;  %v3673_v35 = vrot.slane %v3672_v58, 2  ;;  %v3805_v29 = vpop.permute.xlu0 %3804  ;;  %v9848_v5 = vld [vmem:[#allocation21_spill] sm:$0xff] }
 0x42d   : > { %v3619_v42 = vadd.f32 %v3618_v38, %v3617_v23  ;;  %v3626_v16 = vadd.f32 %v3625_v3, %v3624_v19  ;;  %v3783_v22 = vmul.f32 %v3781_v26, %v3775_v12  ;;  %v3784_v28 = vmul.f32 %v3781_v26, %v3776_v56 }
 0x42e   : > { %v3729_v62 = vrot.slane %v8444_v36, 1  ;;  %v3736_v63 = vrot.slane %v8446_v54, 1  ;;  %v3667_v2 = vadd.f32 %v3666_v8, %v3665_v48  ;;  %v3674_v43 = vadd.f32 %v3673_v35, %v3672_v58  ;;  %v3850_v48 = vpop.permute.xlu2 %3849 }
 0x42f   : > { %v3643_v6 = vadd.f32 %v3642_v34, %v3641_v0  ;;  %v3650_v55 = vadd.f32 %v3649_v61, %v3648_v53  ;;  %v3785_v24 = vsel %vm353_vm2, %v3783_v22, 0.0  ;;  %v3792_v46 = vsel %vm353_vm2, %v3784_v28, 0.0 }
 0x430   : > { %v3753_v40 = vrot.slane %v3752_v1, 1  ;;  %v3760_v11 = vrot.slane %v3759_v39, 1  ;;  %v3668_v59 = vrot.slane %v3667_v2, 1  ;;  %v3675_v10 = vrot.slane %v3674_v43, 1 }
 0x431   : > { %v3620_v4 = vrot.slane %v3619_v42, 1  ;;  %v3627_v57 = vrot.slane %v3626_v16, 1  ;;  %v3786_v31 = vrot.slane %v3785_v24, 4  ;;  %v3793_v50 = vrot.slane %v3792_v46, 4 }
 0x432   : > { %v3669_v32 = vadd.f32 %v3668_v59, %v3667_v2  ;;  %v3676_v20 = vadd.f32 %v3675_v10, %v3674_v43  ;;  %v3592_v7 = vadd.f32 %v9848_v5, %v8430_v17  ;;  %v3593_v33 = vadd.f32 %v9849_v49, %v8432_v27 }
 0x433   : > { %v3644_v23 = vrot.slane %v3643_v6, 1  ;;  %v3651_v19 = vrot.slane %v3650_v55, 1  ;;  %v3787_v60 = vadd.f32 %v3786_v31, %v3785_v24  ;;  %v3794_v47 = vadd.f32 %v3793_v50, %v3792_v46 }
 0x434   : > { %v8470_v0 = vadd.f32 %v3669_v32, %v3592_v7  ;;  %v8472_v53 = vadd.f32 %v3676_v20, %v3593_v33  ;;  %v3831_v15 = vmul.f32 %v3829_v18, %v3775_v12  ;;  %v3832_v51 = vmul.f32 %v3829_v18, %v3776_v56  ;;  %v3866_v20 = vpop.permute.xlu1 %3865 }
 0x435   : > { %v3621_v38 = vadd.f32 %v3620_v4, %v3619_v42  ;;  %v3628_v3 = vadd.f32 %v3627_v57, %v3626_v16  ;;  %v3788_v14 = vrot.slane %v3787_v60, 2  ;;  %v3795_v25 = vrot.slane %v3794_v47, 2 }
 0x436   : > { %v3706_v17 = vadd.f32 %v3705_v45, %v8434_v41  ;;  %v3713_v58 = vadd.f32 %v3712_v9, %v8436_v13  ;;  %v3730_v27 = vadd.f32 %v3729_v62, %v8444_v36  ;;  %v3737_v34 = vadd.f32 %v3736_v63, %v8446_v54  ;;  %v3856_v9 = vld.sshfl [vmem:[#allocation1] sm:$0xff pattern:$0x75316420]  ;;  %v3852_v54 = vpop.permute.xlu0 %3851  ;;  %v9851_v62 = vld [vmem:[#allocation7_spill] sm:$0xff]  ;;  %v3890_v5 = vpop.permute.xlu2 %3889 }
 0x437   : > { %v8478_v61 = vadd.f32 %v3753_v40, %v3752_v1  ;;  %v8480_v26 = vadd.f32 %v3760_v11, %v3759_v39  ;;  %v3789_v8 = vadd.f32 %v3788_v14, %v3787_v60  ;;  %v3796_v35 = vadd.f32 %v3795_v25, %v3794_v47  ;;  %v9850_v1 = vld [vmem:[#allocation19_spill] sm:$0xff] }
 0x438   : > { %v3833_v42 = vsel %vm353_vm2, %v3831_v15, 0.0  ;;  %v3840_v16 = vsel %vm353_vm2, %v3832_v51, 0.0  ;;  %v3807_v22 = vmul.f32 %v3805_v29, %v3775_v12  ;;  %v3808_v28 = vmul.f32 %v3805_v29, %v3776_v56  ;;  %v3857_v12 = vld.sshfl [vmem:[#allocation1 + $0x8] sm:$0xff pattern:$0x75316420] }
 0x439   : > { %v3629_v41 = vadd.f32 %v3621_v38, %v8411_v21  ;;  %v3630_v13 = vadd.f32 %v3628_v3, %v8414_v44  ;;  %v3645_v45 = vadd.f32 %v3644_v23, %v3643_v6  ;;  %v3652_v36 = vadd.f32 %v3651_v19, %v3650_v55 }
 0x43a   : > { %v3568_v39 = vadd.f32 %v9850_v1, %v8424_v30  ;;  %v3569_v63 = vadd.f32 %v9851_v62, %v8426_v52  ;;  %v3809_v2 = vsel %vm353_vm2, %v3807_v22, 0.0  ;;  %v3816_v43 = vsel %vm353_vm2, %v3808_v28, 0.0 }
 0x43b   : > { %v3790_v56 = vrot.slane %v3789_v8, 1  ;;  %v3797_v24 = vrot.slane %v3796_v35, 1  ;;  %v3834_v21 = vrot.slane %v3833_v42, 4  ;;  %v3841_v46 = vrot.slane %v3840_v16, 4 }
 0x43c   : > { %v3810_v44 = vrot.slane %v3809_v2, 4  ;;  %v3817_v6 = vrot.slane %v3816_v43, 4  ;;  %v3853_v55 = vsel %vm1251_vm9, %v3850_v48, %v3852_v54  ;;  %v3854_v30 = vsel %vm1251_vm9, %v3852_v54, %v3850_v48 }
 0x43d   : > { %v3714_v29 = vadd.f32 %v3706_v17, %v3629_v41  ;;  %v3715_v40 = vadd.f32 %v3713_v58, %v3630_v13  ;;  %v3653_v52 = vadd.f32 %v3645_v45, %v3568_v39  ;;  %v3654_v11 = vadd.f32 %v3652_v36, %v3569_v63 }
 0x43e   : > { %v3811_v59 = vadd.f32 %v3810_v44, %v3809_v2  ;;  %v3818_v10 = vadd.f32 %v3817_v6, %v3816_v43  ;;  %v3860_v4 = vmul.f32 %v3856_v9, %v3853_v55  ;;  %v3861_v57 = vmul.f32 %v3857_v12, %v3854_v30 }
 0x43f   : > { %v3791_v31 = vadd.f32 %v3790_v56, %v3789_v8  ;;  %v3798_v50 = vadd.f32 %v3797_v24, %v3796_v35  ;;  %v3835_v18 = vadd.f32 %v3834_v21, %v3833_v42  ;;  %v3842_v32 = vadd.f32 %v3841_v46, %v3840_v16  ;;  %v3914_v8 = vpop.permute.xlu0 %3913 }
 0x440   : > { %v3812_v7 = vrot.slane %v3811_v59, 2  ;;  %v3819_v49 = vrot.slane %v3818_v10, 2  ;;  %v3868_v33 = vmul.f32 %v3866_v20, %v3860_v4  ;;  %v3869_v23 = vmul.f32 %v3866_v20, %v3861_v57 }
 0x441   : > { %v3738_v19 = vadd.f32 %v3730_v27, %v3653_v52  ;;  %v3739_v60 = vadd.f32 %v3737_v34, %v3654_v11  ;;  %v3892_v47 = vmul.f32 %v3890_v5, %v3860_v4  ;;  %v3893_v15 = vmul.f32 %v3890_v5, %v3861_v57 }
 0x442   : > { %v3813_v51 = vadd.f32 %v3812_v7, %v3811_v59  ;;  %v3820_v38 = vadd.f32 %v3819_v49, %v3818_v10  ;;  %v3870_v3 = vsel %vm353_vm2, %v3868_v33, 0.0  ;;  %v3877_v14 = vsel %vm353_vm2, %v3869_v23, 0.0 }
 0x443   : > { %v3836_v25 = vrot.slane %v3835_v18, 2  ;;  %v3843_v48 = vrot.slane %v3842_v32, 2  ;;  %v3871_v17 = vrot.slane %v3870_v3, 4  ;;  %v3878_v58 = vrot.slane %v3877_v14, 4 }
 0x444   : > { %v3799_v35 = vadd.f32 %v3791_v31, %v3714_v29  ;;  %v3800_v42 = vadd.f32 %v3798_v50, %v3715_v40  ;;  %v3894_v16 = vsel %vm353_vm2, %v3892_v47, 0.0  ;;  %v3901_v27 = vsel %vm353_vm2, %v3893_v15, 0.0 }
 0x445   : > { %v3872_v34 = vadd.f32 %v3871_v17, %v3870_v3  ;;  %v3879_v22 = vadd.f32 %v3878_v58, %v3877_v14  ;;  %v3895_v28 = vrot.slane %v3894_v16, 4  ;;  %v3902_v41 = vrot.slane %v3901_v27, 4 }
 0x446   : > { %v3814_v13 = vrot.slane %v3813_v51, 1  ;;  %v3821_v45 = vrot.slane %v3820_v38, 1  ;;  %v3916_v36 = vmul.f32 %v3914_v8, %v3860_v4  ;;  %v3917_v9 = vmul.f32 %v3914_v8, %v3861_v57 }
 0x447   : > { %v3873_v54 = vrot.slane %v3872_v34, 2  ;;  %v3880_v1 = vrot.slane %v3879_v22, 2  ;;  %v3896_v39 = vadd.f32 %v3895_v28, %v3894_v16  ;;  %v3903_v62 = vadd.f32 %v3902_v41, %v3901_v27  ;;  %v8508_v41 = vpop.permute.xlu1 %3989 }
 0x448   : > { %v3837_v63 = vadd.f32 %v3836_v25, %v3835_v18  ;;  %v3844_v2 = vadd.f32 %v3843_v48, %v3842_v32  ;;  %v3918_v43 = vsel %vm353_vm2, %v3916_v36, 0.0  ;;  %v3925_v12 = vsel %vm353_vm2, %v3917_v9, 0.0 }
 0x449   : > { %v3874_v56 = vadd.f32 %v3873_v54, %v3872_v34  ;;  %v3881_v24 = vadd.f32 %v3880_v1, %v3879_v22  ;;  %v3897_v21 = vrot.slane %v3896_v39, 2  ;;  %v3904_v46 = vrot.slane %v3903_v62, 2  ;;  %v8536_v1 = vpop.permute.xlu0 %3965 }
 0x44a   : > { %v3815_v44 = vadd.f32 %v3814_v13, %v3813_v51  ;;  %v3822_v6 = vadd.f32 %v3821_v45, %v3820_v38  ;;  %v3919_v55 = vrot.slane %v3918_v43, 4  ;;  %v3926_v30 = vrot.slane %v3925_v12, 4  ;;  %v9854_v45 = vld [vmem:[#allocation6_spill] sm:$0xff] }
 0x44b   : > { %v3875_v29 = vrot.slane %v3874_v56, 1  ;;  %v3882_v40 = vrot.slane %v3881_v24, 1  ;;  %v3898_v52 = vadd.f32 %v3897_v21, %v3896_v39  ;;  %v3905_v11 = vadd.f32 %v3904_v46, %v3903_v62  ;;  %v8538_v39 = vpop.permute.xlu2 %4013 }
 0x44c   : > { %v3838_v59 = vrot.slane %v3837_v63, 1  ;;  %v3845_v10 = vrot.slane %v3844_v2, 1  ;;  %v3920_v4 = vadd.f32 %v3919_v55, %v3918_v43  ;;  %v3927_v57 = vadd.f32 %v3926_v30, %v3925_v12  ;;  %v5983_v12 = vld [vmem:[%s9702_s2 + $0x68] sm:$0xf] }
 0x44d   : > { %v3876_v31 = vadd.f32 %v3875_v29, %v3874_v56  ;;  %v3883_v50 = vadd.f32 %v3882_v40, %v3881_v24  ;;  %v3899_v18 = vrot.slane %v3898_v52, 1  ;;  %v3906_v32 = vrot.slane %v3905_v11, 1  ;;  %v5981_v56 = vld [vmem:[%s9702_s2 + $0x20] sm:$0xf]  ;;  %v5989_v29 = vld [vmem:[%s9703_s3 + $0x4c] sm:$0xf] }
 0x44e   : > { %v3823_v20 = vadd.f32 %v3815_v44, %v3738_v19  ;;  %v3824_v5 = vadd.f32 %v3822_v6, %v3739_v60  ;;  %v3921_v7 = vrot.slane %v3920_v4, 2  ;;  %v3928_v49 = vrot.slane %v3927_v57, 2  ;;  %v5985_v44 = vld [vmem:[%s9703_s3 + $0x24] sm:$0xf]  ;;  %v5984_v6 = vld [vmem:[%s9702_s2 + $0x8c] sm:$0xf] }
 0x44f   : > { %v3884_v33 = vadd.f32 %v3876_v31, %v3799_v35  ;;  %v3885_v23 = vadd.f32 %v3883_v50, %v3800_v42  ;;  %v3900_v47 = vadd.f32 %v3899_v18, %v3898_v52  ;;  %v3907_v15 = vadd.f32 %v3906_v32, %v3905_v11  ;;  %v8528_v54 = vpop.permute.xlu1 %4100  ;;  %v5986_v40 = vld [vmem:[%s9703_s3 + $0x48] sm:$0xf]  ;;  %v5994_v50 = vld [vmem:[%s9703_s3 + $0x30] sm:$0xf]  ;;  %v5982_v18 = vld [vmem:[%s9702_s2 + $0x44] sm:$0xf] }
 0x450   : > { %v3839_v51 = vadd.f32 %v3838_v59, %v3837_v63  ;;  %v3846_v38 = vadd.f32 %v3845_v10, %v3844_v2  ;;  %v3922_v3 = vadd.f32 %v3921_v7, %v3920_v4  ;;  %v3929_v14 = vadd.f32 %v3928_v49, %v3927_v57  ;;  %v5990_v10 = vld [vmem:[%s9703_s3 + $0x8] sm:$0xf]  ;;  %v8606_v4 = vld [vmem:[%s9704_s4] sm:$0xff]  ;;  %v5991_v7 = vld [vmem:[%s9703_s3 + $0x2c] sm:$0xf] }
 0x451   : > { %v3908_v25 = vadd.f32 %v3900_v47, %v3823_v20  ;;  %v3909_v48 = vadd.f32 %v3907_v15, %v3824_v5  ;;  %v3762_v17 = vadd.f32 %v8478_v61, %v8470_v0  ;;  %v3763_v58 = vadd.f32 %v8480_v26, %v8472_v53  ;;  %v9852_v26 = vld [vmem:[#allocation5_spill] sm:$0xff]  ;;  %v8548_v63 = vpop.permute.xlu0 %4037  ;;  %v5987_v57 = vld [vmem:[%s9703_s3 + $0x4] sm:$0xf]  ;;  %3955 = vst [vmem:[#allocation1] ss:$2 sm:$0xff] %v8606_v4 }
 0x452   : > { %v3923_v19 = vrot.slane %v3922_v3, 1  ;;  %v3930_v60 = vrot.slane %v3929_v14, 1  ;;  %v6048_v15 = vld [vmem:[%s9701_s1] sm:$0xf] }
 0x453   : > { %v3934_v8 = vsel %vm1364_vm10, %v3884_v33, %v3908_v25  ;;  %v3935_v35 = vsel %vm1364_vm10, %v3885_v23, %v3909_v48  ;;  %v3847_v42 = vadd.f32 %v3839_v51, %v3762_v17  ;;  %v3848_v16 = vadd.f32 %v3846_v38, %v3763_v58  ;;  %v8550_v2 = vpop.permute.xlu2 %4124  ;;  %v8637_v33 = vld [vmem:[%s9704_s4 + $0x8] sm:$0xff]  ;;  %v5997_v38 = vld [vmem:[%s9703_s3 + $0x34] sm:$0xf] }
 0x454   : > { %v3924_v27 = vadd.f32 %v3923_v19, %v3922_v3  ;;  %v3931_v34 = vadd.f32 %v3930_v60, %v3929_v14  ;;  %9858 = vst [vmem:[#allocation12_spill] sm:$0xff] %v8637_v33  ;;  %v4939_v23 = vstv %s4938_s15  ;;  %v5995_v3 = vld [vmem:[%s9703_s3 + $0x54] sm:$0xf]  ;;  %v6001_v60 = vld [vmem:[%s9703_s3 + $0x5c] sm:$0xf] }
 0x455   : > { %v4940_v51 = vmul.f32 %v6048_v15, %v4939_v23  ;;  %v8660_v17 = vld [vmem:[%s9704_s4 + $0x10] sm:$0xff] }
 0x456   : > { %v3932_v22 = vadd.f32 %v3924_v27, %v3847_v42  ;;  %v3933_v28 = vadd.f32 %v3931_v34, %v3848_v16  ;;  %9860 = vst [vmem:[#allocation14_spill] sm:$0xff] %v8660_v17  ;;  %v8679_v42 = vld [vmem:[%s9704_s4 + $0x18] sm:$0xff] }
 0x457   : > { %v8544_v62 = vpop.permute.xlu1 %4211  ;;  %9861 = vst [vmem:[#allocation15_spill] sm:$0xff] %v8679_v42 }
 0x458   : > { %v3936_v0 = vsel %vm1367_vm11, %v3934_v8, %v3932_v22  ;;  %v3937_v61 = vsel %vm1367_vm11, %v3935_v35, %v3933_v28  ;;  %v8623_v32 = vld.sshfl [vmem:[#allocation1] sm:$0xff pattern:$0x75316420]  ;;  %v8625_v20 = vld.sshfl [vmem:[#allocation1 + $0x8] sm:$0xff pattern:$0x75316420] }
 0x459   : > { %v3940_v53 = vrot.slane %v3937_v61, 4  ;;  %v8514_v13 = vsel %vm324_vm0, %v3936_v0, %v9852_v26  ;;  %v8518_v36 = vsel %vm324_vm0, %v3937_v61, %v9854_v45  ;;  %v8566_v24 = vpop.permute.xlu0 %4076  ;;  %4066 = vst [vmem:[#allocation1] ss:$2 sm:$0xff] %v8637_v33  ;;  %v4965_v8 = vld [vmem:[%s9703_s3] sm:$0xf]  ;;  %v8704_v26 = vld [vmem:[%s9704_s4 + $0x28] sm:$0xff] }
 0x45a   : > { %9853 = vst [vmem:[#allocation18_spill] sm:$0xff] %v8514_v13  ;;  %4489 = vrot.lane.b32.xlu0 %v8518_v36, %s6082_s21  ;;  %3949 = vrot.lane.b32.xlu2 %v8518_v36, %s6078_s30  ;;  %v5998_v35 = vld [vmem:[%s9703_s3 + $0x58] sm:$0xf]  ;;  %v6003_v28 = vld [vmem:[%s9703_s3 + $0x3c] sm:$0xf] }
 0x45b   : > { %9855 = vst [vmem:[#allocation23_spill] sm:$0xff] %v8518_v36  ;;  %v3941_v9 = vsel %vm353_vm2, %v3936_v0, %v3940_v53  ;;  %3947 = vrot.lane.b32.xlu1 %v8514_v13, %s6078_s30  ;;  %v8570_v21 = vpop.permute.xlu2 %4235  ;;  %v5988_v0 = vld [vmem:[%s9703_s3 + $0x28] sm:$0xf]  ;;  %v5999_v61 = vld [vmem:[%s9703_s3 + $0x14] sm:$0xf] }
 0x45c   : > { %5942 = vst [vmem:[%s7316_s16 + $0x8] sm:$0x77] %v3941_v9 }
 0x45d   : > { %9864 = vst [vmem:[#allocation10_spill] sm:$0xff] %v8704_v26 }
 0x45f   : > { %v8558_v43 = vpop.permute.xlu1 %4322 }
 0x460   : > { %9856 = vst [vmem:[#allocation16_spill] sm:$0xff] %v8558_v43  ;;  %v8651_v14 = vld.sshfl [vmem:[#allocation1] sm:$0xff pattern:$0x75316420] }
 0x461   : > { %v8582_v55 = vpop.permute.xlu0 %4148  ;;  %v8653_v25 = vld.sshfl [vmem:[#allocation1 + $0x8] sm:$0xff pattern:$0x75316420] }
 0x462   : > { %4600 = vrot.lane.b32.xlu0 %v8518_v36, %s6083_s12  ;;  %4060 = vrot.lane.b32.xlu2 %v8518_v36, %s6079_s8  ;;  %4177 = vst [vmem:[#allocation1] ss:$2 sm:$0xff] %v8660_v17 }
 0x463   : > { %4058 = vrot.lane.b32.xlu1 %v8514_v13, %s6079_s8  ;;  %v8584_v30 = vpop.permute.xlu2 %4346 }
 0x464   : > { %9857 = vst [vmem:[#allocation17_spill] sm:$0xff] %v8584_v30 }
 0x467   : > { %v8572_v46 = vpop.permute.xlu1 %4394 }
 0x469   : > { %v8596_v11 = vpop.permute.xlu0 %4187  ;;  %v8681_v16 = vld.sshfl [vmem:[#allocation1] sm:$0xff pattern:$0x75316420]  ;;  %v8683_v27 = vld.sshfl [vmem:[#allocation1 + $0x8] sm:$0xff pattern:$0x75316420] }
 0x46a   : > { %4711 = vrot.lane.b32.xlu0 %v8518_v36, %s6084_s26  ;;  %4171 = vrot.lane.b32.xlu2 %v8518_v36, %s6080_s18  ;;  %4288 = vst [vmem:[#allocation1] ss:$2 sm:$0xff] %v8679_v42 }
 0x46b   : > { %4169 = vrot.lane.b32.xlu1 %v8514_v13, %s6080_s18  ;;  %v8598_v59 = vpop.permute.xlu2 %4418 }
 0x46f   : > { %v8592_v52 = vpop.permute.xlu1 %4466 }
 0x471   : > { %v8627_v5 = vpop.permute.xlu0 %4259  ;;  %v8706_v45 = vld.sshfl [vmem:[#allocation1] sm:$0xff pattern:$0x75316420]  ;;  %v8708_v9 = vld.sshfl [vmem:[#allocation1 + $0x8] sm:$0xff pattern:$0x75316420] }
 0x472   : > { %4822 = vrot.lane.b32.xlu0 %v8518_v36, %s6085_s19  ;;  %4282 = vrot.lane.b32.xlu2 %v8518_v36, %s6081_s13  ;;  %9865 = vst [vmem:[#allocation9_spill] sm:$0xff] %v8706_v45 }
 0x473   : > { %4280 = vrot.lane.b32.xlu1 %v8514_v13, %s6081_s13  ;;  %v8632_v49 = vpop.permute.xlu2 %4529  ;;  %9866 = vst [vmem:[#allocation11_spill] sm:$0xff] %v8708_v9 }
 0x474   : > { %4495 = vst [vmem:[#allocation1] ss:$2 sm:$0xff] %v8704_v26 }
 0x477   : > { %v8615_v31 = vpop.permute.xlu1 %4505 }
 0x479   : > { %v8655_v48 = vpop.permute.xlu0 %4298 }
 0x47a   : > { %4886 = vperm.xlu0 %6046, %v5983_v12   ;;  %4487 = vrot.lane.b32.xlu2 %v8514_v13, %s6082_s21  ;;  %9859 = vst [vmem:[#allocation13_spill] sm:$0xff] %v8655_v48  ;;  %v4421_v12 = vmul.f32 %v8598_v59, %v8514_v13 }
 0x47b   : > { %4838 = vperm.xlu1 %6044, %v5981_v56   ;;  %v8662_v58 = vpop.permute.xlu2 %4640  ;;  %v4422_v56 = vmul.f32 %v8598_v59, %v8518_v36 }
 0x47d   : > { %v4430_v59 = vsel %vm353_vm2, %v4422_v56, 0.0 }
 0x47f   : > { %v8640_v47 = vpop.permute.xlu1 %4577 }
 0x481   : > { %v8686_v34 = vpop.permute.xlu0 %4370 }
 0x482   : > { %4992 = vperm.xlu0 %6046, %v5985_v44   ;;  %4598 = vrot.lane.b32.xlu2 %v8514_v13, %s6083_s12  ;;  %9862 = vst [vmem:[#allocation20_spill] sm:$0xff] %v8686_v34 }
 0x483   : > { %4910 = vperm.xlu1 %6044, %v5984_v6   ;;  %v8688_v22 = vpop.permute.xlu2 %4751 }
 0x484   : > { %9863 = vst [vmem:[#allocation8_spill] sm:$0xff] %v8688_v22 }
 0x487   : > { %v8665_v19 = vpop.permute.xlu1 %4616 }
 0x489   : > { %v4443_v6 = vpop.permute.xlu0 %4442 }
 0x48a   : > { %5101 = vperm.xlu0 %6046, %v5989_v29   ;;  %4709 = vrot.lane.b32.xlu2 %v8514_v13, %s6084_s26  ;;  %v4397_v29 = vmul.f32 %v8572_v46, %v8514_v13  ;;  %v4445_v23 = vmul.f32 %v4443_v6, %v8514_v13  ;;  %v4446_v15 = vmul.f32 %v4443_v6, %v8518_v36 }
 0x48b   : > { %5016 = vperm.xlu1 %6044, %v5986_v40   ;;  %v4398_v40 = vmul.f32 %v8572_v46, %v8518_v36  ;;  %v4470_v46 = vmul.f32 %v8592_v52, %v8518_v36 }
 0x48f   : > { %v8699_v53 = vpop.permute.xlu1 %4688 }
 0x492   : > { %5138 = vperm.xlu0 %6046, %v5990_v10   ;;  %4820 = vrot.lane.b32.xlu2 %v8514_v13, %s6085_s19  ;;  %v6007_v10 = vld [vmem:[%s9703_s3 + $0x64] sm:$0xf] }
 0x493   : > { %5053 = vperm.xlu1 %6044, %v5987_v57   ;;  %v5992_v57 = vld [vmem:[%s9703_s3 + $0x50] sm:$0xf] }
 0x49a   : > { %5247 = vperm.xlu0 %6046, %v5994_v50   ;;  %4862 = vperm.xlu2 %6045, %v5982_v18   ;;  %v4423_v50 = vsel %vm353_vm2, %v4421_v12, 0.0  ;;  %v6004_v18 = vld [vmem:[%s9703_s3 + $0x60] sm:$0xf] }
 0x49b   : > { %5162 = vperm.xlu1 %6044, %v5991_v7   ;;  %v4469_v7 = vmul.f32 %v8592_v52, %v8514_v13  ;;  %v4447_v52 = vsel %vm353_vm2, %v4445_v23, 0.0 }
 0x4a2   : > { %5319 = vperm.xlu0 %6046, %v5997_v38   ;;  %4943 = vperm.xlu2 %6045, %v4940_v51   ;;  %v4424_v51 = vrot.slane %v4423_v50, 4  ;;  %v4431_v38 = vrot.slane %v4430_v59, 4 }
 0x4a3   : > { %5271 = vperm.xlu1 %6044, %v5995_v3   ;;  %v4399_v3 = vsel %vm353_vm2, %v4397_v29, 0.0  ;;  %v5993_v29 = vld [vmem:[%s9703_s3 + $0xc] sm:$0xf] }
 0x4a4   : > { %v4425_v56 = vadd.f32 %v4424_v51, %v4423_v50  ;;  %v4432_v6 = vadd.f32 %v4431_v38, %v4430_v59  ;;  %v8754_v59 = vpop.permute.xlu0 %4553 }
 0x4a6   : > { %v4426_v26 = vrot.slane %v4425_v56, 2  ;;  %v4433_v50 = vrot.slane %v4432_v6, 2 }
 0x4a8   : > { %v4427_v34 = vadd.f32 %v4426_v26, %v4425_v56  ;;  %v4434_v30 = vadd.f32 %v4433_v50, %v4432_v6  ;;  %v6000_v50 = vld [vmem:[%s9703_s3 + $0x38] sm:$0xf] }
 0x4aa   : > { %5428 = vperm.xlu0 %6046, %v6001_v60   ;;  %4968 = vperm.xlu2 %6045, %v4965_v8   ;;  %v4406_v60 = vsel %vm353_vm2, %v4398_v40, 0.0  ;;  %v8740_v8 = vpop.permute.xlu1 %4727 }
 0x4ab   : > { %5343 = vperm.xlu1 %6044, %v5998_v35   ;;  %9867 = vst [vmem:[#allocation21_spill] sm:$0xff] %v8740_v8  ;;  %v4471_v35 = vsel %vm353_vm2, %v4469_v7, 0.0  ;;  %v4407_v12 = vrot.slane %v4406_v60, 4 }
 0x4ac   : > { %v4472_v40 = vrot.slane %v4471_v35, 4 }
 0x4ae   : > { %v4473_v51 = vadd.f32 %v4472_v40, %v4471_v35 }
 0x4b2   : > { %5489 = vperm.xlu0 %6046, %v6003_v28   ;;  %5077 = vperm.xlu2 %6045, %v5988_v0   ;;  %v4478_v28 = vsel %vm353_vm2, %v4470_v46, 0.0  ;;  %v4454_v0 = vsel %vm353_vm2, %v4446_v15, 0.0  ;;  %v6005_v46 = vld [vmem:[%s9703_s3 + $0x1c] sm:$0xf]  ;;  %v4408_v15 = vadd.f32 %v4407_v12, %v4406_v60  ;;  %v8756_v33 = vpop.permute.xlu1 %4799  ;;  %v4474_v60 = vrot.slane %v4473_v51, 2 }
 0x4b3   : > { %5380 = vperm.xlu1 %6044, %v5999_v61   ;;  %v4400_v61 = vrot.slane %v4399_v3, 4  ;;  %v4455_v7 = vrot.slane %v4454_v0, 4  ;;  %9868 = vst [vmem:[#allocation22_spill] sm:$0xff] %v8756_v33 }
 0x4b4   : > { %v8715_v44 = vpop.permute.xlu2 %3949  ;;  %v4409_v13 = vrot.slane %v4408_v15, 2  ;;  %v8767_v40 = vadd.f32 %v4474_v60, %v4473_v51 }
 0x4b5   : > { %v4401_v23 = vadd.f32 %v4400_v61, %v4399_v3  ;;  %v4456_v17 = vadd.f32 %v4455_v7, %v4454_v0  ;;  %v5996_v3 = vld [vmem:[%s9703_s3 + $0x10] sm:$0xf]  ;;  %v4435_v0 = vrot.slane %v4434_v30, 1 }
 0x4b7   : > { %v4402_v36 = vrot.slane %v4401_v23, 2 }
 0x4b9   : > { %v8763_v35 = vadd.f32 %v4402_v36, %v4401_v23 }
 0x4ba   : > { %5598 = vperm.xlu0 %6046, %v6007_v10   ;;  %5186 = vperm.xlu2 %6045, %v5992_v57   ;;  %v4479_v57 = vrot.slane %v4478_v28, 4 }
 0x4bb   : > { %5513 = vperm.xlu1 %6044, %v6004_v18   ;;  %v4448_v18 = vrot.slane %v4447_v52, 4  ;;  %v9873_v22 = vrot.slane %v8763_v35, 1 }
 0x4bc   : > { %v8746_v10 = vpop.permute.xlu2 %4060  ;;  %v4480_v38 = vadd.f32 %v4479_v57, %v4478_v28  ;;  %v8765_v28 = vadd.f32 %v4409_v13, %v4408_v15  ;;  %v8775_v57 = vpop.permute.xlu0 %4664 }
 0x4bd   : > { %v4449_v42 = vadd.f32 %v4448_v18, %v4447_v52  ;;  %v4428_v52 = vrot.slane %v4427_v34, 1  ;;  %v8834_v8 = vadd.f32 %v9873_v22, %v8763_v35 }
 0x4be   : > { %v4481_v61 = vrot.slane %v4480_v38, 2 }
 0x4bf   : > { %v4450_v12 = vrot.slane %v4449_v42, 2  ;;  %v8785_v23 = vadd.f32 %v4428_v52, %v4427_v34  ;;  %v8806_v52 = vld.sshfl [vmem:[#allocation1] sm:$0xff pattern:$0x75316420]  ;;  %9874 = vst [vmem:[#allocation25_spill] sm:$0xff] %v8834_v8 }
 0x4c0   : > { %v8769_v26 = vadd.f32 %v4481_v61, %v4480_v38 }
 0x4c1   : > { %v8771_v56 = vadd.f32 %v4450_v12, %v4449_v42  ;;  %9869 = vst [vmem:[#allocation19_spill] sm:$0xff] %v8785_v23  ;;  %v8787_v42 = vadd.f32 %v4435_v0, %v4434_v30  ;;  %v8808_v0 = vld.sshfl [vmem:[#allocation1 + $0x8] sm:$0xff pattern:$0x75316420] }
 0x4c2   : > { %5223 = vperm.xlu2 %6045, %v5993_v29   ;;  %v4457_v29 = vrot.slane %v4456_v17, 2  ;;  %v9879_v22 = vrot.slane %v8769_v26, 1 }
 0x4c3   : > { %5550 = vperm.xlu1 %6044, %v6005_v46   ;;  %9870 = vst [vmem:[#allocation7_spill] sm:$0xff] %v8787_v42 }
 0x4c4   : > { %v8761_v43 = vpop.permute.xlu2 %4171  ;;  %v8773_v6 = vadd.f32 %v4457_v29, %v4456_v17  ;;  %v8826_v36 = vpop.permute.xlu0 %4775  ;;  %v8849_v35 = vadd.f32 %v9879_v22, %v8769_v26 }
 0x4c5   : > { %9872 = vst [vmem:[#allocation6_spill] sm:$0xff] %v8826_v36 }
 0x4c6   : > { %9880 = vst [vmem:[#allocation28_spill] sm:$0xff] %v8849_v35 }
 0x4ca   : > { %5295 = vperm.xlu2 %6045, %v5996_v3  }
 0x4cd   : > { %v3948_v18 = vpop.permute.xlu1 %3947 }
 0x4ce   : > { %v3951_v13 = vsel %vm333_vm1, %v3948_v18, %v8715_v44  ;;  %v3952_v46 = vsel %vm333_vm1, %v8715_v44, %v3948_v18  ;;  %v8810_v18 = vpop.permute.xlu2 %4282 }
 0x4cf   : > { %v3960_v17 = vmul.f32 %v8623_v32, %v3952_v46  ;;  %v3961_v15 = vmul.f32 %v8625_v20, %v3951_v13 }
 0x4d1   : > { %v3968_v34 = vmul.f32 %v8536_v1, %v3960_v17  ;;  %v3969_v30 = vmul.f32 %v8536_v1, %v3961_v15  ;;  %v3992_v32 = vmul.f32 %v8508_v41, %v3960_v17  ;;  %v3993_v20 = vmul.f32 %v8508_v41, %v3961_v15 }
 0x4d2   : > { %v4016_v60 = vmul.f32 %v8538_v39, %v3960_v17  ;;  %v4017_v61 = vmul.f32 %v8538_v39, %v3961_v15  ;;  %v4040_v12 = vmul.f32 %v8548_v63, %v3960_v17  ;;  %v4041_v29 = vmul.f32 %v8548_v63, %v3961_v15  ;;  %5404 = vperm.xlu2 %6045, %v6000_v50   ;;  %v8819_v63 = vld [vmem:[%s9704_s4 + $0x30] sm:$0xff] }
 0x4d3   : > { %v3970_v1 = vsel %vm353_vm2, %v3968_v34, 0.0  ;;  %v3977_v13 = vsel %vm353_vm2, %v3969_v30, 0.0  ;;  %v3994_v41 = vsel %vm353_vm2, %v3992_v32, 0.0  ;;  %v4001_v46 = vsel %vm353_vm2, %v3993_v20, 0.0  ;;  %9871 = vst [vmem:[#allocation5_spill] sm:$0xff] %v8819_v63 }
 0x4d4   : > { %v3971_v39 = vrot.slane %v3970_v1, 4  ;;  %v3978_v44 = vrot.slane %v3977_v13, 4  ;;  %v3995_v17 = vrot.slane %v3994_v41, 4  ;;  %v4002_v3 = vrot.slane %v4001_v46, 4  ;;  %4606 = vst [vmem:[#allocation1] ss:$2 sm:$0xff] %v8819_v63 }
 0x4d5   : > { %v4018_v15 = vsel %vm353_vm2, %v4016_v60, 0.0  ;;  %v4025_v50 = vsel %vm353_vm2, %v4017_v61, 0.0  ;;  %v4042_v34 = vsel %vm353_vm2, %v4040_v12, 0.0  ;;  %v4049_v30 = vsel %vm353_vm2, %v4041_v29, 0.0  ;;  %v6002_v12 = vld [vmem:[%s9703_s3 + $0x18] sm:$0xf] }
 0x4d6   : > { %v3972_v32 = vadd.f32 %v3971_v39, %v3970_v1  ;;  %v3979_v20 = vadd.f32 %v3978_v44, %v3977_v13  ;;  %v3996_v38 = vadd.f32 %v3995_v17, %v3994_v41  ;;  %v4003_v51 = vadd.f32 %v4002_v3, %v4001_v46 }
 0x4d7   : > { %v4019_v7 = vrot.slane %v4018_v15, 4  ;;  %v4026_v42 = vrot.slane %v4025_v50, 4  ;;  %v4043_v23 = vrot.slane %v4042_v34, 4  ;;  %v4050_v48 = vrot.slane %v4049_v30, 4 }
 0x4d8   : > { %v3973_v9 = vrot.slane %v3972_v32, 2  ;;  %v3980_v60 = vrot.slane %v3979_v20, 2  ;;  %v3997_v45 = vrot.slane %v3996_v38, 2  ;;  %v4004_v61 = vrot.slane %v4003_v51, 2 }
 0x4d9   : > { %v4020_v29 = vadd.f32 %v4019_v7, %v4018_v15  ;;  %v4027_v63 = vadd.f32 %v4026_v42, %v4025_v50  ;;  %v4044_v1 = vadd.f32 %v4043_v23, %v4042_v34  ;;  %v4051_v44 = vadd.f32 %v4050_v48, %v4049_v30  ;;  %v4488_v15 = vpop.permute.xlu2 %4487  ;;  %v4059_v50 = vpop.permute.xlu1 %4058 }
 0x4da   : > { %v3974_v13 = vadd.f32 %v3973_v9, %v3972_v32  ;;  %v3981_v3 = vadd.f32 %v3980_v60, %v3979_v20  ;;  %v3998_v41 = vadd.f32 %v3997_v45, %v3996_v38  ;;  %v4005_v46 = vadd.f32 %v4004_v61, %v4003_v51  ;;  %5465 = vperm.xlu2 %6045, %v6002_v12  }
 0x4db   : > { %v4021_v39 = vrot.slane %v4020_v29, 2  ;;  %v4028_v17 = vrot.slane %v4027_v63, 2  ;;  %v4045_v33 = vrot.slane %v4044_v1, 2  ;;  %v4052_v36 = vrot.slane %v4051_v44, 2 }
 0x4dc   : > { %v9875_v7 = vrot.slane %v8765_v28, 1  ;;  %v3975_v48 = vrot.slane %v3974_v13, 1  ;;  %v3982_v9 = vrot.slane %v3981_v3, 1  ;;  %v3999_v23 = vrot.slane %v3998_v41, 1 }
 0x4dd   : > { %v4006_v45 = vrot.slane %v4005_v46, 1  ;;  %v4022_v51 = vadd.f32 %v4021_v39, %v4020_v29  ;;  %v4029_v38 = vadd.f32 %v4028_v17, %v4027_v63  ;;  %v9877_v34 = vrot.slane %v8767_v40, 1  ;;  %v4490_v29 = vpop.permute.xlu0 %4489 }
 0x4de   : > { %v8839_v42 = vadd.f32 %v9875_v7, %v8765_v28  ;;  %v8851_v28 = vadd.f32 %v4045_v33, %v4044_v1  ;;  %v8853_v32 = vadd.f32 %v4052_v36, %v4051_v44  ;;  %v9881_v20 = vrot.slane %v8771_v56, 1 }
 0x4df   : > { %v8844_v30 = vadd.f32 %v9877_v34, %v8767_v40  ;;  %v9883_v60 = vrot.slane %v8773_v6, 1  ;;  %v4023_v40 = vrot.slane %v4022_v51, 1  ;;  %v4030_v12 = vrot.slane %v4029_v38, 1 }
 0x4e0   : > { %9876 = vst [vmem:[#allocation26_spill] sm:$0xff] %v8839_v42  ;;  %v8858_v63 = vadd.f32 %v9881_v20, %v8771_v56  ;;  %v4491_v26 = vsel %vm900_vm6, %v4488_v15, %v4490_v29  ;;  %v4492_v33 = vsel %vm900_vm6, %v4490_v29, %v4488_v15  ;;  %v4062_v36 = vsel %vm449_vm3, %v4059_v50, %v8746_v10 }
 0x4e1   : > { %9878 = vst [vmem:[#allocation27_spill] sm:$0xff] %v8844_v30  ;;  %v8863_v61 = vadd.f32 %v9883_v60, %v8773_v6  ;;  %v4063_v56 = vsel %vm449_vm3, %v8746_v10, %v4059_v50  ;;  %v8875_v1 = vadd.f32 %v3975_v48, %v3974_v13  ;;  %v8877_v6 = vadd.f32 %v3982_v9, %v3981_v3 }
 0x4e2   : > { %9882 = vst [vmem:[#allocation29_spill] sm:$0xff] %v8858_v63  ;;  %v8879_v44 = vadd.f32 %v3999_v23, %v3998_v41  ;;  %v8881_v39 = vadd.f32 %v4006_v45, %v4005_v46  ;;  %v4047_v17 = vrot.slane %v8851_v28, 1  ;;  %v4054_v7 = vrot.slane %v8853_v32, 1 }
 0x4e3   : > { %9884 = vst [vmem:[#allocation30_spill] sm:$0xff] %v8863_v61  ;;  %v4500_v15 = vmul.f32 %v8806_v52, %v4491_v26  ;;  %v4501_v34 = vmul.f32 %v8808_v0, %v4492_v33  ;;  %v8887_v22 = vadd.f32 %v4023_v40, %v4022_v51  ;;  %v8889_v20 = vadd.f32 %v4030_v12, %v4029_v38 }
 0x4e4   : > { %v8892_v10 = vmul.f32 %v8651_v14, %v4063_v56  ;;  %v8895_v13 = vmul.f32 %v8653_v25, %v4062_v36 }
 0x4e5   : > { %v4508_v3 = vmul.f32 %v8615_v31, %v4500_v15  ;;  %v4509_v41 = vmul.f32 %v8615_v31, %v4501_v34  ;;  %v4532_v46 = vmul.f32 %v8632_v49, %v4500_v15  ;;  %v4533_v52 = vmul.f32 %v8632_v49, %v4501_v34 }
 0x4e6   : > { %v4556_v0 = vmul.f32 %v8754_v59, %v4500_v15  ;;  %v4557_v48 = vmul.f32 %v8754_v59, %v4501_v34  ;;  %v4580_v9 = vmul.f32 %v8640_v47, %v4500_v15  ;;  %v4581_v14 = vmul.f32 %v8640_v47, %v4501_v34 }
 0x4e7   : > { %v4510_v23 = vsel %vm353_vm2, %v4508_v3, 0.0  ;;  %v4517_v25 = vsel %vm353_vm2, %v4509_v41, 0.0  ;;  %v4534_v45 = vsel %vm353_vm2, %v4532_v46, 0.0  ;;  %v4541_v31 = vsel %vm353_vm2, %v4533_v52, 0.0 }
 0x4e8   : > { %v4511_v51 = vrot.slane %v4510_v23, 4  ;;  %v4518_v38 = vrot.slane %v4517_v25, 4  ;;  %v4535_v50 = vrot.slane %v4534_v45, 4  ;;  %v4542_v49 = vrot.slane %v4541_v31, 4 }
 0x4e9   : > { %v4558_v60 = vsel %vm353_vm2, %v4556_v0, 0.0  ;;  %v4565_v59 = vsel %vm353_vm2, %v4557_v48, 0.0  ;;  %v4582_v40 = vsel %vm353_vm2, %v4580_v9, 0.0  ;;  %v4589_v47 = vsel %vm353_vm2, %v4581_v14, 0.0 }
 0x4ea   : > { %v4512_v12 = vadd.f32 %v4511_v51, %v4510_v23  ;;  %v4519_v29 = vadd.f32 %v4518_v38, %v4517_v25  ;;  %v4536_v26 = vadd.f32 %v4535_v50, %v4534_v45  ;;  %v4543_v33 = vadd.f32 %v4542_v49, %v4541_v31  ;;  %v4599_v23 = vpop.permute.xlu2 %4598 }
 0x4eb   : > { %v4559_v36 = vrot.slane %v4558_v60, 4  ;;  %v4566_v56 = vrot.slane %v4565_v59, 4  ;;  %v4583_v15 = vrot.slane %v4582_v40, 4  ;;  %v4590_v34 = vrot.slane %v4589_v47, 4 }
 0x4ec   : > { %v4513_v3 = vrot.slane %v4512_v12, 2  ;;  %v4520_v41 = vrot.slane %v4519_v29, 2  ;;  %v4537_v46 = vrot.slane %v4536_v26, 2  ;;  %v4544_v52 = vrot.slane %v4543_v33, 2 }
 0x4ed   : > { %v4560_v35 = vadd.f32 %v4559_v36, %v4558_v60  ;;  %v4567_v0 = vadd.f32 %v4566_v56, %v4565_v59  ;;  %v4584_v30 = vadd.f32 %v4583_v15, %v4582_v40  ;;  %v4591_v48 = vadd.f32 %v4590_v34, %v4589_v47  ;;  %v4601_v59 = vpop.permute.xlu0 %4600  ;;  %v8949_v15 = vld.sshfl [vmem:[#allocation1] sm:$0xff pattern:$0x75316420] }
 0x4ee   : > { %v4514_v61 = vadd.f32 %v4513_v3, %v4512_v12  ;;  %v4521_v9 = vadd.f32 %v4520_v41, %v4519_v29  ;;  %v8913_v63 = vadd.f32 %v4537_v46, %v4536_v26  ;;  %v8915_v14 = vadd.f32 %v4544_v52, %v4543_v33 }
 0x4ef   : > { %v4561_v25 = vrot.slane %v4560_v35, 2  ;;  %v4568_v45 = vrot.slane %v4567_v0, 2  ;;  %v4585_v31 = vrot.slane %v4584_v30, 2  ;;  %v4592_v51 = vrot.slane %v4591_v48, 2 }
 0x4f0   : > { %v8918_v38 = vadd.f32 %v4047_v17, %v8851_v28  ;;  %v8921_v50 = vadd.f32 %v4054_v7, %v8853_v32  ;;  %v4515_v49 = vrot.slane %v4514_v61, 1  ;;  %v4522_v60 = vrot.slane %v4521_v9, 1 }
 0x4f1   : > { %v8927_v12 = vsel %vm1017_vm7, %v4599_v23, %v4601_v59  ;;  %v8931_v29 = vsel %vm1017_vm7, %v4601_v59, %v4599_v23  ;;  %v8933_v28 = vadd.f32 %v4561_v25, %v4560_v35  ;;  %v8935_v17 = vadd.f32 %v4568_v45, %v4567_v0  ;;  %v8951_v35 = vld.sshfl [vmem:[#allocation1 + $0x8] sm:$0xff pattern:$0x75316420] }
 0x4f2   : > { %v8937_v32 = vadd.f32 %v4585_v31, %v4584_v30  ;;  %v8939_v7 = vadd.f32 %v4592_v51, %v4591_v48  ;;  %v8941_v26 = vadd.f32 %v4515_v49, %v4514_v61  ;;  %v8943_v33 = vadd.f32 %v4522_v60, %v4521_v9 }
 0x4f3   : > { %v4079_v36 = vmul.f32 %v8566_v24, %v8892_v10  ;;  %v4080_v56 = vmul.f32 %v8566_v24, %v8895_v13  ;;  %v4103_v30 = vmul.f32 %v8528_v54, %v8892_v10  ;;  %v4104_v34 = vmul.f32 %v8528_v54, %v8895_v13  ;;  %v8970_v54 = vld [vmem:[%s9704_s4 + $0x38] sm:$0xff] }
 0x4f4   : > { %9885 = vst [vmem:[#allocation31_spill] sm:$0xff] %v8937_v32  ;;  %v4127_v61 = vmul.f32 %v8550_v2, %v8892_v10  ;;  %v4128_v3 = vmul.f32 %v8550_v2, %v8895_v13  ;;  %v4151_v46 = vmul.f32 %v8582_v55, %v8892_v10  ;;  %v4152_v52 = vmul.f32 %v8582_v55, %v8895_v13 }
 0x4f5   : > { %9886 = vst [vmem:[#allocation32_spill] sm:$0xff] %v8939_v7  ;;  %v4081_v41 = vsel %vm353_vm2, %v4079_v36, 0.0  ;;  %v4088_v24 = vsel %vm353_vm2, %v4080_v56, 0.0  ;;  %v4105_v9 = vsel %vm353_vm2, %v4103_v30, 0.0  ;;  %v4112_v2 = vsel %vm353_vm2, %v4104_v34, 0.0 }
 0x4f6   : > { %9887 = vst [vmem:[#allocation33_spill] sm:$0xff] %v8941_v26  ;;  %v4082_v0 = vrot.slane %v4081_v41, 4  ;;  %v4089_v48 = vrot.slane %v4088_v24, 4  ;;  %v4106_v23 = vrot.slane %v4105_v9, 4  ;;  %v4113_v25 = vrot.slane %v4112_v2, 4 }
 0x4f7   : > { %9888 = vst [vmem:[#allocation34_spill] sm:$0xff] %v8943_v33  ;;  %v4129_v10 = vsel %vm353_vm2, %v4127_v61, 0.0  ;;  %v4136_v45 = vsel %vm353_vm2, %v4128_v3, 0.0  ;;  %v4153_v59 = vsel %vm353_vm2, %v4151_v46, 0.0  ;;  %v4160_v36 = vsel %vm353_vm2, %v4152_v52, 0.0 }
 0x4f8   : > { %9889 = vst [vmem:[#allocation35_spill] sm:$0xff] %v8970_v54  ;;  %v4083_v55 = vadd.f32 %v4082_v0, %v4081_v41  ;;  %v4090_v13 = vadd.f32 %v4089_v48, %v4088_v24  ;;  %v4130_v31 = vrot.slane %v4129_v10, 4  ;;  %v4137_v51 = vrot.slane %v4136_v45, 4  ;;  %v6006_v56 = vld [vmem:[%s9703_s3 + $0x40] sm:$0xf] }
 0x4f9   : > { %4717 = vst [vmem:[#allocation1] ss:$2 sm:$0xff] %v8970_v54  ;;  %v4107_v49 = vadd.f32 %v4106_v23, %v4105_v9  ;;  %v4114_v60 = vadd.f32 %v4113_v25, %v4112_v2  ;;  %5574 = vperm.xlu2 %6045, %v6006_v56   ;;  %v4154_v24 = vrot.slane %v4153_v59, 4  ;;  %v4161_v0 = vrot.slane %v4160_v36, 4 }
 0x4fa   : > { %v4084_v30 = vrot.slane %v4083_v55, 2  ;;  %v4091_v34 = vrot.slane %v4090_v13, 2  ;;  %v4131_v47 = vadd.f32 %v4130_v31, %v4129_v10  ;;  %v4138_v61 = vadd.f32 %v4137_v51, %v4136_v45 }
 0x4fb   : > { %v4108_v3 = vrot.slane %v4107_v49, 2  ;;  %v4115_v41 = vrot.slane %v4114_v60, 2  ;;  %v4155_v52 = vadd.f32 %v4154_v24, %v4153_v59  ;;  %v4162_v40 = vadd.f32 %v4161_v0, %v4160_v36 }
 0x4fc   : > { %v4085_v48 = vadd.f32 %v4084_v30, %v4083_v55  ;;  %v4092_v9 = vadd.f32 %v4091_v34, %v4090_v13  ;;  %v4132_v2 = vrot.slane %v4131_v47, 2  ;;  %v4139_v23 = vrot.slane %v4138_v61, 2 }
 0x4fd   : > { %v4109_v46 = vadd.f32 %v4108_v3, %v4107_v49  ;;  %v4116_v25 = vadd.f32 %v4115_v41, %v4114_v60  ;;  %v4156_v45 = vrot.slane %v4155_v52, 2  ;;  %v4163_v31 = vrot.slane %v4162_v40, 2 }
 0x4fe   : > { %v4086_v54 = vrot.slane %v4085_v48, 1  ;;  %v4093_v7 = vrot.slane %v4092_v9, 1  ;;  %v4133_v32 = vadd.f32 %v4132_v2, %v4131_v47  ;;  %v4140_v33 = vadd.f32 %v4139_v23, %v4138_v61 }
 0x4ff   : > { %v4110_v26 = vrot.slane %v4109_v46, 1  ;;  %v4117_v10 = vrot.slane %v4116_v25, 1  ;;  %v4157_v30 = vadd.f32 %v4156_v45, %v4155_v52  ;;  %v4164_v34 = vadd.f32 %v4163_v31, %v4162_v40 }
 0x500   : > { %v4087_v51 = vadd.f32 %v4086_v54, %v4085_v48  ;;  %v4094_v56 = vadd.f32 %v4093_v7, %v4092_v9  ;;  %v4134_v42 = vrot.slane %v4133_v32, 1  ;;  %v4141_v8 = vrot.slane %v4140_v33, 1 }
 0x501   : > { %v4111_v55 = vadd.f32 %v4110_v26, %v4109_v46  ;;  %v4118_v13 = vadd.f32 %v4117_v10, %v4116_v25  ;;  %v9890_v49 = vrot.slane %v8913_v63, 1  ;;  %v9891_v47 = vrot.slane %v8915_v14, 1 }
 0x502   : > { %v4135_v36 = vadd.f32 %v4134_v42, %v4133_v32  ;;  %v4142_v61 = vadd.f32 %v4141_v8, %v4140_v33  ;;  %v4158_v26 = vrot.slane %v4157_v30, 1  ;;  %v4165_v3 = vrot.slane %v4164_v34, 1 }
 0x503   : > { %v8985_v60 = vadd.f32 %v9890_v49, %v8913_v63  ;;  %v8990_v59 = vadd.f32 %v9891_v47, %v8915_v14  ;;  %v8995_v40 = vadd.f32 %v4087_v51, %v8875_v1  ;;  %v8998_v41 = vadd.f32 %v4094_v56, %v8877_v6  ;;  %v4170_v47 = vpop.permute.xlu1 %4169 }
 0x504   : > { %v4611_v63 = vmul.f32 %v8949_v15, %v8927_v12  ;;  %v4612_v14 = vmul.f32 %v8951_v35, %v8931_v29  ;;  %v9005_v8 = vadd.f32 %v4111_v55, %v8879_v44  ;;  %v9008_v42 = vadd.f32 %v4118_v13, %v8881_v39 }
 0x505   : > { %v9011_v32 = vadd.f32 %v4135_v36, %v8887_v22  ;;  %v9014_v1 = vadd.f32 %v4142_v61, %v8889_v20  ;;  %v4159_v15 = vadd.f32 %v4158_v26, %v4157_v30  ;;  %v4166_v44 = vadd.f32 %v4165_v3, %v4164_v34 }
 0x506   : > { %v4619_v6 = vmul.f32 %v8665_v19, %v4611_v63  ;;  %v4620_v33 = vmul.f32 %v8665_v19, %v4612_v14  ;;  %v4643_v12 = vmul.f32 %v8662_v58, %v4611_v63  ;;  %v4644_v29 = vmul.f32 %v8662_v58, %v4612_v14 }
 0x507   : > { %v4667_v35 = vmul.f32 %v8775_v57, %v4611_v63  ;;  %v4668_v39 = vmul.f32 %v8775_v57, %v4612_v14  ;;  %v4691_v46 = vmul.f32 %v8699_v53, %v4611_v63  ;;  %v4692_v57 = vmul.f32 %v8699_v53, %v4612_v14 }
 0x508   : > { %v4621_v22 = vsel %vm353_vm2, %v4619_v6, 0.0  ;;  %v4628_v24 = vsel %vm353_vm2, %v4620_v33, 0.0  ;;  %v4645_v20 = vsel %vm353_vm2, %v4643_v12, 0.0  ;;  %v4652_v0 = vsel %vm353_vm2, %v4644_v29, 0.0 }
 0x509   : > { %v4622_v48 = vrot.slane %v4621_v22, 4  ;;  %v4629_v19 = vrot.slane %v4628_v24, 4  ;;  %v4646_v9 = vrot.slane %v4645_v20, 4  ;;  %v4653_v2 = vrot.slane %v4652_v0, 4 }
 0x50a   : > { %v4669_v58 = vsel %vm353_vm2, %v4667_v35, 0.0  ;;  %v4676_v23 = vsel %vm353_vm2, %v4668_v39, 0.0  ;;  %v4693_v56 = vsel %vm353_vm2, %v4691_v46, 0.0  ;;  %v4700_v55 = vsel %vm353_vm2, %v4692_v57, 0.0  ;;  %v4710_v39 = vpop.permute.xlu2 %4709  ;;  %v9069_v46 = vld [vmem:[%s9704_s4 + $0x40] sm:$0xff] }
 0x50b   : > { %v4623_v25 = vadd.f32 %v4622_v48, %v4621_v22  ;;  %v4630_v52 = vadd.f32 %v4629_v19, %v4628_v24  ;;  %v4647_v10 = vadd.f32 %v4646_v9, %v4645_v20  ;;  %v4654_v45 = vadd.f32 %v4653_v2, %v4652_v0  ;;  %v4718_v48 = vld.sshfl [vmem:[#allocation1] sm:$0xff pattern:$0x75316420]  ;;  %v4719_v19 = vld.sshfl [vmem:[#allocation1 + $0x8] sm:$0xff pattern:$0x75316420] }
 0x50c   : > { %v4670_v31 = vrot.slane %v4669_v58, 4  ;;  %v4677_v51 = vrot.slane %v4676_v23, 4  ;;  %v4694_v26 = vrot.slane %v4693_v56, 4  ;;  %v4701_v3 = vrot.slane %v4700_v55, 4  ;;  %9893 = vst [vmem:[#allocation37_spill] sm:$0xff] %v9069_v46 }
 0x50d   : > { %v4624_v13 = vrot.slane %v4623_v25, 2  ;;  %v4631_v30 = vrot.slane %v4630_v52, 2  ;;  %v4648_v34 = vrot.slane %v4647_v10, 2  ;;  %v4655_v49 = vrot.slane %v4654_v45, 2  ;;  %4828 = vst [vmem:[#allocation1] ss:$2 sm:$0xff] %v9069_v46 }
 0x50e   : > { %v4671_v36 = vadd.f32 %v4670_v31, %v4669_v58  ;;  %v4678_v61 = vadd.f32 %v4677_v51, %v4676_v23  ;;  %v4173_v29 = vsel %vm566_vm4, %v4170_v47, %v8761_v43  ;;  %v4174_v35 = vsel %vm566_vm4, %v8761_v43, %v4170_v47  ;;  %v4712_v23 = vpop.permute.xlu0 %4711 }
 0x50f   : > { %v9032_v53 = vadd.f32 %v4624_v13, %v4623_v25  ;;  %v9034_v63 = vadd.f32 %v4631_v30, %v4630_v52  ;;  %v9036_v14 = vadd.f32 %v4648_v34, %v4647_v10  ;;  %v9038_v6 = vadd.f32 %v4655_v49, %v4654_v45 }
 0x510   : > { %v4672_v33 = vrot.slane %v4671_v36, 2  ;;  %v4679_v12 = vrot.slane %v4678_v61, 2  ;;  %v9047_v22 = vadd.f32 %v4159_v15, %v8918_v38  ;;  %v9050_v24 = vadd.f32 %v4166_v44, %v8921_v50 }
 0x511   : > { %v9052_v20 = vadd.f32 %v4694_v26, %v4693_v56  ;;  %v9054_v0 = vadd.f32 %v4701_v3, %v4700_v55  ;;  %v4182_v38 = vmul.f32 %v8681_v16, %v4174_v35  ;;  %v4183_v50 = vmul.f32 %v8683_v27, %v4173_v29 }
 0x512   : > { %v4713_v15 = vsel %vm1134_vm8, %v4710_v39, %v4712_v23  ;;  %v4714_v44 = vsel %vm1134_vm8, %v4712_v23, %v4710_v39  ;;  %v9071_v57 = vadd.f32 %v4672_v33, %v4671_v36  ;;  %v9073_v25 = vadd.f32 %v4679_v12, %v4678_v61 }
 0x513   : > { %9892 = vst [vmem:[#allocation36_spill] sm:$0xff] %v9054_v0  ;;  %v9075_v52 = vmul.f32 %v4718_v48, %v4713_v15  ;;  %v9077_v16 = vmul.f32 %v4719_v19, %v4714_v44  ;;  %v4190_v27 = vmul.f32 %v8596_v11, %v4182_v38  ;;  %v4191_v10 = vmul.f32 %v8596_v11, %v4183_v50 }
 0x514   : > { %v4214_v45 = vmul.f32 %v8544_v62, %v4182_v38  ;;  %v4215_v31 = vmul.f32 %v8544_v62, %v4183_v50  ;;  %v4238_v51 = vmul.f32 %v8570_v21, %v4182_v38  ;;  %v4239_v56 = vmul.f32 %v8570_v21, %v4183_v50 }
 0x515   : > { %v4262_v55 = vmul.f32 %v8627_v5, %v4182_v38  ;;  %v4263_v13 = vmul.f32 %v8627_v5, %v4183_v50  ;;  %v4192_v30 = vsel %vm353_vm2, %v4190_v27, 0.0  ;;  %v4199_v34 = vsel %vm353_vm2, %v4191_v10, 0.0 }
 0x516   : > { %v4216_v49 = vsel %vm353_vm2, %v4214_v45, 0.0  ;;  %v4223_v11 = vsel %vm353_vm2, %v4215_v31, 0.0  ;;  %v4193_v47 = vrot.slane %v4192_v30, 4  ;;  %v4200_v36 = vrot.slane %v4199_v34, 4 }
 0x517   : > { %v4217_v61 = vrot.slane %v4216_v49, 4  ;;  %v4224_v62 = vrot.slane %v4223_v11, 4  ;;  %v4240_v26 = vsel %vm353_vm2, %v4238_v51, 0.0  ;;  %v4247_v21 = vsel %vm353_vm2, %v4239_v56, 0.0 }
 0x518   : > { %v4264_v3 = vsel %vm353_vm2, %v4262_v55, 0.0  ;;  %v4271_v5 = vsel %vm353_vm2, %v4263_v13, 0.0  ;;  %v4194_v33 = vadd.f32 %v4193_v47, %v4192_v30  ;;  %v4201_v12 = vadd.f32 %v4200_v36, %v4199_v34  ;;  %v9096_v51 = vld.sshfl [vmem:[#allocation1] sm:$0xff pattern:$0x75316420] }
 0x519   : > { %v4218_v29 = vadd.f32 %v4217_v61, %v4216_v49  ;;  %v4225_v35 = vadd.f32 %v4224_v62, %v4223_v11  ;;  %v4241_v39 = vrot.slane %v4240_v26, 4  ;;  %v4248_v48 = vrot.slane %v4247_v21, 4  ;;  %v9098_v56 = vld.sshfl [vmem:[#allocation1 + $0x8] sm:$0xff pattern:$0x75316420] }
 0x51a   : > { %v4265_v19 = vrot.slane %v4264_v3, 4  ;;  %v4272_v23 = vrot.slane %v4271_v5, 4  ;;  %v4195_v38 = vrot.slane %v4194_v33, 2  ;;  %v4202_v50 = vrot.slane %v4201_v12, 2  ;;  %4958 = vst [vmem:[#allocation1] ss:$2 sm:$0xff] %v8606_v4 }
 0x51b   : > { %v4219_v15 = vrot.slane %v4218_v29, 2  ;;  %v4226_v44 = vrot.slane %v4225_v35, 2  ;;  %v4242_v27 = vadd.f32 %v4241_v39, %v4240_v26  ;;  %v4249_v10 = vadd.f32 %v4248_v48, %v4247_v21 }
 0x51c   : > { %v4266_v45 = vadd.f32 %v4265_v19, %v4264_v3  ;;  %v4273_v31 = vadd.f32 %v4272_v23, %v4271_v5  ;;  %v4196_v55 = vadd.f32 %v4195_v38, %v4194_v33  ;;  %v4203_v13 = vadd.f32 %v4202_v50, %v4201_v12  ;;  %v4281_v19 = vpop.permute.xlu1 %4280 }
 0x51d   : > { %v4220_v30 = vadd.f32 %v4219_v15, %v4218_v29  ;;  %v4227_v34 = vadd.f32 %v4226_v44, %v4225_v35  ;;  %v4243_v49 = vrot.slane %v4242_v27, 2  ;;  %v4250_v11 = vrot.slane %v4249_v10, 2 }
 0x51e   : > { %v4267_v47 = vrot.slane %v4266_v45, 2  ;;  %v4274_v36 = vrot.slane %v4273_v31, 2  ;;  %v4197_v61 = vrot.slane %v4196_v55, 1  ;;  %v4204_v62 = vrot.slane %v4203_v13, 1 }
 0x51f   : > { %v4221_v26 = vrot.slane %v4220_v30, 1  ;;  %v4228_v21 = vrot.slane %v4227_v34, 1  ;;  %v4244_v3 = vadd.f32 %v4243_v49, %v4242_v27  ;;  %v4251_v5 = vadd.f32 %v4250_v11, %v4249_v10 }
 0x520   : > { %v4268_v39 = vadd.f32 %v4267_v47, %v4266_v45  ;;  %v4275_v48 = vadd.f32 %v4274_v36, %v4273_v31  ;;  %v4198_v23 = vadd.f32 %v4197_v61, %v4196_v55  ;;  %v4205_v33 = vadd.f32 %v4204_v62, %v4203_v13 }
 0x521   : > { %v4222_v12 = vadd.f32 %v4221_v26, %v4220_v30  ;;  %v4229_v29 = vadd.f32 %v4228_v21, %v4227_v34  ;;  %v4245_v38 = vrot.slane %v4244_v3, 1  ;;  %v4252_v50 = vrot.slane %v4251_v5, 1  ;;  %v9894_v30 = vld [vmem:[#allocation21_spill] sm:$0xff] }
 0x522   : > { %v4269_v15 = vrot.slane %v4268_v39, 1  ;;  %v4276_v44 = vrot.slane %v4275_v48, 1  ;;  %v4284_v27 = vsel %vm683_vm5, %v4281_v19, %v8810_v18  ;;  %v4285_v10 = vsel %vm683_vm5, %v8810_v18, %v4281_v19  ;;  %v9895_v18 = vld [vmem:[#allocation8_spill] sm:$0xff] }
 0x523   : > { %v9110_v45 = vadd.f32 %v4198_v23, %v8995_v40  ;;  %v9113_v31 = vadd.f32 %v4205_v33, %v8998_v41  ;;  %v9116_v55 = vadd.f32 %v4222_v12, %v9005_v8  ;;  %v9119_v13 = vadd.f32 %v4229_v29, %v9008_v42  ;;  %v9896_v8 = vld [vmem:[#allocation6_spill] sm:$0xff] }
 0x524   : > { %v4730_v34 = vmul.f32 %v9894_v30, %v9075_v52  ;;  %v4731_v49 = vmul.f32 %v9894_v30, %v9077_v16  ;;  %v4754_v11 = vmul.f32 %v9895_v18, %v9075_v52  ;;  %v4755_v40 = vmul.f32 %v9895_v18, %v9077_v16  ;;  %v9897_v29 = vld [vmem:[#allocation22_spill] sm:$0xff] }
 0x525   : > { %v4246_v41 = vadd.f32 %v4245_v38, %v4244_v3  ;;  %v4253_v47 = vadd.f32 %v4252_v50, %v4251_v5  ;;  %v4778_v36 = vmul.f32 %v9896_v8, %v9075_v52  ;;  %v4779_v42 = vmul.f32 %v9896_v8, %v9077_v16 }
 0x526   : > { %v4732_v61 = vsel %vm353_vm2, %v4730_v34, 0.0  ;;  %v4739_v62 = vsel %vm353_vm2, %v4731_v49, 0.0  ;;  %v4756_v26 = vsel %vm353_vm2, %v4754_v11, 0.0  ;;  %v4763_v21 = vsel %vm353_vm2, %v4755_v40, 0.0 }
 0x527   : > { %v4733_v19 = vrot.slane %v4732_v61, 4  ;;  %v4740_v23 = vrot.slane %v4739_v62, 4  ;;  %v4757_v33 = vrot.slane %v4756_v26, 4  ;;  %v4764_v12 = vrot.slane %v4763_v21, 4 }
 0x528   : > { %v4780_v3 = vsel %vm353_vm2, %v4778_v36, 0.0  ;;  %v4787_v5 = vsel %vm353_vm2, %v4779_v42, 0.0  ;;  %v4802_v38 = vmul.f32 %v9897_v29, %v9075_v52  ;;  %v4803_v50 = vmul.f32 %v9897_v29, %v9077_v16  ;;  %v9904_v29 = vld [vmem:[#allocation13_spill] sm:$0xff] }
 0x529   : > { %v4734_v30 = vadd.f32 %v4733_v19, %v4732_v61  ;;  %v4741_v34 = vadd.f32 %v4740_v23, %v4739_v62  ;;  %v4758_v49 = vadd.f32 %v4757_v33, %v4756_v26  ;;  %v4765_v18 = vadd.f32 %v4764_v12, %v4763_v21  ;;  %v4821_v19 = vpop.permute.xlu2 %4820 }
 0x52a   : > { %v4781_v11 = vrot.slane %v4780_v3, 4  ;;  %v4788_v40 = vrot.slane %v4787_v5, 4  ;;  %v4804_v8 = vsel %vm353_vm2, %v4802_v38, 0.0  ;;  %v4811_v4 = vsel %vm353_vm2, %v4803_v50, 0.0 }
 0x52b   : > { %v4735_v35 = vrot.slane %v4734_v30, 2  ;;  %v4742_v36 = vrot.slane %v4741_v34, 2  ;;  %v4759_v54 = vrot.slane %v4758_v49, 2  ;;  %v4766_v42 = vrot.slane %v4765_v18, 2 }
 0x52c   : > { %v9145_v7 = vadd.f32 %v4781_v11, %v4780_v3  ;;  %v9147_v52 = vadd.f32 %v4788_v40, %v4787_v5  ;;  %v4805_v43 = vrot.slane %v4804_v8, 4  ;;  %v4812_v16 = vrot.slane %v4811_v4, 4 }
 0x52d   : > { %v9150_v61 = vadd.f32 %v4246_v41, %v9011_v32  ;;  %v9153_v62 = vadd.f32 %v4253_v47, %v9014_v1  ;;  %v9155_v26 = vadd.f32 %v4269_v15, %v4268_v39  ;;  %v9157_v21 = vadd.f32 %v4276_v44, %v4275_v48  ;;  %v9900_v41 = vld [vmem:[#allocation9_spill] sm:$0xff]  ;;  %v9901_v47 = vld [vmem:[#allocation11_spill] sm:$0xff]  ;;  %v4823_v15 = vpop.permute.xlu0 %4822 }
 0x52e   : > { %9898 = vst [vmem:[#allocation21_spill] sm:$0xff] %v9145_v7  ;;  %v9159_v23 = vadd.f32 %v4735_v35, %v4734_v30  ;;  %v9161_v33 = vadd.f32 %v4742_v36, %v4741_v34  ;;  %v9163_v12 = vadd.f32 %v4759_v54, %v4758_v49  ;;  %v9165_v3 = vadd.f32 %v4766_v42, %v4765_v18  ;;  %v9905_v30 = vld [vmem:[#allocation16_spill] sm:$0xff] }
 0x52f   : > { %9899 = vst [vmem:[#allocation8_spill] sm:$0xff] %v9147_v52  ;;  %v4293_v1 = vmul.f32 %v9900_v41, %v4285_v10  ;;  %v4294_v39 = vmul.f32 %v9901_v47, %v4284_v27  ;;  %v9171_v48 = vadd.f32 %v4805_v43, %v4804_v8  ;;  %v9173_v44 = vadd.f32 %v4812_v16, %v4811_v4  ;;  %v9906_v27 = vld [vmem:[#allocation17_spill] sm:$0xff]  ;;  %v9907_v4 = vld [vmem:[#allocation20_spill] sm:$0xff] }
 0x530   : > { %v4824_v35 = vsel %vm1251_vm9, %v4821_v19, %v4823_v15  ;;  %v4825_v54 = vsel %vm1251_vm9, %v4823_v15, %v4821_v19 }
 0x531   : > { %9902 = vst [vmem:[#allocation6_spill] sm:$0xff] %v9171_v48  ;;  %v4301_v38 = vmul.f32 %v9904_v29, %v4293_v1  ;;  %v4302_v50 = vmul.f32 %v9904_v29, %v4294_v39  ;;  %v4325_v34 = vmul.f32 %v9905_v30, %v4293_v1  ;;  %v4326_v10 = vmul.f32 %v9905_v30, %v4294_v39 }
 0x532   : > { %9903 = vst [vmem:[#allocation22_spill] sm:$0xff] %v9173_v44  ;;  %v4349_v49 = vmul.f32 %v9906_v27, %v4293_v1  ;;  %v4350_v43 = vmul.f32 %v9906_v27, %v4294_v39  ;;  %v4373_v18 = vmul.f32 %v9907_v4, %v4293_v1  ;;  %v4374_v11 = vmul.f32 %v9907_v4, %v4294_v39 }
 0x533   : > { %v4303_v40 = vsel %vm353_vm2, %v4301_v38, 0.0  ;;  %v4310_v8 = vsel %vm353_vm2, %v4302_v50, 0.0  ;;  %v4327_v36 = vsel %vm353_vm2, %v4325_v34, 0.0  ;;  %v4334_v42 = vsel %vm353_vm2, %v4326_v10, 0.0 }
 0x534   : > { %v4304_v16 = vrot.slane %v4303_v40, 4  ;;  %v4311_v19 = vrot.slane %v4310_v8, 4  ;;  %v4328_v41 = vrot.slane %v4327_v36, 4  ;;  %v4335_v47 = vrot.slane %v4334_v42, 4 }
 0x535   : > { %v4351_v15 = vsel %vm353_vm2, %v4349_v49, 0.0  ;;  %v4358_v29 = vsel %vm353_vm2, %v4350_v43, 0.0  ;;  %v4375_v1 = vsel %vm353_vm2, %v4373_v18, 0.0  ;;  %v4382_v39 = vsel %vm353_vm2, %v4374_v11, 0.0 }
 0x536   : > { %v4305_v30 = vadd.f32 %v4304_v16, %v4303_v40  ;;  %v4312_v38 = vadd.f32 %v4311_v19, %v4310_v8  ;;  %v4329_v27 = vadd.f32 %v4328_v41, %v4327_v36  ;;  %v4336_v50 = vadd.f32 %v4335_v47, %v4334_v42 }
 0x537   : > { %v4352_v4 = vrot.slane %v4351_v15, 4  ;;  %v4359_v34 = vrot.slane %v4358_v29, 4  ;;  %v4376_v32 = vrot.slane %v4375_v1, 4  ;;  %v4383_v10 = vrot.slane %v4382_v39, 4 }
 0x538   : > { %v4306_v5 = vrot.slane %v4305_v30, 2  ;;  %v4313_v58 = vrot.slane %v4312_v38, 2  ;;  %v4330_v2 = vrot.slane %v4329_v27, 2  ;;  %v4337_v9 = vrot.slane %v4336_v50, 2 }
 0x539   : > { %v4353_v46 = vadd.f32 %v4352_v4, %v4351_v15  ;;  %v4360_v49 = vadd.f32 %v4359_v34, %v4358_v29  ;;  %v4377_v37 = vadd.f32 %v4376_v32, %v4375_v1  ;;  %v4384_v43 = vadd.f32 %v4383_v10, %v4382_v39 }
 0x53a   : > { %v4307_v44 = vadd.f32 %v4306_v5, %v4305_v30  ;;  %v4314_v18 = vadd.f32 %v4313_v58, %v4312_v38  ;;  %v4331_v48 = vadd.f32 %v4330_v2, %v4329_v27  ;;  %v4338_v11 = vadd.f32 %v4337_v9, %v4336_v50  ;;  %v4839_v2 = vpop.permute.xlu1 %4838  ;;  %v4887_v38 = vpop.permute.xlu0 %4886 }
 0x53b   : > { %v4354_v40 = vrot.slane %v4353_v46, 2  ;;  %v4361_v8 = vrot.slane %v4360_v49, 2  ;;  %v4378_v36 = vrot.slane %v4377_v37, 2  ;;  %v4385_v42 = vrot.slane %v4384_v43, 2 }
 0x53c   : > { %v4308_v16 = vrot.slane %v4307_v44, 1  ;;  %v4315_v19 = vrot.slane %v4314_v18, 1  ;;  %v4332_v41 = vrot.slane %v4331_v48, 1  ;;  %v4339_v47 = vrot.slane %v4338_v11, 1 }
 0x53d   : > { %v4355_v52 = vadd.f32 %v4354_v40, %v4353_v46  ;;  %v4362_v7 = vadd.f32 %v4361_v8, %v4360_v49  ;;  %v9195_v0 = vadd.f32 %v4378_v36, %v4377_v37  ;;  %v9197_v15 = vadd.f32 %v4385_v42, %v4384_v43  ;;  %v9205_v46 = vpop.permute.xlu2 %4862  ;;  %v9911_v49 = vld [vmem:[#allocation26_spill] sm:$0xff] }
 0x53e   : > { %v4309_v32 = vadd.f32 %v4308_v16, %v4307_v44  ;;  %v4316_v29 = vadd.f32 %v4315_v19, %v4314_v18  ;;  %v4333_v5 = vadd.f32 %v4332_v41, %v4331_v48  ;;  %v4340_v58 = vadd.f32 %v4339_v47, %v4338_v11  ;;  %v9912_v18 = vld [vmem:[#allocation33_spill] sm:$0xff]  ;;  %v9913_v40 = vld [vmem:[#allocation34_spill] sm:$0xff] }
 0x53f   : > { %v4356_v9 = vrot.slane %v4355_v52, 1  ;;  %v4363_v1 = vrot.slane %v4362_v7, 1  ;;  %v9200_v39 = vmul.f32 %v9096_v51, %v4824_v35  ;;  %v9203_v30 = vmul.f32 %v9098_v56, %v4825_v54 }
 0x540   : > { %v4317_v37 = vadd.f32 %v4309_v32, %v9110_v45  ;;  %v4318_v27 = vadd.f32 %v4316_v29, %v9113_v31  ;;  %v9908_v48 = vrot.slane %v9032_v53, 1  ;;  %v9909_v50 = vrot.slane %v9034_v63, 1  ;;  %v9910_v31 = vld [vmem:[#allocation25_spill] sm:$0xff] }
 0x541   : > { %v4341_v51 = vadd.f32 %v4333_v5, %v9116_v55  ;;  %v4342_v56 = vadd.f32 %v4340_v58, %v9119_v13  ;;  %v4380_v35 = vrot.slane %v9195_v0, 1  ;;  %v4387_v54 = vrot.slane %v9197_v15, 1 }
 0x542   : > { %v4627_v44 = vadd.f32 %v9908_v48, %v9032_v53  ;;  %v4634_v4 = vadd.f32 %v9909_v50, %v9034_v63  ;;  %v9219_v34 = vadd.f32 %v4356_v9, %v4355_v52  ;;  %v9221_v45 = vadd.f32 %v4363_v1, %v4362_v7  ;;  %v9915_v1 = vld [vmem:[#allocation7_spill] sm:$0xff] }
 0x543   : > { %v4413_v10 = vadd.f32 %v9910_v31, %v4317_v37  ;;  %v4414_v53 = vadd.f32 %v9911_v49, %v4318_v27  ;;  %v4841_v43 = vmul.f32 %v4839_v2, %v9200_v39  ;;  %v4842_v63 = vmul.f32 %v4839_v2, %v9203_v30  ;;  %v9914_v2 = vld [vmem:[#allocation19_spill] sm:$0xff]  ;;  %v4911_v31 = vpop.permute.xlu1 %4910 }
 0x544   : > { %v4889_v55 = vmul.f32 %v4887_v38, %v9200_v39  ;;  %v4890_v13 = vmul.f32 %v4887_v38, %v9203_v30  ;;  %v4737_v52 = vrot.slane %v9159_v23, 1  ;;  %v4744_v7 = vrot.slane %v9161_v33, 1 }
 0x545   : > { %v4524_v11 = vadd.f32 %v9912_v18, %v4413_v10  ;;  %v4525_v8 = vadd.f32 %v9913_v40, %v4414_v53  ;;  %v4843_v36 = vsel %vm353_vm2, %v4841_v43, 0.0  ;;  %v4850_v42 = vsel %vm353_vm2, %v4842_v63, 0.0  ;;  %v9243_v53 = vpop.permute.xlu0 %4992  ;;  %v9245_v43 = vpop.permute.xlu2 %4943 }
 0x546   : > { %v4891_v16 = vsel %vm353_vm2, %v4889_v55, 0.0  ;;  %v4898_v19 = vsel %vm353_vm2, %v4890_v13, 0.0  ;;  %v4844_v32 = vrot.slane %v4843_v36, 4  ;;  %v4851_v29 = vrot.slane %v4850_v42, 4 }
 0x547   : > { %v4635_v41 = vadd.f32 %v4627_v44, %v4524_v11  ;;  %v4636_v47 = vadd.f32 %v4634_v4, %v4525_v8  ;;  %v4892_v5 = vrot.slane %v4891_v16, 4  ;;  %v4899_v58 = vrot.slane %v4898_v19, 4 }
 0x548   : > { %v4437_v9 = vadd.f32 %v9914_v2, %v4341_v51  ;;  %v4438_v38 = vadd.f32 %v9915_v1, %v4342_v56  ;;  %v4738_v37 = vadd.f32 %v4737_v52, %v9159_v23  ;;  %v4745_v27 = vadd.f32 %v4744_v7, %v9161_v33 }
 0x549   : > { %v4845_v48 = vadd.f32 %v4844_v32, %v4843_v36  ;;  %v4852_v50 = vadd.f32 %v4851_v29, %v4850_v42  ;;  %v4893_v10 = vadd.f32 %v4892_v5, %v4891_v16  ;;  %v4900_v49 = vadd.f32 %v4899_v58, %v4898_v19 }
 0x54a   : > { %v4548_v44 = vadd.f32 %v8985_v60, %v4437_v9  ;;  %v4549_v4 = vadd.f32 %v8990_v59, %v4438_v38  ;;  %v9916_v23 = vrot.slane %v9036_v14, 1  ;;  %v9917_v33 = vrot.slane %v9038_v6, 1 }
 0x54b   : > { %v4846_v51 = vrot.slane %v4845_v48, 2  ;;  %v4853_v63 = vrot.slane %v4852_v50, 2  ;;  %v4894_v13 = vrot.slane %v4893_v10, 2  ;;  %v4901_v18 = vrot.slane %v4900_v49, 2 }
 0x54c   : > { %v4651_v56 = vadd.f32 %v9916_v23, %v9036_v14  ;;  %v4658_v55 = vadd.f32 %v9917_v33, %v9038_v6  ;;  %v4761_v60 = vrot.slane %v9163_v12, 1  ;;  %v4768_v59 = vrot.slane %v9165_v3, 1 }
 0x54d   : > { %v4847_v11 = vadd.f32 %v4846_v51, %v4845_v48  ;;  %v4854_v40 = vadd.f32 %v4853_v63, %v4852_v50  ;;  %v9255_v7 = vadd.f32 %v4894_v13, %v4893_v10  ;;  %v9257_v36 = vadd.f32 %v4901_v18, %v4900_v49 }
 0x54e   : > { %v4659_v8 = vadd.f32 %v4651_v56, %v4548_v44  ;;  %v4660_v52 = vadd.f32 %v4658_v55, %v4549_v4  ;;  %v4762_v14 = vadd.f32 %v4761_v60, %v9163_v12  ;;  %v4769_v42 = vadd.f32 %v4768_v59, %v9165_v3  ;;  %v9281_v44 = vpop.permute.xlu2 %4968  ;;  %v9918_v60 = vld [vmem:[#allocation29_spill] sm:$0xff] }
 0x54f   : > { %v4848_v16 = vrot.slane %v4847_v11, 1  ;;  %v4855_v6 = vrot.slane %v4854_v40, 1  ;;  %v4865_v19 = vmul.f32 %v9205_v46, %v9200_v39  ;;  %v4866_v32 = vmul.f32 %v9205_v46, %v9203_v30 }
 0x550   : > { %v4381_v29 = vadd.f32 %v4380_v35, %v9195_v0  ;;  %v4388_v5 = vadd.f32 %v4387_v54, %v9197_v15  ;;  %v4770_v58 = vadd.f32 %v4762_v14, %v4659_v8  ;;  %v4771_v2 = vadd.f32 %v4769_v42, %v4660_v52  ;;  %v9273_v35 = vpop.permute.xlu1 %5016  ;;  %v9921_v8 = vld [vmem:[#allocation28_spill] sm:$0xff] }
 0x551   : > { %v4746_v9 = vadd.f32 %v4738_v37, %v4635_v41  ;;  %v4747_v1 = vadd.f32 %v4745_v27, %v4636_v47  ;;  %v4867_v12 = vsel %vm353_vm2, %v4865_v19, 0.0  ;;  %v4874_v3 = vsel %vm353_vm2, %v4866_v32, 0.0  ;;  %v9279_v27 = vpop.permute.xlu0 %5101 }
 0x552   : > { %v4896_v38 = vrot.slane %v9255_v7, 1  ;;  %v4903_v48 = vrot.slane %v9257_v36, 1  ;;  %v4868_v50 = vrot.slane %v4867_v12, 4  ;;  %v4875_v10 = vrot.slane %v4874_v3, 4 }
 0x553   : > { %v4849_v49 = vadd.f32 %v4848_v16, %v4847_v11  ;;  %v4856_v46 = vadd.f32 %v4855_v6, %v4854_v40  ;;  %v4913_v0 = vmul.f32 %v4911_v31, %v9200_v39  ;;  %v4914_v15 = vmul.f32 %v4911_v31, %v9203_v30  ;;  %v9919_v11 = vld [vmem:[#allocation30_spill] sm:$0xff] }
 0x554   : > { %v4869_v54 = vadd.f32 %v4868_v50, %v4867_v12  ;;  %v4876_v41 = vadd.f32 %v4875_v10, %v4874_v3  ;;  %v4278_v47 = vadd.f32 %v9155_v26, %v9047_v22  ;;  %v4279_v37 = vadd.f32 %v9157_v21, %v9050_v24 }
 0x555   : > { %v4915_v4 = vsel %vm353_vm2, %v4913_v0, 0.0  ;;  %v4922_v39 = vsel %vm353_vm2, %v4914_v15, 0.0  ;;  %v4365_v30 = vadd.f32 %v9219_v34, %v9150_v61  ;;  %v4366_v31 = vadd.f32 %v9221_v45, %v9153_v62  ;;  %v9920_v61 = vld [vmem:[#allocation27_spill] sm:$0xff] }
 0x556   : > { %v4870_v51 = vrot.slane %v4869_v54, 2  ;;  %v4877_v63 = vrot.slane %v4876_v41, 2  ;;  %v4916_v22 = vrot.slane %v4915_v4, 4  ;;  %v4923_v26 = vrot.slane %v4922_v39, 4 }
 0x557   : > { %v4857_v23 = vadd.f32 %v4849_v49, %v4746_v9  ;;  %v4858_v24 = vadd.f32 %v4856_v46, %v4747_v1  ;;  %v4389_v21 = vadd.f32 %v4381_v29, %v4278_v47  ;;  %v4390_v56 = vadd.f32 %v4388_v5, %v4279_v37  ;;  %v9924_v29 = vld [vmem:[#allocation31_spill] sm:$0xff]  ;;  %v9925_v9 = vld [vmem:[#allocation32_spill] sm:$0xff]  ;;  %v9303_v46 = vpop.permute.xlu2 %5077 }
 0x558   : > { %v4871_v33 = vadd.f32 %v4870_v51, %v4869_v54  ;;  %v4878_v55 = vadd.f32 %v4877_v63, %v4876_v41  ;;  %v4917_v13 = vadd.f32 %v4916_v22, %v4915_v4  ;;  %v4924_v18 = vadd.f32 %v4923_v26, %v4922_v39  ;;  %v9301_v12 = vpop.permute.xlu1 %5053 }
 0x559   : > { %v4461_v59 = vadd.f32 %v9918_v60, %v4365_v30  ;;  %v4462_v40 = vadd.f32 %v9919_v11, %v4366_v31  ;;  %v4485_v34 = vadd.f32 %v9920_v61, %v4389_v21  ;;  %v4486_v62 = vadd.f32 %v9921_v8, %v4390_v56  ;;  %v9309_v4 = vpop.permute.xlu0 %5138  ;;  %v9933_v61 = vld [vmem:[#allocation6_spill] sm:$0xff] }
 0x55a   : > { %v4872_v45 = vrot.slane %v4871_v33, 1  ;;  %v4879_v52 = vrot.slane %v4878_v55, 1  ;;  %v4918_v14 = vrot.slane %v4917_v13, 2  ;;  %v4925_v42 = vrot.slane %v4924_v18, 2  ;;  %v9934_v8 = vld [vmem:[#allocation22_spill] sm:$0xff] }
 0x55b   : > { %v9922_v16 = vrot.slane %v8933_v28, 1  ;;  %v9923_v19 = vrot.slane %v8935_v17, 1  ;;  %v4587_v5 = vrot.slane %v9924_v29, 1  ;;  %v4594_v1 = vrot.slane %v9925_v9, 1 }
 0x55c   : > { %v4873_v3 = vadd.f32 %v4872_v45, %v4871_v33  ;;  %v4880_v50 = vadd.f32 %v4879_v52, %v4878_v55  ;;  %v4919_v10 = vadd.f32 %v4918_v14, %v4917_v13  ;;  %v4926_v49 = vadd.f32 %v4925_v42, %v4924_v18  ;;  %v9929_v13 = vld [vmem:[#allocation21_spill] sm:$0xff] }
 0x55d   : > { %v4564_v6 = vadd.f32 %v9922_v16, %v8933_v28  ;;  %v4571_v32 = vadd.f32 %v9923_v19, %v8935_v17  ;;  %v4674_v28 = vrot.slane %v9071_v57, 1  ;;  %v4681_v54 = vrot.slane %v9073_v25, 1 }
 0x55e   : > { %v4881_v41 = vadd.f32 %v4873_v3, %v4770_v58  ;;  %v4882_v17 = vadd.f32 %v4880_v50, %v4771_v2  ;;  %v4588_v47 = vadd.f32 %v4587_v5, %v9924_v29  ;;  %v4595_v37 = vadd.f32 %v4594_v1, %v9925_v9  ;;  %v9927_v58 = vld [vmem:[#allocation36_spill] sm:$0xff] }
 0x55f   : > { %v4572_v0 = vadd.f32 %v4564_v6, %v4461_v59  ;;  %v4573_v15 = vadd.f32 %v4571_v32, %v4462_v40  ;;  %v4920_v39 = vrot.slane %v4919_v10, 1  ;;  %v4927_v30 = vrot.slane %v4926_v49, 1  ;;  %v9931_v59 = vld [vmem:[#allocation8_spill] sm:$0xff]  ;;  %v9333_v29 = vpop.permute.xlu2 %5186 }
 0x560   : > { %v4675_v31 = vadd.f32 %v4674_v28, %v9071_v57  ;;  %v4682_v51 = vadd.f32 %v4681_v54, %v9073_v25  ;;  %v4596_v63 = vadd.f32 %v4588_v47, %v4485_v34  ;;  %v4597_v22 = vadd.f32 %v4595_v37, %v4486_v62  ;;  %v9329_v42 = vpop.permute.xlu1 %5162 }
 0x561   : > { %v9926_v26 = vrot.slane %v9052_v20, 2  ;;  %v9928_v2 = vrot.slane %v9927_v58, 2  ;;  %v9930_v18 = vrot.slane %v9929_v13, 2  ;;  %v9932_v57 = vrot.slane %v9931_v59, 2  ;;  %v9341_v37 = vpop.permute.xlu0 %5247 }
 0x562   : > { %v4683_v33 = vadd.f32 %v4675_v31, %v4572_v0  ;;  %v4684_v55 = vadd.f32 %v4682_v51, %v4573_v15  ;;  %v4807_v34 = vrot.slane %v9933_v61, 2  ;;  %v4931_v52 = vsel %vm1364_vm10, %v4857_v23, %v4881_v41 }
 0x563   : > { %v4697_v21 = vadd.f32 %v9926_v26, %v9052_v20  ;;  %v4704_v56 = vadd.f32 %v9928_v2, %v9927_v58  ;;  %v4784_v60 = vadd.f32 %v9930_v18, %v9929_v13  ;;  %v4791_v25 = vadd.f32 %v9932_v57, %v9931_v59  ;;  %v9936_v13 = vld [vmem:[#allocation23_spill] sm:$0xff] }
 0x564   : > { %v4814_v20 = vrot.slane %v9934_v8, 2  ;;  %v4932_v14 = vsel %vm1364_vm10, %v4858_v24, %v4882_v17  ;;  %v4808_v19 = vadd.f32 %v4807_v34, %v9933_v61  ;;  %v4897_v23 = vadd.f32 %v4896_v38, %v9255_v7  ;;  %v6008_v34 = vld [vmem:[%s9703_s3 + $0x20] sm:$0xf] }
 0x565   : > { %v4698_v11 = vrot.slane %v4697_v21, 1  ;;  %v4705_v40 = vrot.slane %v4704_v56, 1  ;;  %v4785_v62 = vrot.slane %v4784_v60, 1  ;;  %v4792_v45 = vrot.slane %v4791_v25, 1 }
 0x566   : > { %v4815_v32 = vadd.f32 %v4814_v20, %v9934_v8  ;;  %v4809_v50 = vrot.slane %v4808_v19, 1  ;;  %v4904_v24 = vadd.f32 %v4903_v48, %v9257_v36  ;;  %v4921_v54 = vadd.f32 %v4920_v39, %v4919_v10  ;;  %v6009_v8 = vld [vmem:[%s9703_s3 + $0x44] sm:$0xf]  ;;  %v6010_v20 = vld [vmem:[%s9703_s3 + $0x68] sm:$0xf] }
 0x567   : > { %v4699_v16 = vadd.f32 %v4698_v11, %v4697_v21  ;;  %v4706_v6 = vadd.f32 %v4705_v40, %v4704_v56  ;;  %v4786_v5 = vadd.f32 %v4785_v62, %v4784_v60  ;;  %v4793_v9 = vadd.f32 %v4792_v45, %v4791_v25  ;;  %v9347_v48 = vpop.permute.xlu2 %5223  ;;  %v4959_v62 = vld.sshfl [vmem:[#allocation1] sm:$0xff pattern:$0x75316420]  ;;  %v4960_v45 = vld.sshfl [vmem:[#allocation1 + $0x8] sm:$0xff pattern:$0x75316420] }
 0x568   : > { %v4816_v0 = vrot.slane %v4815_v32, 1  ;;  %v4928_v41 = vadd.f32 %v4927_v30, %v4926_v49  ;;  %v4810_v17 = vadd.f32 %v4809_v50, %v4808_v19  ;;  %v9345_v38 = vpop.permute.xlu1 %5271 }
 0x569   : > { %v4707_v1 = vadd.f32 %v4699_v16, %v4596_v63  ;;  %v4708_v3 = vadd.f32 %v4706_v6, %v4597_v22  ;;  %v4794_v15 = vadd.f32 %v4786_v5, %v4683_v33  ;;  %v4795_v28 = vadd.f32 %v4793_v9, %v4684_v55  ;;  %v5320_v56 = vpop.permute.xlu0 %5319  ;;  %v9935_v33 = vld [vmem:[#allocation18_spill] sm:$0xff] }
 0x56a   : > { %v4817_v47 = vadd.f32 %v4816_v0, %v4815_v32  ;;  %v9938_v5 = vld [vmem:[#allocation14_spill] sm:$0xff] }
 0x56b   : > { %v4905_v31 = vadd.f32 %v4897_v23, %v4794_v15  ;;  %v4906_v51 = vadd.f32 %v4904_v24, %v4795_v28  ;;  %v4818_v63 = vadd.f32 %v4810_v17, %v4707_v1 }
 0x56c   : > { %v4819_v22 = vadd.f32 %v4817_v47, %v4708_v3 }
 0x56d   : > { %v4933_v26 = vsel %vm1367_vm11, %v4931_v52, %v4905_v31  ;;  %v4934_v7 = vsel %vm1367_vm11, %v4932_v14, %v4906_v51  ;;  %v4929_v21 = vadd.f32 %v4921_v54, %v4818_v63  ;;  %v9937_v52 = vld [vmem:[#allocation12_spill] sm:$0xff] }
 0x56e   : > { %v4930_v36 = vadd.f32 %v4928_v41, %v4819_v22  ;;  %5043 = vst [vmem:[#allocation1] ss:$2 sm:$0xff] %v9937_v52 }
 0x56f   : > { %v4935_v10 = vsel %vm324_vm0, %v4933_v26, %v4929_v21  ;;  %v5296_v59 = vpop.permute.xlu2 %5295  ;;  %v9939_v26 = vld [vmem:[#allocation15_spill] sm:$0xff] }
 0x570   : > { %v4936_v49 = vsel %vm324_vm0, %v4934_v7, %v4930_v36  ;;  %v4946_v39 = vadd.f32 %v9245_v43, %v4935_v10  ;;  %v5344_v60 = vpop.permute.xlu1 %5343 }
 0x571   : > { %v4947_v30 = vadd.f32 %v9245_v43, %v4936_v49  ;;  %v9385_v6 = vpop.permute.xlu0 %5428 }
 0x572   : > { %v4948_v58 = vmax.f32 %v4946_v39, 0.0 }
 0x573   : > { %v4949_v2 = vmax.f32 %v4947_v30, 0.0 }
 0x574   : > { %v4950_v55 = vadd.f32 %v4948_v58, %v9935_v33 }
 0x575   : > { %v4951_v18 = vadd.f32 %v4949_v2, %v9936_v13  ;;  %v9387_v19 = vld.sshfl [vmem:[#allocation1] sm:$0xff pattern:$0x75316420]  ;;  %v9389_v32 = vld.sshfl [vmem:[#allocation1 + $0x8] sm:$0xff pattern:$0x75316420] }
 0x576   : > { %5037 = vrot.lane.b32.xlu2 %v4950_v55, %s6079_s8  ;;  %v5322_v57 = vmul.f32 %v5320_v56, %v4950_v55  ;;  %v5346_v11 = vmul.f32 %v5344_v60, %v4950_v55  ;;  %4952 = vrot.lane.b32.xlu0 %v4950_v55, %s6078_s30  ;;  %v5298_v43 = vmul.f32 %v5296_v59, %v4950_v55 }
 0x577   : > { %4954 = vrot.lane.b32.xlu1 %v4951_v18, %s6078_s30  ;;  %v5323_v25 = vmul.f32 %v5320_v56, %v4951_v18  ;;  %v5347_v40 = vmul.f32 %v5344_v60, %v4951_v18  ;;  %v5299_v61 = vmul.f32 %v5296_v59, %v4951_v18  ;;  %v9381_v14 = vpop.permute.xlu2 %5404  ;;  %5128 = vst [vmem:[#allocation1] ss:$2 sm:$0xff] %v9938_v5  ;;  %v9942_v5 = vld [vmem:[#allocation10_spill] sm:$0xff] }
 0x578   : > { %v9383_v16 = vpop.permute.xlu1 %5380  ;;  %v5324_v9 = vsel %vm353_vm2, %v5322_v57, 0.0  ;;  %v5300_v24 = vsel %vm353_vm2, %v5298_v43, 0.0  ;;  %v5348_v63 = vsel %vm353_vm2, %v5346_v11, 0.0 }
 0x579   : > { %v5331_v1 = vsel %vm353_vm2, %v5323_v25, 0.0  ;;  %v5325_v0 = vrot.slane %v5324_v9, 4  ;;  %v5307_v15 = vsel %vm353_vm2, %v5299_v61, 0.0  ;;  %v9400_v28 = vpop.permute.xlu0 %5489  ;;  %v5301_v54 = vrot.slane %v5300_v24, 4 }
 0x57a   : > { %v5332_v23 = vrot.slane %v5331_v1, 4  ;;  %v5308_v41 = vrot.slane %v5307_v15, 4  ;;  %v5355_v22 = vsel %vm353_vm2, %v5347_v40, 0.0  ;;  %v5349_v39 = vrot.slane %v5348_v63, 4 }
 0x57b   : > { %v5326_v17 = vadd.f32 %v5325_v0, %v5324_v9  ;;  %v5302_v7 = vadd.f32 %v5301_v54, %v5300_v24  ;;  %v5356_v30 = vrot.slane %v5355_v22, 4 }
 0x57c   : > { %v5333_v47 = vadd.f32 %v5332_v23, %v5331_v1  ;;  %v5309_v21 = vadd.f32 %v5308_v41, %v5307_v15 }
 0x57d   : > { %v5327_v10 = vrot.slane %v5326_v17, 2  ;;  %v5303_v56 = vrot.slane %v5302_v7, 2  ;;  %v5357_v60 = vadd.f32 %v5356_v30, %v5355_v22 }
 0x57e   : > { %5124 = vrot.lane.b32.xlu2 %v4951_v18, %s6080_s18  ;;  %5039 = vrot.lane.b32.xlu0 %v4951_v18, %s6079_s8  ;;  %v9402_v31 = vld.sshfl [vmem:[#allocation1] sm:$0xff pattern:$0x75316420]  ;;  %v9404_v51 = vld.sshfl [vmem:[#allocation1 + $0x8] sm:$0xff pattern:$0x75316420] }
 0x57f   : > { %5122 = vrot.lane.b32.xlu1 %v4950_v55, %s6080_s18  ;;  %v9394_v3 = vpop.permute.xlu2 %5465  ;;  %5213 = vst [vmem:[#allocation1] ss:$2 sm:$0xff] %v9939_v26  ;;  %v5334_v49 = vrot.slane %v5333_v47, 2  ;;  %v5310_v33 = vrot.slane %v5309_v21, 2  ;;  %v5304_v59 = vadd.f32 %v5303_v56, %v5302_v7  ;;  %v5358_v61 = vrot.slane %v5357_v60, 2 }
 0x580   : > { %v9396_v50 = vpop.permute.xlu1 %5513 }
 0x581   : > { %v9413_v2 = vpop.permute.xlu0 %5598  ;;  %v5335_v13 = vadd.f32 %v5334_v49, %v5333_v47  ;;  %v5311_v57 = vadd.f32 %v5310_v33, %v5309_v21  ;;  %v5305_v9 = vrot.slane %v5304_v59, 1 }
 0x582   : > { %9941 = vst [vmem:[#allocation11_spill] sm:$0xff] %v9413_v2 }
 0x583   : > { %v5336_v40 = vrot.slane %v5335_v13, 1  ;;  %v5312_v1 = vrot.slane %v5311_v57, 1 }
 0x586   : > { %5364 = vrot.lane.b32.xlu2 %v4950_v55, %s6082_s21  ;;  %5207 = vrot.lane.b32.xlu0 %v4950_v55, %s6081_s13 }
 0x587   : > { %5209 = vrot.lane.b32.xlu1 %v4951_v18, %s6081_s13  ;;  %v9409_v36 = vpop.permute.xlu2 %5574 }
 0x588   : > { %9940 = vst [vmem:[#allocation9_spill] sm:$0xff] %v9409_v36  ;;  %v9411_v58 = vpop.permute.xlu1 %5550 }
 0x58e   : > { %5451 = vrot.lane.b32.xlu2 %v4951_v18, %s6083_s12  ;;  %5366 = vrot.lane.b32.xlu0 %v4951_v18, %s6082_s21 }
 0x58f   : > { %5449 = vrot.lane.b32.xlu1 %v4950_v55, %s6083_s12 }
 0x596   : > { %5619 = vrot.lane.b32.xlu2 %v4950_v55, %s6085_s19  ;;  %5534 = vrot.lane.b32.xlu0 %v4950_v55, %s6084_s26  ;;  %v5328_v55 = vadd.f32 %v5327_v10, %v5326_v17  ;;  %v9428_v17 = vadd.f32 %v5336_v40, %v5335_v13  ;;  %v9438_v10 = vadd.f32 %v5305_v9, %v5304_v59 }
 0x597   : > { %5536 = vrot.lane.b32.xlu1 %v4951_v18, %s6084_s26 }
 0x598   : > { %v5329_v11 = vrot.slane %v5328_v55, 1 }
 0x59a   : > { %v9426_v41 = vadd.f32 %v5329_v11, %v5328_v55 }
 0x59e   : > { %5659 = vperm.xlu2 %6045, %v6009_v8   ;;  %5621 = vrot.lane.b32.xlu0 %v4951_v18, %s6085_s19  ;;  %v5350_v18 = vadd.f32 %v5349_v39, %v5348_v63  ;;  %v9417_v8 = vld.sshfl [vmem:[#allocation1] sm:$0xff pattern:$0x75316420]  ;;  %v9432_v63 = vadd.f32 %v5358_v61, %v5357_v60 }
 0x59f   : > { %5635 = vperm.xlu1 %6044, %v6008_v34  }
 0x5a0   : > { %v5351_v43 = vrot.slane %v5350_v18, 2 }
 0x5a2   : > { %v9430_v47 = vadd.f32 %v5351_v43, %v5350_v18 }
 0x5a6   : > { %5683 = vperm.xlu0 %6046, %v6010_v20   ;;  %v9419_v20 = vld.sshfl [vmem:[#allocation1 + $0x8] sm:$0xff pattern:$0x75316420] }
 0x5a7   : > { %5370 = vst [vmem:[#allocation1] ss:$2 sm:$0xff] %v9942_v5 }
 0x5ae   : > { %v9454_v40 = vld.sshfl [vmem:[#allocation1] sm:$0xff pattern:$0x75316420]  ;;  %v9456_v5 = vld.sshfl [vmem:[#allocation1 + $0x8] sm:$0xff pattern:$0x75316420] }
 0x5d0   : > { %v9415_v25 = vpop.permute.xlu2 %5037 }
 0x5d8   : > { %v5125_v33 = vpop.permute.xlu2 %5124 }
 0x5e8   : > { %v4953_v52 = vpop.permute.xlu0 %4952 }
 0x5e9   : > { %v4955_v34 = vpop.permute.xlu1 %4954 }
 0x5ea   : > { %v4956_v23 = vsel %vm333_vm1, %v4953_v52, %v4955_v34  ;;  %v4957_v24 = vsel %vm333_vm1, %v4955_v34, %v4953_v52 }
 0x5eb   : > { %v4963_v15 = vmul.f32 %v4959_v62, %v4957_v24  ;;  %v4964_v54 = vmul.f32 %v4960_v45, %v4956_v23  ;;  %v9440_v62 = vadd.f32 %v5312_v1, %v5311_v57 }
 0x5ed   : > { %v4971_v22 = vmul.f32 %v9281_v44, %v4963_v15  ;;  %v4972_v26 = vmul.f32 %v9281_v44, %v4964_v54  ;;  %v4995_v7 = vmul.f32 %v9243_v53, %v4963_v15  ;;  %v4996_v21 = vmul.f32 %v9243_v53, %v4964_v54 }
 0x5ee   : > { %v5019_v45 = vmul.f32 %v9273_v35, %v4963_v15  ;;  %v5020_v49 = vmul.f32 %v9273_v35, %v4964_v54  ;;  %v9944_v15 = vld [vmem:[#allocation5_spill] sm:$0xff] }
 0x5ef   : > { %v4973_v39 = vsel %vm353_vm2, %v4971_v22, 0.0  ;;  %v4980_v30 = vsel %vm353_vm2, %v4972_v26, 0.0  ;;  %v4997_v56 = vsel %vm353_vm2, %v4995_v7, 0.0  ;;  %v5004_v44 = vsel %vm353_vm2, %v4996_v21, 0.0  ;;  %5455 = vst [vmem:[#allocation1] ss:$2 sm:$0xff] %v9944_v15 }
 0x5f0   : > { %v4974_v55 = vrot.slane %v4973_v39, 4  ;;  %v4981_v13 = vrot.slane %v4980_v30, 4  ;;  %v4998_v53 = vrot.slane %v4997_v56, 4  ;;  %v5005_v18 = vrot.slane %v5004_v44, 4 }
 0x5f1   : > { %v5123_v60 = vpop.permute.xlu1 %5122  ;;  %v5021_v59 = vsel %vm353_vm2, %v5019_v45, 0.0  ;;  %v5028_v57 = vsel %vm353_vm2, %v5020_v49, 0.0 }
 0x5f2   : > { %v5126_v35 = vsel %vm566_vm4, %v5123_v60, %v5125_v33  ;;  %v5127_v11 = vsel %vm566_vm4, %v5125_v33, %v5123_v60  ;;  %v4975_v43 = vadd.f32 %v4974_v55, %v4973_v39  ;;  %v4982_v61 = vadd.f32 %v4981_v13, %v4980_v30 }
 0x5f3   : > { %v4999_v34 = vadd.f32 %v4998_v53, %v4997_v56  ;;  %v5006_v52 = vadd.f32 %v5005_v18, %v5004_v44  ;;  %v5022_v9 = vrot.slane %v5021_v59, 4  ;;  %v5029_v1 = vrot.slane %v5028_v57, 4 }
 0x5f4   : > { %v5133_v23 = vmul.f32 %v9402_v31, %v5127_v11  ;;  %v5134_v24 = vmul.f32 %v9404_v51, %v5126_v35  ;;  %v4976_v54 = vrot.slane %v4975_v43, 2  ;;  %v4983_v22 = vrot.slane %v4982_v61, 2 }
 0x5f5   : > { %v5000_v26 = vrot.slane %v4999_v34, 2  ;;  %v5007_v7 = vrot.slane %v5006_v52, 2  ;;  %v5023_v21 = vadd.f32 %v5022_v9, %v5021_v59  ;;  %v5030_v45 = vadd.f32 %v5029_v1, %v5028_v57 }
 0x5f6   : > { %v5141_v49 = vmul.f32 %v9309_v4, %v5133_v23  ;;  %v5142_v39 = vmul.f32 %v9309_v4, %v5134_v24  ;;  %v4977_v30 = vadd.f32 %v4976_v54, %v4975_v43  ;;  %v4984_v56 = vadd.f32 %v4983_v22, %v4982_v61 }
 0x5f7   : > { %v5001_v44 = vadd.f32 %v5000_v26, %v4999_v34  ;;  %v5008_v33 = vadd.f32 %v5007_v7, %v5006_v52  ;;  %v5024_v55 = vrot.slane %v5023_v21, 2  ;;  %v5031_v31 = vrot.slane %v5030_v45, 2 }
 0x5f8   : > { %v5143_v51 = vsel %vm353_vm2, %v5141_v49, 0.0  ;;  %v5150_v13 = vsel %vm353_vm2, %v5142_v39, 0.0  ;;  %v4978_v53 = vrot.slane %v4977_v30, 1  ;;  %v4985_v18 = vrot.slane %v4984_v56, 1 }
 0x5f9   : > { %v5002_v60 = vrot.slane %v5001_v44, 1  ;;  %v5009_v35 = vrot.slane %v5008_v33, 1  ;;  %v5025_v59 = vadd.f32 %v5024_v55, %v5023_v21  ;;  %v5032_v57 = vadd.f32 %v5031_v31, %v5030_v45 }
 0x5fa   : > { %v5144_v11 = vrot.slane %v5143_v51, 4  ;;  %v5151_v9 = vrot.slane %v5150_v13, 4  ;;  %v9465_v1 = vadd.f32 %v4978_v53, %v4977_v30  ;;  %v9467_v4 = vadd.f32 %v4985_v18, %v4984_v56  ;;  %v5040_v56 = vpop.permute.xlu0 %5039 }
 0x5fb   : > { %v9469_v43 = vadd.f32 %v5002_v60, %v5001_v44  ;;  %v9471_v61 = vadd.f32 %v5009_v35, %v5008_v33  ;;  %v5026_v34 = vrot.slane %v5025_v59, 1  ;;  %v5033_v52 = vrot.slane %v5032_v57, 1  ;;  %v9491_v60 = vld.sshfl [vmem:[#allocation1] sm:$0xff pattern:$0x75316420] }
 0x5fc   : > { %v5145_v15 = vadd.f32 %v5144_v11, %v5143_v51  ;;  %v5152_v54 = vadd.f32 %v5151_v9, %v5150_v13  ;;  %v5165_v22 = vmul.f32 %v9329_v42, %v5133_v23  ;;  %v5166_v26 = vmul.f32 %v9329_v42, %v5134_v24  ;;  %v9493_v9 = vld.sshfl [vmem:[#allocation1 + $0x8] sm:$0xff pattern:$0x75316420] }
 0x5fd   : > { %v5189_v7 = vmul.f32 %v9333_v29, %v5133_v23  ;;  %v5190_v21 = vmul.f32 %v9333_v29, %v5134_v24  ;;  %v9477_v45 = vadd.f32 %v5026_v34, %v5025_v59  ;;  %v9479_v49 = vadd.f32 %v5033_v52, %v5032_v57 }
 0x5fe   : > { %v5146_v39 = vrot.slane %v5145_v15, 2  ;;  %v5153_v30 = vrot.slane %v5152_v54, 2  ;;  %v5167_v44 = vsel %vm353_vm2, %v5165_v22, 0.0  ;;  %v5174_v33 = vsel %vm353_vm2, %v5166_v26, 0.0  ;;  %v9945_v22 = vld [vmem:[#allocation35_spill] sm:$0xff] }
 0x5ff   : > { %v5191_v55 = vsel %vm353_vm2, %v5189_v7, 0.0  ;;  %v5198_v31 = vsel %vm353_vm2, %v5190_v21, 0.0  ;;  %v5168_v23 = vrot.slane %v5167_v44, 4  ;;  %v5175_v13 = vrot.slane %v5174_v33, 4  ;;  %5540 = vst [vmem:[#allocation1] ss:$2 sm:$0xff] %v9945_v22 }
 0x600   : > { %v5147_v42 = vadd.f32 %v5146_v39, %v5145_v15  ;;  %v5154_v51 = vadd.f32 %v5153_v30, %v5152_v54  ;;  %v5192_v29 = vrot.slane %v5191_v55, 4  ;;  %v5199_v24 = vrot.slane %v5198_v31, 4 }
 0x601   : > { %v5041_v53 = vsel %vm449_vm3, %v9415_v25, %v5040_v56  ;;  %v5042_v18 = vsel %vm449_vm3, %v5040_v56, %v9415_v25  ;;  %v5169_v57 = vadd.f32 %v5168_v23, %v5167_v44  ;;  %v5176_v11 = vadd.f32 %v5175_v13, %v5174_v33 }
 0x602   : > { %v5148_v35 = vrot.slane %v5147_v42, 1  ;;  %v5155_v59 = vrot.slane %v5154_v51, 1  ;;  %v5193_v34 = vadd.f32 %v5192_v29, %v5191_v55  ;;  %v5200_v52 = vadd.f32 %v5199_v24, %v5198_v31  ;;  %v5208_v22 = vpop.permute.xlu0 %5207 }
 0x603   : > { %v5048_v15 = vmul.f32 %v9387_v19, %v5042_v18  ;;  %v5049_v54 = vmul.f32 %v9389_v32, %v5041_v53  ;;  %v5170_v25 = vrot.slane %v5169_v57, 2  ;;  %v5177_v21 = vrot.slane %v5176_v11, 2 }
 0x604   : > { %v9498_v26 = vadd.f32 %v5148_v35, %v5147_v42  ;;  %v9500_v7 = vadd.f32 %v5155_v59, %v5154_v51  ;;  %v5194_v39 = vrot.slane %v5193_v34, 2  ;;  %v5201_v30 = vrot.slane %v5200_v52, 2 }
 0x605   : > { %v5056_v56 = vmul.f32 %v9301_v12, %v5048_v15  ;;  %v5057_v44 = vmul.f32 %v9301_v12, %v5049_v54  ;;  %v5171_v33 = vadd.f32 %v5170_v25, %v5169_v57  ;;  %v5178_v55 = vadd.f32 %v5177_v21, %v5176_v11 }
 0x606   : > { %v5080_v19 = vmul.f32 %v9303_v46, %v5048_v15  ;;  %v5081_v32 = vmul.f32 %v9303_v46, %v5049_v54  ;;  %v5195_v31 = vadd.f32 %v5194_v39, %v5193_v34  ;;  %v5202_v23 = vadd.f32 %v5201_v30, %v5200_v52  ;;  %v5210_v52 = vpop.permute.xlu1 %5209 }
 0x607   : > { %v5058_v42 = vsel %vm353_vm2, %v5056_v56, 0.0  ;;  %v5065_v51 = vsel %vm353_vm2, %v5057_v44, 0.0  ;;  %v5172_v13 = vrot.slane %v5171_v33, 1  ;;  %v5179_v29 = vrot.slane %v5178_v55, 1 }
 0x608   : > { %v5059_v24 = vrot.slane %v5058_v42, 4  ;;  %v5066_v53 = vrot.slane %v5065_v51, 4  ;;  %v5196_v18 = vrot.slane %v5195_v31, 1  ;;  %v5203_v35 = vrot.slane %v5202_v23, 1 }
 0x609   : > { %v5082_v12 = vsel %vm353_vm2, %v5080_v19, 0.0  ;;  %v5089_v59 = vsel %vm353_vm2, %v5081_v32, 0.0  ;;  %v9510_v57 = vadd.f32 %v5172_v13, %v5171_v33  ;;  %v9512_v11 = vadd.f32 %v5179_v29, %v5178_v55 }
 0x60a   : > { %v5060_v46 = vadd.f32 %v5059_v24, %v5058_v42  ;;  %v5067_v34 = vadd.f32 %v5066_v53, %v5065_v51  ;;  %v9514_v25 = vadd.f32 %v5196_v18, %v5195_v31  ;;  %v9516_v21 = vadd.f32 %v5203_v35, %v5202_v23 }
 0x60b   : > { %v5083_v39 = vrot.slane %v5082_v12, 4  ;;  %v5090_v30 = vrot.slane %v5089_v59, 4  ;;  %v5104_v19 = vmul.f32 %v9279_v27, %v5048_v15  ;;  %v5105_v32 = vmul.f32 %v9279_v27, %v5049_v54 }
 0x60c   : > { %v5061_v56 = vrot.slane %v5060_v46, 2  ;;  %v5068_v44 = vrot.slane %v5067_v34, 2  ;;  %v5211_v55 = vsel %vm683_vm5, %v5208_v22, %v5210_v52  ;;  %v5212_v42 = vsel %vm683_vm5, %v5210_v52, %v5208_v22 }
 0x60d   : > { %v5084_v33 = vadd.f32 %v5083_v39, %v5082_v12  ;;  %v5091_v13 = vadd.f32 %v5090_v30, %v5089_v59  ;;  %v5106_v23 = vsel %vm353_vm2, %v5104_v19, 0.0  ;;  %v5113_v29 = vsel %vm353_vm2, %v5105_v32, 0.0 }
 0x60e   : > { %v5062_v31 = vadd.f32 %v5061_v56, %v5060_v46  ;;  %v5069_v51 = vadd.f32 %v5068_v44, %v5067_v34  ;;  %v5107_v18 = vrot.slane %v5106_v23, 4  ;;  %v5114_v15 = vrot.slane %v5113_v29, 4 }
 0x60f   : > { %v5085_v24 = vrot.slane %v5084_v33, 2  ;;  %v5092_v53 = vrot.slane %v5091_v13, 2  ;;  %v5218_v54 = vmul.f32 %v9417_v8, %v5212_v42  ;;  %v5219_v12 = vmul.f32 %v9419_v20, %v5211_v55 }
 0x610   : > { %v5063_v35 = vrot.slane %v5062_v31, 1  ;;  %v5070_v27 = vrot.slane %v5069_v51, 1  ;;  %v5108_v30 = vadd.f32 %v5107_v18, %v5106_v23  ;;  %v5115_v52 = vadd.f32 %v5114_v15, %v5113_v29 }
 0x611   : > { %v5086_v59 = vadd.f32 %v5085_v24, %v5084_v33  ;;  %v5093_v39 = vadd.f32 %v5092_v53, %v5091_v13  ;;  %v5226_v22 = vmul.f32 %v9347_v48, %v5218_v54  ;;  %v5227_v56 = vmul.f32 %v9347_v48, %v5219_v12  ;;  %v9534_v13 = vpop.permute.xlu2 %5364 }
 0x612   : > { %v5064_v46 = vadd.f32 %v5063_v35, %v5062_v31  ;;  %v5071_v34 = vadd.f32 %v5070_v27, %v5069_v51  ;;  %v5109_v32 = vrot.slane %v5108_v30, 2  ;;  %v5116_v2 = vrot.slane %v5115_v52, 2 }
 0x613   : > { %v5087_v44 = vrot.slane %v5086_v59, 1  ;;  %v5094_v19 = vrot.slane %v5093_v39, 1  ;;  %v5228_v20 = vsel %vm353_vm2, %v5226_v22, 0.0  ;;  %v5235_v33 = vsel %vm353_vm2, %v5227_v56, 0.0 }
 0x614   : > { %v5072_v36 = vadd.f32 %v5064_v46, %v9465_v1  ;;  %v5073_v8 = vadd.f32 %v5071_v34, %v9467_v4  ;;  %v5110_v31 = vadd.f32 %v5109_v32, %v5108_v30  ;;  %v5117_v51 = vadd.f32 %v5116_v2, %v5115_v52 }
 0x615   : > { %v5088_v55 = vadd.f32 %v5087_v44, %v5086_v59  ;;  %v5095_v42 = vadd.f32 %v5094_v19, %v5093_v39  ;;  %v5229_v29 = vrot.slane %v5228_v20, 4  ;;  %v5236_v24 = vrot.slane %v5235_v33, 4  ;;  %v9550_v19 = vld.sshfl [vmem:[#allocation1] sm:$0xff pattern:$0x75316420] }
 0x616   : > { %v5157_v48 = vadd.f32 %v9498_v26, %v5072_v36  ;;  %v5158_v23 = vadd.f32 %v9500_v7, %v5073_v8  ;;  %v5111_v53 = vrot.slane %v5110_v31, 1  ;;  %v5118_v18 = vrot.slane %v5117_v51, 1 }
 0x617   : > { %v5096_v1 = vadd.f32 %v5088_v55, %v9469_v43  ;;  %v5097_v4 = vadd.f32 %v5095_v42, %v9471_v61  ;;  %v5230_v15 = vadd.f32 %v5229_v29, %v5228_v20  ;;  %v5237_v35 = vadd.f32 %v5236_v24, %v5235_v33  ;;  %v5450_v33 = vpop.permute.xlu1 %5449 }
 0x618   : > { %v5250_v27 = vmul.f32 %v9341_v37, %v5218_v54  ;;  %v5251_v59 = vmul.f32 %v9341_v37, %v5219_v12  ;;  %v5112_v39 = vadd.f32 %v5111_v53, %v5110_v31  ;;  %v5119_v2 = vadd.f32 %v5118_v18, %v5117_v51 }
 0x619   : > { %v5181_v36 = vadd.f32 %v9510_v57, %v5096_v1  ;;  %v5182_v26 = vadd.f32 %v9512_v11, %v5097_v4  ;;  %v5231_v7 = vrot.slane %v5230_v15, 2  ;;  %v5238_v30 = vrot.slane %v5237_v35, 2  ;;  %v9552_v11 = vld.sshfl [vmem:[#allocation1 + $0x8] sm:$0xff pattern:$0x75316420] }
 0x61a   : > { %v5252_v43 = vsel %vm353_vm2, %v5250_v27, 0.0  ;;  %v5259_v61 = vsel %vm353_vm2, %v5251_v59, 0.0  ;;  %v5120_v52 = vadd.f32 %v5112_v39, %v9477_v45  ;;  %v5121_v46 = vadd.f32 %v5119_v2, %v9479_v49  ;;  %v9946_v49 = vld [vmem:[#allocation37_spill] sm:$0xff] }
 0x61b   : > { %v5253_v34 = vrot.slane %v5252_v43, 4  ;;  %v5260_v22 = vrot.slane %v5259_v61, 4  ;;  %v5232_v56 = vadd.f32 %v5231_v7, %v5230_v15  ;;  %v5239_v37 = vadd.f32 %v5238_v30, %v5237_v35  ;;  %5625 = vst [vmem:[#allocation1] ss:$2 sm:$0xff] %v9946_v49 }
 0x61c   : > { %v5274_v44 = vmul.f32 %v9345_v38, %v5218_v54  ;;  %v5275_v57 = vmul.f32 %v9345_v38, %v5219_v12  ;;  %v5205_v32 = vadd.f32 %v9514_v25, %v5120_v52  ;;  %v5206_v8 = vadd.f32 %v9516_v21, %v5121_v46  ;;  %v5452_v38 = vpop.permute.xlu2 %5451 }
 0x61d   : > { %v5254_v20 = vadd.f32 %v5253_v34, %v5252_v43  ;;  %v5261_v45 = vadd.f32 %v5260_v22, %v5259_v61  ;;  %v5233_v55 = vrot.slane %v5232_v56, 1  ;;  %v5240_v42 = vrot.slane %v5239_v37, 1 }
 0x61e   : > { %v5276_v31 = vsel %vm353_vm2, %v5274_v44, 0.0  ;;  %v5283_v54 = vsel %vm353_vm2, %v5275_v57, 0.0  ;;  %v5453_v21 = vsel %vm1017_vm7, %v5450_v33, %v5452_v38  ;;  %v5454_v4 = vsel %vm1017_vm7, %v5452_v38, %v5450_v33 }
 0x61f   : > { %v5255_v12 = vrot.slane %v5254_v20, 2  ;;  %v5262_v51 = vrot.slane %v5261_v45, 2  ;;  %v5277_v29 = vrot.slane %v5276_v31, 4  ;;  %v5284_v24 = vrot.slane %v5283_v54, 4 }
 0x620   : > { %v5234_v1 = vadd.f32 %v5233_v55, %v5232_v56  ;;  %v5241_v25 = vadd.f32 %v5240_v42, %v5239_v37  ;;  %v5460_v39 = vmul.f32 %v9491_v60, %v5453_v21  ;;  %v5461_v2 = vmul.f32 %v9493_v9, %v5454_v4 }
 0x621   : > { %v5256_v53 = vadd.f32 %v5255_v12, %v5254_v20  ;;  %v5263_v18 = vadd.f32 %v5262_v51, %v5261_v45  ;;  %v5278_v15 = vadd.f32 %v5277_v29, %v5276_v31  ;;  %v5285_v35 = vadd.f32 %v5284_v24, %v5283_v54 }
 0x622   : > { %v5242_v27 = vadd.f32 %v5234_v1, %v5157_v48  ;;  %v5243_v59 = vadd.f32 %v5241_v25, %v5158_v23  ;;  %v5468_v52 = vmul.f32 %v9394_v3, %v5460_v39  ;;  %v5469_v46 = vmul.f32 %v9394_v3, %v5461_v2  ;;  %v5367_v25 = vpop.permute.xlu0 %5366 }
 0x623   : > { %v5257_v7 = vrot.slane %v5256_v53, 1  ;;  %v5264_v30 = vrot.slane %v5263_v18, 1  ;;  %v5279_v43 = vrot.slane %v5278_v15, 2  ;;  %v5286_v61 = vrot.slane %v5285_v35, 2 }
 0x624   : > { %v5492_v34 = vmul.f32 %v9400_v28, %v5460_v39  ;;  %v5493_v22 = vmul.f32 %v9400_v28, %v5461_v2  ;;  %v5470_v60 = vsel %vm353_vm2, %v5468_v52, 0.0  ;;  %v5477_v9 = vsel %vm353_vm2, %v5469_v46, 0.0 }
 0x625   : > { %v5258_v56 = vadd.f32 %v5257_v7, %v5256_v53  ;;  %v5265_v37 = vadd.f32 %v5264_v30, %v5263_v18  ;;  %v5280_v48 = vadd.f32 %v5279_v43, %v5278_v15  ;;  %v5287_v23 = vadd.f32 %v5286_v61, %v5285_v35 }
 0x626   : > { %v5494_v44 = vsel %vm353_vm2, %v5492_v34, 0.0  ;;  %v5501_v57 = vsel %vm353_vm2, %v5493_v22, 0.0  ;;  %v5471_v49 = vrot.slane %v5470_v60, 4  ;;  %v5478_v55 = vrot.slane %v5477_v9, 4 }
 0x627   : > { %v5266_v20 = vadd.f32 %v5258_v56, %v5181_v36  ;;  %v5267_v45 = vadd.f32 %v5265_v37, %v5182_v26  ;;  %v5281_v33 = vrot.slane %v5280_v48, 1  ;;  %v5288_v3 = vrot.slane %v5287_v23, 1 }
 0x628   : > { %v5495_v42 = vrot.slane %v5494_v44, 4  ;;  %v5502_v28 = vrot.slane %v5501_v57, 4  ;;  %v5516_v38 = vmul.f32 %v9396_v50, %v5460_v39  ;;  %v5517_v12 = vmul.f32 %v9396_v50, %v5461_v2 }
 0x629   : > { %v5282_v31 = vadd.f32 %v5281_v33, %v5280_v48  ;;  %v5289_v54 = vadd.f32 %v5288_v3, %v5287_v23  ;;  %v5472_v51 = vadd.f32 %v5471_v49, %v5470_v60  ;;  %v5479_v29 = vadd.f32 %v5478_v55, %v5477_v9 }
 0x62a   : > { %v5496_v24 = vadd.f32 %v5495_v42, %v5494_v44  ;;  %v5503_v1 = vadd.f32 %v5502_v28, %v5501_v57  ;;  %v5518_v26 = vsel %vm353_vm2, %v5516_v38, 0.0  ;;  %v5525_v4 = vsel %vm353_vm2, %v5517_v12, 0.0  ;;  %v5537_v57 = vpop.permute.xlu1 %5536 }
 0x62b   : > { %v9575_v21 = vadd.f32 %v5282_v31, %v5205_v32  ;;  %v9577_v36 = vadd.f32 %v5289_v54, %v5206_v8  ;;  %v5473_v53 = vrot.slane %v5472_v51, 2  ;;  %v5480_v18 = vrot.slane %v5479_v29, 2 }
 0x62c   : > { %v5497_v15 = vrot.slane %v5496_v24, 2  ;;  %v5504_v35 = vrot.slane %v5503_v1, 2  ;;  %v5519_v39 = vrot.slane %v5518_v26, 4  ;;  %v5526_v7 = vrot.slane %v5525_v4, 4 }
 0x62d   : > { %v9582_v50 = vadd.f32 %v9438_v10, %v5242_v27  ;;  %v9585_v2 = vadd.f32 %v9440_v62, %v5243_v59  ;;  %v5474_v32 = vadd.f32 %v5473_v53, %v5472_v51  ;;  %v5481_v30 = vadd.f32 %v5480_v18, %v5479_v29 }
 0x62e   : > { %v5353_v8 = vrot.slane %v9430_v47, 1  ;;  %v5360_v43 = vrot.slane %v9432_v63, 1  ;;  %v9590_v61 = vadd.f32 %v9426_v41, %v5266_v20  ;;  %v9593_v52 = vadd.f32 %v9428_v17, %v5267_v45  ;;  %v5535_v20 = vpop.permute.xlu0 %5534 }
 0x62f   : > { %v5498_v46 = vadd.f32 %v5497_v15, %v5496_v24  ;;  %v5505_v34 = vadd.f32 %v5504_v35, %v5503_v1  ;;  %v5520_v22 = vadd.f32 %v5519_v39, %v5518_v26  ;;  %v5527_v10 = vadd.f32 %v5526_v7, %v5525_v4 }
 0x630   : > { %v5475_v27 = vrot.slane %v5474_v32, 1  ;;  %v5482_v56 = vrot.slane %v5481_v30, 1  ;;  %v5368_v62 = vsel %vm900_vm6, %v9534_v13, %v5367_v25  ;;  %v5369_v59 = vsel %vm900_vm6, %v5367_v25, %v9534_v13 }
 0x631   : > { %v9602_v41 = vadd.f32 %v5353_v8, %v9430_v47  ;;  %v9605_v17 = vadd.f32 %v5360_v43, %v9432_v63  ;;  %v5375_v37 = vmul.f32 %v9454_v40, %v5368_v62  ;;  %v5376_v48 = vmul.f32 %v9456_v5, %v5369_v59 }
 0x632   : > { %v5499_v23 = vrot.slane %v5498_v46, 1  ;;  %v5506_v60 = vrot.slane %v5505_v34, 1  ;;  %v5521_v9 = vrot.slane %v5520_v22, 2  ;;  %v5528_v44 = vrot.slane %v5527_v10, 2 }
 0x633   : > { %v9609_v45 = vadd.f32 %v5475_v27, %v5474_v32  ;;  %v9611_v33 = vadd.f32 %v5482_v56, %v5481_v30  ;;  %v5383_v47 = vmul.f32 %v9383_v16, %v5375_v37  ;;  %v5384_v13 = vmul.f32 %v9383_v16, %v5376_v48 }
 0x634   : > { %v5407_v63 = vmul.f32 %v9381_v14, %v5375_v37  ;;  %v5408_v40 = vmul.f32 %v9381_v14, %v5376_v48  ;;  %v5431_v5 = vmul.f32 %v9385_v6, %v5375_v37  ;;  %v5432_v3 = vmul.f32 %v9385_v6, %v5376_v48 }
 0x635   : > { %v5385_v49 = vsel %vm353_vm2, %v5383_v47, 0.0  ;;  %v5392_v55 = vsel %vm353_vm2, %v5384_v13, 0.0  ;;  %v5538_v42 = vsel %vm1134_vm8, %v5535_v20, %v5537_v57  ;;  %v5539_v28 = vsel %vm1134_vm8, %v5537_v57, %v5535_v20  ;;  %v5620_v20 = vpop.permute.xlu2 %5619 }
 0x636   : > { %v5386_v31 = vrot.slane %v5385_v49, 4  ;;  %v5393_v16 = vrot.slane %v5392_v55, 4  ;;  %v5409_v54 = vsel %vm353_vm2, %v5407_v63, 0.0  ;;  %v5416_v14 = vsel %vm353_vm2, %v5408_v40, 0.0  ;;  %v5622_v37 = vpop.permute.xlu0 %5621 }
 0x637   : > { %v5410_v38 = vrot.slane %v5409_v54, 4  ;;  %v5417_v12 = vrot.slane %v5416_v14, 4  ;;  %v5433_v6 = vsel %vm353_vm2, %v5431_v5, 0.0  ;;  %v5440_v51 = vsel %vm353_vm2, %v5432_v3, 0.0 }
 0x638   : > { %v5500_v29 = vadd.f32 %v5499_v23, %v5498_v46  ;;  %v5507_v24 = vadd.f32 %v5506_v60, %v5505_v34  ;;  %v5387_v1 = vadd.f32 %v5386_v31, %v5385_v49  ;;  %v5394_v25 = vadd.f32 %v5393_v16, %v5392_v55 }
 0x639   : > { %v5411_v26 = vadd.f32 %v5410_v38, %v5409_v54  ;;  %v5418_v4 = vadd.f32 %v5417_v12, %v5416_v14  ;;  %v5545_v53 = vmul.f32 %v9550_v19, %v5538_v42  ;;  %v5546_v18 = vmul.f32 %v9552_v11, %v5539_v28 }
 0x63a   : > { %v5388_v15 = vrot.slane %v5387_v1, 2  ;;  %v5395_v35 = vrot.slane %v5394_v25, 2  ;;  %v5434_v39 = vrot.slane %v5433_v6, 4  ;;  %v5441_v7 = vrot.slane %v5440_v51, 4 }
 0x63b   : > { %v5412_v32 = vrot.slane %v5411_v26, 2  ;;  %v5419_v30 = vrot.slane %v5418_v4, 2  ;;  %v5553_v8 = vmul.f32 %v9411_v58, %v5545_v53  ;;  %v5554_v43 = vmul.f32 %v9411_v58, %v5546_v18 }
 0x63c   : > { %v5522_v46 = vadd.f32 %v5521_v9, %v5520_v22  ;;  %v5529_v34 = vadd.f32 %v5528_v44, %v5527_v10  ;;  %v5389_v27 = vadd.f32 %v5388_v15, %v5387_v1  ;;  %v5396_v56 = vadd.f32 %v5395_v35, %v5394_v25  ;;  %v5626_v25 = vld.sshfl [vmem:[#allocation1] sm:$0xff pattern:$0x75316420]  ;;  %v9948_v15 = vld [vmem:[#allocation11_spill] sm:$0xff] }
 0x63d   : > { %v5413_v62 = vadd.f32 %v5412_v32, %v5411_v26  ;;  %v5420_v59 = vadd.f32 %v5419_v30, %v5418_v4  ;;  %v5555_v19 = vsel %vm353_vm2, %v5553_v8, 0.0  ;;  %v5562_v11 = vsel %vm353_vm2, %v5554_v43, 0.0 }
 0x63e   : > { %v5390_v48 = vrot.slane %v5389_v27, 1  ;;  %v5397_v23 = vrot.slane %v5396_v56, 1  ;;  %v5435_v60 = vadd.f32 %v5434_v39, %v5433_v6  ;;  %v5442_v57 = vadd.f32 %v5441_v7, %v5440_v51  ;;  %v9947_v6 = vld [vmem:[#allocation9_spill] sm:$0xff] }
 0x63f   : > { %v5414_v47 = vrot.slane %v5413_v62, 1  ;;  %v5421_v13 = vrot.slane %v5420_v59, 1  ;;  %v5556_v63 = vrot.slane %v5555_v19, 4  ;;  %v5563_v58 = vrot.slane %v5562_v11, 4 }
 0x640   : > { %v5391_v22 = vadd.f32 %v5390_v48, %v5389_v27  ;;  %v5398_v10 = vadd.f32 %v5397_v23, %v5396_v56  ;;  %v5623_v9 = vsel %vm1251_vm9, %v5620_v20, %v5622_v37  ;;  %v5624_v44 = vsel %vm1251_vm9, %v5622_v37, %v5620_v20 }
 0x641   : > { %v5415_v40 = vadd.f32 %v5414_v47, %v5413_v62  ;;  %v5422_v5 = vadd.f32 %v5421_v13, %v5420_v59  ;;  %v5557_v3 = vadd.f32 %v5556_v63, %v5555_v19  ;;  %v5564_v49 = vadd.f32 %v5563_v58, %v5562_v11  ;;  %v5636_v59 = vpop.permute.xlu1 %5635  ;;  %v5660_v13 = vpop.permute.xlu2 %5659 }
 0x642   : > { %v5523_v55 = vrot.slane %v5522_v46, 1  ;;  %v5530_v42 = vrot.slane %v5529_v34, 1  ;;  %v5399_v28 = vadd.f32 %v5391_v22, %v9582_v50  ;;  %v5400_v31 = vadd.f32 %v5398_v10, %v9585_v2 }
 0x643   : > { %v5423_v16 = vadd.f32 %v5415_v40, %v9590_v61  ;;  %v5424_v54 = vadd.f32 %v5422_v5, %v9593_v52  ;;  %v5436_v14 = vrot.slane %v5435_v60, 2  ;;  %v5443_v38 = vrot.slane %v5442_v57, 2  ;;  %v5627_v52 = vld.sshfl [vmem:[#allocation1 + $0x8] sm:$0xff pattern:$0x75316420] }
 0x644   : > { %v9644_v12 = vadd.f32 %v9609_v45, %v5399_v28  ;;  %v9647_v0 = vadd.f32 %v9611_v33, %v5400_v31  ;;  %v5577_v51 = vmul.f32 %v9947_v6, %v5545_v53  ;;  %v5578_v1 = vmul.f32 %v9947_v6, %v5546_v18 }
 0x645   : > { %v9651_v50 = vadd.f32 %v5500_v29, %v5423_v16  ;;  %v9653_v2 = vadd.f32 %v5507_v24, %v5424_v54  ;;  %v5558_v61 = vrot.slane %v5557_v3, 2  ;;  %v5565_v26 = vrot.slane %v5564_v49, 2 }
 0x646   : > { %v5579_v4 = vsel %vm353_vm2, %v5577_v51, 0.0  ;;  %v5586_v45 = vsel %vm353_vm2, %v5578_v1, 0.0  ;;  %v5601_v35 = vmul.f32 %v9948_v15, %v5545_v53  ;;  %v5602_v33 = vmul.f32 %v9948_v15, %v5546_v18 }
 0x647   : > { %v5437_v39 = vadd.f32 %v5436_v14, %v5435_v60  ;;  %v5444_v7 = vadd.f32 %v5443_v38, %v5442_v57  ;;  %v5580_v32 = vrot.slane %v5579_v4, 4  ;;  %v5587_v30 = vrot.slane %v5586_v45, 4 }
 0x648   : > { %v5603_v29 = vsel %vm353_vm2, %v5601_v35, 0.0  ;;  %v5610_v24 = vsel %vm353_vm2, %v5602_v33, 0.0  ;;  %v9661_v8 = vmul.f32 %v5626_v25, %v5623_v9  ;;  %v9663_v43 = vmul.f32 %v5627_v52, %v5624_v44 }
 0x649   : > { %v9665_v27 = vadd.f32 %v5523_v55, %v5522_v46  ;;  %v9667_v56 = vadd.f32 %v5530_v42, %v5529_v34  ;;  %v5581_v62 = vadd.f32 %v5580_v32, %v5579_v4  ;;  %v5588_v53 = vadd.f32 %v5587_v30, %v5586_v45  ;;  %v5684_v32 = vpop.permute.xlu0 %5683 }
 0x64a   : > { %v5559_v18 = vadd.f32 %v5558_v61, %v5557_v3  ;;  %v5566_v19 = vadd.f32 %v5565_v26, %v5564_v49  ;;  %v5638_v11 = vmul.f32 %v5636_v59, %v9661_v8  ;;  %v5639_v37 = vmul.f32 %v5636_v59, %v9663_v43 }
 0x64b   : > { %v5582_v48 = vrot.slane %v5581_v62, 2  ;;  %v5589_v23 = vrot.slane %v5588_v53, 2  ;;  %v5604_v60 = vrot.slane %v5603_v29, 4  ;;  %v5611_v57 = vrot.slane %v5610_v24, 4 }
 0x64c   : > { %v5438_v20 = vrot.slane %v5437_v39, 1  ;;  %v5445_v47 = vrot.slane %v5444_v7, 1  ;;  %v5640_v46 = vsel %vm353_vm2, %v5638_v11, 0.0  ;;  %v5647_v34 = vsel %vm353_vm2, %v5639_v37, 0.0 }
 0x64d   : > { %v5583_v63 = vadd.f32 %v5582_v48, %v5581_v62  ;;  %v5590_v58 = vadd.f32 %v5589_v23, %v5588_v53  ;;  %v5641_v22 = vrot.slane %v5640_v46, 4  ;;  %v5648_v10 = vrot.slane %v5647_v34, 4 }
 0x64e   : > { %v5560_v9 = vrot.slane %v5559_v18, 1  ;;  %v5567_v44 = vrot.slane %v5566_v19, 1  ;;  %v5662_v40 = vmul.f32 %v5660_v13, %v9661_v8  ;;  %v5663_v5 = vmul.f32 %v5660_v13, %v9663_v43 }
 0x64f   : > { %v5605_v3 = vadd.f32 %v5604_v60, %v5603_v29  ;;  %v5612_v49 = vadd.f32 %v5611_v57, %v5610_v24  ;;  %v5642_v55 = vadd.f32 %v5641_v22, %v5640_v46  ;;  %v5649_v42 = vadd.f32 %v5648_v10, %v5647_v34 }
 0x650   : > { %v5439_v28 = vadd.f32 %v5438_v20, %v5437_v39  ;;  %v5446_v31 = vadd.f32 %v5445_v47, %v5444_v7  ;;  %v5664_v16 = vsel %vm353_vm2, %v5662_v40, 0.0  ;;  %v5671_v54 = vsel %vm353_vm2, %v5663_v5, 0.0 }
 0x651   : > { %v5584_v14 = vrot.slane %v5583_v63, 1  ;;  %v5591_v38 = vrot.slane %v5590_v58, 1  ;;  %v5643_v6 = vrot.slane %v5642_v55, 2  ;;  %v5650_v51 = vrot.slane %v5649_v42, 2 }
 0x652   : > { %v5561_v1 = vadd.f32 %v5560_v9, %v5559_v18  ;;  %v5568_v25 = vadd.f32 %v5567_v44, %v5566_v19  ;;  %v5665_v61 = vrot.slane %v5664_v16, 4  ;;  %v5672_v26 = vrot.slane %v5671_v54, 4 }
 0x653   : > { %v5606_v52 = vrot.slane %v5605_v3, 2  ;;  %v5613_v4 = vrot.slane %v5612_v49, 2  ;;  %v5644_v45 = vadd.f32 %v5643_v6, %v5642_v55  ;;  %v5651_v15 = vadd.f32 %v5650_v51, %v5649_v42 }
 0x654   : > { %v5666_v35 = vadd.f32 %v5665_v61, %v5664_v16  ;;  %v5673_v33 = vadd.f32 %v5672_v26, %v5671_v54  ;;  %v5362_v39 = vadd.f32 %v9602_v41, %v9575_v21  ;;  %v5363_v7 = vadd.f32 %v9605_v17, %v9577_v36 }
 0x655   : > { %v5585_v30 = vadd.f32 %v5584_v14, %v5583_v63  ;;  %v5592_v29 = vadd.f32 %v5591_v38, %v5590_v58  ;;  %v5645_v24 = vrot.slane %v5644_v45, 1  ;;  %v5652_v62 = vrot.slane %v5651_v15, 1 }
 0x656   : > { %v5667_v53 = vrot.slane %v5666_v35, 2  ;;  %v5674_v59 = vrot.slane %v5673_v33, 2  ;;  %v5447_v18 = vadd.f32 %v5439_v28, %v5362_v39  ;;  %v5448_v19 = vadd.f32 %v5446_v31, %v5363_v7 }
 0x657   : > { %v5646_v11 = vadd.f32 %v5645_v24, %v5644_v45  ;;  %v5653_v37 = vadd.f32 %v5652_v62, %v5651_v15  ;;  %v5686_v48 = vmul.f32 %v5684_v32, %v9661_v8  ;;  %v5687_v23 = vmul.f32 %v5684_v32, %v9663_v43 }
 0x658   : > { %v5668_v60 = vadd.f32 %v5667_v53, %v5666_v35  ;;  %v5675_v21 = vadd.f32 %v5674_v59, %v5673_v33  ;;  %v5532_v41 = vadd.f32 %v9665_v27, %v5447_v18  ;;  %v5533_v36 = vadd.f32 %v9667_v56, %v5448_v19 }
 0x659   : > { %v5607_v17 = vadd.f32 %v5606_v52, %v5605_v3  ;;  %v5614_v57 = vadd.f32 %v5613_v4, %v5612_v49  ;;  %v5688_v20 = vsel %vm353_vm2, %v5686_v48, 0.0  ;;  %v5695_v47 = vsel %vm353_vm2, %v5687_v23, 0.0 }
 0x65a   : > { %v5569_v46 = vadd.f32 %v5561_v1, %v9644_v12  ;;  %v5570_v34 = vadd.f32 %v5568_v25, %v9647_v0  ;;  %v5669_v13 = vrot.slane %v5668_v60, 1  ;;  %v5676_v8 = vrot.slane %v5675_v21, 1 }
 0x65b   : > { %v5593_v43 = vadd.f32 %v5585_v30, %v9651_v50  ;;  %v5594_v63 = vadd.f32 %v5592_v29, %v9653_v2  ;;  %v5689_v58 = vrot.slane %v5688_v20, 4  ;;  %v5696_v27 = vrot.slane %v5695_v47, 4 }
 0x65c   : > { %v5654_v22 = vadd.f32 %v5646_v11, %v5569_v46  ;;  %v5655_v56 = vadd.f32 %v5653_v37, %v5570_v34  ;;  %v5670_v10 = vadd.f32 %v5669_v13, %v5668_v60  ;;  %v5677_v9 = vadd.f32 %v5676_v8, %v5675_v21 }
 0x65d   : > { %v5608_v44 = vrot.slane %v5607_v17, 1  ;;  %v5615_v40 = vrot.slane %v5614_v57, 1  ;;  %v5690_v5 = vadd.f32 %v5689_v58, %v5688_v20  ;;  %v5697_v3 = vadd.f32 %v5696_v27, %v5695_v47 }
 0x65e   : > { %v5678_v49 = vadd.f32 %v5670_v10, %v5593_v43  ;;  %v5679_v12 = vadd.f32 %v5677_v9, %v5594_v63 }
 0x65f   : > { %v5691_v55 = vrot.slane %v5690_v5, 2  ;;  %v5698_v0 = vrot.slane %v5697_v3, 2  ;;  %v5609_v28 = vadd.f32 %v5608_v44, %v5607_v17  ;;  %v5616_v2 = vadd.f32 %v5615_v40, %v5614_v57 }
 0x660   : > { %v5704_v42 = vsel %vm1364_vm10, %v5654_v22, %v5678_v49  ;;  %v5705_v50 = vsel %vm1364_vm10, %v5655_v56, %v5679_v12 }
 0x661   : > { %v5692_v31 = vadd.f32 %v5691_v55, %v5690_v5  ;;  %v5699_v16 = vadd.f32 %v5698_v0, %v5697_v3  ;;  %v5617_v38 = vadd.f32 %v5609_v28, %v5532_v41  ;;  %v5618_v6 = vadd.f32 %v5616_v2, %v5533_v36 }
 0x663   : > { %v5693_v54 = vrot.slane %v5692_v31, 1  ;;  %v5700_v14 = vrot.slane %v5699_v16, 1 }
 0x665   : > { %v5694_v51 = vadd.f32 %v5693_v54, %v5692_v31  ;;  %v5701_v1 = vadd.f32 %v5700_v14, %v5699_v16 }
 0x667   : > { %v5702_v25 = vadd.f32 %v5694_v51, %v5617_v38  ;;  %v5703_v61 = vadd.f32 %v5701_v1, %v5618_v6 }
 0x669   : > { %v5706_v26 = vsel %vm1367_vm11, %v5704_v42, %v5702_v25  ;;  %v5707_v52 = vsel %vm1367_vm11, %v5705_v50, %v5703_v61 }
 0x66a   : > { %v5710_v4 = vrot.slane %v5707_v52, 4 }
 0x66c   : > { %v5711_v45 = vsel %vm353_vm2, %v5706_v26, %v5710_v4 }
 0x66d   : > { %6011 = vst [vmem:[%s7316_s16 + $0x10] sm:$0x77] %v5711_v45 }
 0x66e PF: > { %s18_s24 = sadd.s32 1, %s6074_s24  }
 0x66f   : > { %p15_p7 = scmp.ge.s32.totalorder %s18_s24, 4  }
 0x671   :  { %17 = sbr.rel (!%p15_p7) target bundleno = 1 (0x1), region = 156 }
 0x676   :  { %5736 = vsyncpa [#allocation3], 1 }
 0x677   :  { %5738 = vsyncpa [#allocation3 + $0x1], 1 }

</bundles_post_ra>
